<compile_context>
chip_gen: v6e
topology: v6e:2x2x1
jax: 0.10.0
libtpu: 0.0.40
codegen_flags: <defaults>
</compile_context>

<pallas_src>
import math

import jax
import jax.numpy as jnp
from jax.experimental import pallas as pl
from jax.experimental.pallas import tpu as pltpu

OBS_DIM = 16
HID = 64
OUT_DIM = 1
SEQ_LEN = 15
NUM_HEADS = 2
NUM_LAYERS = 3
HEAD_DIM = HID // NUM_HEADS
S = SEQ_LEN + 1            # 15 history slots + 1 vision slot
PACK_W = 32                # packed input: [obs[:16] | action(3) | zero pad]
OUT_PAD = 8                # final projection padded to 8 lanes (real col = 0)
SLAB_COLS = 4 * HID        # 256: widest fused weight (fc_w2) / bias (fc_b2)


def _round_up(x, m):
    return (x + m - 1) // m * m


# --------------------------------------------------------------------------- #
# Static slab layouts (shared by wrapper packing and kernel unpacking)
# --------------------------------------------------------------------------- #
def _build_wslab_layout():
    layout = {}
    off = 0

    def add(name, rows, cols):
        nonlocal off
        layout[name] = (off, rows, cols)
        off += _round_up(rows, 16)          # bf16 sublane-tile alignment

    add("va_w1", PACK_W, 2 * HID)
    add("va_w2", 2 * HID, 2 * HID)
    add("hh_w1", 4, HID)
    add("hh_w2", HID, HID)
    for l in range(NUM_LAYERS):
        add(f"l{l}_wqkv", HID, 3 * HID)
        add(f"l{l}_wo", HID, HID)
        add(f"l{l}_ff_w1", HID, HID)
        add(f"l{l}_ff_w2", HID, HID)
    add("fc_w1", HID, 2 * HID)
    add("fc_w2", 2 * HID, 4 * HID)
    add("pr_w1", 2 * HID, HID)
    add("pr_w2", HID, OUT_PAD)
    return layout, _round_up(off, 16)


WSLAB_LAYOUT, WSLAB_ROWS = _build_wslab_layout()


def _build_bslab_layout():
    per_layer = ["bqkv", "bo", "ln1_g", "ln1_b", "ff_b1", "ff_b2", "ln2_g", "ln2_b"]
    names = (["va_b1", "va_b2", "hh_b1", "hh_b2"]
             + [f"l{l}_{n}" for l in range(NUM_LAYERS) for n in per_layer]
             + ["fc_b1", "fc_b2", "pr_b1", "pr_b2"])
    cols = {"va_b1": 2 * HID, "va_b2": 2 * HID, "hh_b1": HID, "hh_b2": HID,
            "fc_b1": 2 * HID, "fc_b2": 4 * HID, "pr_b1": HID, "pr_b2": OUT_PAD}
    for l in range(NUM_LAYERS):
        cols[f"l{l}_bqkv"] = 3 * HID
        for n in per_layer[1:]:
            cols[f"l{l}_{n}"] = HID
    layout = {name: (i, cols[name]) for i, name in enumerate(names)}
    return layout, _round_up(len(names), 8)


BSLAB_LAYOUT, BSLAB_ROWS = _build_bslab_layout()


# --------------------------------------------------------------------------- #
# Kernel
# --------------------------------------------------------------------------- #
def directnet_kernel(pk_ref, hist_ref, w_ref, b_ref, out_ref):
    """pk (Bt,32) f32, hist (Bt,15,4) f32, weight slab bf16, bias slab f32,
    out (1, 8, Bt) f32 (row 0 holds the prediction, transposed lane-dense)."""
    Bt = pk_ref.shape[0]
    bf16 = jnp.bfloat16

    def W(name, r0=0, nrows=None):
        off, rows, cols = WSLAB_LAYOUT[name]
        nrows = rows if nrows is None else nrows
        return w_ref[off + r0:off + r0 + nrows, :cols]

    def B_(name):
        r, c = BSLAB_LAYOUT[name]
        return b_ref[r:r + 1, :c]

    def mm(x, w):
        # MXU matmul: bf16 operands, f32 accumulation (weights are bf16 already).
        return jnp.dot(x.astype(bf16), w, preferred_element_type=jnp.float32)

    def mlp2(x, w1, b1, w2, b2):
        # Linear -> (Dropout=id) -> ReLU -> Linear -> (Dropout=id)
        h = jnp.maximum(mm(x, w1) + b1, 0.0)
        return mm(h, w2) + b2

    def layer_norm(x, g, b):
        mu = jnp.mean(x, axis=-1, keepdims=True)
        var = jnp.mean(jnp.square(x - mu), axis=-1, keepdims=True)
        return (x - mu) * jax.lax.rsqrt(var + 1e-5) * g + b

    # --- fused vision + action heads -> feat = [visions | act_emb] ----------
    feat = mlp2(pk_ref[...], W("va_w1"), B_("va_b1"),
                W("va_w2"), B_("va_b2"))                           # (Bt, 2H)
    visions = feat[:, :HID]                                        # (Bt, H)

    # --- history head on the 15 real slots (16th slot is overwritten) -------
    hist2 = hist_ref[...].reshape(Bt * SEQ_LEN, 4)
    hist_emb = mlp2(hist2, W("hh_w1"), B_("hh_b1"),
                    W("hh_w2"), B_("hh_b2")).reshape(Bt, SEQ_LEN, HID)

    # last slot = visions (concat instead of iota+where overwrite)
    x = jnp.concatenate([hist_emb, visions[:, None, :]], axis=1)   # (Bt, S, H)

    # --- transformer encoder (post-norm, ReLU FF, 2 heads) ------------------
    # attention scale already folded into wq / bq at pack time
    for l in range(NUM_LAYERS):
        pre = f"l{l}_"
        x2 = x.reshape(Bt * S, HID)

        # fused QKV projection; cast to bf16 once for all MXU consumers
        qkv = (mm(x2, W(pre + "wqkv")) + B_(pre + "bqkv")).astype(bf16)

        attn = None
        for h in range(NUM_HEADS):
            lo = h * HEAD_DIM
            qh = qkv[:, lo:lo + HEAD_DIM].reshape(Bt, S, HEAD_DIM)
            kh = qkv[:, HID + lo:HID + lo + HEAD_DIM].reshape(Bt, S, HEAD_DIM)
            vh = qkv[:, 2 * HID + lo:2 * HID + lo + HEAD_DIM].reshape(Bt, S, HEAD_DIM)

            s = jnp.einsum("bqd,bkd->bqk", qh, kh,
                           preferred_element_type=jnp.float32)     # (Bt,S,S)
            s = s - jnp.max(s, axis=-1, keepdims=True)
            e = jnp.exp(s)
            p = e * pl.reciprocal(jnp.sum(e, axis=-1, keepdims=True), approx=True)
            ctx = jnp.einsum("bqk,bkd->bqd", p.astype(bf16), vh,
                             preferred_element_type=jnp.float32)   # (Bt,S,hd)

            # per-head output projection (row block of wo) -- no head concat
            part = mm(ctx.reshape(Bt * S, HEAD_DIM),
                      W(pre + "wo", r0=lo, nrows=HEAD_DIM))
            attn = part if attn is None else attn + part
        attn = (attn + B_(pre + "bo")).reshape(Bt, S, HID)

        x = layer_norm(x + attn, B_(pre + "ln1_g"), B_(pre + "ln1_b"))
        ff = mlp2(x.reshape(Bt * S, HID),
                  W(pre + "ff_w1"), B_(pre + "ff_b1"),
                  W(pre + "ff_w2"), B_(pre + "ff_b2")).reshape(Bt, S, HID)
        x = layer_norm(x + ff, B_(pre + "ln2_g"), B_(pre + "ln2_b"))

    seq_last = x[:, S - 1, :]                                      # (Bt, H)

    # --- fused FiLM heads (fc_w | fc_b) + prediction head -------------------
    wb = mlp2(seq_last, W("fc_w1"), B_("fc_b1"),
              W("fc_w2"), B_("fc_b2"))                             # (Bt, 4H)
    pred_in = feat * wb[:, :2 * HID] + wb[:, 2 * HID:]             # (Bt, 2H)
    pred = mlp2(pred_in, W("pr_w1"), B_("pr_b1"),
                W("pr_w2"), B_("pr_b2"))                           # (Bt, 8)

    # lane-dense transposed store; wrapper reads row 0
    out_ref[...] = jnp.transpose(pred).reshape(1, OUT_PAD, Bt)


# --------------------------------------------------------------------------- #
# Parameter construction (natural / PyTorch-like layout)
# --------------------------------------------------------------------------- #
def make_params(key):
    """Deterministic synthetic init (PyTorch Linear-style uniform bounds)."""
    params = {}
    keys = jax.random.split(key, 64)
    ki = [0]

    def nk():
        k = keys[ki[0]]
        ki[0] += 1
        return k

    def lin(wname, bname, fan_in, fan_out):
        bound = 1.0 / math.sqrt(fan_in)
        params[wname] = jax.random.uniform(
            nk(), (fan_in, fan_out), jnp.float32, -bound, bound)
        params[bname] = jax.random.uniform(
            nk(), (1, fan_out), jnp.float32, -bound, bound)

    lin("vh_w1", "vh_b1", OBS_DIM, HID)
    lin("vh_w2", "vh_b2", HID, HID)
    lin("ah_w1", "ah_b1", 3, HID)
    lin("ah_w2", "ah_b2", HID, HID)
    lin("hh_w1", "hh_b1", 4, HID)
    lin("hh_w2", "hh_b2", HID, HID)
    for l in range(NUM_LAYERS):
        p = f"l{l}_"
        lin(p + "wq", p + "bq", HID, HID)
        lin(p + "wk", p + "bk", HID, HID)
        lin(p + "wv", p + "bv", HID, HID)
        lin(p + "wo", p + "bo", HID, HID)
        params[p + "ln1_g"] = jnp.ones((1, HID), jnp.float32)
        params[p + "ln1_b"] = jnp.zeros((1, HID), jnp.float32)
        lin(p + "ff_w1", p + "ff_b1", HID, HID)
        lin(p + "ff_w2", p + "ff_b2", HID, HID)
        params[p + "ln2_g"] = jnp.ones((1, HID), jnp.float32)
        params[p + "ln2_b"] = jnp.zeros((1, HID), jnp.float32)
    lin("fw_w1", "fw_b1", HID, HID)
    lin("fw_w2", "fw_b2", HID, 2 * HID)
    lin("fb_w1", "fb_b1", HID, HID)
    lin("fb_w2", "fb_b2", HID, 2 * HID)
    lin("pr_w1", "pr_b1", 2 * HID, HID)
    lin("pr_w2", "pr_b2", HID, OUT_DIM)
    return params


# --------------------------------------------------------------------------- #
# Wrapper-side fusion / scaling / slab packing
# --------------------------------------------------------------------------- #
def _block_diag(a, b):
    ra, ca = a.shape
    rb, cb = b.shape
    top = jnp.concatenate([a, jnp.zeros((ra, cb), a.dtype)], axis=1)
    bot = jnp.concatenate([jnp.zeros((rb, ca), b.dtype), b], axis=1)
    return jnp.concatenate([top, bot], axis=0)


def _pack_kernel_params(p):
    """Fuse / pad / scale the natural params and pack into the two slabs."""
    f32 = jnp.float32
    scale = 1.0 / math.sqrt(HEAD_DIM)
    wd, bd = {}, {}

    # fused vision+action head (packed input = [obs16 | act3 | 0*13], width 32)
    w_va1 = jnp.zeros((PACK_W, 2 * HID), f32)
    w_va1 = w_va1.at[:OBS_DIM, :HID].set(p["vh_w1"])
    w_va1 = w_va1.at[OBS_DIM:OBS_DIM + 3, HID:].set(p["ah_w1"])
    wd["va_w1"] = w_va1
    bd["va_b1"] = jnp.concatenate([p["vh_b1"], p["ah_b1"]], axis=1)
    wd["va_w2"] = _block_diag(p["vh_w2"], p["ah_w2"])
    bd["va_b2"] = jnp.concatenate([p["vh_b2"], p["ah_b2"]], axis=1)

    wd["hh_w1"], bd["hh_b1"] = p["hh_w1"], p["hh_b1"]
    wd["hh_w2"], bd["hh_b2"] = p["hh_w2"], p["hh_b2"]

    for l in range(NUM_LAYERS):
        pre = f"l{l}_"
        # attention scale folded into the query projection (weights + bias)
        wd[pre + "wqkv"] = jnp.concatenate(
            [p[pre + "wq"] * scale, p[pre + "wk"], p[pre + "wv"]], axis=1)
        bd[pre + "bqkv"] = jnp.concatenate(
            [p[pre + "bq"] * scale, p[pre + "bk"], p[pre + "bv"]], axis=1)
        wd[pre + "wo"], bd[pre + "bo"] = p[pre + "wo"], p[pre + "bo"]
        bd[pre + "ln1_g"], bd[pre + "ln1_b"] = p[pre + "ln1_g"], p[pre + "ln1_b"]
        wd[pre + "ff_w1"], bd[pre + "ff_b1"] = p[pre + "ff_w1"], p[pre + "ff_b1"]
        wd[pre + "ff_w2"], bd[pre + "ff_b2"] = p[pre + "ff_w2"], p[pre + "ff_b2"]
        bd[pre + "ln2_g"], bd[pre + "ln2_b"] = p[pre + "ln2_g"], p[pre + "ln2_b"]

    # fused FiLM heads fc_w | fc_b
    wd["fc_w1"] = jnp.concatenate([p["fw_w1"], p["fb_w1"]], axis=1)
    bd["fc_b1"] = jnp.concatenate([p["fw_b1"], p["fb_b1"]], axis=1)
    wd["fc_w2"] = _block_diag(p["fw_w2"], p["fb_w2"])
    bd["fc_b2"] = jnp.concatenate([p["fw_b2"], p["fb_b2"]], axis=1)

    # prediction head; final projection padded to 8 lanes (real col = 0)
    wd["pr_w1"], bd["pr_b1"] = p["pr_w1"], p["pr_b1"]
    wd["pr_w2"] = jnp.zeros((HID, OUT_PAD), f32).at[:, :OUT_DIM].set(p["pr_w2"])
    bd["pr_b2"] = jnp.zeros((1, OUT_PAD), f32).at[:, :OUT_DIM].set(p["pr_b2"])

    wslab = jnp.zeros((WSLAB_ROWS, SLAB_COLS), f32)
    for name, (off, rows, cols) in WSLAB_LAYOUT.items():
        wslab = wslab.at[off:off + rows, :cols].set(wd[name])
    bslab = jnp.zeros((BSLAB_ROWS, SLAB_COLS), f32)
    for name, (r, c) in BSLAB_LAYOUT.items():
        bslab = bslab.at[r:r + 1, :c].set(bd[name])
    return wslab.astype(jnp.bfloat16), bslab


def _choose_bt(B):
    # >=2 grid steps whenever B > 8 (so v7x can shard across both TensorCores),
    # tiles up to 256 rows for large B (amortizes serial step overhead on
    # v5e/v6e while keeping VMEM use at a few MiB everywhere).
    if B <= 8:
        return _round_up(max(B, 1), 8)
    return min(256, _round_up((B + 1) // 2, 8))


# --------------------------------------------------------------------------- #
# Forward
# --------------------------------------------------------------------------- #
@jax.jit
def directnet_forward(params, observations, actions):
    B = observations.shape[0]
    f32 = jnp.float32
    observations = observations.astype(f32)
    actions = actions.astype(f32)

    bt = _choose_bt(B)
    num_tiles = -(-B // bt)
    b_pad = num_tiles * bt

    # lane-dense packed input: [obs[:, :16] | actions | zero pad]  (B_pad, 32)
    packed = jnp.zeros((b_pad, PACK_W), f32)
    packed = packed.at[:B, :OBS_DIM].set(observations[:, :OBS_DIM])
    packed = packed.at[:B, OBS_DIM:OBS_DIM + 3].set(actions)

    # history slots (B_pad, 15, 4): seq[:, i, :] = obs[:, 16+4i : 20+4i]
    hist = jnp.zeros((b_pad, SEQ_LEN, 4), f32)
    hist = hist.at[:B].set(
        observations[:, OBS_DIM:OBS_DIM + SEQ_LEN * 4].reshape(B, SEQ_LEN, 4))

    wslab, bslab = _pack_kernel_params(params)

    out = pl.pallas_call(
        directnet_kernel,
        out_shape=jax.ShapeDtypeStruct((num_tiles, OUT_PAD, bt), f32),
        grid=(num_tiles,),
        in_specs=[
            pl.BlockSpec((bt, PACK_W), lambda i: (i, 0)),
            pl.BlockSpec((bt, SEQ_LEN, 4), lambda i: (i, 0, 0)),
            # weight / bias slabs: constant index_map -> stay VMEM-resident
            pl.BlockSpec((WSLAB_ROWS, SLAB_COLS), lambda i: (0, 0)),
            pl.BlockSpec((BSLAB_ROWS, SLAB_COLS), lambda i: (0, 0)),
        ],
        out_specs=pl.BlockSpec((1, OUT_PAD, bt), lambda i: (i, 0, 0)),
        compiler_params=pltpu.CompilerParams(
            dimension_semantics=("parallel",),   # megacore sharding on v7x
            vmem_limit_bytes=32 * 1024 * 1024,   # footprint is a few MiB
        ),
    )(packed, hist, wslab, bslab)

    # row 0 of each (8, bt) output tile holds the real prediction column;
    # matches torch `.squeeze()` for output_dim == 1
    return out[:, 0, :].reshape(-1)[:B]


if __name__ == "__main__":
    key = jax.random.PRNGKey(0)
    kp, ko, ka = jax.random.split(key, 3)
    params = make_params(kp)

    B = 2
    observations = jax.random.normal(
        ko, (B, OBS_DIM + SEQ_LEN * 4), jnp.float32)   # (2, 76)
    actions = jax.random.normal(ka, (B, 3), jnp.float32)

    out = directnet_forward(params, observations, actions)
    jax.block_until_ready(out)
    assert out.shape == (B,)
    assert bool(jnp.all(jnp.isfinite(out)))
    print("KERNEL_OK")
</pallas_src>

<mosaic_0001>
module attributes {stable_mosaic.version = 11 : i64} {
  func.func @directnet_kernel(%arg0: i32, %arg1: memref<8x32xf32, #tpu.memory_space<vmem>>, %arg2: memref<8x15x4xf32, #tpu.memory_space<vmem>>, %arg3: memref<1392x256xbf16, #tpu.memory_space<vmem>>, %arg4: memref<32x256xf32, #tpu.memory_space<vmem>>, %arg5: memref<1x8x8xf32, #tpu.memory_space<vmem>>) attributes {dimension_semantics = [#tpu.dimension_semantics<parallel>], iteration_bounds = array<i64: 1>, scalar_prefetch = 0 : i64, scratch_operands = 0 : i64, tpu.core_type = #tpu.core_type<tc>, window_params = [{transform_indices = @transform_0, window_bounds = array<i64: 8, 32>}, {transform_indices = @transform_1, window_bounds = array<i64: 8, 15, 4>}, {pipeline_mode = #tpu.pipeline_mode<synchronous>, transform_indices = @transform_2, window_bounds = array<i64: 1392, 256>}, {pipeline_mode = #tpu.pipeline_mode<synchronous>, transform_indices = @transform_3, window_bounds = array<i64: 32, 256>}, {transform_indices = @transform_4, window_bounds = array<i64: 1, 8, 8>}]} {
    %c0 = arith.constant 0 : index
    %c0_0 = arith.constant 0 : index
    %0 = vector.load %arg1[%c0, %c0_0] : memref<8x32xf32, #tpu.memory_space<vmem>>, vector<8x32xf32>
    %c0_1 = arith.constant 0 : index
    %c0_2 = arith.constant 0 : index
    %1 = vector.load %arg3[%c0_1, %c0_2] : memref<1392x256xbf16, #tpu.memory_space<vmem>>, vector<32x128xbf16>
    %c0_3 = arith.constant 0 : index
    %c0_4 = arith.constant 0 : index
    %2 = vector.load %arg4[%c0_3, %c0_4] : memref<32x256xf32, #tpu.memory_space<vmem>>, vector<1x128xf32>
    %c32 = arith.constant 32 : index
    %c0_5 = arith.constant 0 : index
    %3 = vector.load %arg3[%c32, %c0_5] : memref<1392x256xbf16, #tpu.memory_space<vmem>>, vector<128x128xbf16>
    %c1 = arith.constant 1 : index
    %c0_6 = arith.constant 0 : index
    %4 = vector.load %arg4[%c1, %c0_6] : memref<32x256xf32, #tpu.memory_space<vmem>>, vector<1x128xf32>
    %5 = arith.truncf %0 : vector<8x32xf32> to vector<8x32xbf16>
    %cst = arith.constant dense<0.000000e+00> : vector<8x128xf32>
    %6 = tpu.matmul %5, %1, %cst {dimension_numbers = #tpu.dot_dimension_numbers<[1], [0], [0], [1], [0, 0, 1, 1], [], []>} : vector<8x32xbf16>, vector<32x128xbf16>, vector<8x128xf32> -> vector<8x128xf32>
    %7 = vector.broadcast %2 : vector<1x128xf32> to vector<8x128xf32>
    %8 = arith.addf %6, %7 : vector<8x128xf32>
    %cst_7 = arith.constant 0.000000e+00 : f32
    %9 = vector.broadcast %cst_7 : f32 to vector<8x128xf32>
    %10 = arith.maximumf %8, %9 : vector<8x128xf32>
    %11 = arith.truncf %10 : vector<8x128xf32> to vector<8x128xbf16>
    %cst_8 = arith.constant dense<0.000000e+00> : vector<8x128xf32>
    %12 = tpu.matmul %11, %3, %cst_8 {dimension_numbers = #tpu.dot_dimension_numbers<[1], [0], [0], [1], [0, 0, 1, 1], [], []>} : vector<8x128xbf16>, vector<128x128xbf16>, vector<8x128xf32> -> vector<8x128xf32>
    %13 = vector.broadcast %4 : vector<1x128xf32> to vector<8x128xf32>
    %14 = arith.addf %12, %13 : vector<8x128xf32>
    %15 = vector.extract_strided_slice %14 {offsets = [0, 0], sizes = [8, 64], strides = [1, 1]} : vector<8x128xf32> to vector<8x64xf32>
    %c0_9 = arith.constant 0 : index
    %c0_10 = arith.constant 0 : index
    %c0_11 = arith.constant 0 : index
    %16 = vector.load %arg2[%c0_9, %c0_10, %c0_11] : memref<8x15x4xf32, #tpu.memory_space<vmem>>, vector<8x15x4xf32>
    %17 = vector.shape_cast %16 : vector<8x15x4xf32> to vector<120x4xf32>
    %c160 = arith.constant 160 : index
    %c0_12 = arith.constant 0 : index
    %18 = vector.load %arg3[%c160, %c0_12] : memref<1392x256xbf16, #tpu.memory_space<vmem>>, vector<4x64xbf16>
    %c2 = arith.constant 2 : index
    %c0_13 = arith.constant 0 : index
    %19 = vector.load %arg4[%c2, %c0_13] : memref<32x256xf32, #tpu.memory_space<vmem>>, vector<1x64xf32>
    %c176 = arith.constant 176 : index
    %c0_14 = arith.constant 0 : index
    %20 = vector.load %arg3[%c176, %c0_14] : memref<1392x256xbf16, #tpu.memory_space<vmem>>, vector<64x64xbf16>
    %c3 = arith.constant 3 : index
    %c0_15 = arith.constant 0 : index
    %21 = vector.load %arg4[%c3, %c0_15] : memref<32x256xf32, #tpu.memory_space<vmem>>, vector<1x64xf32>
    %22 = arith.truncf %17 : vector<120x4xf32> to vector<120x4xbf16>
    %cst_16 = arith.constant dense<0.000000e+00> : vector<120x64xf32>
    %23 = tpu.matmul %22, %18, %cst_16 {dimension_numbers = #tpu.dot_dimension_numbers<[1], [0], [0], [1], [0, 0, 1, 1], [], []>} : vector<120x4xbf16>, vector<4x64xbf16>, vector<120x64xf32> -> vector<120x64xf32>
    %24 = vector.broadcast %19 : vector<1x64xf32> to vector<120x64xf32>
    %25 = arith.addf %23, %24 : vector<120x64xf32>
    %cst_17 = arith.constant 0.000000e+00 : f32
    %26 = vector.broadcast %cst_17 : f32 to vector<120x64xf32>
    %27 = arith.maximumf %25, %26 : vector<120x64xf32>
    %28 = arith.truncf %27 : vector<120x64xf32> to vector<120x64xbf16>
    %cst_18 = arith.constant dense<0.000000e+00> : vector<120x64xf32>
    %29 = tpu.matmul %28, %20, %cst_18 {dimension_numbers = #tpu.dot_dimension_numbers<[1], [0], [0], [1], [0, 0, 1, 1], [], []>} : vector<120x64xbf16>, vector<64x64xbf16>, vector<120x64xf32> -> vector<120x64xf32>
    %30 = vector.broadcast %21 : vector<1x64xf32> to vector<120x64xf32>
    %31 = arith.addf %29, %30 : vector<120x64xf32>
    %32 = vector.shape_cast %31 : vector<120x64xf32> to vector<8x15x64xf32>
    %33 = vector.shape_cast %15 : vector<8x64xf32> to vector<8x1x64xf32>
    %34 = tpu.concatenate %32, %33 in 1 : vector<8x15x64xf32>, vector<8x1x64xf32> -> vector<8x16x64xf32>
    %35 = vector.shape_cast %34 : vector<8x16x64xf32> to vector<128x64xf32>
    %c240 = arith.constant 240 : index
    %c0_19 = arith.constant 0 : index
    %36 = vector.load %arg3[%c240, %c0_19] : memref<1392x256xbf16, #tpu.memory_space<vmem>>, vector<64x192xbf16>
    %37 = arith.truncf %35 : vector<128x64xf32> to vector<128x64xbf16>
    %cst_20 = arith.constant dense<0.000000e+00> : vector<128x192xf32>
    %38 = tpu.matmul %37, %36, %cst_20 {dimension_numbers = #tpu.dot_dimension_numbers<[1], [0], [0], [1], [0, 0, 1, 1], [], []>} : vector<128x64xbf16>, vector<64x192xbf16>, vector<128x192xf32> -> vector<128x192xf32>
    %c4 = arith.constant 4 : index
    %c0_21 = arith.constant 0 : index
    %39 = vector.load %arg4[%c4, %c0_21] : memref<32x256xf32, #tpu.memory_space<vmem>>, vector<1x192xf32>
    %40 = vector.broadcast %39 : vector<1x192xf32> to vector<128x192xf32>
    %41 = arith.addf %38, %40 : vector<128x192xf32>
    %42 = arith.truncf %41 : vector<128x192xf32> to vector<128x192xbf16>
    %43 = vector.extract_strided_slice %42 {offsets = [0, 0], sizes = [128, 32], strides = [1, 1]} : vector<128x192xbf16> to vector<128x32xbf16>
    %44 = vector.shape_cast %43 : vector<128x32xbf16> to vector<8x16x32xbf16>
    %45 = vector.extract_strided_slice %42 {offsets = [0, 64], sizes = [128, 32], strides = [1, 1]} : vector<128x192xbf16> to vector<128x32xbf16>
    %46 = vector.shape_cast %45 : vector<128x32xbf16> to vector<8x16x32xbf16>
    %47 = vector.extract_strided_slice %42 {offsets = [0, 128], sizes = [128, 32], strides = [1, 1]} : vector<128x192xbf16> to vector<128x32xbf16>
    %48 = vector.shape_cast %47 : vector<128x32xbf16> to vector<8x16x32xbf16>
    "tpu.trace_start"() <{level = 10 : i32, message = "bqd,bkd->bqk"}> : () -> ()
    %cst_22 = arith.constant dense<0.000000e+00> : vector<8x16x16xf32>
    %49 = tpu.matmul %44, %46, %cst_22 {dimension_numbers = #tpu.dot_dimension_numbers<[2], [2], [1], [1], [0, 0, 0, 1, 1, 1], [0], [0]>} : vector<8x16x32xbf16>, vector<8x16x32xbf16>, vector<8x16x16xf32> -> vector<8x16x16xf32>
    "tpu.trace_stop"() : () -> ()
    %cst_23 = arith.constant dense<0xFF800000> : vector<8x16xf32>
    %50 = vector.multi_reduction <maximumf>, %49, %cst_23 [2] : vector<8x16x16xf32> to vector<8x16xf32>
    %51 = vector.shape_cast %50 : vector<8x16xf32> to vector<8x16x1xf32>
    %52 = vector.broadcast %51 : vector<8x16x1xf32> to vector<8x16x16xf32>
    %53 = arith.subf %49, %52 : vector<8x16x16xf32>
    %54 = math.exp %53 : vector<8x16x16xf32>
    %cst_24 = arith.constant dense<0.000000e+00> : vector<8x16xf32>
    %55 = vector.multi_reduction <add>, %54, %cst_24 [2] : vector<8x16x16xf32> to vector<8x16xf32>
    %56 = vector.shape_cast %55 : vector<8x16xf32> to vector<8x16x1xf32>
    %57 = tpu.reciprocal %56 {approx = true} : vector<8x16x1xf32> -> vector<8x16x1xf32>
    %58 = vector.broadcast %57 : vector<8x16x1xf32> to vector<8x16x16xf32>
    %59 = arith.mulf %54, %58 : vector<8x16x16xf32>
    %60 = arith.truncf %59 : vector<8x16x16xf32> to vector<8x16x16xbf16>
    "tpu.trace_start"() <{level = 10 : i32, message = "bqk,bkd->bqd"}> : () -> ()
    %cst_25 = arith.constant dense<0.000000e+00> : vector<8x16x32xf32>
    %61 = tpu.matmul %60, %48, %cst_25 {dimension_numbers = #tpu.dot_dimension_numbers<[2], [1], [1], [2], [0, 0, 0, 1, 1, 2], [0], [0]>} : vector<8x16x16xbf16>, vector<8x16x32xbf16>, vector<8x16x32xf32> -> vector<8x16x32xf32>
    "tpu.trace_stop"() : () -> ()
    %62 = vector.shape_cast %61 : vector<8x16x32xf32> to vector<128x32xf32>
    %c304 = arith.constant 304 : index
    %c0_26 = arith.constant 0 : index
    %63 = vector.load %arg3[%c304, %c0_26] : memref<1392x256xbf16, #tpu.memory_space<vmem>>, vector<32x64xbf16>
    %64 = arith.truncf %62 : vector<128x32xf32> to vector<128x32xbf16>
    %cst_27 = arith.constant dense<0.000000e+00> : vector<128x64xf32>
    %65 = tpu.matmul %64, %63, %cst_27 {dimension_numbers = #tpu.dot_dimension_numbers<[1], [0], [0], [1], [0, 0, 1, 1], [], []>} : vector<128x32xbf16>, vector<32x64xbf16>, vector<128x64xf32> -> vector<128x64xf32>
    %66 = vector.extract_strided_slice %42 {offsets = [0, 32], sizes = [128, 32], strides = [1, 1]} : vector<128x192xbf16> to vector<128x32xbf16>
    %67 = vector.shape_cast %66 : vector<128x32xbf16> to vector<8x16x32xbf16>
    %68 = vector.extract_strided_slice %42 {offsets = [0, 96], sizes = [128, 32], strides = [1, 1]} : vector<128x192xbf16> to vector<128x32xbf16>
    %69 = vector.shape_cast %68 : vector<128x32xbf16> to vector<8x16x32xbf16>
    %70 = vector.extract_strided_slice %42 {offsets = [0, 160], sizes = [128, 32], strides = [1, 1]} : vector<128x192xbf16> to vector<128x32xbf16>
    %71 = vector.shape_cast %70 : vector<128x32xbf16> to vector<8x16x32xbf16>
    "tpu.trace_start"() <{level = 10 : i32, message = "bqd,bkd->bqk"}> : () -> ()
    %cst_28 = arith.constant dense<0.000000e+00> : vector<8x16x16xf32>
    %72 = tpu.matmul %67, %69, %cst_28 {dimension_numbers = #tpu.dot_dimension_numbers<[2], [2], [1], [1], [0, 0, 0, 1, 1, 1], [0], [0]>} : vector<8x16x32xbf16>, vector<8x16x32xbf16>, vector<8x16x16xf32> -> vector<8x16x16xf32>
    "tpu.trace_stop"() : () -> ()
    %cst_29 = arith.constant dense<0xFF800000> : vector<8x16xf32>
    %73 = vector.multi_reduction <maximumf>, %72, %cst_29 [2] : vector<8x16x16xf32> to vector<8x16xf32>
    %74 = vector.shape_cast %73 : vector<8x16xf32> to vector<8x16x1xf32>
    %75 = vector.broadcast %74 : vector<8x16x1xf32> to vector<8x16x16xf32>
    %76 = arith.subf %72, %75 : vector<8x16x16xf32>
    %77 = math.exp %76 : vector<8x16x16xf32>
    %cst_30 = arith.constant dense<0.000000e+00> : vector<8x16xf32>
    %78 = vector.multi_reduction <add>, %77, %cst_30 [2] : vector<8x16x16xf32> to vector<8x16xf32>
    %79 = vector.shape_cast %78 : vector<8x16xf32> to vector<8x16x1xf32>
    %80 = tpu.reciprocal %79 {approx = true} : vector<8x16x1xf32> -> vector<8x16x1xf32>
    %81 = vector.broadcast %80 : vector<8x16x1xf32> to vector<8x16x16xf32>
    %82 = arith.mulf %77, %81 : vector<8x16x16xf32>
    %83 = arith.truncf %82 : vector<8x16x16xf32> to vector<8x16x16xbf16>
    "tpu.trace_start"() <{level = 10 : i32, message = "bqk,bkd->bqd"}> : () -> ()
    %cst_31 = arith.constant dense<0.000000e+00> : vector<8x16x32xf32>
    %84 = tpu.matmul %83, %71, %cst_31 {dimension_numbers = #tpu.dot_dimension_numbers<[2], [1], [1], [2], [0, 0, 0, 1, 1, 2], [0], [0]>} : vector<8x16x16xbf16>, vector<8x16x32xbf16>, vector<8x16x32xf32> -> vector<8x16x32xf32>
    "tpu.trace_stop"() : () -> ()
    %85 = vector.shape_cast %84 : vector<8x16x32xf32> to vector<128x32xf32>
    %c336 = arith.constant 336 : index
    %c0_32 = arith.constant 0 : index
    %86 = vector.load %arg3[%c336, %c0_32] : memref<1392x256xbf16, #tpu.memory_space<vmem>>, vector<32x64xbf16>
    %87 = arith.truncf %85 : vector<128x32xf32> to vector<128x32xbf16>
    %cst_33 = arith.constant dense<0.000000e+00> : vector<128x64xf32>
    %88 = tpu.matmul %87, %86, %cst_33 {dimension_numbers = #tpu.dot_dimension_numbers<[1], [0], [0], [1], [0, 0, 1, 1], [], []>} : vector<128x32xbf16>, vector<32x64xbf16>, vector<128x64xf32> -> vector<128x64xf32>
    %89 = arith.addf %65, %88 : vector<128x64xf32>
    %c5 = arith.constant 5 : index
    %c0_34 = arith.constant 0 : index
    %90 = vector.load %arg4[%c5, %c0_34] : memref<32x256xf32, #tpu.memory_space<vmem>>, vector<1x64xf32>
    %91 = vector.broadcast %90 : vector<1x64xf32> to vector<128x64xf32>
    %92 = arith.addf %89, %91 : vector<128x64xf32>
    %93 = vector.shape_cast %92 : vector<128x64xf32> to vector<8x16x64xf32>
    %94 = arith.addf %34, %93 : vector<8x16x64xf32>
    %c6 = arith.constant 6 : index
    %c0_35 = arith.constant 0 : index
    %95 = vector.load %arg4[%c6, %c0_35] : memref<32x256xf32, #tpu.memory_space<vmem>>, vector<1x64xf32>
    %c7 = arith.constant 7 : index
    %c0_36 = arith.constant 0 : index
    %96 = vector.load %arg4[%c7, %c0_36] : memref<32x256xf32, #tpu.memory_space<vmem>>, vector<1x64xf32>
    %cst_37 = arith.constant dense<0.000000e+00> : vector<8x16xf32>
    %97 = vector.multi_reduction <add>, %94, %cst_37 [2] : vector<8x16x64xf32> to vector<8x16xf32>
    %98 = vector.shape_cast %97 : vector<8x16xf32> to vector<8x16x1xf32>
    %cst_38 = arith.constant 6.400000e+01 : f32
    %99 = vector.broadcast %cst_38 : f32 to vector<8x16x1xf32>
    %100 = arith.divf %98, %99 : vector<8x16x1xf32>
    %101 = vector.broadcast %100 : vector<8x16x1xf32> to vector<8x16x64xf32>
    %102 = arith.subf %94, %101 : vector<8x16x64xf32>
    %103 = arith.mulf %102, %102 : vector<8x16x64xf32>
    %cst_39 = arith.constant dense<0.000000e+00> : vector<8x16xf32>
    %104 = vector.multi_reduction <add>, %103, %cst_39 [2] : vector<8x16x64xf32> to vector<8x16xf32>
    %105 = vector.shape_cast %104 : vector<8x16xf32> to vector<8x16x1xf32>
    %cst_40 = arith.constant 6.400000e+01 : f32
    %106 = vector.broadcast %cst_40 : f32 to vector<8x16x1xf32>
    %107 = arith.divf %105, %106 : vector<8x16x1xf32>
    %108 = vector.broadcast %100 : vector<8x16x1xf32> to vector<8x16x64xf32>
    %109 = arith.subf %94, %108 : vector<8x16x64xf32>
    %cst_41 = arith.constant 9.99999974E-6 : f32
    %110 = vector.broadcast %cst_41 : f32 to vector<8x16x1xf32>
    %111 = arith.addf %107, %110 : vector<8x16x1xf32>
    %112 = math.rsqrt %111 : vector<8x16x1xf32>
    %113 = vector.broadcast %112 : vector<8x16x1xf32> to vector<8x16x64xf32>
    %114 = arith.mulf %109, %113 : vector<8x16x64xf32>
    %115 = vector.shape_cast %95 : vector<1x64xf32> to vector<1x1x64xf32>
    %116 = vector.broadcast %115 : vector<1x1x64xf32> to vector<8x16x64xf32>
    %117 = arith.mulf %114, %116 : vector<8x16x64xf32>
    %118 = vector.shape_cast %96 : vector<1x64xf32> to vector<1x1x64xf32>
    %119 = vector.broadcast %118 : vector<1x1x64xf32> to vector<8x16x64xf32>
    %120 = arith.addf %117, %119 : vector<8x16x64xf32>
    %121 = vector.shape_cast %120 : vector<8x16x64xf32> to vector<128x64xf32>
    %c368 = arith.constant 368 : index
    %c0_42 = arith.constant 0 : index
    %122 = vector.load %arg3[%c368, %c0_42] : memref<1392x256xbf16, #tpu.memory_space<vmem>>, vector<64x64xbf16>
    %c8 = arith.constant 8 : index
    %c0_43 = arith.constant 0 : index
    %123 = vector.load %arg4[%c8, %c0_43] : memref<32x256xf32, #tpu.memory_space<vmem>>, vector<1x64xf32>
    %c432 = arith.constant 432 : index
    %c0_44 = arith.constant 0 : index
    %124 = vector.load %arg3[%c432, %c0_44] : memref<1392x256xbf16, #tpu.memory_space<vmem>>, vector<64x64xbf16>
    %c9 = arith.constant 9 : index
    %c0_45 = arith.constant 0 : index
    %125 = vector.load %arg4[%c9, %c0_45] : memref<32x256xf32, #tpu.memory_space<vmem>>, vector<1x64xf32>
    %126 = arith.truncf %121 : vector<128x64xf32> to vector<128x64xbf16>
    %cst_46 = arith.constant dense<0.000000e+00> : vector<128x64xf32>
    %127 = tpu.matmul %126, %122, %cst_46 {dimension_numbers = #tpu.dot_dimension_numbers<[1], [0], [0], [1], [0, 0, 1, 1], [], []>} : vector<128x64xbf16>, vector<64x64xbf16>, vector<128x64xf32> -> vector<128x64xf32>
    %128 = vector.broadcast %123 : vector<1x64xf32> to vector<128x64xf32>
    %129 = arith.addf %127, %128 : vector<128x64xf32>
    %cst_47 = arith.constant 0.000000e+00 : f32
    %130 = vector.broadcast %cst_47 : f32 to vector<128x64xf32>
    %131 = arith.maximumf %129, %130 : vector<128x64xf32>
    %132 = arith.truncf %131 : vector<128x64xf32> to vector<128x64xbf16>
    %cst_48 = arith.constant dense<0.000000e+00> : vector<128x64xf32>
    %133 = tpu.matmul %132, %124, %cst_48 {dimension_numbers = #tpu.dot_dimension_numbers<[1], [0], [0], [1], [0, 0, 1, 1], [], []>} : vector<128x64xbf16>, vector<64x64xbf16>, vector<128x64xf32> -> vector<128x64xf32>
    %134 = vector.broadcast %125 : vector<1x64xf32> to vector<128x64xf32>
    %135 = arith.addf %133, %134 : vector<128x64xf32>
    %136 = vector.shape_cast %135 : vector<128x64xf32> to vector<8x16x64xf32>
    %137 = arith.addf %120, %136 : vector<8x16x64xf32>
    %c10 = arith.constant 10 : index
    %c0_49 = arith.constant 0 : index
    %138 = vector.load %arg4[%c10, %c0_49] : memref<32x256xf32, #tpu.memory_space<vmem>>, vector<1x64xf32>
    %c11 = arith.constant 11 : index
    %c0_50 = arith.constant 0 : index
    %139 = vector.load %arg4[%c11, %c0_50] : memref<32x256xf32, #tpu.memory_space<vmem>>, vector<1x64xf32>
    %cst_51 = arith.constant dense<0.000000e+00> : vector<8x16xf32>
    %140 = vector.multi_reduction <add>, %137, %cst_51 [2] : vector<8x16x64xf32> to vector<8x16xf32>
    %141 = vector.shape_cast %140 : vector<8x16xf32> to vector<8x16x1xf32>
    %cst_52 = arith.constant 6.400000e+01 : f32
    %142 = vector.broadcast %cst_52 : f32 to vector<8x16x1xf32>
    %143 = arith.divf %141, %142 : vector<8x16x1xf32>
    %144 = vector.broadcast %143 : vector<8x16x1xf32> to vector<8x16x64xf32>
    %145 = arith.subf %137, %144 : vector<8x16x64xf32>
    %146 = arith.mulf %145, %145 : vector<8x16x64xf32>
    %cst_53 = arith.constant dense<0.000000e+00> : vector<8x16xf32>
    %147 = vector.multi_reduction <add>, %146, %cst_53 [2] : vector<8x16x64xf32> to vector<8x16xf32>
    %148 = vector.shape_cast %147 : vector<8x16xf32> to vector<8x16x1xf32>
    %cst_54 = arith.constant 6.400000e+01 : f32
    %149 = vector.broadcast %cst_54 : f32 to vector<8x16x1xf32>
    %150 = arith.divf %148, %149 : vector<8x16x1xf32>
    %151 = vector.broadcast %143 : vector<8x16x1xf32> to vector<8x16x64xf32>
    %152 = arith.subf %137, %151 : vector<8x16x64xf32>
    %cst_55 = arith.constant 9.99999974E-6 : f32
    %153 = vector.broadcast %cst_55 : f32 to vector<8x16x1xf32>
    %154 = arith.addf %150, %153 : vector<8x16x1xf32>
    %155 = math.rsqrt %154 : vector<8x16x1xf32>
    %156 = vector.broadcast %155 : vector<8x16x1xf32> to vector<8x16x64xf32>
    %157 = arith.mulf %152, %156 : vector<8x16x64xf32>
    %158 = vector.shape_cast %138 : vector<1x64xf32> to vector<1x1x64xf32>
    %159 = vector.broadcast %158 : vector<1x1x64xf32> to vector<8x16x64xf32>
    %160 = arith.mulf %157, %159 : vector<8x16x64xf32>
    %161 = vector.shape_cast %139 : vector<1x64xf32> to vector<1x1x64xf32>
    %162 = vector.broadcast %161 : vector<1x1x64xf32> to vector<8x16x64xf32>
    %163 = arith.addf %160, %162 : vector<8x16x64xf32>
    %164 = vector.shape_cast %163 : vector<8x16x64xf32> to vector<128x64xf32>
    %c496 = arith.constant 496 : index
    %c0_56 = arith.constant 0 : index
    %165 = vector.load %arg3[%c496, %c0_56] : memref<1392x256xbf16, #tpu.memory_space<vmem>>, vector<64x192xbf16>
    %166 = arith.truncf %164 : vector<128x64xf32> to vector<128x64xbf16>
    %cst_57 = arith.constant dense<0.000000e+00> : vector<128x192xf32>
    %167 = tpu.matmul %166, %165, %cst_57 {dimension_numbers = #tpu.dot_dimension_numbers<[1], [0], [0], [1], [0, 0, 1, 1], [], []>} : vector<128x64xbf16>, vector<64x192xbf16>, vector<128x192xf32> -> vector<128x192xf32>
    %c12 = arith.constant 12 : index
    %c0_58 = arith.constant 0 : index
    %168 = vector.load %arg4[%c12, %c0_58] : memref<32x256xf32, #tpu.memory_space<vmem>>, vector<1x192xf32>
    %169 = vector.broadcast %168 : vector<1x192xf32> to vector<128x192xf32>
    %170 = arith.addf %167, %169 : vector<128x192xf32>
    %171 = arith.truncf %170 : vector<128x192xf32> to vector<128x192xbf16>
    %172 = vector.extract_strided_slice %171 {offsets = [0, 0], sizes = [128, 32], strides = [1, 1]} : vector<128x192xbf16> to vector<128x32xbf16>
    %173 = vector.shape_cast %172 : vector<128x32xbf16> to vector<8x16x32xbf16>
    %174 = vector.extract_strided_slice %171 {offsets = [0, 64], sizes = [128, 32], strides = [1, 1]} : vector<128x192xbf16> to vector<128x32xbf16>
    %175 = vector.shape_cast %174 : vector<128x32xbf16> to vector<8x16x32xbf16>
    %176 = vector.extract_strided_slice %171 {offsets = [0, 128], sizes = [128, 32], strides = [1, 1]} : vector<128x192xbf16> to vector<128x32xbf16>
    %177 = vector.shape_cast %176 : vector<128x32xbf16> to vector<8x16x32xbf16>
    "tpu.trace_start"() <{level = 10 : i32, message = "bqd,bkd->bqk"}> : () -> ()
    %cst_59 = arith.constant dense<0.000000e+00> : vector<8x16x16xf32>
    %178 = tpu.matmul %173, %175, %cst_59 {dimension_numbers = #tpu.dot_dimension_numbers<[2], [2], [1], [1], [0, 0, 0, 1, 1, 1], [0], [0]>} : vector<8x16x32xbf16>, vector<8x16x32xbf16>, vector<8x16x16xf32> -> vector<8x16x16xf32>
    "tpu.trace_stop"() : () -> ()
    %cst_60 = arith.constant dense<0xFF800000> : vector<8x16xf32>
    %179 = vector.multi_reduction <maximumf>, %178, %cst_60 [2] : vector<8x16x16xf32> to vector<8x16xf32>
    %180 = vector.shape_cast %179 : vector<8x16xf32> to vector<8x16x1xf32>
    %181 = vector.broadcast %180 : vector<8x16x1xf32> to vector<8x16x16xf32>
    %182 = arith.subf %178, %181 : vector<8x16x16xf32>
    %183 = math.exp %182 : vector<8x16x16xf32>
    %cst_61 = arith.constant dense<0.000000e+00> : vector<8x16xf32>
    %184 = vector.multi_reduction <add>, %183, %cst_61 [2] : vector<8x16x16xf32> to vector<8x16xf32>
    %185 = vector.shape_cast %184 : vector<8x16xf32> to vector<8x16x1xf32>
    %186 = tpu.reciprocal %185 {approx = true} : vector<8x16x1xf32> -> vector<8x16x1xf32>
    %187 = vector.broadcast %186 : vector<8x16x1xf32> to vector<8x16x16xf32>
    %188 = arith.mulf %183, %187 : vector<8x16x16xf32>
    %189 = arith.truncf %188 : vector<8x16x16xf32> to vector<8x16x16xbf16>
    "tpu.trace_start"() <{level = 10 : i32, message = "bqk,bkd->bqd"}> : () -> ()
    %cst_62 = arith.constant dense<0.000000e+00> : vector<8x16x32xf32>
    %190 = tpu.matmul %189, %177, %cst_62 {dimension_numbers = #tpu.dot_dimension_numbers<[2], [1], [1], [2], [0, 0, 0, 1, 1, 2], [0], [0]>} : vector<8x16x16xbf16>, vector<8x16x32xbf16>, vector<8x16x32xf32> -> vector<8x16x32xf32>
    "tpu.trace_stop"() : () -> ()
    %191 = vector.shape_cast %190 : vector<8x16x32xf32> to vector<128x32xf32>
    %c560 = arith.constant 560 : index
    %c0_63 = arith.constant 0 : index
    %192 = vector.load %arg3[%c560, %c0_63] : memref<1392x256xbf16, #tpu.memory_space<vmem>>, vector<32x64xbf16>
    %193 = arith.truncf %191 : vector<128x32xf32> to vector<128x32xbf16>
    %cst_64 = arith.constant dense<0.000000e+00> : vector<128x64xf32>
    %194 = tpu.matmul %193, %192, %cst_64 {dimension_numbers = #tpu.dot_dimension_numbers<[1], [0], [0], [1], [0, 0, 1, 1], [], []>} : vector<128x32xbf16>, vector<32x64xbf16>, vector<128x64xf32> -> vector<128x64xf32>
    %195 = vector.extract_strided_slice %171 {offsets = [0, 32], sizes = [128, 32], strides = [1, 1]} : vector<128x192xbf16> to vector<128x32xbf16>
    %196 = vector.shape_cast %195 : vector<128x32xbf16> to vector<8x16x32xbf16>
    %197 = vector.extract_strided_slice %171 {offsets = [0, 96], sizes = [128, 32], strides = [1, 1]} : vector<128x192xbf16> to vector<128x32xbf16>
    %198 = vector.shape_cast %197 : vector<128x32xbf16> to vector<8x16x32xbf16>
    %199 = vector.extract_strided_slice %171 {offsets = [0, 160], sizes = [128, 32], strides = [1, 1]} : vector<128x192xbf16> to vector<128x32xbf16>
    %200 = vector.shape_cast %199 : vector<128x32xbf16> to vector<8x16x32xbf16>
    "tpu.trace_start"() <{level = 10 : i32, message = "bqd,bkd->bqk"}> : () -> ()
    %cst_65 = arith.constant dense<0.000000e+00> : vector<8x16x16xf32>
    %201 = tpu.matmul %196, %198, %cst_65 {dimension_numbers = #tpu.dot_dimension_numbers<[2], [2], [1], [1], [0, 0, 0, 1, 1, 1], [0], [0]>} : vector<8x16x32xbf16>, vector<8x16x32xbf16>, vector<8x16x16xf32> -> vector<8x16x16xf32>
    "tpu.trace_stop"() : () -> ()
    %cst_66 = arith.constant dense<0xFF800000> : vector<8x16xf32>
    %202 = vector.multi_reduction <maximumf>, %201, %cst_66 [2] : vector<8x16x16xf32> to vector<8x16xf32>
    %203 = vector.shape_cast %202 : vector<8x16xf32> to vector<8x16x1xf32>
    %204 = vector.broadcast %203 : vector<8x16x1xf32> to vector<8x16x16xf32>
    %205 = arith.subf %201, %204 : vector<8x16x16xf32>
    %206 = math.exp %205 : vector<8x16x16xf32>
    %cst_67 = arith.constant dense<0.000000e+00> : vector<8x16xf32>
    %207 = vector.multi_reduction <add>, %206, %cst_67 [2] : vector<8x16x16xf32> to vector<8x16xf32>
    %208 = vector.shape_cast %207 : vector<8x16xf32> to vector<8x16x1xf32>
    %209 = tpu.reciprocal %208 {approx = true} : vector<8x16x1xf32> -> vector<8x16x1xf32>
    %210 = vector.broadcast %209 : vector<8x16x1xf32> to vector<8x16x16xf32>
    %211 = arith.mulf %206, %210 : vector<8x16x16xf32>
    %212 = arith.truncf %211 : vector<8x16x16xf32> to vector<8x16x16xbf16>
    "tpu.trace_start"() <{level = 10 : i32, message = "bqk,bkd->bqd"}> : () -> ()
    %cst_68 = arith.constant dense<0.000000e+00> : vector<8x16x32xf32>
    %213 = tpu.matmul %212, %200, %cst_68 {dimension_numbers = #tpu.dot_dimension_numbers<[2], [1], [1], [2], [0, 0, 0, 1, 1, 2], [0], [0]>} : vector<8x16x16xbf16>, vector<8x16x32xbf16>, vector<8x16x32xf32> -> vector<8x16x32xf32>
    "tpu.trace_stop"() : () -> ()
    %214 = vector.shape_cast %213 : vector<8x16x32xf32> to vector<128x32xf32>
    %c592 = arith.constant 592 : index
    %c0_69 = arith.constant 0 : index
    %215 = vector.load %arg3[%c592, %c0_69] : memref<1392x256xbf16, #tpu.memory_space<vmem>>, vector<32x64xbf16>
    %216 = arith.truncf %214 : vector<128x32xf32> to vector<128x32xbf16>
    %cst_70 = arith.constant dense<0.000000e+00> : vector<128x64xf32>
    %217 = tpu.matmul %216, %215, %cst_70 {dimension_numbers = #tpu.dot_dimension_numbers<[1], [0], [0], [1], [0, 0, 1, 1], [], []>} : vector<128x32xbf16>, vector<32x64xbf16>, vector<128x64xf32> -> vector<128x64xf32>
    %218 = arith.addf %194, %217 : vector<128x64xf32>
    %c13 = arith.constant 13 : index
    %c0_71 = arith.constant 0 : index
    %219 = vector.load %arg4[%c13, %c0_71] : memref<32x256xf32, #tpu.memory_space<vmem>>, vector<1x64xf32>
    %220 = vector.broadcast %219 : vector<1x64xf32> to vector<128x64xf32>
    %221 = arith.addf %218, %220 : vector<128x64xf32>
    %222 = vector.shape_cast %221 : vector<128x64xf32> to vector<8x16x64xf32>
    %223 = arith.addf %163, %222 : vector<8x16x64xf32>
    %c14 = arith.constant 14 : index
    %c0_72 = arith.constant 0 : index
    %224 = vector.load %arg4[%c14, %c0_72] : memref<32x256xf32, #tpu.memory_space<vmem>>, vector<1x64xf32>
    %c15 = arith.constant 15 : index
    %c0_73 = arith.constant 0 : index
    %225 = vector.load %arg4[%c15, %c0_73] : memref<32x256xf32, #tpu.memory_space<vmem>>, vector<1x64xf32>
    %cst_74 = arith.constant dense<0.000000e+00> : vector<8x16xf32>
    %226 = vector.multi_reduction <add>, %223, %cst_74 [2] : vector<8x16x64xf32> to vector<8x16xf32>
    %227 = vector.shape_cast %226 : vector<8x16xf32> to vector<8x16x1xf32>
    %cst_75 = arith.constant 6.400000e+01 : f32
    %228 = vector.broadcast %cst_75 : f32 to vector<8x16x1xf32>
    %229 = arith.divf %227, %228 : vector<8x16x1xf32>
    %230 = vector.broadcast %229 : vector<8x16x1xf32> to vector<8x16x64xf32>
    %231 = arith.subf %223, %230 : vector<8x16x64xf32>
    %232 = arith.mulf %231, %231 : vector<8x16x64xf32>
    %cst_76 = arith.constant dense<0.000000e+00> : vector<8x16xf32>
    %233 = vector.multi_reduction <add>, %232, %cst_76 [2] : vector<8x16x64xf32> to vector<8x16xf32>
    %234 = vector.shape_cast %233 : vector<8x16xf32> to vector<8x16x1xf32>
    %cst_77 = arith.constant 6.400000e+01 : f32
    %235 = vector.broadcast %cst_77 : f32 to vector<8x16x1xf32>
    %236 = arith.divf %234, %235 : vector<8x16x1xf32>
    %237 = vector.broadcast %229 : vector<8x16x1xf32> to vector<8x16x64xf32>
    %238 = arith.subf %223, %237 : vector<8x16x64xf32>
    %cst_78 = arith.constant 9.99999974E-6 : f32
    %239 = vector.broadcast %cst_78 : f32 to vector<8x16x1xf32>
    %240 = arith.addf %236, %239 : vector<8x16x1xf32>
    %241 = math.rsqrt %240 : vector<8x16x1xf32>
    %242 = vector.broadcast %241 : vector<8x16x1xf32> to vector<8x16x64xf32>
    %243 = arith.mulf %238, %242 : vector<8x16x64xf32>
    %244 = vector.shape_cast %224 : vector<1x64xf32> to vector<1x1x64xf32>
    %245 = vector.broadcast %244 : vector<1x1x64xf32> to vector<8x16x64xf32>
    %246 = arith.mulf %243, %245 : vector<8x16x64xf32>
    %247 = vector.shape_cast %225 : vector<1x64xf32> to vector<1x1x64xf32>
    %248 = vector.broadcast %247 : vector<1x1x64xf32> to vector<8x16x64xf32>
    %249 = arith.addf %246, %248 : vector<8x16x64xf32>
    %250 = vector.shape_cast %249 : vector<8x16x64xf32> to vector<128x64xf32>
    %c624 = arith.constant 624 : index
    %c0_79 = arith.constant 0 : index
    %251 = vector.load %arg3[%c624, %c0_79] : memref<1392x256xbf16, #tpu.memory_space<vmem>>, vector<64x64xbf16>
    %c16 = arith.constant 16 : index
    %c0_80 = arith.constant 0 : index
    %252 = vector.load %arg4[%c16, %c0_80] : memref<32x256xf32, #tpu.memory_space<vmem>>, vector<1x64xf32>
    %c688 = arith.constant 688 : index
    %c0_81 = arith.constant 0 : index
    %253 = vector.load %arg3[%c688, %c0_81] : memref<1392x256xbf16, #tpu.memory_space<vmem>>, vector<64x64xbf16>
    %c17 = arith.constant 17 : index
    %c0_82 = arith.constant 0 : index
    %254 = vector.load %arg4[%c17, %c0_82] : memref<32x256xf32, #tpu.memory_space<vmem>>, vector<1x64xf32>
    %255 = arith.truncf %250 : vector<128x64xf32> to vector<128x64xbf16>
    %cst_83 = arith.constant dense<0.000000e+00> : vector<128x64xf32>
    %256 = tpu.matmul %255, %251, %cst_83 {dimension_numbers = #tpu.dot_dimension_numbers<[1], [0], [0], [1], [0, 0, 1, 1], [], []>} : vector<128x64xbf16>, vector<64x64xbf16>, vector<128x64xf32> -> vector<128x64xf32>
    %257 = vector.broadcast %252 : vector<1x64xf32> to vector<128x64xf32>
    %258 = arith.addf %256, %257 : vector<128x64xf32>
    %cst_84 = arith.constant 0.000000e+00 : f32
    %259 = vector.broadcast %cst_84 : f32 to vector<128x64xf32>
    %260 = arith.maximumf %258, %259 : vector<128x64xf32>
    %261 = arith.truncf %260 : vector<128x64xf32> to vector<128x64xbf16>
    %cst_85 = arith.constant dense<0.000000e+00> : vector<128x64xf32>
    %262 = tpu.matmul %261, %253, %cst_85 {dimension_numbers = #tpu.dot_dimension_numbers<[1], [0], [0], [1], [0, 0, 1, 1], [], []>} : vector<128x64xbf16>, vector<64x64xbf16>, vector<128x64xf32> -> vector<128x64xf32>
    %263 = vector.broadcast %254 : vector<1x64xf32> to vector<128x64xf32>
    %264 = arith.addf %262, %263 : vector<128x64xf32>
    %265 = vector.shape_cast %264 : vector<128x64xf32> to vector<8x16x64xf32>
    %266 = arith.addf %249, %265 : vector<8x16x64xf32>
    %c18 = arith.constant 18 : index
    %c0_86 = arith.constant 0 : index
    %267 = vector.load %arg4[%c18, %c0_86] : memref<32x256xf32, #tpu.memory_space<vmem>>, vector<1x64xf32>
    %c19 = arith.constant 19 : index
    %c0_87 = arith.constant 0 : index
    %268 = vector.load %arg4[%c19, %c0_87] : memref<32x256xf32, #tpu.memory_space<vmem>>, vector<1x64xf32>
    %cst_88 = arith.constant dense<0.000000e+00> : vector<8x16xf32>
    %269 = vector.multi_reduction <add>, %266, %cst_88 [2] : vector<8x16x64xf32> to vector<8x16xf32>
    %270 = vector.shape_cast %269 : vector<8x16xf32> to vector<8x16x1xf32>
    %cst_89 = arith.constant 6.400000e+01 : f32
    %271 = vector.broadcast %cst_89 : f32 to vector<8x16x1xf32>
    %272 = arith.divf %270, %271 : vector<8x16x1xf32>
    %273 = vector.broadcast %272 : vector<8x16x1xf32> to vector<8x16x64xf32>
    %274 = arith.subf %266, %273 : vector<8x16x64xf32>
    %275 = arith.mulf %274, %274 : vector<8x16x64xf32>
    %cst_90 = arith.constant dense<0.000000e+00> : vector<8x16xf32>
    %276 = vector.multi_reduction <add>, %275, %cst_90 [2] : vector<8x16x64xf32> to vector<8x16xf32>
    %277 = vector.shape_cast %276 : vector<8x16xf32> to vector<8x16x1xf32>
    %cst_91 = arith.constant 6.400000e+01 : f32
    %278 = vector.broadcast %cst_91 : f32 to vector<8x16x1xf32>
    %279 = arith.divf %277, %278 : vector<8x16x1xf32>
    %280 = vector.broadcast %272 : vector<8x16x1xf32> to vector<8x16x64xf32>
    %281 = arith.subf %266, %280 : vector<8x16x64xf32>
    %cst_92 = arith.constant 9.99999974E-6 : f32
    %282 = vector.broadcast %cst_92 : f32 to vector<8x16x1xf32>
    %283 = arith.addf %279, %282 : vector<8x16x1xf32>
    %284 = math.rsqrt %283 : vector<8x16x1xf32>
    %285 = vector.broadcast %284 : vector<8x16x1xf32> to vector<8x16x64xf32>
    %286 = arith.mulf %281, %285 : vector<8x16x64xf32>
    %287 = vector.shape_cast %267 : vector<1x64xf32> to vector<1x1x64xf32>
    %288 = vector.broadcast %287 : vector<1x1x64xf32> to vector<8x16x64xf32>
    %289 = arith.mulf %286, %288 : vector<8x16x64xf32>
    %290 = vector.shape_cast %268 : vector<1x64xf32> to vector<1x1x64xf32>
    %291 = vector.broadcast %290 : vector<1x1x64xf32> to vector<8x16x64xf32>
    %292 = arith.addf %289, %291 : vector<8x16x64xf32>
    %293 = vector.shape_cast %292 : vector<8x16x64xf32> to vector<128x64xf32>
    %c752 = arith.constant 752 : index
    %c0_93 = arith.constant 0 : index
    %294 = vector.load %arg3[%c752, %c0_93] : memref<1392x256xbf16, #tpu.memory_space<vmem>>, vector<64x192xbf16>
    %295 = arith.truncf %293 : vector<128x64xf32> to vector<128x64xbf16>
    %cst_94 = arith.constant dense<0.000000e+00> : vector<128x192xf32>
    %296 = tpu.matmul %295, %294, %cst_94 {dimension_numbers = #tpu.dot_dimension_numbers<[1], [0], [0], [1], [0, 0, 1, 1], [], []>} : vector<128x64xbf16>, vector<64x192xbf16>, vector<128x192xf32> -> vector<128x192xf32>
    %c20 = arith.constant 20 : index
    %c0_95 = arith.constant 0 : index
    %297 = vector.load %arg4[%c20, %c0_95] : memref<32x256xf32, #tpu.memory_space<vmem>>, vector<1x192xf32>
    %298 = vector.broadcast %297 : vector<1x192xf32> to vector<128x192xf32>
    %299 = arith.addf %296, %298 : vector<128x192xf32>
    %300 = arith.truncf %299 : vector<128x192xf32> to vector<128x192xbf16>
    %301 = vector.extract_strided_slice %300 {offsets = [0, 0], sizes = [128, 32], strides = [1, 1]} : vector<128x192xbf16> to vector<128x32xbf16>
    %302 = vector.shape_cast %301 : vector<128x32xbf16> to vector<8x16x32xbf16>
    %303 = vector.extract_strided_slice %300 {offsets = [0, 64], sizes = [128, 32], strides = [1, 1]} : vector<128x192xbf16> to vector<128x32xbf16>
    %304 = vector.shape_cast %303 : vector<128x32xbf16> to vector<8x16x32xbf16>
    %305 = vector.extract_strided_slice %300 {offsets = [0, 128], sizes = [128, 32], strides = [1, 1]} : vector<128x192xbf16> to vector<128x32xbf16>
    %306 = vector.shape_cast %305 : vector<128x32xbf16> to vector<8x16x32xbf16>
    "tpu.trace_start"() <{level = 10 : i32, message = "bqd,bkd->bqk"}> : () -> ()
    %cst_96 = arith.constant dense<0.000000e+00> : vector<8x16x16xf32>
    %307 = tpu.matmul %302, %304, %cst_96 {dimension_numbers = #tpu.dot_dimension_numbers<[2], [2], [1], [1], [0, 0, 0, 1, 1, 1], [0], [0]>} : vector<8x16x32xbf16>, vector<8x16x32xbf16>, vector<8x16x16xf32> -> vector<8x16x16xf32>
    "tpu.trace_stop"() : () -> ()
    %cst_97 = arith.constant dense<0xFF800000> : vector<8x16xf32>
    %308 = vector.multi_reduction <maximumf>, %307, %cst_97 [2] : vector<8x16x16xf32> to vector<8x16xf32>
    %309 = vector.shape_cast %308 : vector<8x16xf32> to vector<8x16x1xf32>
    %310 = vector.broadcast %309 : vector<8x16x1xf32> to vector<8x16x16xf32>
    %311 = arith.subf %307, %310 : vector<8x16x16xf32>
    %312 = math.exp %311 : vector<8x16x16xf32>
    %cst_98 = arith.constant dense<0.000000e+00> : vector<8x16xf32>
    %313 = vector.multi_reduction <add>, %312, %cst_98 [2] : vector<8x16x16xf32> to vector<8x16xf32>
    %314 = vector.shape_cast %313 : vector<8x16xf32> to vector<8x16x1xf32>
    %315 = tpu.reciprocal %314 {approx = true} : vector<8x16x1xf32> -> vector<8x16x1xf32>
    %316 = vector.broadcast %315 : vector<8x16x1xf32> to vector<8x16x16xf32>
    %317 = arith.mulf %312, %316 : vector<8x16x16xf32>
    %318 = arith.truncf %317 : vector<8x16x16xf32> to vector<8x16x16xbf16>
    "tpu.trace_start"() <{level = 10 : i32, message = "bqk,bkd->bqd"}> : () -> ()
    %cst_99 = arith.constant dense<0.000000e+00> : vector<8x16x32xf32>
    %319 = tpu.matmul %318, %306, %cst_99 {dimension_numbers = #tpu.dot_dimension_numbers<[2], [1], [1], [2], [0, 0, 0, 1, 1, 2], [0], [0]>} : vector<8x16x16xbf16>, vector<8x16x32xbf16>, vector<8x16x32xf32> -> vector<8x16x32xf32>
    "tpu.trace_stop"() : () -> ()
    %320 = vector.shape_cast %319 : vector<8x16x32xf32> to vector<128x32xf32>
    %c816 = arith.constant 816 : index
    %c0_100 = arith.constant 0 : index
    %321 = vector.load %arg3[%c816, %c0_100] : memref<1392x256xbf16, #tpu.memory_space<vmem>>, vector<32x64xbf16>
    %322 = arith.truncf %320 : vector<128x32xf32> to vector<128x32xbf16>
    %cst_101 = arith.constant dense<0.000000e+00> : vector<128x64xf32>
    %323 = tpu.matmul %322, %321, %cst_101 {dimension_numbers = #tpu.dot_dimension_numbers<[1], [0], [0], [1], [0, 0, 1, 1], [], []>} : vector<128x32xbf16>, vector<32x64xbf16>, vector<128x64xf32> -> vector<128x64xf32>
    %324 = vector.extract_strided_slice %300 {offsets = [0, 32], sizes = [128, 32], strides = [1, 1]} : vector<128x192xbf16> to vector<128x32xbf16>
    %325 = vector.shape_cast %324 : vector<128x32xbf16> to vector<8x16x32xbf16>
    %326 = vector.extract_strided_slice %300 {offsets = [0, 96], sizes = [128, 32], strides = [1, 1]} : vector<128x192xbf16> to vector<128x32xbf16>
    %327 = vector.shape_cast %326 : vector<128x32xbf16> to vector<8x16x32xbf16>
    %328 = vector.extract_strided_slice %300 {offsets = [0, 160], sizes = [128, 32], strides = [1, 1]} : vector<128x192xbf16> to vector<128x32xbf16>
    %329 = vector.shape_cast %328 : vector<128x32xbf16> to vector<8x16x32xbf16>
    "tpu.trace_start"() <{level = 10 : i32, message = "bqd,bkd->bqk"}> : () -> ()
    %cst_102 = arith.constant dense<0.000000e+00> : vector<8x16x16xf32>
    %330 = tpu.matmul %325, %327, %cst_102 {dimension_numbers = #tpu.dot_dimension_numbers<[2], [2], [1], [1], [0, 0, 0, 1, 1, 1], [0], [0]>} : vector<8x16x32xbf16>, vector<8x16x32xbf16>, vector<8x16x16xf32> -> vector<8x16x16xf32>
    "tpu.trace_stop"() : () -> ()
    %cst_103 = arith.constant dense<0xFF800000> : vector<8x16xf32>
    %331 = vector.multi_reduction <maximumf>, %330, %cst_103 [2] : vector<8x16x16xf32> to vector<8x16xf32>
    %332 = vector.shape_cast %331 : vector<8x16xf32> to vector<8x16x1xf32>
    %333 = vector.broadcast %332 : vector<8x16x1xf32> to vector<8x16x16xf32>
    %334 = arith.subf %330, %333 : vector<8x16x16xf32>
    %335 = math.exp %334 : vector<8x16x16xf32>
    %cst_104 = arith.constant dense<0.000000e+00> : vector<8x16xf32>
    %336 = vector.multi_reduction <add>, %335, %cst_104 [2] : vector<8x16x16xf32> to vector<8x16xf32>
    %337 = vector.shape_cast %336 : vector<8x16xf32> to vector<8x16x1xf32>
    %338 = tpu.reciprocal %337 {approx = true} : vector<8x16x1xf32> -> vector<8x16x1xf32>
    %339 = vector.broadcast %338 : vector<8x16x1xf32> to vector<8x16x16xf32>
    %340 = arith.mulf %335, %339 : vector<8x16x16xf32>
    %341 = arith.truncf %340 : vector<8x16x16xf32> to vector<8x16x16xbf16>
    "tpu.trace_start"() <{level = 10 : i32, message = "bqk,bkd->bqd"}> : () -> ()
    %cst_105 = arith.constant dense<0.000000e+00> : vector<8x16x32xf32>
    %342 = tpu.matmul %341, %329, %cst_105 {dimension_numbers = #tpu.dot_dimension_numbers<[2], [1], [1], [2], [0, 0, 0, 1, 1, 2], [0], [0]>} : vector<8x16x16xbf16>, vector<8x16x32xbf16>, vector<8x16x32xf32> -> vector<8x16x32xf32>
    "tpu.trace_stop"() : () -> ()
    %343 = vector.shape_cast %342 : vector<8x16x32xf32> to vector<128x32xf32>
    %c848 = arith.constant 848 : index
    %c0_106 = arith.constant 0 : index
    %344 = vector.load %arg3[%c848, %c0_106] : memref<1392x256xbf16, #tpu.memory_space<vmem>>, vector<32x64xbf16>
    %345 = arith.truncf %343 : vector<128x32xf32> to vector<128x32xbf16>
    %cst_107 = arith.constant dense<0.000000e+00> : vector<128x64xf32>
    %346 = tpu.matmul %345, %344, %cst_107 {dimension_numbers = #tpu.dot_dimension_numbers<[1], [0], [0], [1], [0, 0, 1, 1], [], []>} : vector<128x32xbf16>, vector<32x64xbf16>, vector<128x64xf32> -> vector<128x64xf32>
    %347 = arith.addf %323, %346 : vector<128x64xf32>
    %c21 = arith.constant 21 : index
    %c0_108 = arith.constant 0 : index
    %348 = vector.load %arg4[%c21, %c0_108] : memref<32x256xf32, #tpu.memory_space<vmem>>, vector<1x64xf32>
    %349 = vector.broadcast %348 : vector<1x64xf32> to vector<128x64xf32>
    %350 = arith.addf %347, %349 : vector<128x64xf32>
    %351 = vector.shape_cast %350 : vector<128x64xf32> to vector<8x16x64xf32>
    %352 = arith.addf %292, %351 : vector<8x16x64xf32>
    %c22 = arith.constant 22 : index
    %c0_109 = arith.constant 0 : index
    %353 = vector.load %arg4[%c22, %c0_109] : memref<32x256xf32, #tpu.memory_space<vmem>>, vector<1x64xf32>
    %c23 = arith.constant 23 : index
    %c0_110 = arith.constant 0 : index
    %354 = vector.load %arg4[%c23, %c0_110] : memref<32x256xf32, #tpu.memory_space<vmem>>, vector<1x64xf32>
    %cst_111 = arith.constant dense<0.000000e+00> : vector<8x16xf32>
    %355 = vector.multi_reduction <add>, %352, %cst_111 [2] : vector<8x16x64xf32> to vector<8x16xf32>
    %356 = vector.shape_cast %355 : vector<8x16xf32> to vector<8x16x1xf32>
    %cst_112 = arith.constant 6.400000e+01 : f32
    %357 = vector.broadcast %cst_112 : f32 to vector<8x16x1xf32>
    %358 = arith.divf %356, %357 : vector<8x16x1xf32>
    %359 = vector.broadcast %358 : vector<8x16x1xf32> to vector<8x16x64xf32>
    %360 = arith.subf %352, %359 : vector<8x16x64xf32>
    %361 = arith.mulf %360, %360 : vector<8x16x64xf32>
    %cst_113 = arith.constant dense<0.000000e+00> : vector<8x16xf32>
    %362 = vector.multi_reduction <add>, %361, %cst_113 [2] : vector<8x16x64xf32> to vector<8x16xf32>
    %363 = vector.shape_cast %362 : vector<8x16xf32> to vector<8x16x1xf32>
    %cst_114 = arith.constant 6.400000e+01 : f32
    %364 = vector.broadcast %cst_114 : f32 to vector<8x16x1xf32>
    %365 = arith.divf %363, %364 : vector<8x16x1xf32>
    %366 = vector.broadcast %358 : vector<8x16x1xf32> to vector<8x16x64xf32>
    %367 = arith.subf %352, %366 : vector<8x16x64xf32>
    %cst_115 = arith.constant 9.99999974E-6 : f32
    %368 = vector.broadcast %cst_115 : f32 to vector<8x16x1xf32>
    %369 = arith.addf %365, %368 : vector<8x16x1xf32>
    %370 = math.rsqrt %369 : vector<8x16x1xf32>
    %371 = vector.broadcast %370 : vector<8x16x1xf32> to vector<8x16x64xf32>
    %372 = arith.mulf %367, %371 : vector<8x16x64xf32>
    %373 = vector.shape_cast %353 : vector<1x64xf32> to vector<1x1x64xf32>
    %374 = vector.broadcast %373 : vector<1x1x64xf32> to vector<8x16x64xf32>
    %375 = arith.mulf %372, %374 : vector<8x16x64xf32>
    %376 = vector.shape_cast %354 : vector<1x64xf32> to vector<1x1x64xf32>
    %377 = vector.broadcast %376 : vector<1x1x64xf32> to vector<8x16x64xf32>
    %378 = arith.addf %375, %377 : vector<8x16x64xf32>
    %379 = vector.shape_cast %378 : vector<8x16x64xf32> to vector<128x64xf32>
    %c880 = arith.constant 880 : index
    %c0_116 = arith.constant 0 : index
    %380 = vector.load %arg3[%c880, %c0_116] : memref<1392x256xbf16, #tpu.memory_space<vmem>>, vector<64x64xbf16>
    %c24 = arith.constant 24 : index
    %c0_117 = arith.constant 0 : index
    %381 = vector.load %arg4[%c24, %c0_117] : memref<32x256xf32, #tpu.memory_space<vmem>>, vector<1x64xf32>
    %c944 = arith.constant 944 : index
    %c0_118 = arith.constant 0 : index
    %382 = vector.load %arg3[%c944, %c0_118] : memref<1392x256xbf16, #tpu.memory_space<vmem>>, vector<64x64xbf16>
    %c25 = arith.constant 25 : index
    %c0_119 = arith.constant 0 : index
    %383 = vector.load %arg4[%c25, %c0_119] : memref<32x256xf32, #tpu.memory_space<vmem>>, vector<1x64xf32>
    %384 = arith.truncf %379 : vector<128x64xf32> to vector<128x64xbf16>
    %cst_120 = arith.constant dense<0.000000e+00> : vector<128x64xf32>
    %385 = tpu.matmul %384, %380, %cst_120 {dimension_numbers = #tpu.dot_dimension_numbers<[1], [0], [0], [1], [0, 0, 1, 1], [], []>} : vector<128x64xbf16>, vector<64x64xbf16>, vector<128x64xf32> -> vector<128x64xf32>
    %386 = vector.broadcast %381 : vector<1x64xf32> to vector<128x64xf32>
    %387 = arith.addf %385, %386 : vector<128x64xf32>
    %cst_121 = arith.constant 0.000000e+00 : f32
    %388 = vector.broadcast %cst_121 : f32 to vector<128x64xf32>
    %389 = arith.maximumf %387, %388 : vector<128x64xf32>
    %390 = arith.truncf %389 : vector<128x64xf32> to vector<128x64xbf16>
    %cst_122 = arith.constant dense<0.000000e+00> : vector<128x64xf32>
    %391 = tpu.matmul %390, %382, %cst_122 {dimension_numbers = #tpu.dot_dimension_numbers<[1], [0], [0], [1], [0, 0, 1, 1], [], []>} : vector<128x64xbf16>, vector<64x64xbf16>, vector<128x64xf32> -> vector<128x64xf32>
    %392 = vector.broadcast %383 : vector<1x64xf32> to vector<128x64xf32>
    %393 = arith.addf %391, %392 : vector<128x64xf32>
    %394 = vector.shape_cast %393 : vector<128x64xf32> to vector<8x16x64xf32>
    %395 = arith.addf %378, %394 : vector<8x16x64xf32>
    %c26 = arith.constant 26 : index
    %c0_123 = arith.constant 0 : index
    %396 = vector.load %arg4[%c26, %c0_123] : memref<32x256xf32, #tpu.memory_space<vmem>>, vector<1x64xf32>
    %c27 = arith.constant 27 : index
    %c0_124 = arith.constant 0 : index
    %397 = vector.load %arg4[%c27, %c0_124] : memref<32x256xf32, #tpu.memory_space<vmem>>, vector<1x64xf32>
    %cst_125 = arith.constant dense<0.000000e+00> : vector<8x16xf32>
    %398 = vector.multi_reduction <add>, %395, %cst_125 [2] : vector<8x16x64xf32> to vector<8x16xf32>
    %399 = vector.shape_cast %398 : vector<8x16xf32> to vector<8x16x1xf32>
    %cst_126 = arith.constant 6.400000e+01 : f32
    %400 = vector.broadcast %cst_126 : f32 to vector<8x16x1xf32>
    %401 = arith.divf %399, %400 : vector<8x16x1xf32>
    %402 = vector.broadcast %401 : vector<8x16x1xf32> to vector<8x16x64xf32>
    %403 = arith.subf %395, %402 : vector<8x16x64xf32>
    %404 = arith.mulf %403, %403 : vector<8x16x64xf32>
    %cst_127 = arith.constant dense<0.000000e+00> : vector<8x16xf32>
    %405 = vector.multi_reduction <add>, %404, %cst_127 [2] : vector<8x16x64xf32> to vector<8x16xf32>
    %406 = vector.shape_cast %405 : vector<8x16xf32> to vector<8x16x1xf32>
    %cst_128 = arith.constant 6.400000e+01 : f32
    %407 = vector.broadcast %cst_128 : f32 to vector<8x16x1xf32>
    %408 = arith.divf %406, %407 : vector<8x16x1xf32>
    %409 = vector.broadcast %401 : vector<8x16x1xf32> to vector<8x16x64xf32>
    %410 = arith.subf %395, %409 : vector<8x16x64xf32>
    %cst_129 = arith.constant 9.99999974E-6 : f32
    %411 = vector.broadcast %cst_129 : f32 to vector<8x16x1xf32>
    %412 = arith.addf %408, %411 : vector<8x16x1xf32>
    %413 = math.rsqrt %412 : vector<8x16x1xf32>
    %414 = vector.broadcast %413 : vector<8x16x1xf32> to vector<8x16x64xf32>
    %415 = arith.mulf %410, %414 : vector<8x16x64xf32>
    %416 = vector.shape_cast %396 : vector<1x64xf32> to vector<1x1x64xf32>
    %417 = vector.broadcast %416 : vector<1x1x64xf32> to vector<8x16x64xf32>
    %418 = arith.mulf %415, %417 : vector<8x16x64xf32>
    %419 = vector.shape_cast %397 : vector<1x64xf32> to vector<1x1x64xf32>
    %420 = vector.broadcast %419 : vector<1x1x64xf32> to vector<8x16x64xf32>
    %421 = arith.addf %418, %420 : vector<8x16x64xf32>
    %422 = vector.extract_strided_slice %421 {offsets = [0, 15, 0], sizes = [8, 1, 64], strides = [1, 1, 1]} : vector<8x16x64xf32> to vector<8x1x64xf32>
    %423 = vector.shape_cast %422 : vector<8x1x64xf32> to vector<8x64xf32>
    %c1008 = arith.constant 1008 : index
    %c0_130 = arith.constant 0 : index
    %424 = vector.load %arg3[%c1008, %c0_130] : memref<1392x256xbf16, #tpu.memory_space<vmem>>, vector<64x128xbf16>
    %c28 = arith.constant 28 : index
    %c0_131 = arith.constant 0 : index
    %425 = vector.load %arg4[%c28, %c0_131] : memref<32x256xf32, #tpu.memory_space<vmem>>, vector<1x128xf32>
    %c1072 = arith.constant 1072 : index
    %c0_132 = arith.constant 0 : index
    %426 = vector.load %arg3[%c1072, %c0_132] : memref<1392x256xbf16, #tpu.memory_space<vmem>>, vector<128x256xbf16>
    %c29 = arith.constant 29 : index
    %c0_133 = arith.constant 0 : index
    %427 = vector.load %arg4[%c29, %c0_133] : memref<32x256xf32, #tpu.memory_space<vmem>>, vector<1x256xf32>
    %428 = arith.truncf %423 : vector<8x64xf32> to vector<8x64xbf16>
    %cst_134 = arith.constant dense<0.000000e+00> : vector<8x128xf32>
    %429 = tpu.matmul %428, %424, %cst_134 {dimension_numbers = #tpu.dot_dimension_numbers<[1], [0], [0], [1], [0, 0, 1, 1], [], []>} : vector<8x64xbf16>, vector<64x128xbf16>, vector<8x128xf32> -> vector<8x128xf32>
    %430 = vector.broadcast %425 : vector<1x128xf32> to vector<8x128xf32>
    %431 = arith.addf %429, %430 : vector<8x128xf32>
    %cst_135 = arith.constant 0.000000e+00 : f32
    %432 = vector.broadcast %cst_135 : f32 to vector<8x128xf32>
    %433 = arith.maximumf %431, %432 : vector<8x128xf32>
    %434 = arith.truncf %433 : vector<8x128xf32> to vector<8x128xbf16>
    %cst_136 = arith.constant dense<0.000000e+00> : vector<8x256xf32>
    %435 = tpu.matmul %434, %426, %cst_136 {dimension_numbers = #tpu.dot_dimension_numbers<[1], [0], [0], [1], [0, 0, 1, 1], [], []>} : vector<8x128xbf16>, vector<128x256xbf16>, vector<8x256xf32> -> vector<8x256xf32>
    %436 = vector.broadcast %427 : vector<1x256xf32> to vector<8x256xf32>
    %437 = arith.addf %435, %436 : vector<8x256xf32>
    %438 = vector.extract_strided_slice %437 {offsets = [0, 0], sizes = [8, 128], strides = [1, 1]} : vector<8x256xf32> to vector<8x128xf32>
    %439 = arith.mulf %14, %438 : vector<8x128xf32>
    %440 = vector.extract_strided_slice %437 {offsets = [0, 128], sizes = [8, 128], strides = [1, 1]} : vector<8x256xf32> to vector<8x128xf32>
    %441 = arith.addf %439, %440 : vector<8x128xf32>
    %c1200 = arith.constant 1200 : index
    %c0_137 = arith.constant 0 : index
    %442 = vector.load %arg3[%c1200, %c0_137] : memref<1392x256xbf16, #tpu.memory_space<vmem>>, vector<128x64xbf16>
    %c30 = arith.constant 30 : index
    %c0_138 = arith.constant 0 : index
    %443 = vector.load %arg4[%c30, %c0_138] : memref<32x256xf32, #tpu.memory_space<vmem>>, vector<1x64xf32>
    %c1328 = arith.constant 1328 : index
    %c0_139 = arith.constant 0 : index
    %444 = vector.load %arg3[%c1328, %c0_139] : memref<1392x256xbf16, #tpu.memory_space<vmem>>, vector<64x8xbf16>
    %c31 = arith.constant 31 : index
    %c0_140 = arith.constant 0 : index
    %445 = vector.load %arg4[%c31, %c0_140] : memref<32x256xf32, #tpu.memory_space<vmem>>, vector<1x8xf32>
    %446 = arith.truncf %441 : vector<8x128xf32> to vector<8x128xbf16>
    %cst_141 = arith.constant dense<0.000000e+00> : vector<8x64xf32>
    %447 = tpu.matmul %446, %442, %cst_141 {dimension_numbers = #tpu.dot_dimension_numbers<[1], [0], [0], [1], [0, 0, 1, 1], [], []>} : vector<8x128xbf16>, vector<128x64xbf16>, vector<8x64xf32> -> vector<8x64xf32>
    %448 = vector.broadcast %443 : vector<1x64xf32> to vector<8x64xf32>
    %449 = arith.addf %447, %448 : vector<8x64xf32>
    %cst_142 = arith.constant 0.000000e+00 : f32
    %450 = vector.broadcast %cst_142 : f32 to vector<8x64xf32>
    %451 = arith.maximumf %449, %450 : vector<8x64xf32>
    %452 = arith.truncf %451 : vector<8x64xf32> to vector<8x64xbf16>
    %cst_143 = arith.constant dense<0.000000e+00> : vector<8x8xf32>
    %453 = tpu.matmul %452, %444, %cst_143 {dimension_numbers = #tpu.dot_dimension_numbers<[1], [0], [0], [1], [0, 0, 1, 1], [], []>} : vector<8x64xbf16>, vector<64x8xbf16>, vector<8x8xf32> -> vector<8x8xf32>
    %454 = vector.broadcast %445 : vector<1x8xf32> to vector<8x8xf32>
    %455 = arith.addf %453, %454 : vector<8x8xf32>
    %456 = tpu.transpose %455, [1, 0] : vector<8x8xf32> -> vector<8x8xf32>
    %457 = vector.shape_cast %456 : vector<8x8xf32> to vector<1x8x8xf32>
    %c0_144 = arith.constant 0 : index
    %c0_145 = arith.constant 0 : index
    %c0_146 = arith.constant 0 : index
    %458 = vector.load %arg5[%c0_144, %c0_145, %c0_146] : memref<1x8x8xf32, #tpu.memory_space<vmem>>, vector<1x8x8xf32>
    tpu.vector_store %arg5[%c0_144, %c0_145, %c0_146], %457 {strides = array<i32>} : memref<1x8x8xf32, #tpu.memory_space<vmem>>, vector<1x8x8xf32>,
    return
  }
  func.func @transform_0(%arg0: i32) -> (i32, i32) {
    %c0_i32 = arith.constant 0 : i32
    %c0_i32_0 = arith.constant 0 : i32
    return %arg0, %c0_i32 : i32, i32
  }
  func.func @transform_1(%arg0: i32) -> (i32, i32, i32) {
    %c0_i32 = arith.constant 0 : i32
    %c0_i32_0 = arith.constant 0 : i32
    %c0_i32_1 = arith.constant 0 : i32
    return %arg0, %c0_i32, %c0_i32_0 : i32, i32, i32
  }
  func.func @transform_2(%arg0: i32) -> (i32, i32) {
    %c0_i32 = arith.constant 0 : i32
    %c0_i32_0 = arith.constant 0 : i32
    %c0_i32_1 = arith.constant 0 : i32
    return %c0_i32, %c0_i32_0 : i32, i32
  }
  func.func @transform_3(%arg0: i32) -> (i32, i32) {
    %c0_i32 = arith.constant 0 : i32
    %c0_i32_0 = arith.constant 0 : i32
    %c0_i32_1 = arith.constant 0 : i32
    return %c0_i32, %c0_i32_0 : i32, i32
  }
  func.func @transform_4(%arg0: i32) -> (i32, i32, i32) {
    %c0_i32 = arith.constant 0 : i32
    %c0_i32_0 = arith.constant 0 : i32
    %c0_i32_1 = arith.constant 0 : i32
    return %arg0, %c0_i32, %c0_i32_0 : i32, i32, i32
  }
}

</mosaic_0001>

<bundles_post_ra>
// kernel: directnet_forward.1
= control target key start
LH: loop header
LB: loop body
LE: loop exit
PB: predicated region body
PF: predicated region fallthrough
CT: control target
= control target key end

     0   :  { %vm1790_vm0 = vcmask 1041408   ;;  %v224_v0 = vlaneseq  ;;  %v16365_v4 = vmov 1966171168   ;;  %v21514_v11 = vmov 0.0   ;;  %s16369_s23 = smov 64   ;;  %s16370_s24 = smov 32   ;;  %s21509_s2 = inlined_call_operand.vmem [shape: bf16[1392,256], index: 2, kind: input, shape index: {}]   ;;  %s21510_s1 = inlined_call_operand.vmem [shape: f32[8,15,4], index: 1, kind: input, shape index: {}]   ;;  %s21511_s0 = inlined_call_operand.vmem [shape: f32[8,32], index: 0, kind: input, shape index: {}]   ;;  %s21512_s3 = inlined_call_operand.vmem [shape: f32[32,256], index: 3, kind: input, shape index: {}]   ;;  %s21513_s4 = inlined_call_operand.vmem [shape: f32[1,8,8], index: 4, kind: output, shape index: {}]  }
   0x1   :  { %v996_v1 = vld [vmem:[%s21509_s2 + $0xa0] sm:$0x3]  ;;  %v189_v3 = vld [vmem:[%s21510_s1 + $0x8] sm:$0x7f]  ;;  %v222_v5 = vunpack.c.l.s4 %v16365_v4  ;;  %v190_v7 = vld [vmem:[%s21510_s1 + $0x10] sm:$0xff]  ;;  %14701 = vmatprep.subr.bf16.mxu1 %v21514_v11  ;;  %vm16367_vm1 = vmmov 0  }
   0x2   :  { %v188_v2 = vld [vmem:[%s21510_s1] sm:$0xff]  ;;  %15655 = vmatprep.subr.msk.bf16.mxu0 %vm1790_vm0, %v996_v1  ;;  %v1792_v6 = vsel %vm1790_vm0, %v996_v1, 0  ;;  %v16409_v8 = vshrl.u32 %v224_v0, 7  ;;  %v191_v9 = vld [vmem:[%s21510_s1 + $0x18] sm:$0x7f]  ;;  %v269_v14 = vcombine.high %v189_v3, %v189_v3  ;;  %v16428_v16 = vld [vmem:[%s21510_s1 + $0x30] sm:$0xff]  ;;  %v317_v18 = vcombine.high %v190_v7, %v190_v7  ;;  %14705 = vmatprep.mubr.msk.bf16.mxu1 %vm16367_vm1, %v21514_v11 }
   0x3   :  { %v16417_v10 = vld [vmem:[%s21510_s1 + $0x20] sm:$0xff]  ;;  %14730 = vmatpush3.bf16.msra.mxu0 %v1792_v6  ;;  %v220_v12 = vcombine.high %v188_v2, %v188_v2  ;;  %v223_v13 = vunpack.c.0.s8 %v222_v5  ;;  %v16423_v15 = vld [vmem:[%s21510_s1 + $0x28] sm:$0x7f]  ;;  %v16433_v17 = vld [vmem:[%s21510_s1 + $0x38] sm:$0x7f]  ;;  %v366_v19 = vcombine.high %v191_v9, %v191_v9  ;;  %v511_v24 = vcombine.high %v16428_v16, %v16428_v16  ;;  %s16371_s25 = smov 96  }
   0x4   :  { %v16438_v20 = vld [vmem:[%s21510_s1 + $0x40] sm:$0xff]  ;;  %v414_v22 = vcombine.high %v16417_v10, %v16417_v10  ;;  %v463_v23 = vcombine.high %v16423_v15, %v16423_v15  ;;  %v15671_v25 = vld [vmem:[%s21509_s2 + $0x10] ss:$8 sps:$4 sm:$0xff]   ;;  %v16455_v26 = vld [vmem:[%s21510_s1 + $0x48] sm:$0x7f]  ;;  %v560_v28 = vcombine.high %v16433_v17, %v16433_v17  ;;  %vm1765_vm2 = vcmask 31744  }
   0x5   :  { %v16441_v21 = vsub.s32 %v223_v13, %v16409_v8  ;;  %v16460_v27 = vld [vmem:[%s21510_s1 + $0x50] sm:$0xff]  ;;  %v608_v29 = vcombine.high %v16438_v20, %v16438_v20  ;;  %v657_v30 = vcombine.high %v16455_v26, %v16455_v26  ;;  %14702 = vmatpush3.bf16.msra.mxu1 %v15671_v25  ;;  %v15675_v36 = vld [vmem:[%s21509_s2] ss:$8 sps:$4 sm:$0xff]   ;;  %vm54_vm3 = vcmask 261120  }
   0x6   :  { %v705_v31 = vcombine.high %v16460_v27, %v16460_v27  ;;  %14703 = vmatprep.subr.bf16.mxu1 %v21514_v11  ;;  %v16491_v49 = vld [vmem:[%s21509_s2 + $0xe0] ss:$8 sps:$4 sm:$0xff]   ;;  %vm1937_vm4 = vcmask 523264   ;;  %vm3690_vm5 = vcmask 1046528   ;;  %vm4321_vm6 = vcmask 130048  }
   0x7   :  { %v227_v32 = vrot.slane %v188_v2, %v16441_v21  ;;  %v234_v33 = vrot.slane %v220_v12, %v16441_v21  ;;  %v276_v34 = vrot.slane %v189_v3, %v16441_v21  ;;  %v283_v35 = vrot.slane %v269_v14, %v16441_v21  ;;  %14747 = vmatprep.subr.bf16.mxu0 %v16491_v49 }
   0x8   :  { %v324_v37 = vrot.slane %v190_v7, %v16441_v21  ;;  %v331_v38 = vrot.slane %v317_v18, %v16441_v21  ;;  %v373_v39 = vrot.slane %v191_v9, %v16441_v21  ;;  %v380_v40 = vrot.slane %v366_v19, %v16441_v21 }
   0x9   :  { %v235_v41 = vcombine.high %v227_v32, %v227_v32  ;;  %v236_v42 = vcombine.high %v234_v33, %v234_v33  ;;  %v243_v43 = vrot.slane %v227_v32, %v16441_v21  ;;  %v250_v44 = vrot.slane %v234_v33, %v16441_v21  ;;  %14704 = vmatpush3.bf16.msra.mxu1 %v15675_v36 }
   0xa   :  { %v284_v45 = vcombine.high %v276_v34, %v276_v34  ;;  %v285_v46 = vcombine.high %v283_v35, %v283_v35  ;;  %v292_v47 = vrot.slane %v276_v34, %v16441_v21  ;;  %v299_v48 = vrot.slane %v283_v35, %v16441_v21  ;;  %14709 = vmatprep.subr.bf16.mxu1 %v21514_v11 }
   0xb   :  { %v257_v50 = vrot.slane %v235_v41, %v16441_v21  ;;  %v264_v51 = vrot.slane %v236_v42, %v16441_v21  ;;  %v332_v52 = vcombine.high %v324_v37, %v324_v37  ;;  %v340_v53 = vrot.slane %v324_v37, %v16441_v21 }
   0xc   :  { %v306_v54 = vrot.slane %v284_v45, %v16441_v21  ;;  %v313_v55 = vrot.slane %v285_v46, %v16441_v21  ;;  %v315_v56 = vcombine.high %v299_v48, %v299_v48  ;;  %v333_v57 = vcombine.high %v331_v38, %v331_v38 }
   0xd   :  { %v362_v58 = vcombine.high %v340_v53, %v340_v53  ;;  %v1007_v59 = vcombine.low %v243_v43, %v257_v50  ;;  %v13965_v60 = vcombine.high %v243_v43, %v257_v50  ;;  %v1009_v61 = vcombine.low %v250_v44, %v264_v51 }
   0xe   :  { %v13966_v62 = vcombine.high %v250_v44, %v264_v51  ;;  %v1056_v63 = vcombine.low %v292_v47, %v306_v54  ;;  %v13967_v0 = vcombine.high %v292_v47, %v306_v54  ;;  %v1058_v1 = vcombine.low %v299_v48, %v313_v55 }
   0xf   :  { %v1017_v2 = vrot.slane %v1007_v59, %v16441_v21  ;;  %v1024_v3 = vrot.slane %v13965_v60, %v16441_v21  ;;  %v1031_v4 = vrot.slane %v1009_v61, %v16441_v21  ;;  %v1059_v5 = vcombine.low %v315_v56, %v340_v53 }
  0x10   :  { %v1038_v6 = vrot.slane %v13966_v62, %v16441_v21  ;;  %v1066_v7 = vrot.slane %v1056_v63, %v16441_v21  ;;  %v1073_v9 = vrot.slane %v13967_v0, %v16441_v21  ;;  %v1080_v12 = vrot.slane %v1058_v1, %v16441_v21 }
  0x11   :  { %v1039_v13 = vcombine.low %v1017_v2, %v1024_v3  ;;  %v1087_v14 = vrot.slane %v1059_v5, %v16441_v21  ;;  %v347_v18 = vrot.slane %v331_v38, %v16441_v21  ;;  %v354_v19 = vrot.slane %v332_v52, %v16441_v21 }
  0x12   :  { %v1040_v25 = vcombine.low %v1031_v4, %v1038_v6  ;;  %v1088_v32 = vcombine.low %v1066_v7, %v1073_v9  ;;  %v361_v33 = vrot.slane %v333_v57, %v16441_v21  ;;  %v381_v34 = vcombine.high %v373_v39, %v373_v39 }
  0x13   :  { %v1047_v35 = vrot.slane %v1039_v13, %v16441_v21  ;;  %v1089_v36 = vcombine.low %v1080_v12, %v1087_v14  ;;  %v363_v37 = vcombine.high %v347_v18, %v347_v18  ;;  %v364_v41 = vcombine.high %v354_v19, %v354_v19 }
  0x14   :  { %v1054_v42 = vrot.slane %v1040_v25, %v16441_v21  ;;  %v1096_v43 = vrot.slane %v1088_v32, %v16441_v21  ;;  %v365_v44 = vcombine.high %v361_v33, %v361_v33  ;;  %v382_v45 = vcombine.high %v380_v40, %v380_v40 }
  0x15   :  { %v1103_v38 = vrot.slane %v1089_v36, %v16441_v21  ;;  %v389_v46 = vrot.slane %v373_v39, %v16441_v21  ;;  %v396_v47 = vrot.slane %v380_v40, %v16441_v21  ;;  %v403_v48 = vrot.slane %v381_v34, %v16441_v21 }
  0x16   :  { %v1055_v50 = vcombine.low %v1047_v35, %v1054_v42  ;;  %v410_v51 = vrot.slane %v382_v45, %v16441_v21  ;;  %v421_v52 = vrot.slane %v16417_v10, %v16441_v21  ;;  %v1105_v53 = vcombine.low %v354_v19, %v362_v58 }
  0x17   :  { %v1104_v54 = vcombine.low %v1096_v43, %v1103_v38  ;;  %v411_v55 = vcombine.high %v389_v46, %v389_v46  ;;  %v412_v56 = vcombine.high %v396_v47, %v396_v47  ;;  %v413_v57 = vcombine.high %v403_v48, %v403_v48 }
  0x18   :  { %v429_v59 = vcombine.high %v421_v52, %v421_v52  ;;  %v437_v60 = vrot.slane %v421_v52, %v16441_v21  ;;  %v1106_v61 = vcombine.low %v364_v41, %v347_v18  ;;  %v1107_v39 = vcombine.low %v361_v33, %v363_v37 }
  0x19   :  { %v1757_v62 = vpack.c.bf16 %v1104_v54, %v1055_v50  ;;  %v1108_v40 = vcombine.low %v365_v44, %v389_v46  ;;  %v1115_v63 = vrot.slane %v1105_v53, %v16441_v21  ;;  %v1154_v0 = vcombine.low %v403_v48, %v411_v55 }
  0x1a   :  { %v451_v1 = vrot.slane %v429_v59, %v16441_v21  ;;  %v1122_v2 = vrot.slane %v1106_v61, %v16441_v21  ;;  %v1129_v58 = vrot.slane %v1107_v39, %v16441_v21  ;;  %v1155_v3 = vcombine.low %v413_v57, %v396_v47 }
  0x1b   :  { %14731 = vmatprep.mubr.msk.bf16.mxu0 %vm1765_vm2, %v1757_v62  ;;  %v1136_v4 = vrot.slane %v1108_v40, %v16441_v21  ;;  %v1156_v5 = vcombine.low %v410_v51, %v412_v56  ;;  %v1164_v6 = vrot.slane %v1154_v0, %v16441_v21  ;;  %v428_v7 = vrot.slane %v414_v22, %v16441_v21 }
  0x1c   :  { %v1137_v9 = vcombine.low %v1115_v63, %v1122_v2  ;;  %v1157_v12 = vcombine.low %v437_v60, %v451_v1  ;;  %v1171_v13 = vrot.slane %v1155_v3, %v16441_v21  ;;  %v470_v14 = vrot.slane %v16423_v15, %v16441_v21 }
  0x1d   :  { %v1138_v18 = vcombine.low %v1129_v58, %v1136_v4  ;;  %v1178_v19 = vrot.slane %v1156_v5, %v16441_v21  ;;  %v430_v25 = vcombine.high %v428_v7, %v428_v7  ;;  %v444_v32 = vrot.slane %v428_v7, %v16441_v21 }
  0x1e   :  { %v1145_v33 = vrot.slane %v1137_v9, %v16441_v21  ;;  %v1185_v34 = vrot.slane %v1157_v12, %v16441_v21  ;;  %v1186_v35 = vcombine.low %v1164_v6, %v1171_v13  ;;  %v477_v10 = vrot.slane %v463_v23, %v16441_v21 }
  0x1f   :  { %v1152_v22 = vrot.slane %v1138_v18, %v16441_v21  ;;  %v458_v36 = vrot.slane %v430_v25, %v16441_v21  ;;  %v478_v37 = vcombine.high %v470_v14, %v470_v14  ;;  %v486_v41 = vrot.slane %v470_v14, %v16441_v21 }
  0x20   :  { %v1187_v42 = vcombine.low %v1178_v19, %v1185_v34  ;;  %v1194_v43 = vrot.slane %v1186_v35, %v16441_v21  ;;  %v479_v44 = vcombine.high %v477_v10, %v477_v10  ;;  %v493_v45 = vrot.slane %v477_v10, %v16441_v21 }
  0x21   :  { %v1153_v38 = vcombine.low %v1145_v33, %v1152_v22  ;;  %v500_v46 = vrot.slane %v478_v37, %v16441_v21  ;;  %v518_v15 = vrot.slane %v16428_v16, %v16441_v21  ;;  %v13968_v23 = vcombine.high %v437_v60, %v451_v1 }
  0x22   :  { %v1201_v47 = vrot.slane %v1187_v42, %v16441_v21  ;;  %v507_v48 = vrot.slane %v479_v44, %v16441_v21  ;;  %v509_v50 = vcombine.high %v493_v45, %v493_v45  ;;  %v1204_v51 = vcombine.low %v444_v32, %v458_v36 }
  0x23   :  { %v526_v52 = vcombine.high %v518_v15, %v518_v15  ;;  %v534_v53 = vrot.slane %v518_v15, %v16441_v21  ;;  %v13969_v54 = vcombine.high %v444_v32, %v458_v36  ;;  %v1206_v55 = vcombine.low %v486_v41, %v500_v46 }
  0x24   :  { %v1202_v56 = vcombine.low %v1194_v43, %v1201_v47  ;;  %v1213_v57 = vrot.slane %v13968_v23, %v16441_v21  ;;  %v1220_v59 = vrot.slane %v1204_v51, %v16441_v21  ;;  %v13970_v61 = vcombine.high %v486_v41, %v500_v46 }
  0x25   :  { %v548_v39 = vrot.slane %v526_v52, %v16441_v21  ;;  %v556_v60 = vcombine.high %v534_v53, %v534_v53  ;;  %v1227_v62 = vrot.slane %v13969_v54, %v16441_v21  ;;  %v1234_v40 = vrot.slane %v1206_v55, %v16441_v21 }
  0x26   :  { %v1758_v63 = vpack.c.bf16 %v1202_v56, %v1153_v38  ;;  %v1235_v0 = vcombine.low %v1213_v57, %v1220_v59  ;;  %v1253_v1 = vcombine.low %v493_v45, %v507_v48  ;;  %v1254_v2 = vcombine.low %v509_v50, %v534_v53 }
  0x27   :  { %v1236_v58 = vcombine.low %v1227_v62, %v1234_v40  ;;  %v1255_v3 = vcombine.low %v548_v39, %v556_v60  ;;  %v1262_v4 = vrot.slane %v13970_v61, %v16441_v21  ;;  %v525_v5 = vrot.slane %v511_v24, %v16441_v21 }
  0x28   :  { %14732 = vmatmul.mubr.msk.bf16.vlgmr.msra.gmra.mxu0 %vm1765_vm2, %v1758_v63  ;;  %v1243_v6 = vrot.slane %v1235_v0, %v16441_v21  ;;  %v1269_v7 = vrot.slane %v1253_v1, %v16441_v21  ;;  %v1276_v9 = vrot.slane %v1254_v2, %v16441_v21  ;;  %v558_v12 = vcombine.high %v548_v39, %v548_v39 }
  0x29   :  { %v1250_v13 = vrot.slane %v1236_v58, %v16441_v21  ;;  %v1283_v14 = vrot.slane %v1255_v3, %v16441_v21  ;;  %v527_v18 = vcombine.high %v525_v5, %v525_v5  ;;  %v541_v19 = vrot.slane %v525_v5, %v16441_v21  ;;  %14748 = vmatpush3.bf16.msra.mxu0 %v16491_v49 }
  0x2a   :  { %v1284_v16 = vcombine.low %v1262_v4, %v1269_v7  ;;  %v567_v24 = vrot.slane %v16433_v17, %v16441_v21  ;;  %v574_v25 = vrot.slane %v560_v28, %v16441_v21  ;;  %v615_v32 = vrot.slane %v16438_v20, %v16441_v21 }
  0x2b   :  { %v1251_v33 = vcombine.low %v1243_v6, %v1250_v13  ;;  %v1285_v34 = vcombine.low %v1276_v9, %v1283_v14  ;;  %v555_v35 = vrot.slane %v527_v18, %v16441_v21  ;;  %v557_v10 = vcombine.high %v541_v19, %v541_v19 }
  0x2c   :  { %v1292_v22 = vrot.slane %v1284_v16, %v16441_v21  ;;  %v575_v49 = vcombine.high %v567_v24, %v567_v24  ;;  %v576_v36 = vcombine.high %v574_v25, %v574_v25  ;;  %v583_v37 = vrot.slane %v567_v24, %v16441_v21 }
  0x2d   :  { %v1299_v41 = vrot.slane %v1285_v34, %v16441_v21  ;;  %v559_v42 = vcombine.high %v555_v35, %v555_v35  ;;  %v590_v17 = vrot.slane %v574_v25, %v16441_v21  ;;  %v623_v28 = vcombine.high %v615_v32, %v615_v32 }
  0x2e   :  { %v597_v43 = vrot.slane %v575_v49, %v16441_v21  ;;  %v604_v44 = vrot.slane %v576_v36, %v16441_v21  ;;  %v605_v45 = vcombine.high %v583_v37, %v583_v37  ;;  %v631_v38 = vrot.slane %v615_v32, %v16441_v21 }
  0x2f   :  { %v1300_v46 = vcombine.low %v1292_v22, %v1299_v41  ;;  %v606_v15 = vcombine.high %v590_v17, %v590_v17  ;;  %v645_v23 = vrot.slane %v623_v28, %v16441_v21  ;;  %v1301_v47 = vcombine.low %v558_v12, %v541_v19 }
  0x30   :  { %v607_v48 = vcombine.high %v597_v43, %v597_v43  ;;  %v1302_v50 = vcombine.low %v555_v35, %v557_v10  ;;  %v1303_v51 = vcombine.low %v559_v42, %v583_v37  ;;  %v1304_v52 = vcombine.low %v597_v43, %v605_v45 }
  0x31   :  { %v1759_v53 = vpack.c.bf16 %v1300_v46, %v1251_v33  ;;  %v1311_v54 = vrot.slane %v1301_v47, %v16441_v21  ;;  %v1351_v55 = vcombine.low %v604_v44, %v606_v15  ;;  %v1352_v56 = vcombine.low %v631_v38, %v645_v23  ;;  %v200_v46 = vld [vmem:[%s21510_s1 + $0x60] sm:$0xff] }
  0x32   :  { %v1318_v57 = vrot.slane %v1302_v50, %v16441_v21  ;;  %v1325_v59 = vrot.slane %v1303_v51, %v16441_v21  ;;  %v1332_v61 = vrot.slane %v1304_v52, %v16441_v21  ;;  %v1350_v39 = vcombine.low %v607_v48, %v590_v17 }
  0x33   :  { %14735 = vmatprep.mubr.msk.bf16.mxu0 %vm1765_vm2, %v1759_v53  ;;  %v13971_v60 = vcombine.high %v631_v38, %v645_v23  ;;  %v1367_v62 = vrot.slane %v1351_v55, %v16441_v21  ;;  %v1374_v40 = vrot.slane %v1352_v56, %v16441_v21  ;;  %v622_v63 = vrot.slane %v608_v29, %v16441_v21 }
  0x34   :  { %v1333_v0 = vcombine.low %v1311_v54, %v1318_v57  ;;  %v1334_v1 = vcombine.low %v1325_v59, %v1332_v61  ;;  %v1360_v2 = vrot.slane %v1350_v39, %v16441_v21  ;;  %v664_v58 = vrot.slane %v16455_v26, %v16441_v21 }
  0x35   :  { %v1381_v3 = vrot.slane %v13971_v60, %v16441_v21  ;;  %v624_v4 = vcombine.high %v622_v63, %v622_v63  ;;  %v638_v5 = vrot.slane %v622_v63, %v16441_v21  ;;  %v671_v6 = vrot.slane %v657_v30, %v16441_v21 }
  0x36   :  { %v1341_v20 = vrot.slane %v1333_v0, %v16441_v21  ;;  %v1348_v29 = vrot.slane %v1334_v1, %v16441_v21  ;;  %v1382_v7 = vcombine.low %v1360_v2, %v1367_v62  ;;  %v672_v9 = vcombine.high %v664_v58, %v664_v58 }
  0x37   :  { %v1383_v12 = vcombine.low %v1374_v40, %v1381_v3  ;;  %v652_v13 = vrot.slane %v624_v4, %v16441_v21  ;;  %v673_v14 = vcombine.high %v671_v6, %v671_v6  ;;  %v680_v18 = vrot.slane %v664_v58, %v16441_v21 }
  0x38   :  { %v1349_v19 = vcombine.low %v1341_v20, %v1348_v29  ;;  %v1390_v16 = vrot.slane %v1382_v7, %v16441_v21  ;;  %v687_v24 = vrot.slane %v671_v6, %v16441_v21  ;;  %v694_v26 = vrot.slane %v672_v9, %v16441_v21 }
  0x39   :  { %v1397_v30 = vrot.slane %v1383_v12, %v16441_v21  ;;  %v701_v25 = vrot.slane %v673_v14, %v16441_v21  ;;  %v712_v32 = vrot.slane %v16460_v27, %v16441_v21  ;;  %v719_v33 = vrot.slane %v705_v31, %v16441_v21  ;;  %v199_v27 = vld [vmem:[%s21510_s1 + $0x58] sm:$0x7f] }
  0x3a   :  { %v703_v34 = vcombine.high %v687_v24, %v687_v24  ;;  %v1399_v35 = vcombine.low %v638_v5, %v652_v13  ;;  %v13972_v10 = vcombine.high %v638_v5, %v652_v13  ;;  %v1401_v22 = vcombine.low %v680_v18, %v694_v26 }
  0x3b   :  { %v1398_v49 = vcombine.low %v1390_v16, %v1397_v30  ;;  %v720_v36 = vcombine.high %v712_v32, %v712_v32  ;;  %v728_v37 = vrot.slane %v712_v32, %v16441_v21  ;;  %v735_v41 = vrot.slane %v719_v33, %v16441_v21 }
  0x3c   :  { %v13973_v42 = vcombine.high %v680_v18, %v694_v26  ;;  %v1409_v17 = vrot.slane %v1399_v35, %v16441_v21  ;;  %v1416_v28 = vrot.slane %v13972_v10, %v16441_v21  ;;  %v1423_v43 = vrot.slane %v1401_v22, %v16441_v21 }
  0x3d   :  { %v1760_v31 = vpack.c.bf16 %v1398_v49, %v1349_v19  ;;  %v742_v44 = vrot.slane %v720_v36, %v16441_v21  ;;  %v750_v45 = vcombine.high %v728_v37, %v728_v37  ;;  %v1448_v38 = vcombine.low %v687_v24, %v701_v25 }
  0x3e   :  { %v1430_v15 = vrot.slane %v13973_v42, %v16441_v21  ;;  %v1431_v23 = vcombine.low %v1409_v17, %v1416_v28  ;;  %v1449_v47 = vcombine.low %v703_v34, %v728_v37  ;;  %v721_v48 = vcombine.high %v719_v33, %v719_v33  ;;  %v18_v17 = vld [vmem:[%s21511_s0] sm:$0xff]  ;;  %v201_v28 = vld [vmem:[%s21510_s1 + $0x68] sm:$0x7f] }
  0x3f   :  { %14736 = vmatmul.mubr.msk.bf16.gmra.mxu0 %vm1765_vm2, %v1760_v31  ;;  %v752_v50 = vcombine.high %v742_v44, %v742_v44  ;;  %v1450_v51 = vcombine.low %v742_v44, %v750_v45  ;;  %v1458_v52 = vrot.slane %v1448_v38, %v16441_v21  ;;  %v751_v53 = vcombine.high %v735_v41, %v735_v41  ;;  %v202_v45 = vld [vmem:[%s21510_s1 + $0x70] sm:$0xff] }
  0x40   :  { %v1432_v54 = vcombine.low %v1423_v43, %v1430_v15  ;;  %v1439_v55 = vrot.slane %v1431_v23, %v16441_v21  ;;  %v1465_v56 = vrot.slane %v1449_v47, %v16441_v21  ;;  %v749_v57 = vrot.slane %v721_v48, %v16441_v21  ;;  %v15681_v47 = vld [vmem:[%s21509_s2 + $0x90] ss:$8 sps:$4 sm:$0xff]  }
  0x41   :  { %v1451_v59 = vcombine.low %v752_v50, %v735_v41  ;;  %v1472_v61 = vrot.slane %v1450_v51, %v16441_v21  ;;  %v754_v39 = vcombine.high %v199_v27, %v199_v27  ;;  %v761_v60 = vrot.slane %v199_v27, %v16441_v21 }
  0x42   :  { %v1446_v62 = vrot.slane %v1432_v54, %v16441_v21  ;;  %v1480_v40 = vcombine.low %v1458_v52, %v1465_v56  ;;  %v753_v63 = vcombine.high %v749_v57, %v749_v57  ;;  %v802_v0 = vcombine.high %v200_v46, %v200_v46 }
  0x43   :  { %v1479_v1 = vrot.slane %v1451_v59, %v16441_v21  ;;  %v768_v2 = vrot.slane %v754_v39, %v16441_v21  ;;  %v769_v58 = vcombine.high %v761_v60, %v761_v60  ;;  %v777_v3 = vrot.slane %v761_v60, %v16441_v21 }
  0x44   :  { %v1447_v4 = vcombine.low %v1439_v55, %v1446_v62  ;;  %v1488_v5 = vrot.slane %v1480_v40, %v16441_v21  ;;  %v809_v6 = vrot.slane %v200_v46, %v16441_v21  ;;  %v816_v20 = vrot.slane %v802_v0, %v16441_v21  ;;  %v15683_v0 = vld [vmem:[%s21509_s2 + $0x80] ss:$8 sps:$4 sm:$0xff]  }
  0x45   :  { %v1481_v29 = vcombine.low %v1472_v61, %v1479_v1  ;;  %v770_v7 = vcombine.high %v768_v2, %v768_v2  ;;  %v784_v9 = vrot.slane %v768_v2, %v16441_v21  ;;  %v791_v12 = vrot.slane %v769_v58, %v16441_v21 }
  0x46   :  { %v799_v13 = vcombine.high %v777_v3, %v777_v3  ;;  %v817_v14 = vcombine.high %v809_v6, %v809_v6  ;;  %v818_v18 = vcombine.high %v816_v20, %v816_v20  ;;  %v825_v19 = vrot.slane %v809_v6, %v16441_v21 }
  0x47   :  { %v1495_v16 = vrot.slane %v1481_v29, %v16441_v21  ;;  %v798_v24 = vrot.slane %v770_v7, %v16441_v21  ;;  %v800_v26 = vcombine.high %v784_v9, %v784_v9  ;;  %v801_v30 = vcombine.high %v791_v12, %v791_v12 }
  0x48   :  { %v16658_v25 = vrot.slane %v816_v20, %v16441_v21  ;;  %v839_v32 = vrot.slane %v817_v14, %v16441_v21  ;;  %v16662_v33 = vrot.slane %v818_v18, %v16441_v21  ;;  %v1497_v34 = vcombine.low %v749_v57, %v751_v53 }
  0x49   :  { %v1496_v35 = vcombine.low %v1488_v5, %v1495_v16  ;;  %v1498_v10 = vcombine.low %v753_v63, %v777_v3  ;;  %v1499_v22 = vcombine.low %v791_v12, %v799_v13  ;;  %v1500_v49 = vcombine.low %v801_v30, %v784_v9 }
  0x4a   :  { %v1507_v36 = vrot.slane %v1497_v34, %v16441_v21  ;;  %v1546_v37 = vcombine.low %v798_v24, %v800_v26  ;;  %v1547_v41 = vcombine.low %v825_v19, %v839_v32  ;;  %v13974_v42 = vcombine.high %v825_v19, %v839_v32 }
  0x4b   :  { %v1761_v43 = vpack.c.bf16 %v1496_v35, %v1447_v4  ;;  %v1514_v27 = vrot.slane %v1498_v10, %v16441_v21  ;;  %v1521_v31 = vrot.slane %v1499_v22, %v16441_v21  ;;  %v1528_v44 = vrot.slane %v1500_v49, %v16441_v21  ;;  %v203_v22 = vld [vmem:[%s21510_s1 + $0x78] sm:$0x7f] }
  0x4c   :  { %v1549_v38 = vcombine.low %v16658_v25, %v16662_v33  ;;  %v1556_v46 = vrot.slane %v1546_v37, %v16441_v21  ;;  %v1563_v15 = vrot.slane %v1547_v41, %v16441_v21  ;;  %v1570_v23 = vrot.slane %v13974_v42, %v16441_v21 }
  0x4d   :  { %14739 = vmatprep.mubr.msk.bf16.mxu0 %vm1765_vm2, %v1761_v43  ;;  %v1529_v48 = vcombine.low %v1507_v36, %v1514_v27  ;;  %v1530_v50 = vcombine.low %v1521_v31, %v1528_v44  ;;  %v41_v51 = vpack.c.bf16 %v18_v17, %v18_v17  ;;  %v851_v52 = vcombine.high %v201_v28, %v201_v28 }
  0x4e   :  { %v1577_v53 = vrot.slane %v1549_v38, %v16441_v21  ;;  %v1578_v54 = vcombine.low %v1556_v46, %v1563_v15  ;;  %v858_v55 = vrot.slane %v201_v28, %v16441_v21  ;;  %v899_v56 = vcombine.high %v202_v45, %v202_v45 }
  0x4f   :  { %v1537_v57 = vrot.slane %v1529_v48, %v16441_v21  ;;  %v1544_v59 = vrot.slane %v1530_v50, %v16441_v21  ;;  %14706 = vmatmul.mubr.msk.bf16.vlgmr.msra.gmra.mxu1 %vm54_vm3, %v41_v51  ;;  %v865_v61 = vrot.slane %v851_v52, %v16441_v21  ;;  %v906_v39 = vrot.slane %v202_v45, %v16441_v21 }
  0x50   :  { %v1579_v60 = vcombine.low %v1570_v23, %v1577_v53  ;;  %v1586_v62 = vrot.slane %v1578_v54, %v16441_v21  ;;  %v866_v40 = vcombine.high %v858_v55, %v858_v55  ;;  %v874_v63 = vrot.slane %v858_v55, %v16441_v21  ;;  %14710 = vmatpush3.bf16.msra.mxu1 %v15681_v47 }
  0x51   :  { %v1545_v1 = vcombine.low %v1537_v57, %v1544_v59  ;;  %v867_v2 = vcombine.high %v865_v61, %v865_v61  ;;  %v881_v58 = vrot.slane %v865_v61, %v16441_v21  ;;  %v913_v3 = vrot.slane %v899_v56, %v16441_v21  ;;  %14711 = vmatprep.subr.bf16.mxu1 %v21514_v11 }
  0x52   :  { %v1593_v4 = vrot.slane %v1579_v60, %v16441_v21  ;;  %v888_v5 = vrot.slane %v866_v40, %v16441_v21  ;;  %v914_v6 = vcombine.high %v906_v39, %v906_v39  ;;  %v922_v20 = vrot.slane %v906_v39, %v16441_v21  ;;  %14725 = vmatprep.mubr.msk.bf16.mxu1 %vm16367_vm1, %v21514_v11 }
  0x53   :  { %v895_v29 = vrot.slane %v867_v2, %v16441_v21  ;;  %v897_v7 = vcombine.high %v881_v58, %v881_v58  ;;  %v915_v9 = vcombine.high %v913_v3, %v913_v3  ;;  %v929_v12 = vrot.slane %v913_v3, %v16441_v21 }
  0x54   :  { %v1594_v13 = vcombine.low %v1586_v62, %v1593_v4  ;;  %v936_v14 = vrot.slane %v914_v6, %v16441_v21  ;;  %v944_v18 = vcombine.high %v922_v20, %v922_v20  ;;  %v13975_v19 = vcombine.high %v16658_v25, %v16662_v33  ;;  %14712 = vmatpush3.bf16.msra.mxu1 %v15683_v0 }
  0x55   :  { %v943_v16 = vrot.slane %v915_v9, %v16441_v21  ;;  %v945_v24 = vcombine.high %v929_v12, %v929_v12  ;;  %v1596_v26 = vcombine.low %v874_v63, %v888_v5  ;;  %v13976_v30 = vcombine.high %v874_v63, %v888_v5  ;;  %14713 = vmatprep.subr.bf16.mxu1 %v21514_v11 }
  0x56   :  { %v1762_v32 = vpack.c.bf16 %v1594_v13, %v1545_v1  ;;  %v946_v34 = vcombine.high %v936_v14, %v936_v14  ;;  %v1598_v35 = vcombine.low %v881_v58, %v895_v29  ;;  %v1605_v10 = vrot.slane %v13975_v19, %v16441_v21  ;;  %v15686_v19 = vld [vmem:[%s21509_s2 + $0xc0] ss:$8 sps:$4 sm:$0xff]  }
  0x57   :  { %v1612_v49 = vrot.slane %v1596_v26, %v16441_v21  ;;  %v1619_v25 = vrot.slane %v13976_v30, %v16441_v21  ;;  %v1644_v33 = vcombine.low %v897_v7, %v922_v20  ;;  %v1645_v36 = vcombine.low %v936_v14, %v944_v18  ;;  %v15684_v14 = vld [vmem:[%s21509_s2 + $0xd0] ss:$8 sps:$4 sm:$0xff]   ;;  %v15690_v30 = vld [vmem:[%s21509_s2 + $0x40] ss:$8 sps:$4 sm:$0xff]  }
  0x58   :  { %14740 = vmatmul.mubr.msk.bf16.gmra.mxu0 %vm1765_vm2, %v1762_v32  ;;  %v1626_v37 = vrot.slane %v1598_v35, %v16441_v21  ;;  %v1646_v41 = vcombine.low %v946_v34, %v929_v12  ;;  %v1647_v42 = vcombine.low %v943_v16, %v945_v24  ;;  %v948_v27 = vcombine.high %v203_v22, %v203_v22  ;;  %v15685_v18 = vld [vmem:[%s21509_s2 + $0x70] ss:$8 sps:$4 sm:$0xff]   ;;  %v15692_v34 = vld [vmem:[%s21509_s2 + $0x20] ss:$8 sps:$4 sm:$0xff]  }
  0x59   :  { %v1627_v17 = vcombine.low %v1605_v10, %v1612_v49  ;;  %v1654_v28 = vrot.slane %v1644_v33, %v16441_v21  ;;  %v1661_v43 = vrot.slane %v1645_v36, %v16441_v21  ;;  %v955_v38 = vrot.slane %v203_v22, %v16441_v21  ;;  %14749 = vmatprep.subr.bf16.mxu0 %v15684_v14  ;;  %v15688_v24 = vld [vmem:[%s21509_s2 + $0xb0] ss:$8 sps:$4 sm:$0xff]   ;;  %v16779_v22 = vld [vmem:[%s21512_s3 + $0x2] ss:$0 sm:$0xff] }
  0x5a   :  { %v1628_v31 = vcombine.low %v1619_v25, %v1626_v37  ;;  %v1668_v44 = vrot.slane %v1646_v41, %v16441_v21  ;;  %v1675_v45 = vrot.slane %v1647_v42, %v16441_v21  ;;  %v947_v23 = vcombine.high %v943_v16, %v943_v16  ;;  %14714 = vmatpush3.bf16.msra.mxu1 %v15685_v18  ;;  %v15687_v16 = vld [vmem:[%s21509_s2 + $0x60] ss:$8 sps:$4 sm:$0xff]   ;;  %v15689_v26 = vld [vmem:[%s21509_s2 + $0x50] ss:$8 sps:$4 sm:$0xff]  }
  0x5b   :  { %v1635_v46 = vrot.slane %v1627_v17, %v16441_v21  ;;  %v1676_v15 = vcombine.low %v1654_v28, %v1661_v43  ;;  %v962_v47 = vrot.slane %v948_v27, %v16441_v21  ;;  %v963_v51 = vcombine.high %v955_v38, %v955_v38  ;;  %14750 = vmatpush3.bf16.msra.mxu0 %v15684_v14  ;;  %v15691_v32 = vld [vmem:[%s21509_s2 + $0x30] ss:$8 sps:$4 sm:$0xff]  }
  0x5c   :  { %v1642_v48 = vrot.slane %v1628_v31, %v16441_v21  ;;  %v1677_v50 = vcombine.low %v1668_v44, %v1675_v45  ;;  %v971_v52 = vrot.slane %v955_v38, %v16441_v21  ;;  %14715 = vmatprep.subr.bf16.mxu1 %v21514_v11  ;;  %14751 = vmatprep.subr.bf16.mxu0 %v15686_v19  ;;  %vm13509_vm7 = vcmask 1041409  }
  0x5d   :  { %v1684_v53 = vrot.slane %v1676_v15, %v16441_v21  ;;  %v964_v54 = vcombine.high %v962_v47, %v962_v47  ;;  %v978_v55 = vrot.slane %v962_v47, %v16441_v21  ;;  %v985_v59 = vrot.slane %v963_v51, %v16441_v21 }
  0x5e   :  { %v1643_v56 = vcombine.low %v1635_v46, %v1642_v48  ;;  %v1691_v57 = vrot.slane %v1677_v50, %v16441_v21  ;;  %v993_v61 = vcombine.high %v971_v52, %v971_v52  ;;  %v1693_v62 = vcombine.low %v947_v23, %v971_v52  ;;  %14716 = vmatpush3.bf16.msra.mxu1 %v15687_v16 }
  0x5f   :  { %v992_v39 = vrot.slane %v964_v54, %v16441_v21  ;;  %v994_v60 = vcombine.high %v978_v55, %v978_v55  ;;  %v995_v63 = vcombine.high %v985_v59, %v985_v59  ;;  %14752 = vmatpush3.bf16.msra.mxu0 %v15686_v19  ;;  %14717 = vmatprep.subr.bf16.mxu1 %v21514_v11  ;;  %vm13512_vm8 = vcmask 1042434  }
  0x60   :  { %v1692_v40 = vcombine.low %v1684_v53, %v1691_v57  ;;  %v1694_v0 = vcombine.low %v985_v59, %v993_v61  ;;  %v1703_v2 = vrot.slane %v1693_v62, %v16441_v21  ;;  %14753 = vmatprep.subr.bf16.mxu0 %v15688_v24  ;;  %vm13515_vm9 = vcmask 1043459  }
  0x61   :  { %v1696_v1 = vcombine.low %v992_v39, %v994_v60  ;;  %v1695_v3 = vcombine.low %v995_v63, %v978_v55  ;;  %vm13518_vm10 = vcmask 1044484   ;;  %vm13521_vm11 = vcmask 1045509  }
  0x62   :  { %v1763_v58 = vpack.c.bf16 %v1692_v40, %v1643_v56  ;;  %v1710_v4 = vrot.slane %v1694_v0, %v16441_v21  ;;  %14718 = vmatpush3.bf16.msra.mxu1 %v15689_v26  ;;  %v23_v56 = vld [vmem:[%s21512_s3] ss:$0 sm:$0xff]  ;;  %vm13524_vm12 = vcmask 1046534   ;;  %vm13526_vm13 = vcmask 1047559  }
  0x63   :  { %v1724_v5 = vrot.slane %v1696_v1, %v16441_v21  ;;  %v1717_v6 = vrot.slane %v1695_v3, %v16441_v21  ;;  %14754 = vmatpush3.bf16.msra.mxu0 %v15688_v24  ;;  %14719 = vmatprep.subr.bf16.mxu1 %v21514_v11  ;;  %vm13948_vm14 = vcmask 64512  }
  0x64   :  { %14743 = vmatprep.mubr.msk.bf16.mxu0 %vm1765_vm2, %v1763_v58  ;;  %v1725_v20 = vcombine.low %v1703_v2, %v1710_v4  ;;  %14771 = vmatprep.subr.bf16.mxu0 %v21514_v11 }
  0x65   :  { %v1726_v29 = vcombine.low %v1717_v6, %v1724_v5 }
  0x66   :  { %v1733_v7 = vrot.slane %v1725_v20, %v16441_v21  ;;  %14720 = vmatpush3.bf16.msra.mxu1 %v15690_v30 }
  0x67   :  { %v1740_v9 = vrot.slane %v1726_v29, %v16441_v21  ;;  %14721 = vmatprep.subr.bf16.mxu1 %v21514_v11 }
  0x69   :  { %v1741_v12 = vcombine.low %v1733_v7, %v1740_v9 }
  0x6a   :  { %14722 = vmatpush3.bf16.msra.mxu1 %v15691_v32 }
  0x6b   :  { %v1764_v13 = vpack.c.bf16 %v1741_v12, %v1741_v12  ;;  %14723 = vmatprep.subr.bf16.mxu1 %v21514_v11 }
  0x6d   :  { %14744 = vmatmul.mubr.msk.bf16.gmra.mxu0 %vm1765_vm2, %v1764_v13 }
  0x6e   :  { %14724 = vmatpush3.bf16.msra.mxu1 %v15692_v34 }
  0xe8   :  { %v14733_v35 = vpop.f32.mrf.mxu0 }
  0xe9   :  { %v1837_v36 = vadd.f32 %v14733_v35, %v16779_v22 }
  0xea   :  { %v1828_v10 = vpop.f32.mrf.mxu0 }
  0xeb   :  { %v1829_v25 = vadd.f32 %v1828_v10, %v16779_v22  ;;  %v1892_v43 = vmax.f32 %v1837_v36, 0.0  ;;  %v15701_v36 = vld [vmem:[%s21509_s2 + $0x104] ss:$8 sps:$4 sm:$0xff]  }
  0xec   :  { %v14734_v49 = vpop.f32.mrf.mxu0 }
  0xed   :  { %v1840_v33 = vadd.f32 %v14734_v49, %v16779_v22  ;;  %v1890_v17 = vmax.f32 %v1829_v25, 0.0  ;;  %v15695_v49 = vld [vmem:[%s21509_s2 + $0x124] ss:$8 sps:$4 sm:$0xff]   ;;  %v15693_v25 = vld [vmem:[%s21509_s2 + $0x120] ss:$8 sps:$4 sm:$0xff]  }
  0xee   :  { %v1831_v37 = vpop.f32.mrf.mxu0  ;;  %3800 = vmatprep.subr.bf16.mxu1 %v15695_v49 }
  0xef   :  { %v1832_v41 = vadd.f32 %v1831_v37, %v16779_v22  ;;  %v1893_v42 = vmax.f32 %v1840_v33, 0.0  ;;  %v15696_v33 = vld [vmem:[%s21509_s2 + $0x110] ss:$8 sps:$4 sm:$0xff]   ;;  %v15699_v37 = vld [vmem:[%s21509_s2 + $0x100] ss:$8 sps:$4 sm:$0xff]  }
  0xf1   :  { %v1891_v28 = vmax.f32 %v1832_v41, 0.0  ;;  %v1906_v31 = vpack.c.bf16 %v1893_v42, %v1892_v43  ;;  %v15704_v41 = vld [vmem:[%s21509_s2 + $0xf4] ss:$8 sps:$4 sm:$0xff]   ;;  %v15702_v42 = vld [vmem:[%s21509_s2 + $0xf0] ss:$8 sps:$4 sm:$0xff]  }
  0xf3   :  { %v1905_v27 = vpack.c.bf16 %v1891_v28, %v1890_v17  ;;  %v21516_v17 = vmov 0  }
  0xf5   :  { %14755 = vmatprep.mubr.msk.bf16.mxu0 %vm1937_vm4, %v1905_v27  ;;  %v16838_v27 = vld [vmem:[%s21512_s3 + $0x3] ss:$0 sm:$0xff] }
  0xf6   :  { %14756 = vmatmul.mubr.msk.bf16.vlgmr.msra.gmra.mxu0 %vm1937_vm4, %v1906_v31 }
  0xff   :  { %v14737_v44 = vpop.f32.mrf.mxu0 }
 0x100   :  { %v1853_v45 = vadd.f32 %v14737_v44, %v16779_v22 }
 0x101   :  { %v1844_v38 = vpop.f32.mrf.mxu0 }
 0x102   :  { %v1845_v46 = vadd.f32 %v1844_v38, %v16779_v22  ;;  %v1896_v47 = vmax.f32 %v1853_v45, 0.0 }
 0x103   :  { %v14738_v15 = vpop.f32.mrf.mxu0 }
 0x104   :  { %v1856_v23 = vadd.f32 %v14738_v15, %v16779_v22  ;;  %v1894_v50 = vmax.f32 %v1845_v46, 0.0 }
 0x105   :  { %v1847_v48 = vpop.f32.mrf.mxu0 }
 0x106   :  { %v1897_v51 = vmax.f32 %v1856_v23, 0.0  ;;  %v1848_v52 = vadd.f32 %v1847_v48, %v16779_v22 }
 0x108   :  { %v1895_v53 = vmax.f32 %v1848_v52, 0.0  ;;  %v1908_v54 = vpack.c.bf16 %v1897_v51, %v1896_v47 }
 0x10a   :  { %v1907_v55 = vpack.c.bf16 %v1895_v53, %v1894_v50 }
 0x10c   :  { %14759 = vmatprep.mubr.msk.bf16.mxu0 %vm1937_vm4, %v1907_v55 }
 0x10d   :  { %14760 = vmatmul.mubr.msk.bf16.gmra.mxu0 %vm1937_vm4, %v1908_v54 }
 0x10f   :  { %v92_v57 = vpop.f32.mrf.mxu1 }
 0x110   :  { %v93_v59 = vadd.f32 %v92_v57, %v23_v56 }
 0x111   :  { %v14707_v61 = vpop.f32.mrf.mxu1 }
 0x112   :  { %v98_v39 = vmax.f32 %v93_v59, 0.0 }
 0x113   :  { %v95_v60 = vpop.f32.mrf.mxu1 }
 0x114   :  { %v99_v62 = vpack.c.bf16 %v98_v39, %v98_v39 }
 0x115   :  { %v14708_v40 = vpop.f32.mrf.mxu1 }
 0x116   :  { %14726 = vmatmul.mubr.bf16.vlgmr.msra.gmra.mxu1 %v99_v62 }
 0x117   :  { %3801 = vmatpush1.bf16.msra.mxu1 %v15693_v25  ;;  %3824 = vmatprep.mubr.bf16.mxu1 %v21516_v17 }
 0x118   :  { %v14741_v63 = vpop.f32.mrf.mxu0 }
 0x119   :  { %v1869_v0 = vadd.f32 %v14741_v63, %v16779_v22 }
 0x11a   :  { %v1860_v1 = vpop.f32.mrf.mxu0 }
 0x11b   :  { %v1861_v2 = vadd.f32 %v1860_v1, %v16779_v22  ;;  %v1900_v4 = vmax.f32 %v1869_v0, 0.0 }
 0x11c   :  { %v14742_v58 = vpop.f32.mrf.mxu0 }
 0x11d   :  { %v1872_v3 = vadd.f32 %v14742_v58, %v16779_v22  ;;  %v1898_v6 = vmax.f32 %v1861_v2, 0.0 }
 0x11e   :  { %v1863_v5 = vpop.f32.mrf.mxu0 }
 0x11f   :  { %v1901_v20 = vmax.f32 %v1872_v3, 0.0  ;;  %v1864_v29 = vadd.f32 %v1863_v5, %v16779_v22 }
 0x121   :  { %v1899_v7 = vmax.f32 %v1864_v29, 0.0  ;;  %v1910_v9 = vpack.c.bf16 %v1901_v20, %v1900_v4 }
 0x123   :  { %v1909_v12 = vpack.c.bf16 %v1899_v7, %v1898_v6 }
 0x125   :  { %14763 = vmatprep.mubr.msk.bf16.mxu0 %vm1937_vm4, %v1909_v12 }
 0x126   :  { %14764 = vmatmul.mubr.msk.bf16.gmra.mxu0 %vm1937_vm4, %v1910_v9 }
 0x12d   :  { %v14745_v13 = vpop.f32.mrf.mxu0 }
 0x12e   :  { %v1885_v14 = vadd.f32 %v14745_v13, %v16779_v22 }
 0x12f   :  { %v1876_v18 = vpop.f32.mrf.mxu0 }
 0x130   :  { %v1877_v19 = vadd.f32 %v1876_v18, %v16779_v22  ;;  %v1904_v24 = vmax.f32 %v1885_v14, 0.0 }
 0x131   :  { %v14746_v16 = vpop.f32.mrf.mxu0 }
 0x132   :  { %v1902_v30 = vmax.f32 %v1877_v19, 0.0  ;;  %v1912_v35 = vpack.c.bf16 %v1904_v24, %v1904_v24 }
 0x133   :  { %v1879_v26 = vpop.f32.mrf.mxu0 }
 0x134   :  { %v1880_v32 = vadd.f32 %v1879_v26, %v16779_v22  ;;  %v15698_v22 = vld [vmem:[%s21509_s2 + $0x114] ss:$8 sps:$4 sm:$0xff]   ;;  %v16869_v26 = vsub.s32 0, %v16409_v8 }
 0x135   :  { %3802 = vmatprep.subr.bf16.mxu1 %v15698_v22 }
 0x136   :  { %v1903_v34 = vmax.f32 %v1880_v32, 0.0  ;;  %3803 = vmatpush1.bf16.msra.mxu1 %v15696_v33  ;;  %21536 = vst [vmem:[#allocation2_spill] sm:$0xff] %v16869_v26 }
 0x137   :  { %3804 = vmatprep.subr.bf16.mxu1 %v15701_v36 }
 0x138   :  { %v1911_v10 = vpack.c.bf16 %v1903_v34, %v1902_v30 }
 0x13a   :  { %14767 = vmatprep.mubr.msk.bf16.mxu0 %vm1937_vm4, %v1911_v10  ;;  %3805 = vmatpush1.bf16.msra.mxu1 %v15699_v37 }
 0x13b   :  { %14768 = vmatmul.mubr.msk.bf16.gmra.mxu0 %vm1937_vm4, %v1912_v35  ;;  %3806 = vmatprep.subr.bf16.mxu1 %v15704_v41 }
 0x13c   :  { %14773 = vmatprep.mubr.msk.bf16.mxu0 %vm16367_vm1, %v21514_v11 }
 0x13e   :  { %3807 = vmatpush1.bf16.msra.mxu1 %v15702_v42 }
 0x13f   :  { %14801 = vmatprep.subr.bf16.mxu1 %v21514_v11 }
 0x1b6   :  { %v14757_v28 = vpop.f32.mrf.mxu0 }
 0x1b7   :  { %v2005_v31 = vadd.f32 %v14757_v28, %v16838_v27 }
 0x1b8   :  { %v1996_v43 = vpop.f32.mrf.mxu0 }
 0x1b9   :  { %v1997_v45 = vadd.f32 %v1996_v43, %v16838_v27  ;;  %v2171_v46 = vcombine.high %v2005_v31, %v2005_v31  ;;  %v2178_v15 = vrot.slane %v2005_v31, %v16441_v21 }
 0x1ba   :  { %v14758_v44 = vpop.f32.mrf.mxu0 }
 0x1bb   :  { %v2008_v38 = vadd.f32 %v14758_v44, %v16838_v27  ;;  %v2073_v47 = vcombine.high %v1997_v45, %v1997_v45  ;;  %v2080_v48 = vrot.slane %v1997_v45, %v16441_v21  ;;  %v2185_v53 = vrot.slane %v2171_v46, %v16441_v21 }
 0x1bc   :  { %v1999_v23 = vpop.f32.mrf.mxu0  ;;  %v2186_v54 = vcombine.high %v2178_v15, %v2178_v15  ;;  %v16852_v61 = vrot.slane %v2178_v15, %v16441_v21 }
 0x1bd   :  { %v2227_v51 = vrot.slane %v2008_v38, %v16441_v21  ;;  %v2000_v52 = vadd.f32 %v1999_v23, %v16838_v27  ;;  %v2087_v56 = vrot.slane %v2073_v47, %v16441_v21  ;;  %v2088_v57 = vcombine.high %v2080_v48, %v2080_v48 }
 0x1be   :  { %v2187_v62 = vcombine.high %v2185_v53, %v2185_v53  ;;  %v2201_v40 = vrot.slane %v2185_v53, %v16441_v21  ;;  %v2208_v63 = vrot.slane %v2186_v54, %v16441_v21  ;;  %v2220_v58 = vcombine.high %v2008_v38, %v2008_v38 }
 0x1bf   :  { %v2235_v39 = vcombine.high %v2227_v51, %v2227_v51  ;;  %v2122_v60 = vcombine.high %v2000_v52, %v2000_v52  ;;  %v2089_v2 = vcombine.high %v2087_v56, %v2087_v56  ;;  %v2110_v3 = vrot.slane %v2088_v57, %v16441_v21 }
 0x1c0   :  { %v2216_v4 = vcombine.high %v16852_v61, %v16852_v61  ;;  %v2096_v5 = vrot.slane %v2080_v48, %v16441_v21  ;;  %v2215_v29 = vrot.slane %v2187_v62, %v16441_v21  ;;  %v2217_v7 = vcombine.high %v2201_v40, %v2201_v40 }
 0x1c1   :  { %v2257_v6 = vrot.slane %v2235_v39, %v16441_v21  ;;  %v2136_v20 = vrot.slane %v2122_v60, %v16441_v21  ;;  %v2218_v9 = vcombine.high %v2208_v63, %v2208_v63  ;;  %v2129_v12 = vrot.slane %v2000_v52, %v16441_v21 }
 0x1c2   :  { %v2117_v14 = vrot.slane %v2089_v2, %v16441_v21  ;;  %v2234_v18 = vrot.slane %v2220_v58, %v16441_v21  ;;  %v2103_v19 = vrot.slane %v2087_v56, %v16441_v21  ;;  %v2858_v16 = vcombine.low %v2096_v5, %v2110_v3 }
 0x1c3   :  { %v2243_v24 = vrot.slane %v2227_v51, %v16441_v21  ;;  %v13997_v30 = vcombine.high %v2096_v5, %v2110_v3  ;;  %v2267_v32 = vcombine.high %v2257_v6, %v2257_v6  ;;  %v2138_v34 = vcombine.high %v2136_v20, %v2136_v20 }
 0x1c4   :  { %v16872_v10 = vcombine.low %v2208_v63, %v2216_v4  ;;  %v2957_v49 = vcombine.low %v2218_v9, %v2201_v40  ;;  %v2958_v25 = vcombine.low %v2215_v29, %v2217_v7  ;;  %v2137_v22 = vcombine.high %v2129_v12, %v2129_v12 }
 0x1c5   :  { %v2860_v36 = vcombine.low %v2103_v19, %v2117_v14  ;;  %v2236_v37 = vcombine.high %v2234_v18, %v2234_v18  ;;  %v16877_v41 = vrot.slane %v2234_v18, %v16441_v21  ;;  %v13998_v28 = vcombine.high %v2103_v19, %v2117_v14 }
 0x1c6   :  { %v2868_v43 = vrot.slane %v2858_v16, %v16441_v21  ;;  %v2219_v31 = vcombine.high %v2215_v29, %v2215_v29  ;;  %v2265_v44 = vcombine.high %v2243_v24, %v2243_v24  ;;  %v2875_v45 = vrot.slane %v13997_v30, %v16441_v21 }
 0x1c7   :  { %v3006_v38 = vcombine.low %v2267_v32, %v16877_v41  ;;  %v16884_v46 = vrot.slane %v2138_v34, %v16441_v21  ;;  %v2972_v23 = vrot.slane %v16872_v10, %v16441_v21  ;;  %v2979_v47 = vrot.slane %v2957_v49, %v16441_v21 }
 0x1c8   :  { %v2986_v48 = vrot.slane %v2958_v25, %v16441_v21  ;;  %v2159_v51 = vrot.slane %v2137_v22, %v16441_v21  ;;  %v2882_v53 = vrot.slane %v2860_v36, %v16441_v21  ;;  %v2264_v54 = vrot.slane %v2236_v37, %v16441_v21  ;;  %v40_v37 = vld [vmem:[%s21512_s3 + $0x1] ss:$0 sm:$0xff] }
 0x1c9   :  { %v2889_v57 = vrot.slane %v13998_v28, %v16441_v21  ;;  %v3005_v39 = vcombine.low %v2257_v6, %v2265_v44  ;;  %v2145_v60 = vrot.slane %v2129_v12, %v16441_v21  ;;  %v2890_v62 = vcombine.low %v2868_v43, %v2875_v45 }
 0x1ca   :  { %v3027_v40 = vrot.slane %v3006_v38, %v16441_v21  ;;  %v3034_v5 = vrot.slane %v2264_v54, %v16441_v21  ;;  %v14000_v49 = vcombine.high %v16877_v41, %v2264_v54  ;;  %v2170_v41 = vcombine.high %v16884_v46, %v16884_v46 }
 0x1cb   :  { %v2907_v2 = vcombine.low %v2145_v60, %v2159_v51  ;;  %v13999_v58 = vcombine.high %v2145_v60, %v2159_v51  ;;  %v2891_v7 = vcombine.low %v2882_v53, %v2889_v57  ;;  %v3020_v12 = vrot.slane %v3005_v39, %v16441_v21 }
 0x1cc   :  { %v2898_v14 = vrot.slane %v2890_v62, %v16441_v21  ;;  %v3036_v18 = vcombine.low %v3027_v40, %v3034_v5 }
 0x1cd   :  { %v14761_v0 = vpop.f32.mrf.mxu0  ;;  %v2923_v30 = vrot.slane %v13999_v58, %v16441_v21 }
 0x1ce   :  { %v2021_v35 = vadd.f32 %v14761_v0, %v16838_v27  ;;  %v3050_v44 = vrot.slane %v3036_v18, %v16441_v21 }
 0x1cf   :  { %v2012_v13 = vpop.f32.mrf.mxu0 }
 0x1d0   :  { %v2013_v42 = vadd.f32 %v2012_v13, %v16838_v27  ;;  %v2374_v15 = vrot.slane %v2021_v35, %v16441_v21  ;;  %v2367_v3 = vcombine.high %v2021_v35, %v2021_v35 }
 0x1d1   :  { %v16874_v33 = vpop.f32.mrf.mxu0 }
 0x1d2   :  { %v2269_v56 = vcombine.high %v2013_v42, %v2013_v42  ;;  %v2382_v0 = vcombine.high %v2374_v15, %v2374_v15  ;;  %v2276_v6 = vrot.slane %v2013_v42, %v16441_v21  ;;  %v16911_v13 = vrot.slane %v2374_v15, %v16441_v21 }
 0x1d3   :  { %v16892_v52 = vpop.f32.mrf.mxu0  ;;  %v2381_v32 = vrot.slane %v2367_v3, %v16441_v21  ;;  %v2905_v42 = vrot.slane %v2891_v7, %v16441_v21  ;;  %v2024_v51 = vadd.f32 %v16874_v33, %v16838_v27 }
 0x1d4   :  { %v2283_v29 = vrot.slane %v2269_v56, %v16441_v21  ;;  %v2404_v16 = vrot.slane %v2382_v0, %v16441_v21  ;;  %v2284_v22 = vcombine.high %v2276_v6, %v2276_v6  ;;  %v2292_v54 = vrot.slane %v2276_v6, %v16441_v21 }
 0x1d5   :  { %v2397_v43 = vrot.slane %v2381_v32, %v16441_v21  ;;  %v16955_v40 = vcombine.low %v2898_v14, %v2905_v42  ;;  %v2016_v14 = vadd.f32 %v16892_v52, %v16838_v27 }
 0x1d6   :  { %v16845_v50 = vpop.f32.mrf.mxu1  ;;  %v2285_v36 = vcombine.high %v2283_v29, %v2283_v29  ;;  %v2414_v38 = vcombine.high %v2404_v16, %v2404_v16  ;;  %v2306_v56 = vrot.slane %v2284_v22, %v16441_v21 }
 0x1d8   :  { %v14727_v55 = vpop.f32.mrf.mxu1  ;;  %v3152_v33 = vcombine.low %v2414_v38, %v2397_v43  ;;  %v3053_v6 = vcombine.low %v2292_v54, %v2306_v56 }
 0x1d9   :  { %v2152_v55 = vrot.slane %v2136_v20, %v16441_v21 }
 0x1da   :  { %v185_v59 = vpop.f32.mrf.mxu1  ;;  %v16981_v22 = vrot.slane %v3053_v6, %v16441_v21 }
 0x1db   :  { %v3004_v59 = vcombine.low %v2219_v31, %v2243_v24  ;;  %v2909_v63 = vcombine.low %v2152_v55, %v16884_v46  ;;  %v2168_v20 = vcombine.high %v2152_v55, %v2152_v55  ;;  %v2916_v24 = vrot.slane %v2907_v2, %v16441_v21 }
 0x1dc   :  { %v14728_v1 = vpop.f32.mrf.mxu1  ;;  %v2412_v31 = vcombine.high %v16911_v13, %v16911_v13  ;;  %v2299_v55 = vrot.slane %v2283_v29, %v16441_v21  ;;  %v2313_v46 = vrot.slane %v2285_v36, %v16441_v21  ;;  %v2416_v2 = vcombine.high %v2024_v51, %v2024_v51 }
 0x1dd   :  { %v16901_v1 = vcombine.low %v2979_v47, %v2986_v48  ;;  %v3013_v9 = vrot.slane %v3004_v59, %v16441_v21  ;;  %v2930_v19 = vrot.slane %v2909_v63, %v16441_v21  ;;  %v2937_v25 = vrot.slane %v2168_v20, %v16441_v21 }
 0x1de   :  { %v2938_v15 = vcombine.low %v2916_v24, %v2923_v30  ;;  %v2383_v47 = vcombine.high %v2381_v32, %v2381_v32  ;;  %v16936_v48 = vadd.f32 %v16845_v50, %v40_v37  ;;  %v16948_v59 = vrot.slane %v14000_v49, %v16441_v21 }
 0x1df   :  { %v3002_v35 = vrot.slane %v16901_v1, %v16441_v21  ;;  %v3035_v28 = vcombine.low %v3013_v9, %v3020_v12  ;;  %v2939_v45 = vcombine.low %v2930_v19, %v2937_v25  ;;  %v2413_v50 = vcombine.high %v2397_v43, %v2397_v43 }
 0x1e0   :  { %21537 = vst [vmem:[#allocation3_spill] sm:$0xff] %v16936_v48  ;;  %v3151_v39 = vcombine.low %v2404_v16, %v2412_v31  ;;  %v2809_v62 = vcombine.high %v16936_v48, %v16936_v48  ;;  %v2411_v63 = vrot.slane %v2383_v47, %v16441_v21  ;;  %v2816_v0 = vrot.slane %v16936_v48, %v16441_v21 }
 0x1e1   :  { %v3043_v57 = vrot.slane %v3035_v28, %v16441_v21  ;;  %v16951_v60 = vrot.slane %v2939_v45, %v16441_v21  ;;  %v2946_v5 = vrot.slane %v2938_v15, %v16441_v21  ;;  %v16966_v20 = vcombine.low %v2170_v41, %v16852_v61 }
 0x1e2   :  { %v3055_v29 = vcombine.low %v2299_v55, %v2313_v46  ;;  %v3173_v7 = vrot.slane %v3151_v39, %v16441_v21  ;;  %v16969_v9 = vcombine.low %v2411_v63, %v2413_v50  ;;  %v2423_v12 = vrot.slane %v2024_v51, %v16441_v21 }
 0x1e3   :  { %v16962_v3 = vcombine.low %v3043_v57, %v3050_v44  ;;  %v2954_v18 = vcombine.low %v2946_v5, %v16951_v60  ;;  %v3180_v19 = vrot.slane %v3152_v33, %v16441_v21  ;;  %v14001_v16 = vcombine.high %v2292_v54, %v2306_v56 }
 0x1e4   :  { %v2823_v24 = vrot.slane %v2809_v62, %v16441_v21  ;;  %v14002_v61 = vcombine.high %v2299_v55, %v2313_v46  ;;  %v2824_v30 = vcombine.high %v2816_v0, %v2816_v0  ;;  %v2415_v32 = vcombine.high %v2411_v63, %v2411_v63 }
 0x1e5   :  { %v2430_v49 = vrot.slane %v2416_v2, %v16441_v21  ;;  %v16984_v36 = vrot.slane %v3055_v29, %v16441_v21  ;;  %v2832_v52 = vrot.slane %v2816_v0, %v16441_v21  ;;  %v2431_v42 = vcombine.high %v2423_v12, %v2423_v12 }
 0x1e6   :  { %v16903_v4 = vpop.f32.mrf.mxu0  ;;  %v2439_v28 = vrot.slane %v2423_v12, %v16441_v21  ;;  %v3207_v43 = vrot.slane %v16969_v9, %v16441_v21  ;;  %v2325_v31 = vrot.slane %v2016_v14, %v16441_v21  ;;  %v16995_v41 = vcombine.low %v3173_v7, %v3180_v19 }
 0x1e7   :  { %v2037_v37 = vadd.f32 %v16903_v4, %v16838_v27  ;;  %v16998_v45 = vrot.slane %v14001_v16, %v16441_v21  ;;  %v2825_v38 = vcombine.high %v2823_v24, %v2823_v24  ;;  %v17002_v4 = vrot.slane %v14002_v61, %v16441_v21 }
 0x1e8   :  { %v16919_v34 = vpop.f32.mrf.mxu0  ;;  %v17005_v47 = vrot.slane %v2824_v30, %v16441_v21  ;;  %v2432_v51 = vcombine.high %v2430_v49, %v2430_v49  ;;  %v2318_v54 = vcombine.high %v2016_v14, %v2016_v14  ;;  %v3084_v56 = vcombine.low %v16948_v59, %v16981_v22 }
 0x1e9   :  { %v2570_v15 = vrot.slane %v2037_v37, %v16441_v21  ;;  %v3085_v46 = vcombine.low %v16998_v45, %v16984_v36  ;;  %v2854_v57 = vcombine.high %v2832_v52, %v2832_v52  ;;  %v2563_v50 = vcombine.high %v2037_v37, %v2037_v37 }
 0x1ea   :  { %v16940_v53 = vpop.f32.mrf.mxu0  ;;  %v3653_v39 = vrot.slane %v2832_v52, %v16869_v26  ;;  %v2453_v60 = vrot.slane %v2431_v42, %v16441_v21  ;;  %v2461_v33 = vcombine.high %v2439_v28, %v2439_v28  ;;  %v2333_v62 = vcombine.high %v2325_v31, %v2325_v31 }
 0x1eb   :  { %v17014_v63 = vrot.slane %v2823_v24, %v16441_v21  ;;  %v17017_v0 = vrot.slane %v2825_v38, %v16441_v21  ;;  %v3199_v2 = vcombine.low %v2415_v32, %v2439_v28  ;;  %v2578_v5 = vcombine.high %v2570_v15, %v2570_v15 }
 0x1ec   :  { %v16960_v58 = vpop.f32.mrf.mxu0  ;;  %v3657_v29 = vrot.slane %v17005_v47, %v16869_v26  ;;  %v2460_v7 = vrot.slane %v2432_v51, %v16441_v21  ;;  %v2332_v9 = vrot.slane %v2318_v54, %v16441_v21  ;;  %v17026_v12 = vrot.slane %v2854_v57, %v16869_v26 }
 0x1ed   :  { %v2446_v14 = vrot.slane %v2430_v49, %v16441_v21  ;;  %v2577_v19 = vrot.slane %v2563_v50, %v16441_v21  ;;  %v2029_v16 = vadd.f32 %v16919_v34, %v16838_v27  ;;  %v2463_v24 = vcombine.high %v2453_v60, %v2453_v60 }
 0x1ee   :  { %v3200_v61 = vcombine.low %v2453_v60, %v2461_v33  ;;  %v2355_v30 = vrot.slane %v2333_v62, %v16441_v21  ;;  %v17034_v32 = vsel %vm3690_vm5, %v2954_v18, %v3653_v39  ;;  %v3214_v52 = vrot.slane %v3199_v2, %v16441_v21 }
 0x1ef   :  { %v2593_v37 = vrot.slane %v2577_v19, %v16441_v21  ;;  %v2600_v42 = vrot.slane %v2578_v5, %v16441_v21  ;;  %v2465_v28 = vcombine.high %v2029_v16, %v2029_v16  ;;  %v3246_v49 = vcombine.low %v2446_v14, %v2460_v7 }
 0x1f0   :  { %v2334_v38 = vcombine.high %v2332_v9, %v2332_v9  ;;  %v2341_v51 = vrot.slane %v2325_v31, %v16441_v21  ;;  %v2348_v34 = vrot.slane %v2332_v9, %v16441_v21  ;;  %v14004_v54 = vcombine.high %v2446_v14, %v2460_v7 }
 0x1f1   :  { %v2472_v57 = vrot.slane %v2029_v16, %v16441_v21  ;;  %v3707_v18 = vpack.c.bf16 %v17034_v32, %v16955_v40  ;;  %v3221_v50 = vrot.slane %v3200_v61, %v16441_v21  ;;  %v3228_v39 = vrot.slane %v2463_v24, %v16441_v21 }
 0x1f2   :  { %v3102_v60 = vcombine.low %v2341_v51, %v2355_v30  ;;  %v14003_v33 = vcombine.high %v2341_v51, %v2355_v30  ;;  %v17046_v62 = vcombine.low %v3207_v43, %v3214_v52  ;;  %v2609_v2 = vcombine.high %v2593_v37, %v2593_v37 }
 0x1f3   :  { %v2610_v5 = vcombine.high %v2600_v42, %v2600_v42  ;;  %v2479_v31 = vrot.slane %v2465_v28, %v16441_v21  ;;  %14020 = vmatmul.mubr.msk.bf16.vlgmr.msra.gmra.mxu1 %vm1937_vm4, %v3707_v18  ;;  %v17053_v9 = vrot.slane %v3246_v49, %v16441_v21  ;;  %v2362_v14 = vrot.slane %v2334_v38, %v16441_v21 }
 0x1f4   :  { %3834 = vmatprep.mubr.bf16.mxu1 %v21516_v17  ;;  %v17058_v43 = vrot.slane %v14004_v54, %v16441_v21  ;;  %v17061_v16 = vrot.slane %v2570_v15, %v16441_v21  ;;  %v2480_v61 = vcombine.high %v2472_v57, %v2472_v57  ;;  %v17064_v30 = vcombine.low %v3221_v50, %v3228_v39 }
 0x1f5   :  { %v3117_v52 = vrot.slane %v3102_v60, %v16441_v21  ;;  %v3124_v28 = vrot.slane %v14003_v33, %v16441_v21  ;;  %v2032_v49 = vadd.f32 %v16960_v58, %v16838_v27  ;;  %v3237_v38 = vrot.slane %v17046_v62, %v16441_v21 }
 0x1f6   :  { %v3392_v51 = vcombine.low %v2610_v5, %v2593_v37  ;;  %v2481_v18 = vcombine.high %v2479_v31, %v2479_v31  ;;  %v2366_v15 = vcombine.high %v2362_v14, %v2362_v14  ;;  %v3131_v11 = vrot.slane %v2348_v34, %v16441_v21 }
 0x1f7   :  { %v2040_v50 = vadd.f32 %v16940_v53, %v16838_v27  ;;  %v2608_v58 = vcombine.high %v17061_v16, %v17061_v16  ;;  %v2488_v60 = vrot.slane %v2472_v57, %v16441_v21  ;;  %v2502_v37 = vrot.slane %v2480_v61, %v16441_v21 }
 0x1f8   :  { %v3244_v33 = vrot.slane %v17064_v30, %v16441_v21  ;;  %v2521_v5 = vrot.slane %v2032_v49, %v16441_v21  ;;  %v3401_v53 = vrot.slane %v3392_v51, %v16441_v21  ;;  %v2509_v7 = vrot.slane %v2481_v18, %v16441_v21 }
 0x1f9   :  { %v3150_v57 = vcombine.low %v2366_v15, %v16911_v13  ;;  %v2612_v39 = vcombine.high %v2040_v50, %v2040_v50  ;;  %v2619_v6 = vrot.slane %v2040_v50, %v16441_v21  ;;  %v3092_v36 = vrot.slane %v3084_v56, %v16441_v21 }
 0x1fa   :  { %v2529_v18 = vcombine.high %v2521_v5, %v2521_v5 }
 0x1fb   :  { %v16978_v25 = vpop.f32.mrf.mxu0 }
 0x1fd   :  { %v16993_v44 = vpop.f32.mrf.mxu0 }
 0x1ff   :  { %v14770_v55 = vpop.f32.mrf.mxu0 }
 0x200   :  { %v2579_v55 = vcombine.high %v2577_v19, %v2577_v19  ;;  %v2364_v19 = vcombine.high %v2348_v34, %v2348_v34  ;;  %v3132_v34 = vcombine.low %v17002_v4, %v3117_v52  ;;  %v17095_v4 = vcombine.low %v2600_v42, %v2608_v58 }
 0x201   :  { %v2514_v52 = vcombine.high %v2032_v49, %v2032_v49  ;;  %v2626_v49 = vrot.slane %v2612_v39, %v16441_v21  ;;  %v2627_v58 = vcombine.high %v2619_v6, %v2619_v6  ;;  %v2047_v1 = vpop.f32.mrf.mxu0 }
 0x202   :  { %v2607_v24 = vrot.slane %v2579_v55, %v16441_v21  ;;  %v17073_v55 = vcombine.low %v2362_v14, %v2364_v19  ;;  %v2495_v19 = vrot.slane %v2479_v31, %v16441_v21  ;;  %v3140_v51 = vrot.slane %v3132_v34, %v16441_v21 }
 0x203   :  { %v3374_v34 = vrot.slane %v17095_v4, %v16441_v21 }
 0x204   :  { %v3393_v54 = vcombine.low %v2607_v24, %v2609_v2  ;;  %v3133_v2 = vcombine.low %v3124_v28, %v3131_v11  ;;  %v3159_v61 = vrot.slane %v17073_v55, %v16441_v21  ;;  %v3248_v11 = vcombine.low %v2488_v60, %v2502_v37 }
 0x205   :  { %v2965_v28 = vrot.slane %v16966_v20, %v16441_v21  ;;  %v3295_v15 = vcombine.low %v2495_v19, %v2509_v7  ;;  %v14006_v55 = vcombine.high %v2495_v19, %v2509_v7  ;;  %v2611_v50 = vcombine.high %v2607_v24, %v2607_v24 }
 0x206   :  { %v3408_v14 = vrot.slane %v3393_v54, %v16441_v21  ;;  %v3147_v31 = vrot.slane %v3133_v2, %v16441_v21  ;;  %v14005_v54 = vcombine.high %v2488_v60, %v2502_v37  ;;  %v17108_v20 = vrot.slane %v2619_v6, %v16441_v21 }
 0x207   :  { %v2987_v42 = vcombine.low %v2965_v28, %v2972_v23  ;;  %v17113_v60 = vrot.slane %v3248_v11, %v16441_v21  ;;  %v2528_v37 = vrot.slane %v2514_v52, %v16441_v21  ;;  %v2537_v23 = vrot.slane %v2521_v5, %v16441_v21 }
 0x208   :  { %v17101_v13 = vcombine.low %v3401_v53, %v3408_v14  ;;  %v17118_v10 = vrot.slane %v14005_v54, %v16441_v21  ;;  %v17122_v24 = vrot.slane %v2529_v18, %v16441_v21  ;;  %v2045_v6 = vadd.f32 %v16993_v44, %v16838_v27 }
 0x209   :  { %v2995_v7 = vrot.slane %v2987_v42, %v16441_v21  ;;  %v3304_v2 = vrot.slane %v3295_v15, %v16441_v21  ;;  %v3311_v53 = vrot.slane %v14006_v55, %v16441_v21  ;;  %v2628_v19 = vcombine.high %v2626_v49, %v2626_v49 }
 0x20a   :  { %v3431_v39 = vrot.slane %v17101_v13, %v16441_v21  ;;  %v17136_v5 = vrot.slane %v2627_v58, %v16441_v21  ;;  %v3394_v11 = vcombine.low %v2611_v50, %v17108_v20  ;;  %v17144_v44 = vsel %vm3690_vm5, %v16962_v3, %v3657_v29 }
 0x20b   :  { %v17133_v14 = vcombine.low %v2995_v7, %v3002_v35  ;;  %v17147_v52 = vrot.slane %v2626_v49, %v16441_v21  ;;  %v2530_v28 = vcombine.high %v2528_v37, %v2528_v37  ;;  %v3166_v54 = vrot.slane %v3150_v57, %v16441_v21 }
 0x20c   :  { %v2559_v18 = vcombine.high %v2537_v23, %v2537_v23  ;;  %v3297_v15 = vcombine.low %v2537_v23, %v17122_v24  ;;  %v2661_v55 = vcombine.high %v2045_v6, %v2045_v6  ;;  %v3148_v42 = vcombine.low %v3140_v51, %v3147_v31 }
 0x20d   :  { %v3708_v35 = vpack.c.bf16 %v17144_v44, %v17133_v14  ;;  %v3279_v50 = vcombine.low %v17113_v60, %v17118_v10  ;;  %v3326_v3 = vcombine.low %v3304_v2, %v3311_v53  ;;  %v2544_v29 = vrot.slane %v2528_v37, %v16441_v21 }
 0x20e   :  { %v3099_v49 = vrot.slane %v3085_v46, %v16441_v21  ;;  %v17162_v57 = vrot.slane %v2628_v19, %v16441_v21  ;;  %v3415_v58 = vrot.slane %v3394_v11, %v16441_v21  ;;  %v3422_v51 = vrot.slane %v17136_v5, %v16441_v21 }
 0x20f   :  { %14021 = vmatmul.mubr.msk.bf16.gmra.mxu1 %vm1937_vm4, %v3708_v35  ;;  %v2048_v31 = vadd.f32 %v2047_v1, %v16838_v27  ;;  %v2558_v37 = vrot.slane %v2530_v28, %v16441_v21  ;;  %v2053_v7 = vadd.f32 %v16978_v25, %v16838_v27  ;;  %v3181_v45 = vcombine.low %v3159_v61, %v3166_v54 }
 0x210   :  { %3844 = vmatprep.mubr.bf16.mxu1 %v21516_v17  ;;  %v3318_v46 = vrot.slane %v3297_v15, %v16441_v21  ;;  %v3325_v23 = vrot.slane %v2559_v18, %v16441_v21  ;;  %v2675_v2 = vrot.slane %v2661_v55, %v16441_v21  ;;  %v17181_v53 = vsel %vm3690_vm5, %v3148_v42, %v17026_v12 }
 0x211   :  { %v14007_v19 = vcombine.high %v17108_v20, %v17136_v5  ;;  %v2560_v27 = vcombine.high %v2544_v29, %v2544_v29  ;;  %v2668_v25 = vrot.slane %v2045_v6, %v16441_v21  ;;  %v17186_v11 = vcombine.low %v3092_v36, %v3099_v49 }
 0x212   :  { %v17189_v59 = vrot.slane %v3326_v3, %v16441_v21  ;;  %v17191_v22 = vcombine.low %v3415_v58, %v3422_v51  ;;  %v3441_v56 = vcombine.low %v17147_v52, %v17162_v57  ;;  %v2710_v61 = vcombine.high %v2048_v31, %v2048_v31 }
 0x213   :  { %v2561_v12 = vcombine.high %v17122_v24, %v17122_v24  ;;  %v2562_v28 = vcombine.high %v2558_v37, %v2558_v37  ;;  %v3709_v1 = vpack.c.bf16 %v17181_v53, %v17186_v11  ;;  %v3189_v6 = vrot.slane %v3181_v45, %v16441_v21 }
 0x214   :  { %v14008_v35 = vcombine.high %v17147_v52, %v17162_v57  ;;  %v3327_v54 = vcombine.low %v3318_v46, %v3325_v23  ;;  %v2759_v18 = vcombine.high %v2053_v7, %v2053_v7  ;;  %v2677_v15 = vcombine.high %v2675_v2, %v2675_v2 }
 0x215   :  { %v3344_v55 = vcombine.low %v2558_v37, %v2560_v27  ;;  %v2766_v42 = vrot.slane %v2053_v7, %v16441_v21  ;;  %v2676_v3 = vcombine.high %v2668_v25, %v2668_v25  ;;  %v3196_v24 = vrot.slane %v16995_v41, %v16441_v21 }
 0x216   :  { %v2717_v49 = vrot.slane %v2048_v31, %v16441_v21  ;;  %v2724_v58 = vrot.slane %v2710_v61, %v16441_v21  ;;  %v3245_v51 = vcombine.low %v3237_v38, %v3244_v33  ;;  %v21538_v37 = vcombine.high %v17005_v47, %v17005_v47 }
 0x217   :  { %14022 = vmatmul.mubr.msk.bf16.gmra.mxu1 %vm1937_vm4, %v3709_v1  ;;  %v3438_v41 = vrot.slane %v17191_v22, %v16441_v21  ;;  %v3343_v31 = vcombine.low %v2561_v12, %v2544_v29  ;;  %v3345_v36 = vcombine.low %v2562_v28, %v17061_v16  ;;  %v17222_v45 = vcombine.low %v3189_v6, %v3196_v24 }
 0x218   :  { %3854 = vmatprep.mubr.bf16.mxu1 %v21516_v17  ;;  %v3665_v7 = vrot.slane %v21538_v37, %v16869_v26  ;;  %v3341_v46 = vrot.slane %v3327_v54, %v16441_v21  ;;  %v2773_v30 = vrot.slane %v2759_v18, %v16441_v21  ;;  %v2691_v62 = vrot.slane %v2675_v2, %v16441_v21 }
 0x219   :  { %v2705_v38 = vrot.slane %v2677_v15, %v16441_v21  ;;  %v2774_v33 = vcombine.high %v2766_v42, %v2766_v42  ;;  %v2782_v47 = vrot.slane %v2766_v42, %v16441_v21  ;;  %v2684_v23 = vrot.slane %v2668_v25, %v16441_v21 }
 0x21a   :  { %v2698_v27 = vrot.slane %v2676_v3, %v16441_v21  ;;  %v3360_v29 = vrot.slane %v3344_v55, %v16441_v21  ;;  %v2725_v16 = vcombine.high %v2717_v49, %v2717_v49  ;;  %v2726_v61 = vcombine.high %v2724_v58, %v2724_v58 }
 0x21b   :  { %v17233_v12 = vsel %vm3690_vm5, %v3245_v51, %v3665_v7  ;;  %v3353_v28 = vrot.slane %v3343_v31, %v16441_v21  ;;  %v3367_v6 = vrot.slane %v3345_v36, %v16441_v21  ;;  %v3490_v54 = vcombine.low %v2691_v62, %v2705_v38 }
 0x21c   :  { %v14009_v1 = vcombine.high %v2684_v23, %v2698_v27  ;;  %v3710_v2 = vpack.c.bf16 %v17233_v12, %v17222_v45  ;;  %v14010_v18 = vcombine.high %v2691_v62, %v2705_v38  ;;  %v2733_v25 = vrot.slane %v2717_v49, %v16441_v21 }
 0x21d   :  { %v3342_v15 = vcombine.low %v17189_v59, %v3341_v46  ;;  %v2775_v55 = vcombine.high %v2773_v30, %v2773_v30  ;;  %v2789_v42 = vrot.slane %v2773_v30, %v16441_v21  ;;  %v2796_v3 = vrot.slane %v2774_v33, %v16441_v21 }
 0x21e   :  { %v3293_v24 = vrot.slane %v3279_v50, %v16441_v21  ;;  %v2804_v51 = vcombine.high %v2782_v47, %v2782_v47  ;;  %v2740_v37 = vrot.slane %v2724_v58, %v16441_v21  ;;  %v2747_v7 = vrot.slane %v2725_v16, %v16441_v21 }
 0x21f   :  { %14023 = vmatmul.mubr.msk.bf16.gmra.mxu1 %vm1937_vm4, %v3710_v2  ;;  %v2754_v49 = vrot.slane %v2726_v61, %v16441_v21  ;;  %v3498_v59 = vrot.slane %v14009_v1, %v16441_v21  ;;  %v21539_v31 = vcombine.low %v17053_v9, %v17058_v43  ;;  %v3375_v46 = vcombine.low %v3353_v28, %v3360_v29 }
 0x220   :  { %3864 = vmatprep.mubr.bf16.mxu1 %v21516_v17  ;;  %v3376_v60 = vcombine.low %v3367_v6, %v3374_v34  ;;  %v3505_v10 = vrot.slane %v3490_v54, %v16441_v21  ;;  %v3512_v50 = vrot.slane %v14010_v18, %v16441_v21  ;;  %v3519_v58 = vrot.slane %v2733_v25, %v16441_v21 }
 0x221   :  { %v3286_v36 = vrot.slane %v21539_v31, %v16441_v21  ;;  %v21540_v30 = vrot.slane %v17014_v63, %v16869_v26  ;;  %v2803_v9 = vrot.slane %v2775_v55, %v16441_v21  ;;  %v2805_v43 = vcombine.high %v2789_v42, %v2789_v42 }
 0x222   :  { %v3443_v38 = vcombine.low %v2684_v23, %v2698_v27  ;;  %v2806_v4 = vcombine.high %v2796_v3, %v2796_v3  ;;  %v2755_v34 = vcombine.high %v2733_v25, %v2733_v25  ;;  %v2756_v29 = vcombine.high %v2740_v37, %v2740_v37 }
 0x223   :  { %v17267_v62 = vsel %vm3690_vm5, %v3342_v15, %v21540_v30  ;;  %v17270_v33 = vcombine.low %v3286_v36, %v3293_v24  ;;  %v2757_v16 = vcombine.high %v2747_v7, %v2747_v7  ;;  %v2758_v61 = vcombine.high %v2754_v49, %v2754_v49 }
 0x224   :  { %v3383_v1 = vrot.slane %v3375_v46, %v16441_v21  ;;  %v3390_v2 = vrot.slane %v3376_v60, %v16441_v21  ;;  %v3450_v6 = vrot.slane %v14007_v19, %v16441_v21  ;;  %v3457_v23 = vrot.slane %v3441_v56, %v16441_v21 }
 0x225   :  { %v3711_v28 = vpack.c.bf16 %v17267_v62, %v17270_v33  ;;  %v3520_v27 = vcombine.low %v3498_v59, %v3505_v10  ;;  %v3521_v54 = vcombine.low %v3512_v50, %v3519_v58  ;;  %v3464_v18 = vrot.slane %v14008_v35, %v16441_v21 }
 0x226   :  { %v3586_v25 = vcombine.low %v2796_v3, %v2804_v51  ;;  %v3588_v15 = vcombine.low %v2803_v9, %v2805_v43  ;;  %v3471_v55 = vrot.slane %v3443_v38, %v16441_v21  ;;  %v2807_v20 = vcombine.high %v2803_v9, %v2803_v9 }
 0x227   :  { %14024 = vmatmul.mubr.msk.bf16.gmra.mxu1 %vm1937_vm4, %v3711_v28  ;;  %v3587_v5 = vcombine.low %v2806_v4, %v2789_v42  ;;  %v3537_v19 = vcombine.low %v2747_v7, %v2755_v34  ;;  %v3439_v56 = vcombine.low %v3431_v39, %v3438_v41  ;;  %v3538_v52 = vcombine.low %v2757_v16, %v2740_v37 }
 0x228   :  { %3874 = vmatprep.mubr.bf16.mxu1 %v21516_v17  ;;  %v3539_v57 = vcombine.low %v2754_v49, %v2756_v29  ;;  %v3540_v35 = vcombine.low %v2758_v61, %v2782_v47  ;;  %v17297_v3 = vcombine.low %v3383_v1, %v3390_v2  ;;  %v2855_v24 = vcombine.high %v17014_v63, %v17014_v63 }
 0x229   :  { %v3528_v42 = vrot.slane %v3520_v27, %v16441_v21  ;;  %v3535_v51 = vrot.slane %v3521_v54, %v16441_v21  ;;  %v3673_v7 = vrot.slane %v17017_v0, %v16869_v26  ;;  %v3472_v22 = vcombine.low %v3450_v6, %v3457_v23 }
 0x22a   :  { %v3595_v59 = vrot.slane %v3586_v25, %v16441_v21  ;;  %v3609_v13 = vrot.slane %v3588_v15, %v16441_v21  ;;  %v3473_v39 = vcombine.low %v3464_v18, %v3471_v55  ;;  %v3602_v41 = vrot.slane %v3587_v5, %v16441_v21 }
 0x22b   :  { %v3616_v47 = vrot.slane %v2807_v20, %v16441_v21  ;;  %v3547_v37 = vrot.slane %v3537_v19, %v16441_v21  ;;  %v17311_v63 = vsel %vm3690_vm5, %v3439_v56, %v3673_v7  ;;  %v3554_v49 = vrot.slane %v3538_v52, %v16441_v21 }
 0x22c   :  { %21541 = vst [vmem:[#allocation4_spill] sm:$0xff] %v17311_v63  ;;  %v3561_v31 = vrot.slane %v3539_v57, %v16441_v21  ;;  %v3712_v36 = vpack.c.bf16 %v17311_v63, %v17297_v3  ;;  %v3568_v46 = vrot.slane %v3540_v35, %v16441_v21  ;;  %v3536_v60 = vcombine.low %v3528_v42, %v3535_v51 }
 0x22d   :  { %v3480_v10 = vrot.slane %v3472_v22, %v16441_v21  ;;  %v3487_v50 = vrot.slane %v3473_v39, %v16441_v21  ;;  %v3617_v58 = vcombine.low %v3595_v59, %v3602_v41  ;;  %v3618_v30 = vcombine.low %v3609_v13, %v3616_v47 }
 0x22e   :  { %v3677_v9 = vrot.slane %v2855_v24, %v16869_v26  ;;  %v3569_v43 = vcombine.low %v3547_v37, %v3554_v49  ;;  %v3570_v38 = vcombine.low %v3561_v31, %v3568_v46  ;;  %v2857_v2 = vcombine.high %v17017_v0, %v17017_v0  ;;  %v17352_v0 = vld [vmem:[%s21512_s3 + $0x4] ss:$8 sm:$0x3] }
 0x22f   :  { %14025 = vmatmul.mubr.msk.bf16.gmra.mxu1 %vm1937_vm4, %v3712_v36  ;;  %v17326_v34 = vcombine.low %v3480_v10, %v3487_v50  ;;  %v3625_v29 = vrot.slane %v3617_v58, %v16441_v21  ;;  %v3632_v16 = vrot.slane %v3618_v30, %v16441_v21  ;;  %v3721_v15 = vrot.slane %v17352_v0, %v16869_v26 }
 0x230   :  { %3884 = vmatprep.mubr.bf16.mxu1 %v21516_v17  ;;  %v17324_v4 = vsel %vm3690_vm5, %v3536_v60, %v3677_v9  ;;  %v3577_v28 = vrot.slane %v3569_v43, %v16441_v21  ;;  %v3584_v1 = vrot.slane %v3570_v38, %v16441_v21  ;;  %v3681_v27 = vrot.slane %v2857_v2, %v16869_v26 }
 0x231   :  { %21542 = vst [vmem:[#allocation5_spill] sm:$0xff] %v17324_v4  ;;  %21543 = vst [vmem:[#allocation6_spill] sm:$0xff] %v17326_v34  ;;  %v3713_v61 = vpack.c.bf16 %v17324_v4, %v17326_v34  ;;  %v3633_v6 = vcombine.low %v3625_v29, %v3632_v16  ;;  %v21546_v21 = vmov 0.0  }
 0x232   :  { %v17338_v23 = vcombine.low %v3577_v28, %v3584_v1 }
 0x233   :  { %v17342_v54 = vsel %vm3690_vm5, %v3633_v6, %v3681_v27 }
 0x234   :  { %21544 = vst [vmem:[#allocation7_spill] sm:$0xff] %v17338_v23  ;;  %21545 = vst [vmem:[#allocation8_spill] sm:$0xff] %v17342_v54  ;;  %v3714_v18 = vpack.c.bf16 %v17342_v54, %v17338_v23 }
 0x237   :  { %14026 = vmatmul.mubr.msk.bf16.gmra.mxu1 %vm1937_vm4, %v3713_v61 }
 0x238   :  { %3894 = vmatprep.mubr.bf16.mxu1 %v21516_v17 }
 0x23f   :  { %14027 = vmatmul.mubr.msk.bf16.gmra.mxu1 %vm1937_vm4, %v3714_v18 }
 0x240   :  { %14803 = vmatprep.mubr.msk.bf16.mxu1 %vm16367_vm1, %v21546_v21 }
 0x2b3   :  { %v3826_v25 = vpop.f32.mrf.mxu1 }
 0x2b4   :  { %v3827_v5 = vadd.f32 %v3826_v25, %v3721_v15 }
 0x2b5   :  { %v17356_v55 = vpop.f32.mrf.mxu1 }
 0x2b7   :  { %v3830_v20 = vpop.f32.mrf.mxu1 }
 0x2b8   :  { %v3831_v19 = vadd.f32 %v3830_v20, %v3721_v15 }
 0x2b9   :  { %v17362_v52 = vpop.f32.mrf.mxu1 }
 0x2ba   :  { %v17358_v56 = vpack.c.bf16 %v3831_v19, %v3827_v5 }
 0x2bc   :  { %3922 = vrot.lane.b32.xlu0 %v17358_v56, %s16369_s23 }
 0x2cf   :  { %v3836_v57 = vpop.f32.mrf.mxu1 }
 0x2d0   :  { %v3837_v42 = vadd.f32 %v3836_v57, %v3721_v15 }
 0x2d1   :  { %v17364_v35 = vpop.f32.mrf.mxu1 }
 0x2d3   :  { %v3840_v24 = vpop.f32.mrf.mxu1 }
 0x2d4   :  { %v3841_v51 = vadd.f32 %v3840_v24, %v3721_v15 }
 0x2d5   :  { %v17366_v7 = vpop.f32.mrf.mxu1 }
 0x2d6   :  { %v17368_v22 = vpack.c.bf16 %v3841_v51, %v3837_v42 }
 0x2d7   :  { %v3846_v59 = vpop.f32.mrf.mxu1 }
 0x2d8   :  { %3972 = vrot.lane.b32.xlu0 %v17368_v22, %s16369_s23  ;;  %v3847_v41 = vadd.f32 %v3846_v59, %v3721_v15 }
 0x2d9   :  { %v17372_v13 = vpop.f32.mrf.mxu1 }
 0x2db   :  { %v3850_v39 = vpop.f32.mrf.mxu1 }
 0x2dc   :  { %v3851_v47 = vadd.f32 %v3850_v39, %v3721_v15 }
 0x2dd   :  { %v17374_v37 = vpop.f32.mrf.mxu1 }
 0x2de   :  { %v17376_v49 = vpack.c.bf16 %v3851_v47, %v3847_v41 }
 0x2df   :  { %v3856_v31 = vpop.f32.mrf.mxu1 }
 0x2e0   :  { %4022 = vrot.lane.b32.xlu1 %v17376_v49, %s16369_s23  ;;  %v3857_v60 = vadd.f32 %v3856_v31, %v3721_v15 }
 0x2e1   :  { %v17380_v36 = vpop.f32.mrf.mxu1 }
 0x2e3   :  { %v3860_v46 = vpop.f32.mrf.mxu1 }
 0x2e4   :  { %v3861_v10 = vadd.f32 %v3860_v46, %v3721_v15 }
 0x2e5   :  { %v17382_v50 = vpop.f32.mrf.mxu1 }
 0x2e6   :  { %v17384_v58 = vpack.c.bf16 %v3861_v10, %v3857_v60 }
 0x2e7   :  { %v3866_v30 = vpop.f32.mrf.mxu1 }
 0x2e8   :  { %4072 = vrot.lane.b32.xlu1 %v17384_v58, %s16369_s23  ;;  %v3867_v38 = vadd.f32 %v3866_v30, %v3721_v15 }
 0x2e9   :  { %v17388_v9 = vpop.f32.mrf.mxu1 }
 0x2eb   :  { %v3870_v43 = vpop.f32.mrf.mxu1 }
 0x2ec   :  { %v3871_v29 = vadd.f32 %v3870_v43, %v3721_v15 }
 0x2ed   :  { %v17390_v16 = vpop.f32.mrf.mxu1 }
 0x2ee   :  { %v17392_v61 = vpack.c.bf16 %v3871_v29, %v3867_v38 }
 0x2ef   :  { %v3876_v28 = vpop.f32.mrf.mxu1 }
 0x2f0   :  { %4122 = vrot.lane.b32.xlu0 %v17392_v61, %s16369_s23  ;;  %v3877_v6 = vadd.f32 %v3876_v28, %v3721_v15 }
 0x2f1   :  { %v17396_v1 = vpop.f32.mrf.mxu1 }
 0x2f3   :  { %v3880_v2 = vpop.f32.mrf.mxu1 }
 0x2f4   :  { %v3881_v27 = vadd.f32 %v3880_v2, %v3721_v15 }
 0x2f5   :  { %v17398_v18 = vpop.f32.mrf.mxu1 }
 0x2f6   :  { %v17400_v25 = vpack.c.bf16 %v3881_v27, %v3877_v6 }
 0x2f7   :  { %v3886_v20 = vpop.f32.mrf.mxu1 }
 0x2f8   :  { %4172 = vrot.lane.b32.xlu1 %v17400_v25, %s16369_s23  ;;  %v3887_v57 = vadd.f32 %v3886_v20, %v3721_v15 }
 0x2f9   :  { %v17404_v5 = vpop.f32.mrf.mxu1 }
 0x2fb   :  { %v3890_v19 = vpop.f32.mrf.mxu1 }
 0x2fc   :  { %v3891_v24 = vadd.f32 %v3890_v19, %v3721_v15  ;;  %v17451_v19 = vsub.s32 1, %v16409_v8 }
 0x2fd   :  { %v17406_v42 = vpop.f32.mrf.mxu1 }
 0x2fe   :  { %v17408_v51 = vpack.c.bf16 %v3891_v24, %v3887_v57  ;;  %21547 = vst [vmem:[#allocation9_spill] sm:$0xff] %v17451_v19 }
 0x2ff   :  { %v3896_v59 = vpop.f32.mrf.mxu1 }
 0x300   :  { %4222 = vrot.lane.b32.xlu0 %v17408_v51, %s16369_s23  ;;  %v3897_v47 = vadd.f32 %v3896_v59, %v3721_v15  ;;  %v17458_v59 = vrot.slane %v17352_v0, %v17451_v19 }
 0x301   :  { %v17412_v39 = vpop.f32.mrf.mxu1 }
 0x302   :  { %v3833_v8 = vadd.f32 %v17362_v52, %v17458_v59  ;;  %v3843_v0 = vadd.f32 %v17366_v7, %v17458_v59 }
 0x303   :  { %v3900_v41 = vpop.f32.mrf.mxu1 }
 0x304   :  { %v3901_v31 = vadd.f32 %v3900_v41, %v3721_v15  ;;  %v3829_v41 = vadd.f32 %v17356_v55, %v17458_v59  ;;  %v3839_v55 = vadd.f32 %v17364_v35, %v17458_v59 }
 0x306   :  { %v17414_v46 = vpack.c.bf16 %v3901_v31, %v3897_v47  ;;  %v17467_v47 = vpack.c.bf16 %v3833_v8, %v3829_v41  ;;  %v17481_v52 = vpack.c.bf16 %v3843_v0, %v3839_v55 }
 0x308   :  { %4272 = vrot.lane.b32.xlu1 %v17414_v46, %s16369_s23 }
 0x32e   :  { %v3923_v60 = vpop.permute.xlu0 %3922 }
 0x32f   :  { %v3928_v10 = vsel %vm54_vm3, %v3923_v60, 0 }
 0x330   :  { %14772 = vmatpush3.bf16.xpose.msra.mxu0 %v3928_v10 }
 0x331   :  { %14777 = vmatprep.subr.bf16.mxu0 %v21546_v21 }
 0x337   :  { %14774 = vmatmul.mubr.msk.bf16.vlgmr.msra.gmra.mxu0 %vm54_vm3, %v17358_v56 }
 0x338   :  { %14779 = vmatprep.mubr.msk.bf16.mxu0 %vm16367_vm1, %v21546_v21 }
 0x34a   :  { %v3973_v30 = vpop.permute.xlu0 %3972 }
 0x34b   :  { %v3978_v15 = vsel %vm54_vm3, %v3973_v30, 0 }
 0x34c   :  { %14778 = vmatpush3.bf16.xpose.msra.mxu0 %v3978_v15 }
 0x34d   :  { %14783 = vmatprep.subr.bf16.mxu0 %v21546_v21 }
 0x352   :  { %v4023_v43 = vpop.permute.xlu1 %4022 }
 0x353   :  { %v4028_v38 = vsel %vm54_vm3, %v4023_v43, 0  ;;  %14780 = vmatmul.mubr.msk.bf16.vlgmr.msra.gmra.mxu0 %vm54_vm3, %v17368_v22 }
 0x354   :  { %14784 = vmatpush3.bf16.xpose.msra.mxu0 %v4028_v38  ;;  %14785 = vmatprep.mubr.msk.bf16.mxu0 %vm16367_vm1, %v21546_v21 }
 0x355   :  { %14789 = vmatprep.subr.bf16.mxu0 %v21546_v21 }
 0x35a   :  { %v4073_v29 = vpop.permute.xlu1 %4072 }
 0x35b   :  { %v4078_v28 = vsel %vm54_vm3, %v4073_v29, 0  ;;  %14786 = vmatmul.mubr.msk.bf16.vlgmr.msra.gmra.mxu0 %vm54_vm3, %v17376_v49 }
 0x35c   :  { %14790 = vmatpush3.bf16.xpose.msra.mxu0 %v4078_v28  ;;  %14791 = vmatprep.mubr.msk.bf16.mxu0 %vm16367_vm1, %v21546_v21 }
 0x35d   :  { %14795 = vmatprep.subr.bf16.mxu0 %v21546_v21 }
 0x362   :  { %v4123_v2 = vpop.permute.xlu0 %4122 }
 0x363   :  { %v4128_v6 = vsel %vm54_vm3, %v4123_v2, 0  ;;  %14792 = vmatmul.mubr.msk.bf16.vlgmr.msra.gmra.mxu0 %vm54_vm3, %v17384_v58 }
 0x364   :  { %14796 = vmatpush3.bf16.xpose.msra.mxu0 %v4128_v6  ;;  %14797 = vmatprep.mubr.msk.bf16.mxu0 %vm16367_vm1, %v21546_v21 }
 0x365   :  { %14807 = vmatprep.subr.bf16.mxu0 %v21546_v21 }
 0x36a   :  { %v4173_v27 = vpop.permute.xlu1 %4172 }
 0x36b   :  { %v4178_v20 = vsel %vm54_vm3, %v4173_v27, 0  ;;  %14798 = vmatmul.mubr.msk.bf16.vlgmr.msra.gmra.mxu0 %vm54_vm3, %v17392_v61 }
 0x36c   :  { %14802 = vmatpush3.bf16.xpose.msra.mxu1 %v4178_v20  ;;  %14809 = vmatprep.mubr.msk.bf16.mxu0 %vm16367_vm1, %v21546_v21 }
 0x36d   :  { %14813 = vmatprep.subr.bf16.mxu1 %v21546_v21 }
 0x372   :  { %v4223_v57 = vpop.permute.xlu0 %4222 }
 0x373   :  { %v4228_v24 = vsel %vm54_vm3, %v4223_v57, 0  ;;  %14804 = vmatmul.mubr.msk.bf16.vlgmr.msra.gmra.mxu1 %vm54_vm3, %v17400_v25 }
 0x374   :  { %14808 = vmatpush3.bf16.xpose.msra.mxu0 %v4228_v24  ;;  %14815 = vmatprep.mubr.msk.bf16.mxu1 %vm16367_vm1, %v21546_v21 }
 0x375   :  { %14819 = vmatprep.subr.bf16.mxu0 %v21546_v21 }
 0x37a   :  { %v4273_v31 = vpop.permute.xlu1 %4272 }
 0x37b   :  { %v4278_v60 = vsel %vm54_vm3, %v4273_v31, 0  ;;  %14810 = vmatmul.mubr.msk.bf16.vlgmr.msra.gmra.mxu0 %vm54_vm3, %v17408_v51 }
 0x37c   :  { %14814 = vmatpush3.bf16.xpose.msra.mxu1 %v4278_v60  ;;  %14820 = vmatpush3.bf16.msra.mxu0 %v17467_v47 }
 0x37d   :  { %14825 = vmatprep.subr.bf16.mxu1 %v21546_v21  ;;  %14821 = vmatprep.mubr.msk.bf16.mxu0 %vm16367_vm1, %v21546_v21 }
 0x37e   :  { %14831 = vmatprep.subr.bf16.mxu0 %v21546_v21 }
 0x383   :  { %14816 = vmatmul.mubr.msk.bf16.vlgmr.msra.gmra.mxu1 %vm54_vm3, %v17414_v46 }
 0x384   :  { %14826 = vmatpush3.bf16.msra.mxu1 %v17481_v52  ;;  %14827 = vmatprep.mubr.msk.bf16.mxu1 %vm16367_vm1, %v21546_v21 }
 0x385   :  { %14837 = vmatprep.subr.bf16.mxu1 %v21546_v21 }
 0x3f7   :  { %v17489_v10 = vpop.f32.mrf.mxu0 }
 0x3f8   :  { %v4322_v7 = vsel %vm4321_vm6, %v17489_v10, -inf }
 0x3f9   :  { %4323 = vmax.xlane.f32.xlu0 %v4322_v7  ;;  %v14775_v35 = vpop.f32.mrf.mxu0 }
 0x3fb   :  { %v17493_v30 = vpop.f32.mrf.mxu0 }
 0x3fc   :  { %v4325_v15 = vsel %vm4321_vm6, %v17493_v30, -inf }
 0x3fd   :  { %4326 = vmax.xlane.f32.xlu1 %v4325_v15  ;;  %v14776_v43 = vpop.f32.mrf.mxu0 }
 0x413   :  { %v17497_v38 = vpop.f32.mrf.mxu0 }
 0x414   :  { %v4328_v29 = vsel %vm4321_vm6, %v17497_v38, -inf }
 0x415   :  { %4329 = vmax.xlane.f32.xlu0 %v4328_v29  ;;  %v14781_v28 = vpop.f32.mrf.mxu0 }
 0x417   :  { %v17501_v2 = vpop.f32.mrf.mxu0 }
 0x418   :  { %v4331_v6 = vsel %vm4321_vm6, %v17501_v2, -inf }
 0x419   :  { %4332 = vmax.xlane.f32.xlu0 %v4331_v6  ;;  %v14782_v27 = vpop.f32.mrf.mxu0 }
 0x41b   :  { %v17505_v20 = vpop.f32.mrf.mxu0 }
 0x41c   :  { %v4334_v57 = vsel %vm4321_vm6, %v17505_v20, -inf }
 0x41d   :  { %4335 = vmax.xlane.f32.xlu1 %v4334_v57  ;;  %v14787_v24 = vpop.f32.mrf.mxu0  ;;  %v17529_v57 = vpop.f32.mrf.mxu1 }
 0x41f   :  { %v17509_v8 = vpop.f32.mrf.mxu0 }
 0x420   :  { %v4337_v41 = vsel %vm4321_vm6, %v17509_v8, -inf }
 0x421   :  { %4338 = vmax.xlane.f32.xlu0 %v4337_v41  ;;  %v14788_v31 = vpop.f32.mrf.mxu0 }
 0x423   :  { %v17513_v60 = vpop.f32.mrf.mxu0 }
 0x424   :  { %v4340_v0 = vsel %vm4321_vm6, %v17513_v60, -inf }
 0x425   :  { %4341 = vmax.xlane.f32.xlu1 %v4340_v0  ;;  %v14793_v55 = vpop.f32.mrf.mxu0 }
 0x427   :  { %v17517_v7 = vpop.f32.mrf.mxu0 }
 0x428   :  { %v4343_v35 = vsel %vm4321_vm6, %v17517_v7, -inf }
 0x429   :  { %4344 = vmax.xlane.f32.xlu0 %v4343_v35  ;;  %v14794_v15 = vpop.f32.mrf.mxu0 }
 0x42b   :  { %v17521_v43 = vpop.f32.mrf.mxu0 }
 0x42c   :  { %v4346_v29 = vsel %vm4321_vm6, %v17521_v43, -inf }
 0x42d   :  { %4347 = vmax.xlane.f32.xlu1 %v4346_v29  ;;  %v14799_v28 = vpop.f32.mrf.mxu0 }
 0x42f   :  { %v17525_v6 = vpop.f32.mrf.mxu0 }
 0x430   :  { %v4349_v27 = vsel %vm4321_vm6, %v17525_v6, -inf }
 0x431   :  { %4350 = vmax.xlane.f32.xlu0 %v4349_v27  ;;  %v14800_v24 = vpop.f32.mrf.mxu0 }
 0x433   :  { %v17531_v41 = vpop.f32.mrf.mxu1 }
 0x434   :  { %v4352_v31 = vsel %vm4321_vm6, %v17531_v41, -inf }
 0x435   :  { %v14805_v0 = vpop.f32.mrf.mxu1  ;;  %4353 = vmax.xlane.f32.xlu1 %v4352_v31 }
 0x437   :  { %v17535_v55 = vpop.f32.mrf.mxu1 }
 0x438   :  { %v4355_v35 = vsel %vm4321_vm6, %v17535_v55, -inf }
 0x439   :  { %v14806_v15 = vpop.f32.mrf.mxu1  ;;  %4356 = vmax.xlane.f32.xlu0 %v4355_v35 }
 0x43b   :  { %v17539_v29 = vpop.f32.mrf.mxu0 }
 0x43c   :  { %v4358_v28 = vsel %vm4321_vm6, %v17539_v29, -inf }
 0x43d   :  { %4359 = vmax.xlane.f32.xlu1 %v4358_v28  ;;  %v14811_v27 = vpop.f32.mrf.mxu0 }
 0x43f   :  { %v17543_v24 = vpop.f32.mrf.mxu0 }
 0x440   :  { %v4361_v0 = vsel %vm4321_vm6, %v17543_v24, -inf }
 0x441   :  { %4362 = vmax.xlane.f32.xlu0 %v4361_v0  ;;  %v14812_v31 = vpop.f32.mrf.mxu0 }
 0x443   :  { %v17547_v17 = vpop.f32.mrf.mxu1 }
 0x444   :  { %v4364_v15 = vsel %vm4321_vm6, %v17547_v17, -inf }
 0x445   :  { %v14817_v35 = vpop.f32.mrf.mxu1  ;;  %4365 = vmax.xlane.f32.xlu1 %v4364_v15 }
 0x447   :  { %v17551_v48 = vpop.f32.mrf.mxu1 }
 0x448   :  { %v4367_v28 = vsel %vm4321_vm6, %v17551_v48, -inf }
 0x449   :  { %v14818_v27 = vpop.f32.mrf.mxu1  ;;  %4368 = vmax.xlane.f32.xlu0 %v4367_v28 }
 0x456   :  { %4872 = vrot.lane.b32.xlu1 %v17358_v56, %s16370_s24 }
 0x482   :  { %v4324_v0 = vpop.xlane.xlu0 %4323 }
 0x483   :  { %v4370_v31 = vsub.f32 %v17489_v10, %v4324_v0 }
 0x485   :  { %v4386_v19 = vmul.f32 1.442695, %v4370_v31 }
 0x486   :  { %v4327_v26 = vpop.xlane.xlu1 %4326 }
 0x487   :  { %15805 = vpow2.f32 %v4386_v19  ;;  %v4371_v35 = vsub.f32 %v17493_v30, %v4327_v26 }
 0x489   :  { %v4388_v15 = vmul.f32 1.442695, %v4371_v35 }
 0x48b   :  { %15807 = vpow2.f32 %v4388_v15 }
 0x494   :  { %v17559_v54 = vpop.eup %15805 }
 0x495   :  { %v4418_v27 = vsel %vm4321_vm6, %v17559_v54, 0.0 }
 0x496   :  { %4419 = vadd.xlane.f32.xlu1 %v4418_v27 }
 0x498   :  { %v17564_v23 = vpop.eup %15807 }
 0x499   :  { %v4421_v10 = vsel %vm4321_vm6, %v17564_v23, 0.0 }
 0x49a   :  { %4422 = vadd.xlane.f32.xlu0 %v4421_v10 }
 0x49e   :  { %v4330_v28 = vpop.xlane.xlu0 %4329 }
 0x49f   :  { %v4372_v4 = vsub.f32 %v17497_v38, %v4330_v28 }
 0x4a1   :  { %v4390_v34 = vmul.f32 1.442695, %v4372_v4 }
 0x4a2   :  { %v4333_v19 = vpop.xlane.xlu0 %4332 }
 0x4a3   :  { %15809 = vpow2.f32 %v4390_v34  ;;  %v4373_v26 = vsub.f32 %v17501_v2, %v4333_v19 }
 0x4a5   :  { %v4392_v30 = vmul.f32 1.442695, %v4373_v26 }
 0x4a6   :  { %v4336_v0 = vpop.xlane.xlu1 %4335 }
 0x4a7   :  { %15811 = vpow2.f32 %v4392_v30  ;;  %v4374_v31 = vsub.f32 %v17505_v20, %v4336_v0 }
 0x4a9   :  { %v4394_v35 = vmul.f32 1.442695, %v4374_v31 }
 0x4aa   :  { %v4339_v15 = vpop.xlane.xlu0 %4338 }
 0x4ab   :  { %15813 = vpow2.f32 %v4394_v35  ;;  %v4375_v38 = vsub.f32 %v17509_v8, %v4339_v15 }
 0x4ad   :  { %v4396_v27 = vmul.f32 1.442695, %v4375_v38 }
 0x4ae   :  { %v4342_v4 = vpop.xlane.xlu1 %4341 }
 0x4af   :  { %15815 = vpow2.f32 %v4396_v27  ;;  %v4376_v28 = vsub.f32 %v17513_v60, %v4342_v4 }
 0x4b0   :  { %v17572_v63 = vpop.eup %15809 }
 0x4b1   :  { %v4398_v34 = vmul.f32 1.442695, %v4376_v28  ;;  %v4424_v2 = vsel %vm4321_vm6, %v17572_v63, 0.0 }
 0x4b2   :  { %4425 = vadd.xlane.f32.xlu1 %v4424_v2  ;;  %v4345_v10 = vpop.xlane.xlu0 %4344 }
 0x4b3   :  { %15817 = vpow2.f32 %v4398_v34  ;;  %v4377_v20 = vsub.f32 %v17517_v7, %v4345_v10 }
 0x4b4   :  { %v17577_v19 = vpop.eup %15811 }
 0x4b5   :  { %v4400_v26 = vmul.f32 1.442695, %v4377_v20  ;;  %v4427_v8 = vsel %vm4321_vm6, %v17577_v19, 0.0 }
 0x4b6   :  { %v4348_v30 = vpop.xlane.xlu1 %4347  ;;  %4428 = vadd.xlane.f32.xlu0 %v4427_v8 }
 0x4b7   :  { %15819 = vpow2.f32 %v4400_v26  ;;  %v4378_v60 = vsub.f32 %v17521_v43, %v4348_v30 }
 0x4b8   :  { %v17582_v0 = vpop.eup %15813 }
 0x4b9   :  { %v4402_v31 = vmul.f32 1.442695, %v4378_v60  ;;  %v4430_v35 = vsel %vm4321_vm6, %v17582_v0, 0.0 }
 0x4ba   :  { %4431 = vadd.xlane.f32.xlu1 %v4430_v35  ;;  %v4351_v15 = vpop.xlane.xlu0 %4350 }
 0x4bb   :  { %15821 = vpow2.f32 %v4402_v31  ;;  %v4379_v7 = vsub.f32 %v17525_v6, %v4351_v15 }
 0x4bc   :  { %v17587_v38 = vpop.eup %15815 }
 0x4bd   :  { %v4404_v27 = vmul.f32 1.442695, %v4379_v7  ;;  %v4433_v4 = vsel %vm4321_vm6, %v17587_v38, 0.0 }
 0x4be   :  { %v4354_v28 = vpop.xlane.xlu1 %4353  ;;  %4434 = vadd.xlane.f32.xlu0 %v4433_v4 }
 0x4bf   :  { %15823 = vpow2.f32 %v4404_v27  ;;  %v4380_v43 = vsub.f32 %v17531_v41, %v4354_v28 }
 0x4c0   :  { %v17592_v34 = vpop.eup %15817 }
 0x4c1   :  { %v4406_v2 = vmul.f32 1.442695, %v4380_v43  ;;  %v4436_v10 = vsel %vm4321_vm6, %v17592_v34, 0.0 }
 0x4c2   :  { %4437 = vadd.xlane.f32.xlu1 %v4436_v10  ;;  %v4357_v20 = vpop.xlane.xlu0 %4356 }
 0x4c3   :  { %15825 = vpow2.f32 %v4406_v2  ;;  %v4381_v6 = vsub.f32 %v17535_v55, %v4357_v20 }
 0x4c4   :  { %v17597_v26 = vpop.eup %15819 }
 0x4c5   :  { %v4408_v8 = vmul.f32 1.442695, %v4381_v6  ;;  %v4439_v30 = vsel %vm4321_vm6, %v17597_v26, 0.0 }
 0x4c6   :  { %v4360_v60 = vpop.xlane.xlu1 %4359  ;;  %4440 = vadd.xlane.f32.xlu0 %v4439_v30 }
 0x4c7   :  { %15827 = vpow2.f32 %v4408_v8  ;;  %v4382_v41 = vsub.f32 %v17539_v29, %v4360_v60 }
 0x4c8   :  { %v17602_v31 = vpop.eup %15821 }
 0x4c9   :  { %v4410_v35 = vmul.f32 1.442695, %v4382_v41  ;;  %v4442_v15 = vsel %vm4321_vm6, %v17602_v31, 0.0 }
 0x4ca   :  { %4443 = vadd.xlane.f32.xlu1 %v4442_v15  ;;  %v4363_v7 = vpop.xlane.xlu0 %4362 }
 0x4cb   :  { %15829 = vpow2.f32 %v4410_v35  ;;  %v4383_v55 = vsub.f32 %v17543_v24, %v4363_v7 }
 0x4cc   :  { %v17607_v27 = vpop.eup %15823 }
 0x4cd   :  { %v4412_v4 = vmul.f32 1.442695, %v4383_v55  ;;  %v4445_v28 = vsel %vm4321_vm6, %v17607_v27, 0.0 }
 0x4ce   :  { %v4366_v43 = vpop.xlane.xlu1 %4365  ;;  %4446 = vadd.xlane.f32.xlu0 %v4445_v28 }
 0x4cf   :  { %15831 = vpow2.f32 %v4412_v4  ;;  %v4384_v29 = vsub.f32 %v17547_v17, %v4366_v43 }
 0x4d0   :  { %v17612_v2 = vpop.eup %15825 }
 0x4d1   :  { %v4414_v10 = vmul.f32 1.442695, %v4384_v29  ;;  %v4448_v20 = vsel %vm4321_vm6, %v17612_v2, 0.0 }
 0x4d2   :  { %4449 = vadd.xlane.f32.xlu1 %v4448_v20  ;;  %v4369_v6 = vpop.xlane.xlu0 %4368 }
 0x4d3   :  { %15833 = vpow2.f32 %v4414_v10  ;;  %v4385_v24 = vsub.f32 %v17551_v48, %v4369_v6  ;;  %v3863_v6 = vadd.f32 %v17382_v50, %v17458_v59 }
 0x4d4   :  { %v17617_v8 = vpop.eup %15827 }
 0x4d5   :  { %v4416_v30 = vmul.f32 1.442695, %v4385_v24  ;;  %v4451_v60 = vsel %vm4321_vm6, %v17617_v8, 0.0 }
 0x4d6   :  { %4452 = vadd.xlane.f32.xlu0 %v4451_v60  ;;  %v3859_v60 = vadd.f32 %v17380_v36, %v17458_v59  ;;  %v3873_v36 = vadd.f32 %v17390_v16, %v17458_v59 }
 0x4d7   :  { %15835 = vpow2.f32 %v4416_v30 }
 0x4d8   :  { %v17621_v17 = vpop.eup %15829 }
 0x4d9   :  { %v4454_v41 = vsel %vm4321_vm6, %v17621_v17, 0.0 }
 0x4da   :  { %4455 = vadd.xlane.f32.xlu1 %v4454_v41 }
 0x4dc   :  { %v17625_v35 = vpop.eup %15831 }
 0x4dd   :  { %v4457_v15 = vsel %vm4321_vm6, %v17625_v35, 0.0 }
 0x4de   :  { %4458 = vadd.xlane.f32.xlu0 %v4457_v15 }
 0x4e0   :  { %v17629_v48 = vpop.eup %15833 }
 0x4e1   :  { %v4460_v7 = vsel %vm4321_vm6, %v17629_v48, 0.0 }
 0x4e2   :  { %4461 = vadd.xlane.f32.xlu1 %v4460_v7  ;;  %v17690_v7 = vpack.c.bf16 %v3863_v6, %v3859_v60  ;;  %v3899_v60 = vadd.f32 %v17412_v39, %v17458_v59 }
 0x4e4   :  { %v17633_v55 = vpop.eup %15835 }
 0x4e5   :  { %v4463_v4 = vsel %vm4321_vm6, %v17633_v55, 0.0 }
 0x4e6   :  { %4464 = vadd.xlane.f32.xlu0 %v4463_v4 }
 0x4f3   :  { %4870 = vrot.lane.b32.xlu1 %v17358_v56, %s16371_s25  ;;  %v17669_v56 = vpop.permute.xlu1 %4872 }
 0x4f7   :  { %4921 = vrot.lane.b32.xlu1 %v17368_v22, %s16371_s25 }
 0x4fb   :  { %5025 = vrot.lane.b32.xlu1 %v17384_v58, %s16370_s24 }
 0x4fc   :  { %4923 = vrot.lane.b32.xlu0 %v17368_v22, %s16370_s24 }
 0x4ff   :  { %5023 = vrot.lane.b32.xlu1 %v17384_v58, %s16371_s25 }
 0x500   :  { %4974 = vrot.lane.b32.xlu0 %v17376_v49, %s16370_s24 }
 0x503   :  { %5127 = vrot.lane.b32.xlu1 %v17400_v25, %s16370_s24 }
 0x504   :  { %4972 = vrot.lane.b32.xlu0 %v17376_v49, %s16371_s25 }
 0x507   :  { %5125 = vrot.lane.b32.xlu1 %v17400_v25, %s16371_s25  ;;  %v3853_v25 = vadd.f32 %v17374_v37, %v17458_v59 }
 0x508   :  { %5076 = vrot.lane.b32.xlu0 %v17392_v61, %s16370_s24 }
 0x50b   :  { %5229 = vrot.lane.b32.xlu1 %v17414_v46, %s16370_s24 }
 0x50c   :  { %5074 = vrot.lane.b32.xlu0 %v17392_v61, %s16371_s25 }
 0x50f   :  { %5227 = vrot.lane.b32.xlu1 %v17414_v46, %s16371_s25 }
 0x510   :  { %5178 = vrot.lane.b32.xlu0 %v17408_v51, %s16370_s24 }
 0x513   :  { %5463 = vrot.lane.b32.xlu1 %v17467_v47, %s16371_s25  ;;  %v3849_v47 = vadd.f32 %v17372_v13, %v17458_v59 }
 0x514   :  { %5176 = vrot.lane.b32.xlu0 %v17408_v51, %s16371_s25 }
 0x515   :  { %v17677_v29 = vpack.c.bf16 %v3853_v25, %v3849_v47  ;;  %v3879_v47 = vadd.f32 %v17396_v1, %v17458_v59  ;;  %v3893_v1 = vadd.f32 %v17406_v42, %v17458_v59 }
 0x51f   :  { %v4420_v22 = vpop.xlane.xlu1 %4419 }
 0x520   :  { %15837 = vrcp.f32 %v4420_v22 }
 0x523   :  { %v4423_v49 = vpop.xlane.xlu0 %4422 }
 0x524   :  { %15839 = vrcp.f32 %v4423_v49  ;;  %v3869_v49 = vadd.f32 %v17388_v9, %v17458_v59  ;;  %v3883_v9 = vadd.f32 %v17398_v18, %v17458_v59 }
 0x526   :  { %v17703_v25 = vpack.c.bf16 %v3873_v36, %v3869_v49  ;;  %v4878_v49 = vsel %vm54_vm3, %v17669_v56, 0 }
 0x52d   :  { %v15838_v58 = vpop.eup %15837 }
 0x52e   :  { %v4482_v46 = vmul.f32 %v15838_v58, %v17559_v54 }
 0x531   :  { %v15840_v61 = vpop.eup %15839 }
 0x532   :  { %v4483_v28 = vmul.f32 %v15840_v61, %v17564_v23 }
 0x534   :  { %v4498_v51 = vpack.c.bf16 %v4483_v28, %v4482_v46 }
 0x536   :  { %14822 = vmatmul.mubr.msk.bf16.vlgmr.msra.gmra.mxu0 %vm4321_vm6, %v4498_v51 }
 0x537   :  { %14832 = vmatpush3.bf16.msra.mxu0 %v17677_v29  ;;  %14833 = vmatprep.mubr.msk.bf16.mxu0 %vm16367_vm1, %v21546_v21 }
 0x538   :  { %14843 = vmatprep.subr.bf16.mxu0 %v21546_v21 }
 0x53b   :  { %v4426_v43 = vpop.xlane.xlu1 %4425 }
 0x53c   :  { %15841 = vrcp.f32 %v4426_v43 }
 0x53f   :  { %v4429_v10 = vpop.xlane.xlu0 %4428 }
 0x540   :  { %15843 = vrcp.f32 %v4429_v10  ;;  %v17716_v10 = vpack.c.bf16 %v3883_v9, %v3879_v47 }
 0x543   :  { %v4432_v23 = vpop.xlane.xlu1 %4431 }
 0x544   :  { %15845 = vrcp.f32 %v4432_v23 }
 0x547   :  { %v4435_v54 = vpop.xlane.xlu0 %4434 }
 0x548   :  { %15847 = vrcp.f32 %v4435_v54 }
 0x549   :  { %v15842_v13 = vpop.eup %15841 }
 0x54a   :  { %v4484_v24 = vmul.f32 %v15842_v13, %v17572_v63  ;;  %v3889_v13 = vadd.f32 %v17404_v5, %v17458_v59  ;;  %v3903_v5 = vadd.f32 %v17529_v57, %v17458_v59 }
 0x54b   :  { %v4438_v37 = vpop.xlane.xlu1 %4437 }
 0x54c   :  { %15849 = vrcp.f32 %v4438_v37  ;;  %v17729_v6 = vpack.c.bf16 %v3893_v1, %v3889_v13 }
 0x54d   :  { %v15844_v20 = vpop.eup %15843 }
 0x54e   :  { %v4485_v30 = vmul.f32 %v15844_v20, %v17577_v19 }
 0x54f   :  { %v4441_v41 = vpop.xlane.xlu0 %4440 }
 0x550   :  { %15851 = vrcp.f32 %v4441_v41  ;;  %v4499_v15 = vpack.c.bf16 %v4485_v30, %v4484_v24 }
 0x551   :  { %v15846_v4 = vpop.eup %15845 }
 0x552   :  { %14828 = vmatmul.mubr.msk.bf16.vlgmr.msra.gmra.mxu1 %vm4321_vm6, %v4499_v15  ;;  %v4486_v50 = vmul.f32 %v15846_v4, %v17582_v0 }
 0x553   :  { %14838 = vmatpush3.bf16.msra.mxu1 %v17690_v7  ;;  %v4444_v22 = vpop.xlane.xlu1 %4443  ;;  %14839 = vmatprep.mubr.msk.bf16.mxu1 %vm16367_vm1, %v21546_v21 }
 0x554   :  { %14849 = vmatprep.subr.bf16.mxu1 %v21546_v21  ;;  %15853 = vrcp.f32 %v4444_v22  ;;  %v17742_v22 = vpack.c.bf16 %v3903_v5, %v3899_v60 }
 0x555   :  { %v15848_v63 = vpop.eup %15847 }
 0x556   :  { %v4487_v19 = vmul.f32 %v15848_v63, %v17587_v38 }
 0x557   :  { %v4447_v58 = vpop.xlane.xlu0 %4446 }
 0x558   :  { %15855 = vrcp.f32 %v4447_v58  ;;  %v4500_v61 = vpack.c.bf16 %v4487_v19, %v4486_v50 }
 0x559   :  { %v15850_v46 = vpop.eup %15849 }
 0x55a   :  { %14834 = vmatmul.mubr.msk.bf16.vlgmr.msra.gmra.mxu0 %vm4321_vm6, %v4500_v61  ;;  %v4488_v0 = vmul.f32 %v15850_v46, %v17592_v34 }
 0x55b   :  { %14844 = vmatpush3.bf16.msra.mxu0 %v17703_v25  ;;  %v4450_v28 = vpop.xlane.xlu1 %4449  ;;  %14845 = vmatprep.mubr.msk.bf16.mxu0 %vm16367_vm1, %v21546_v21 }
 0x55c   :  { %14855 = vmatprep.subr.bf16.mxu0 %v21546_v21  ;;  %15857 = vrcp.f32 %v4450_v28 }
 0x55d   :  { %v15852_v16 = vpop.eup %15851 }
 0x55e   :  { %v4489_v38 = vmul.f32 %v15852_v16, %v17597_v26 }
 0x55f   :  { %v4453_v43 = vpop.xlane.xlu0 %4452 }
 0x560   :  { %15859 = vrcp.f32 %v4453_v43  ;;  %v4501_v51 = vpack.c.bf16 %v4489_v38, %v4488_v0 }
 0x561   :  { %v15854_v23 = vpop.eup %15853 }
 0x562   :  { %14840 = vmatmul.mubr.msk.bf16.vlgmr.msra.gmra.mxu1 %vm4321_vm6, %v4501_v51  ;;  %v4490_v34 = vmul.f32 %v15854_v23, %v17602_v31 }
 0x563   :  { %14850 = vmatpush3.bf16.msra.mxu1 %v17716_v10  ;;  %v4456_v54 = vpop.xlane.xlu1 %4455  ;;  %14851 = vmatprep.mubr.msk.bf16.mxu1 %vm16367_vm1, %v21546_v21 }
 0x564   :  { %14861 = vmatprep.subr.bf16.mxu1 %v21546_v21  ;;  %15861 = vrcp.f32 %v4456_v54 }
 0x565   :  { %v15856_v18 = vpop.eup %15855 }
 0x566   :  { %v4491_v26 = vmul.f32 %v15856_v18, %v17607_v27 }
 0x567   :  { %v4459_v37 = vpop.xlane.xlu0 %4458 }
 0x568   :  { %15863 = vrcp.f32 %v4459_v37  ;;  %v4502_v20 = vpack.c.bf16 %v4491_v26, %v4490_v34 }
 0x569   :  { %v15858_v24 = vpop.eup %15857 }
 0x56a   :  { %14846 = vmatmul.mubr.msk.bf16.vlgmr.msra.gmra.mxu0 %vm4321_vm6, %v4502_v20  ;;  %v4492_v31 = vmul.f32 %v15858_v24, %v17612_v2 }
 0x56b   :  { %14856 = vmatpush3.bf16.msra.mxu0 %v17729_v6  ;;  %v4462_v30 = vpop.xlane.xlu1 %4461  ;;  %14857 = vmatprep.mubr.msk.bf16.mxu0 %vm16367_vm1, %v21546_v21 }
 0x56c   :  { %14867 = vmatprep.subr.bf16.mxu0 %v21546_v21  ;;  %15865 = vrcp.f32 %v4462_v30 }
 0x56d   :  { %v15860_v42 = vpop.eup %15859 }
 0x56e   :  { %v4493_v27 = vmul.f32 %v15860_v42, %v17617_v8 }
 0x56f   :  { %v4871_v41 = vpop.permute.xlu1 %4870  ;;  %v4465_v15 = vpop.xlane.xlu0 %4464 }
 0x570   :  { %15867 = vrcp.f32 %v4465_v15  ;;  %v4503_v4 = vpack.c.bf16 %v4493_v27, %v4492_v31 }
 0x571   :  { %v15862_v63 = vpop.eup %15861 }
 0x572   :  { %14852 = vmatmul.mubr.msk.bf16.vlgmr.msra.gmra.mxu1 %vm4321_vm6, %v4503_v4  ;;  %v4494_v39 = vmul.f32 %v15862_v63, %v17621_v17 }
 0x573   :  { %14862 = vmatpush3.bf16.msra.mxu1 %v17742_v22  ;;  %v4922_v57 = vpop.permute.xlu1 %4921  ;;  %v4924_v36 = vpop.permute.xlu0 %4923  ;;  %14863 = vmatprep.mubr.msk.bf16.mxu1 %vm16367_vm1, %v21546_v21 }
 0x574   :  { %14873 = vmatprep.subr.bf16.mxu1 %v21546_v21  ;;  %v4929_v9 = vsel %vm54_vm3, %v4924_v36, 0 }
 0x575   :  { %v15864_v2 = vpop.eup %15863 }
 0x576   :  { %v4495_v59 = vmul.f32 %v15864_v2, %v17625_v35 }
 0x577   :  { %v5026_v8 = vpop.permute.xlu1 %5025  ;;  %v4975_v50 = vpop.permute.xlu0 %4974 }
 0x578   :  { %v4504_v19 = vpack.c.bf16 %v4495_v59, %v4494_v39  ;;  %v4980_v56 = vsel %vm54_vm3, %v4975_v50, 0  ;;  %v5031_v47 = vsel %vm54_vm3, %v5026_v8, 0 }
 0x579   :  { %v15866_v58 = vpop.eup %15865 }
 0x57a   :  { %14858 = vmatmul.mubr.msk.bf16.vlgmr.msra.gmra.mxu0 %vm4321_vm6, %v4504_v19  ;;  %v4496_v35 = vmul.f32 %v15866_v58, %v17629_v48 }
 0x57b   :  { %14868 = vmatpush3.bf16.xpose.msra.mxu0 %v4878_v49  ;;  %14869 = vmatprep.mubr.msk.bf16.mxu0 %vm16367_vm1, %v21546_v21  ;;  %v5024_v61 = vpop.permute.xlu1 %5023  ;;  %v4973_v17 = vpop.permute.xlu0 %4972 }
 0x57c   :  { %14879 = vmatprep.subr.bf16.mxu0 %v21546_v21 }
 0x57d   :  { %v15868_v46 = vpop.eup %15867 }
 0x57e   :  { %v4497_v28 = vmul.f32 %v15868_v46, %v17633_v55 }
 0x57f   :  { %v5128_v0 = vpop.permute.xlu1 %5127  ;;  %v5077_v38 = vpop.permute.xlu0 %5076 }
 0x580   :  { %v4505_v16 = vpack.c.bf16 %v4497_v28, %v4496_v35  ;;  %v5082_v43 = vsel %vm54_vm3, %v5077_v38, 0  ;;  %v5133_v54 = vsel %vm54_vm3, %v5128_v0, 0 }
 0x582   :  { %14864 = vmatmul.mubr.msk.bf16.vlgmr.msra.gmra.mxu1 %vm4321_vm6, %v4505_v16  ;;  %14870 = vmatmul.mubr.msk.bf16.vlgmr.msra.gmra.mxu0 %vm54_vm3, %v4871_v41 }
 0x583   :  { %14874 = vmatpush3.bf16.xpose.msra.mxu1 %v4929_v9  ;;  %14880 = vmatpush3.bf16.xpose.msra.mxu0 %v4980_v56  ;;  %v5126_v48 = vpop.permute.xlu1 %5125  ;;  %v5075_v55 = vpop.permute.xlu0 %5074 }
 0x584   :  { %14875 = vmatprep.mubr.msk.bf16.mxu1 %vm16367_vm1, %v21546_v21  ;;  %14881 = vmatprep.mubr.msk.bf16.mxu0 %vm16367_vm1, %v21546_v21 }
 0x585   :  { %14885 = vmatprep.subr.bf16.mxu1 %v21546_v21  ;;  %14891 = vmatprep.subr.bf16.mxu0 %v21546_v21 }
 0x587   :  { %v5230_v51 = vpop.permute.xlu1 %5229  ;;  %v5179_v23 = vpop.permute.xlu0 %5178 }
 0x588   :  { %v5184_v18 = vsel %vm54_vm3, %v5179_v23, 0  ;;  %v5235_v26 = vsel %vm54_vm3, %v5230_v51, 0 }
 0x58a   :  { %14876 = vmatmul.mubr.msk.bf16.vlgmr.msra.gmra.mxu1 %vm54_vm3, %v4922_v57  ;;  %14882 = vmatmul.mubr.msk.bf16.vlgmr.msra.gmra.mxu0 %vm54_vm3, %v4973_v17 }
 0x58b   :  { %14886 = vmatpush3.bf16.xpose.msra.mxu1 %v5031_v47  ;;  %14892 = vmatpush3.bf16.xpose.msra.mxu0 %v5082_v43  ;;  %v5228_v1 = vpop.permute.xlu1 %5227  ;;  %v5177_v34 = vpop.permute.xlu0 %5176 }
 0x58c   :  { %14887 = vmatprep.mubr.msk.bf16.mxu1 %vm16367_vm1, %v21546_v21  ;;  %14893 = vmatprep.mubr.msk.bf16.mxu0 %vm16367_vm1, %v21546_v21 }
 0x58d   :  { %14897 = vmatprep.subr.bf16.mxu1 %v21546_v21  ;;  %14903 = vmatprep.subr.bf16.mxu0 %v21546_v21 }
 0x58f   :  { %v5464_v13 = vpop.permute.xlu1 %5463 }
 0x592   :  { %14888 = vmatmul.mubr.msk.bf16.vlgmr.msra.gmra.mxu1 %vm54_vm3, %v5024_v61  ;;  %14894 = vmatmul.mubr.msk.bf16.vlgmr.msra.gmra.mxu0 %vm54_vm3, %v5075_v55 }
 0x593   :  { %14898 = vmatpush3.bf16.xpose.msra.mxu1 %v5133_v54  ;;  %14904 = vmatpush3.bf16.xpose.msra.mxu0 %v5184_v18 }
 0x594   :  { %14899 = vmatprep.mubr.msk.bf16.mxu1 %vm16367_vm1, %v21546_v21  ;;  %14905 = vmatprep.mubr.msk.bf16.mxu0 %vm16367_vm1, %v21546_v21 }
 0x595   :  { %14909 = vmatprep.subr.bf16.mxu1 %v21546_v21  ;;  %14915 = vmatprep.subr.bf16.mxu0 %v21546_v21 }
 0x59a   :  { %14900 = vmatmul.mubr.msk.bf16.vlgmr.msra.gmra.mxu1 %vm54_vm3, %v5126_v48  ;;  %14906 = vmatmul.mubr.msk.bf16.vlgmr.msra.gmra.mxu0 %vm54_vm3, %v5177_v34 }
 0x59b   :  { %14910 = vmatpush3.bf16.xpose.msra.mxu1 %v5235_v26  ;;  %14916 = vmatpush3.bf16.msra.mxu0 %v5464_v13 }
 0x59c   :  { %14911 = vmatprep.mubr.msk.bf16.mxu1 %vm16367_vm1, %v21546_v21  ;;  %14921 = vmatprep.subr.bf16.mxu1 %v21546_v21 }
 0x59d   :  { %14917 = vmatprep.mubr.msk.bf16.mxu0 %vm16367_vm1, %v21546_v21  ;;  %14927 = vmatprep.subr.bf16.mxu0 %v21546_v21 }
 0x5a2   :  { %14912 = vmatmul.mubr.msk.bf16.vlgmr.msra.gmra.mxu1 %vm54_vm3, %v5228_v1 }
 0x5a3   :  { %14923 = vmatprep.mubr.msk.bf16.mxu1 %vm16367_vm1, %v21546_v21 }
 0x5f6   :  { %v17801_v37 = vpop.f32.mrf.mxu0 }
 0x5f8   :  { %v14823_v20 = vpop.f32.mrf.mxu0 }
 0x5fa   :  { %v17803_v24 = vpop.f32.mrf.mxu0 }
 0x5fb   :  { %v4862_v30 = vpack.c.bf16 %v17803_v24, %v17801_v37 }
 0x5fc   :  { %v14824_v42 = vpop.f32.mrf.mxu0 }
 0x612   :  { %v17807_v5 = vpop.f32.mrf.mxu1 }
 0x614   :  { %v14829_v31 = vpop.f32.mrf.mxu1 }
 0x616   :  { %v17809_v27 = vpop.f32.mrf.mxu1 }
 0x618   :  { %v14830_v41 = vpop.f32.mrf.mxu1 }
 0x61a   :  { %v17813_v15 = vpop.f32.mrf.mxu0 }
 0x61c   :  { %v14835_v4 = vpop.f32.mrf.mxu0 }
 0x61e   :  { %v17815_v63 = vpop.f32.mrf.mxu0 }
 0x620   :  { %v14836_v36 = vpop.f32.mrf.mxu0 }
 0x622   :  { %v17819_v2 = vpop.f32.mrf.mxu1 }
 0x624   :  { %v14841_v39 = vpop.f32.mrf.mxu1 }
 0x626   :  { %v17821_v59 = vpop.f32.mrf.mxu1 }
 0x628   :  { %v14842_v50 = vpop.f32.mrf.mxu1 }
 0x62a   :  { %v17825_v19 = vpop.f32.mrf.mxu0 }
 0x62c   :  { %v14847_v49 = vpop.f32.mrf.mxu0 }
 0x62e   :  { %v17827_v58 = vpop.f32.mrf.mxu0 }
 0x62f   :  { %v21551_v37 = vpack.c.bf16 %v17827_v58, %v17825_v19 }
 0x630   :  { %v14848_v46 = vpop.f32.mrf.mxu0 }
 0x632   :  { %v17831_v17 = vpop.f32.mrf.mxu1 }
 0x634   :  { %v14853_v35 = vpop.f32.mrf.mxu1 }
 0x636   :  { %v17833_v28 = vpop.f32.mrf.mxu1 }
 0x637   :  { %v21552_v24 = vpack.c.bf16 %v17833_v28, %v17831_v17 }
 0x638   :  { %v14854_v9 = vpop.f32.mrf.mxu1 }
 0x63a   :  { %v17837_v56 = vpop.f32.mrf.mxu0 }
 0x63c   :  { %v14859_v0 = vpop.f32.mrf.mxu0 }
 0x63e   :  { %v17839_v38 = vpop.f32.mrf.mxu0 }
 0x640   :  { %v14860_v55 = vpop.f32.mrf.mxu0 }
 0x642   :  { %v17843_v47 = vpop.f32.mrf.mxu1  ;;  %v17845_v43 = vpop.f32.mrf.mxu0 }
 0x643   :  { %v5278_v51 = vsel %vm4321_vm6, %v17845_v43, -inf }
 0x644   :  { %5279 = vmax.xlane.f32.xlu0 %v5278_v51  ;;  %v14865_v23 = vpop.f32.mrf.mxu1  ;;  %v14871_v54 = vpop.f32.mrf.mxu0 }
 0x646   :  { %v17849_v18 = vpop.f32.mrf.mxu1  ;;  %v17851_v1 = vpop.f32.mrf.mxu0 }
 0x647   :  { %v5281_v26 = vsel %vm4321_vm6, %v17851_v1, -inf }
 0x648   :  { %5282 = vmax.xlane.f32.xlu1 %v5281_v26  ;;  %v14866_v13 = vpop.f32.mrf.mxu1  ;;  %v14872_v20 = vpop.f32.mrf.mxu0 }
 0x64a   :  { %v17857_v42 = vpop.f32.mrf.mxu1  ;;  %v17859_v31 = vpop.f32.mrf.mxu0 }
 0x64b   :  { %v5284_v41 = vsel %vm4321_vm6, %v17857_v42, -inf  ;;  %v5290_v4 = vsel %vm4321_vm6, %v17859_v31, -inf }
 0x64c   :  { %5285 = vmax.xlane.f32.xlu0 %v5284_v41  ;;  %v14877_v36 = vpop.f32.mrf.mxu1  ;;  %5291 = vmax.xlane.f32.xlu1 %v5290_v4  ;;  %v14883_v39 = vpop.f32.mrf.mxu0 }
 0x64e   :  { %v17865_v50 = vpop.f32.mrf.mxu1  ;;  %v17867_v49 = vpop.f32.mrf.mxu0 }
 0x64f   :  { %v5287_v46 = vsel %vm4321_vm6, %v17865_v50, -inf  ;;  %v5293_v23 = vsel %vm4321_vm6, %v17867_v49, -inf }
 0x650   :  { %5288 = vmax.xlane.f32.xlu0 %v5287_v46  ;;  %v14878_v35 = vpop.f32.mrf.mxu1  ;;  %v14884_v9 = vpop.f32.mrf.mxu0 }
 0x652   :  { %v17871_v0 = vpop.f32.mrf.mxu1  ;;  %v17873_v55 = vpop.f32.mrf.mxu0 }
 0x653   :  { %v5296_v51 = vsel %vm4321_vm6, %v17871_v0, -inf  ;;  %v5302_v4 = vsel %vm4321_vm6, %v17873_v55, -inf }
 0x654   :  { %v14889_v54 = vpop.f32.mrf.mxu1  ;;  %5297 = vmax.xlane.f32.xlu1 %v5296_v51  ;;  %5294 = vmax.xlane.f32.xlu0 %v5293_v23  ;;  %v14895_v26 = vpop.f32.mrf.mxu0 }
 0x656   :  { %v17879_v13 = vpop.f32.mrf.mxu1  ;;  %v17881_v20 = vpop.f32.mrf.mxu0 }
 0x657   :  { %v5299_v41 = vsel %vm4321_vm6, %v17879_v13, -inf }
 0x658   :  { %v14890_v36 = vpop.f32.mrf.mxu1  ;;  %5300 = vmax.xlane.f32.xlu0 %v5299_v41  ;;  %5303 = vmax.xlane.f32.xlu1 %v5302_v4  ;;  %v14896_v39 = vpop.f32.mrf.mxu0 }
 0x65a   :  { %v17887_v46 = vpop.f32.mrf.mxu1  ;;  %v17889_v35 = vpop.f32.mrf.mxu0 }
 0x65b   :  { %v5308_v9 = vsel %vm4321_vm6, %v17887_v46, -inf }
 0x65c   :  { %v14901_v51 = vpop.f32.mrf.mxu1  ;;  %5309 = vmax.xlane.f32.xlu1 %v5308_v9  ;;  %v14907_v23 = vpop.f32.mrf.mxu0  ;;  %v5305_v9 = vsel %vm4321_vm6, %v17881_v20, -inf }
 0x65e   :  { %v17893_v54 = vpop.f32.mrf.mxu1  ;;  %v17895_v26 = vpop.f32.mrf.mxu0 }
 0x660   :  { %v14902_v34 = vpop.f32.mrf.mxu1  ;;  %v14908_v48 = vpop.f32.mrf.mxu0 }
 0x661   :  { %v5311_v34 = vsel %vm4321_vm6, %v17893_v54, -inf  ;;  %v5314_v48 = vsel %vm4321_vm6, %v17889_v35, -inf }
 0x662   :  { %v17897_v36 = vpop.f32.mrf.mxu1 }
 0x663   :  { %v5320_v51 = vsel %vm4321_vm6, %v17897_v36, -inf }
 0x664   :  { %v14913_v41 = vpop.f32.mrf.mxu1 }
 0x666   :  { %v17899_v4 = vpop.f32.mrf.mxu1 }
 0x668   :  { %v14914_v39 = vpop.f32.mrf.mxu1 }
 0x66d   :  { %5559 = vrot.lane.b32.xlu1 %v17677_v29, %s16371_s25  ;;  %v5317_v29 = vsel %vm4321_vm6, %v17895_v26, -inf }
 0x66e   :  { %5511 = vrot.lane.b32.xlu0 %v17481_v52, %s16371_s25  ;;  %v5323_v52 = vsel %vm4321_vm6, %v17899_v4, -inf }
 0x68d   :  { %5306 = vmax.xlane.f32.xlu0 %v5305_v9 }
 0x691   :  { %5312 = vmax.xlane.f32.xlu0 %v5311_v34  ;;  %5315 = vmax.xlane.f32.xlu1 %v5314_v48 }
 0x695   :  { %5321 = vmax.xlane.f32.xlu1 %v5320_v51  ;;  %5318 = vmax.xlane.f32.xlu0 %v5317_v29 }
 0x699   :  { %5324 = vmax.xlane.f32.xlu0 %v5323_v52 }
 0x6cd   :  { %v5280_v23 = vpop.xlane.xlu0 %5279 }
 0x6ce   :  { %v5326_v41 = vsub.f32 %v17845_v43, %v5280_v23 }
 0x6d0   :  { %v5342_v39 = vmul.f32 1.442695, %v5326_v41 }
 0x6d1   :  { %v5283_v9 = vpop.xlane.xlu1 %5282 }
 0x6d2   :  { %15869 = vpow2.f32 %v5342_v39  ;;  %v5327_v34 = vsub.f32 %v17851_v1, %v5283_v9 }
 0x6d4   :  { %v5344_v48 = vmul.f32 1.442695, %v5327_v34 }
 0x6d5   :  { %v5292_v16 = vpop.xlane.xlu1 %5291  ;;  %v5286_v61 = vpop.xlane.xlu0 %5285 }
 0x6d6   :  { %15871 = vpow2.f32 %v5344_v48  ;;  %v5330_v8 = vsub.f32 %v17859_v31, %v5292_v16  ;;  %v5328_v51 = vsub.f32 %v17857_v42, %v5286_v61 }
 0x6d8   :  { %v5346_v29 = vmul.f32 1.442695, %v5328_v51  ;;  %v5350_v57 = vmul.f32 1.442695, %v5330_v8 }
 0x6d9   :  { %v5289_v60 = vpop.xlane.xlu0 %5288 }
 0x6da   :  { %v5329_v52 = vsub.f32 %v17865_v50, %v5289_v60  ;;  %15873 = vpow2.f32 %v5346_v29 }
 0x6db   :  { %15875 = vpow2.f32 %v5350_v57 }
 0x6dc   :  { %v5348_v43 = vmul.f32 1.442695, %v5329_v52 }
 0x6dd   :  { %v5298_v23 = vpop.xlane.xlu1 %5297  ;;  %v5295_v41 = vpop.xlane.xlu0 %5294 }
 0x6de   :  { %15877 = vpow2.f32 %v5348_v43  ;;  %v5332_v1 = vsub.f32 %v17871_v0, %v5298_v23  ;;  %v5331_v52 = vsub.f32 %v17867_v49, %v5295_v41 }
 0x6df   :  { %v17923_v39 = vpop.eup %15869 }
 0x6e0   :  { %v5354_v9 = vmul.f32 1.442695, %v5332_v1  ;;  %v5374_v16 = vsel %vm4321_vm6, %v17923_v39, 0.0  ;;  %v5352_v23 = vmul.f32 1.442695, %v5331_v52 }
 0x6e1   :  { %5375 = vadd.xlane.f32.xlu1 %v5374_v16  ;;  %v5301_v61 = vpop.xlane.xlu0 %5300  ;;  %v5304_v43 = vpop.xlane.xlu1 %5303 }
 0x6e2   :  { %15879 = vpow2.f32 %v5354_v9  ;;  %v5333_v1 = vsub.f32 %v17879_v13, %v5301_v61  ;;  %v5334_v9 = vsub.f32 %v17873_v55, %v5304_v43 }
 0x6e3   :  { %v17927_v8 = vpop.eup %15871  ;;  %15881 = vpow2.f32 %v5352_v23 }
 0x6e4   :  { %v5377_v60 = vsel %vm4321_vm6, %v17927_v8, 0.0 }
 0x6e5   :  { %5378 = vadd.xlane.f32.xlu0 %v5377_v60  ;;  %v5512_v57 = vpop.permute.xlu0 %5511  ;;  %v5310_v16 = vpop.xlane.xlu1 %5309  ;;  %v5356_v60 = vmul.f32 1.442695, %v5333_v1 }
 0x6e6   :  { %14922 = vmatpush3.bf16.msra.mxu1 %v5512_v57  ;;  %v5358_v57 = vmul.f32 1.442695, %v5334_v9 }
 0x6e7   :  { %14933 = vmatprep.subr.bf16.mxu1 %v21546_v21  ;;  %v17932_v42 = vpop.eup %15873  ;;  %15883 = vpow2.f32 %v5356_v60 }
 0x6e8   :  { %v5380_v31 = vsel %vm4321_vm6, %v17932_v42, 0.0  ;;  %v17936_v50 = vpop.eup %15875  ;;  %15885 = vpow2.f32 %v5358_v57 }
 0x6e9   :  { %5381 = vadd.xlane.f32.xlu1 %v5380_v31  ;;  %v5386_v48 = vsel %vm4321_vm6, %v17936_v50, 0.0  ;;  %v5336_v31 = vsub.f32 %v17887_v46, %v5310_v16 }
 0x6eb   :  { %v17938_v0 = vpop.eup %15877 }
 0x6ec   :  { %v5383_v34 = vsel %vm4321_vm6, %v17938_v0, 0.0 }
 0x6ed   :  { %5384 = vadd.xlane.f32.xlu0 %v5383_v34  ;;  %5387 = vadd.xlane.f32.xlu1 %v5386_v48  ;;  %v17956_v34 = vpop.permute.xlu1 %5559 }
 0x6ef   :  { %v17944_v51 = vpop.eup %15879 }
 0x6f0   :  { %v5392_v29 = vsel %vm4321_vm6, %v17944_v51, 0.0  ;;  %v17961_v46 = vpop.eup %15881 }
 0x6f1   :  { %5393 = vadd.xlane.f32.xlu1 %v5392_v29  ;;  %v5389_v60 = vsel %vm4321_vm6, %v17961_v46, 0.0 }
 0x702   :  { %5655 = vrot.lane.b32.xlu1 %v17703_v25, %s16371_s25  ;;  %v5362_v25 = vmul.f32 1.442695, %v5336_v31 }
 0x703   :  { %5607 = vrot.lane.b32.xlu0 %v17690_v7, %s16371_s25 }
 0x704   :  { %15887 = vpow2.f32 %v5362_v25 }
 0x716   :  { %v5307_v7 = vpop.xlane.xlu0 %5306 }
 0x717   :  { %v5335_v49 = vsub.f32 %v17881_v20, %v5307_v7 }
 0x719   :  { %v5360_v41 = vmul.f32 1.442695, %v5335_v49 }
 0x71a   :  { %v5316_v48 = vpop.xlane.xlu1 %5315  ;;  %v5313_v13 = vpop.xlane.xlu0 %5312 }
 0x71b   :  { %15889 = vpow2.f32 %v5360_v41  ;;  %v5338_v55 = vsub.f32 %v17889_v35, %v5316_v48  ;;  %v5337_v61 = vsub.f32 %v17893_v54, %v5313_v13  ;;  %v17967_v35 = vpop.eup %15883 }
 0x71c   :  { %v17969_v57 = vpop.eup %15885 }
 0x71d   :  { %v5366_v29 = vmul.f32 1.442695, %v5338_v55  ;;  %v5364_v52 = vmul.f32 1.442695, %v5337_v61  ;;  %v17976_v7 = vpop.eup %15887 }
 0x71e   :  { %v5322_v43 = vpop.xlane.xlu1 %5321  ;;  %v5319_v23 = vpop.xlane.xlu0 %5318 }
 0x71f   :  { %15891 = vpow2.f32 %v5366_v29  ;;  %v5340_v1 = vsub.f32 %v17897_v36, %v5322_v43  ;;  %v5339_v20 = vsub.f32 %v17895_v26, %v5319_v23  ;;  %v5395_v26 = vsel %vm4321_vm6, %v17967_v35, 0.0 }
 0x720   :  { %15893 = vpow2.f32 %v5364_v52  ;;  %v5398_v36 = vsel %vm4321_vm6, %v17969_v57, 0.0 }
 0x721   :  { %v5370_v9 = vmul.f32 1.442695, %v5340_v1  ;;  %v5368_v16 = vmul.f32 1.442695, %v5339_v20 }
 0x722   :  { %5390 = vadd.xlane.f32.xlu0 %v5389_v60  ;;  %v5325_v54 = vpop.xlane.xlu0 %5324 }
 0x723   :  { %15895 = vpow2.f32 %v5370_v9  ;;  %v5341_v31 = vsub.f32 %v17899_v4, %v5325_v54  ;;  %v5404_v4 = vsel %vm4321_vm6, %v17976_v7, 0.0 }
 0x724   :  { %15897 = vpow2.f32 %v5368_v16 }
 0x725   :  { %v5372_v25 = vmul.f32 1.442695, %v5341_v31 }
 0x726   :  { %5396 = vadd.xlane.f32.xlu0 %v5395_v26  ;;  %5399 = vadd.xlane.f32.xlu1 %v5398_v36 }
 0x727   :  { %15899 = vpow2.f32 %v5372_v25 }
 0x728   :  { %v17978_v49 = vpop.eup %15889 }
 0x729   :  { %v5401_v41 = vsel %vm4321_vm6, %v17978_v49, 0.0 }
 0x72a   :  { %5402 = vadd.xlane.f32.xlu0 %v5401_v41  ;;  %5405 = vadd.xlane.f32.xlu1 %v5404_v4 }
 0x72c   :  { %v17984_v48 = vpop.eup %15891 }
 0x72d   :  { %v17986_v13 = vpop.eup %15893  ;;  %v5410_v55 = vsel %vm4321_vm6, %v17984_v48, 0.0 }
 0x72e   :  { %v5407_v61 = vsel %vm4321_vm6, %v17986_v13, 0.0  ;;  %5411 = vadd.xlane.f32.xlu1 %v5410_v55 }
 0x72f   :  { %5408 = vadd.xlane.f32.xlu0 %v5407_v61 }
 0x730   :  { %v17992_v29 = vpop.eup %15895 }
 0x731   :  { %v17994_v52 = vpop.eup %15897  ;;  %v5416_v43 = vsel %vm4321_vm6, %v17992_v29, 0.0 }
 0x732   :  { %v5413_v23 = vsel %vm4321_vm6, %v17994_v52, 0.0  ;;  %5417 = vadd.xlane.f32.xlu1 %v5416_v43 }
 0x733   :  { %5414 = vadd.xlane.f32.xlu0 %v5413_v23 }
 0x734   :  { %v18000_v1 = vpop.eup %15899 }
 0x735   :  { %v5419_v20 = vsel %vm4321_vm6, %v18000_v1, 0.0 }
 0x737   :  { %5420 = vadd.xlane.f32.xlu0 %v5419_v20 }
 0x743   :  { %5751 = vrot.lane.b32.xlu1 %v17729_v6, %s16371_s25 }
 0x747   :  { %5799 = vrot.lane.b32.xlu1 %v17742_v22, %s16371_s25 }
 0x74d   :  { %5703 = vrot.lane.b32.xlu0 %v17716_v10, %s16371_s25 }
 0x76a   :  { %v5376_v9 = vpop.xlane.xlu1 %5375 }
 0x76b   :  { %15901 = vrcp.f32 %v5376_v9 }
 0x76e   :  { %v5379_v16 = vpop.xlane.xlu0 %5378 }
 0x76f   :  { %15903 = vrcp.f32 %v5379_v16 }
 0x772   :  { %v5382_v60 = vpop.xlane.xlu1 %5381 }
 0x773   :  { %15905 = vrcp.f32 %v5382_v60 }
 0x776   :  { %v5385_v54 = vpop.xlane.xlu0 %5384 }
 0x777   :  { %15907 = vrcp.f32 %v5385_v54 }
 0x778   :  { %v15902_v31 = vpop.eup %15901 }
 0x779   :  { %v5438_v26 = vmul.f32 %v15902_v31, %v17923_v39 }
 0x77a   :  { %v5608_v39 = vpop.permute.xlu0 %5607 }
 0x77c   :  { %v15904_v25 = vpop.eup %15903 }
 0x77d   :  { %v5439_v6 = vmul.f32 %v15904_v25, %v17927_v8  ;;  %v5388_v8 = vpop.xlane.xlu1 %5387 }
 0x77e   :  { %15909 = vrcp.f32 %v5388_v8 }
 0x77f   :  { %v5454_v36 = vpack.c.bf16 %v5439_v6, %v5438_v26 }
 0x780   :  { %v15906_v22 = vpop.eup %15905 }
 0x781   :  { %14918 = vmatmul.mubr.msk.bf16.vlgmr.msra.gmra.mxu0 %vm4321_vm6, %v5454_v36  ;;  %v5440_v41 = vmul.f32 %v15906_v22, %v17932_v42 }
 0x782   :  { %14928 = vmatpush3.bf16.msra.mxu0 %v17956_v34  ;;  %14929 = vmatprep.mubr.msk.bf16.mxu0 %vm16367_vm1, %v21546_v21  ;;  %v5394_v34 = vpop.xlane.xlu1 %5393 }
 0x783   :  { %14939 = vmatprep.subr.bf16.mxu0 %v21546_v21 }
 0x784   :  { %v15908_v10 = vpop.eup %15907 }
 0x785   :  { %v5441_v4 = vmul.f32 %v15908_v10, %v17938_v0 }
 0x786   :  { %v5656_v43 = vpop.permute.xlu1 %5655 }
 0x787   :  { %v5455_v55 = vpack.c.bf16 %v5441_v4, %v5440_v41 }
 0x789   :  { %14924 = vmatmul.mubr.msk.bf16.vlgmr.msra.gmra.mxu1 %vm4321_vm6, %v5455_v55 }
 0x78a   :  { %14934 = vmatpush3.bf16.msra.mxu1 %v5608_v39  ;;  %14935 = vmatprep.mubr.msk.bf16.mxu1 %vm16367_vm1, %v21546_v21 }
 0x78b   :  { %14945 = vmatprep.subr.bf16.mxu1 %v21546_v21  ;;  %v15910_v9 = vpop.eup %15909 }
 0x78c   :  { %v5442_v31 = vmul.f32 %v15910_v9, %v17936_v50  ;;  %v15705_v9 = vld [vmem:[%s21509_s2 + $0x140] ss:$8 sps:$4 sm:$0xff]  }
 0x7ab   :  { %v5391_v61 = vpop.xlane.xlu0 %5390 }
 0x7ac   :  { %15911 = vrcp.f32 %v5391_v61 }
 0x7ad   :  { %15913 = vrcp.f32 %v5394_v34 }
 0x7af   :  { %v5397_v42 = vpop.xlane.xlu0 %5396  ;;  %v5400_v23 = vpop.xlane.xlu1 %5399 }
 0x7b0   :  { %15915 = vrcp.f32 %v5397_v42 }
 0x7b1   :  { %15917 = vrcp.f32 %v5400_v23 }
 0x7b3   :  { %v5403_v0 = vpop.xlane.xlu0 %5402  ;;  %v5406_v20 = vpop.xlane.xlu1 %5405 }
 0x7b4   :  { %15919 = vrcp.f32 %v5403_v0 }
 0x7b5   :  { %15921 = vrcp.f32 %v5406_v20 }
 0x7b7   :  { %v5412_v16 = vpop.xlane.xlu1 %5411 }
 0x7b8   :  { %v5409_v60 = vpop.xlane.xlu0 %5408 }
 0x7b9   :  { %v15912_v54 = vpop.eup %15911  ;;  %15923 = vrcp.f32 %v5409_v60 }
 0x7ba   :  { %v5443_v25 = vmul.f32 %v15912_v54, %v17961_v46  ;;  %v15914_v26 = vpop.eup %15913  ;;  %15925 = vrcp.f32 %v5412_v16 }
 0x7bb   :  { %v5418_v6 = vpop.xlane.xlu1 %5417  ;;  %v5444_v41 = vmul.f32 %v15914_v26, %v17944_v51  ;;  %v15708_v26 = vld [vmem:[%s21509_s2 + $0x150] ss:$8 sps:$4 sm:$0xff]  }
 0x7bc   :  { %v5415_v36 = vpop.xlane.xlu0 %5414  ;;  %v5456_v22 = vpack.c.bf16 %v5443_v25, %v5442_v31 }
 0x7bd   :  { %v15916_v10 = vpop.eup %15915  ;;  %15927 = vrcp.f32 %v5415_v36 }
 0x7be   :  { %14930 = vmatmul.mubr.msk.bf16.vlgmr.msra.gmra.mxu0 %vm4321_vm6, %v5456_v22  ;;  %v5445_v4 = vmul.f32 %v15916_v10, %v17967_v35  ;;  %v15918_v55 = vpop.eup %15917  ;;  %15929 = vrcp.f32 %v5418_v6  ;;  %v21550_v22 = vpack.c.bf16 %v17821_v59, %v17819_v2 }
 0x7bf   :  { %14940 = vmatpush3.bf16.msra.mxu0 %v5656_v43  ;;  %14941 = vmatprep.mubr.msk.bf16.mxu0 %vm16367_vm1, %v21546_v21  ;;  %v5446_v8 = vmul.f32 %v15918_v55, %v17969_v57  ;;  %v5752_v43 = vpop.permute.xlu1 %5751  ;;  %v15707_v57 = vld [vmem:[%s21509_s2 + $0x160] ss:$8 sps:$4 sm:$0xff]  }
 0x7c0   :  { %v5421_v50 = vpop.xlane.xlu0 %5420  ;;  %v5457_v46 = vpack.c.bf16 %v5445_v4, %v5444_v41  ;;  %14951 = vmatprep.subr.bf16.mxu0 %v21546_v21 }
 0x7c1   :  { %v15920_v39 = vpop.eup %15919  ;;  %15931 = vrcp.f32 %v5421_v50 }
 0x7c2   :  { %14936 = vmatmul.mubr.msk.bf16.vlgmr.msra.gmra.mxu1 %vm4321_vm6, %v5457_v46  ;;  %v5447_v51 = vmul.f32 %v15920_v39, %v17978_v49  ;;  %v15922_v61 = vpop.eup %15921 }
 0x7c3   :  { %14947 = vmatprep.mubr.msk.bf16.mxu1 %vm16367_vm1, %v21546_v21  ;;  %v5448_v49 = vmul.f32 %v15922_v61, %v17976_v7  ;;  %v5800_v54 = vpop.permute.xlu1 %5799 }
 0x7c4   :  { %v5704_v35 = vpop.permute.xlu0 %5703  ;;  %v5458_v34 = vpack.c.bf16 %v5447_v51, %v5446_v8 }
 0x7c5   :  { %14946 = vmatpush3.bf16.msra.mxu1 %v5704_v35 }
 0x7c6   :  { %14942 = vmatmul.mubr.msk.bf16.vlgmr.msra.gmra.mxu0 %vm4321_vm6, %v5458_v34  ;;  %14957 = vmatprep.subr.bf16.mxu1 %v21546_v21  ;;  %v15924_v42 = vpop.eup %15923 }
 0x7c7   :  { %14952 = vmatpush3.bf16.msra.mxu0 %v5752_v43  ;;  %14953 = vmatprep.mubr.msk.bf16.mxu0 %vm16367_vm1, %v21546_v21  ;;  %v5449_v23 = vmul.f32 %v15924_v42, %v17986_v13  ;;  %v15926_v0 = vpop.eup %15925 }
 0x7c8   :  { %14963 = vmatprep.subr.bf16.mxu0 %v15707_v57  ;;  %v5450_v31 = vmul.f32 %v15926_v0, %v17984_v48 }
 0x7c9   :  { %v5459_v20 = vpack.c.bf16 %v5449_v23, %v5448_v49 }
 0x7ca   :  { %v15928_v16 = vpop.eup %15927 }
 0x7cb   :  { %v15930_v60 = vpop.eup %15929  ;;  %14948 = vmatmul.mubr.msk.bf16.vlgmr.msra.gmra.mxu1 %vm4321_vm6, %v5459_v20  ;;  %v5451_v25 = vmul.f32 %v15928_v16, %v17994_v52  ;;  %v15706_v52 = vld [vmem:[%s21509_s2 + $0x130] ss:$8 sps:$4 sm:$0xff]  }
 0x7cc   :  { %14958 = vmatpush3.bf16.msra.mxu1 %v5800_v54  ;;  %14959 = vmatprep.mubr.msk.bf16.mxu1 %vm16367_vm1, %v21546_v21  ;;  %v5452_v6 = vmul.f32 %v15930_v60, %v17992_v29  ;;  %v21548_v29 = vpack.c.bf16 %v17809_v27, %v17807_v5  ;;  %v21554_v5 = vpack.c.bf16 %v17849_v18, %v17843_v47 }
 0x7cd   :  { %v5460_v13 = vpack.c.bf16 %v5451_v25, %v5450_v31  ;;  %14983 = vmatprep.subr.bf16.mxu1 %v15705_v9 }
 0x7ce   :  { %v15932_v7 = vpop.eup %15931 }
 0x7cf   :  { %v5453_v36 = vmul.f32 %v15932_v7, %v18000_v1  ;;  %14954 = vmatmul.mubr.msk.bf16.vlgmr.msra.gmra.mxu0 %vm4321_vm6, %v5460_v13  ;;  %v21549_v1 = vpack.c.bf16 %v17815_v63, %v17813_v15 }
 0x7d0   :  { %14964 = vmatpush3.bf16.msra.mxu0 %v15707_v57 }
 0x7d1   :  { %v5461_v48 = vpack.c.bf16 %v5453_v36, %v5452_v6  ;;  %14965 = vmatprep.subr.bf16.mxu0 %v15708_v26 }
 0x7d3   :  { %14960 = vmatmul.mubr.msk.bf16.vlgmr.msra.gmra.mxu1 %vm4321_vm6, %v5461_v48 }
 0x7d4   :  { %14984 = vmatpush3.bf16.msra.mxu1 %v15705_v9  ;;  %14987 = vmatprep.mubr.msk.bf16.mxu1 %vm54_vm3, %v4862_v30  ;;  %v21553_v30 = vpack.c.bf16 %v17839_v38, %v17837_v56 }
 0x7d5   :  { %14985 = vmatprep.subr.bf16.mxu1 %v15706_v52  ;;  %14966 = vmatpush3.bf16.msra.mxu0 %v15708_v26 }
 0x7d8   :  { %14986 = vmatpush3.bf16.msra.mxu1 %v15706_v52 }
 0x7db   :  { %14988 = vmatmul.mubr.msk.bf16.vlgmr.msra.gmra.mxu1 %vm54_vm3, %v21548_v29  ;;  %v18106_v29 = vld [vmem:[%s21512_s3 + $0x5] ss:$0 sm:$0xff] }
 0x7dc   :  { %14991 = vmatprep.mubr.msk.bf16.mxu1 %vm54_vm3, %v21549_v1 }
 0x7e3   :  { %14992 = vmatmul.mubr.msk.bf16.gmra.mxu1 %vm54_vm3, %v21550_v22 }
 0x7e4   :  { %14995 = vmatprep.mubr.msk.bf16.mxu1 %vm54_vm3, %v21551_v37 }
 0x7eb   :  { %14996 = vmatmul.mubr.msk.bf16.gmra.mxu1 %vm54_vm3, %v21552_v24 }
 0x7ec   :  { %14999 = vmatprep.mubr.msk.bf16.mxu1 %vm54_vm3, %v21553_v30 }
 0x7f3   :  { %15000 = vmatmul.mubr.msk.bf16.gmra.mxu1 %vm54_vm3, %v21554_v5 }
 0x841   :  { %v5503_v27 = vpop.f32.mrf.mxu0 }
 0x843   :  { %v14919_v15 = vpop.f32.mrf.mxu0 }
 0x845   :  { %v5506_v63 = vpop.f32.mrf.mxu0 }
 0x846   :  { %v5850_v2 = vpack.c.bf16 %v5506_v63, %v5503_v27 }
 0x847   :  { %v14920_v59 = vpop.f32.mrf.mxu0 }
 0x848   :  { %14967 = vmatprep.mubr.msk.bf16.mxu0 %vm54_vm3, %v5850_v2 }
 0x849   :  { %v5551_v19 = vpop.f32.mrf.mxu1 }
 0x84b   :  { %v14925_v58 = vpop.f32.mrf.mxu1 }
 0x84d   :  { %v5554_v17 = vpop.f32.mrf.mxu1 }
 0x84e   :  { %v5851_v28 = vpack.c.bf16 %v5554_v17, %v5551_v19 }
 0x84f   :  { %v14926_v10 = vpop.f32.mrf.mxu1 }
 0x850   :  { %14968 = vmatmul.mubr.msk.bf16.vlgmr.msra.gmra.mxu0 %vm54_vm3, %v5851_v28 }
 0x87e   :  { %v5599_v56 = vpop.f32.mrf.mxu0 }
 0x880   :  { %v14931_v38 = vpop.f32.mrf.mxu0 }
 0x882   :  { %v5602_v41 = vpop.f32.mrf.mxu0  ;;  %v5647_v47 = vpop.f32.mrf.mxu1 }
 0x883   :  { %v5852_v18 = vpack.c.bf16 %v5602_v41, %v5599_v56 }
 0x884   :  { %v14932_v4 = vpop.f32.mrf.mxu0  ;;  %v14937_v55 = vpop.f32.mrf.mxu1 }
 0x885   :  { %14971 = vmatprep.mubr.msk.bf16.mxu0 %vm54_vm3, %v5852_v18 }
 0x886   :  { %v5650_v50 = vpop.f32.mrf.mxu1  ;;  %v5695_v46 = vpop.f32.mrf.mxu0 }
 0x887   :  { %v5853_v39 = vpack.c.bf16 %v5650_v50, %v5647_v47 }
 0x888   :  { %v14938_v8 = vpop.f32.mrf.mxu1  ;;  %v14943_v51 = vpop.f32.mrf.mxu0 }
 0x889   :  { %14972 = vmatmul.mubr.msk.bf16.gmra.mxu0 %vm54_vm3, %v5853_v39 }
 0x88a   :  { %v5698_v35 = vpop.f32.mrf.mxu0 }
 0x88b   :  { %v5854_v34 = vpack.c.bf16 %v5698_v35, %v5695_v46  ;;  %v5743_v61 = vpop.f32.mrf.mxu1 }
 0x88c   :  { %v14944_v43 = vpop.f32.mrf.mxu0 }
 0x88d   :  { %14975 = vmatprep.mubr.msk.bf16.mxu0 %vm54_vm3, %v5854_v34  ;;  %v14949_v42 = vpop.f32.mrf.mxu1 }
 0x88f   :  { %v5746_v57 = vpop.f32.mrf.mxu1  ;;  %v5791_v49 = vpop.f32.mrf.mxu0 }
 0x890   :  { %v5855_v23 = vpack.c.bf16 %v5746_v57, %v5743_v61 }
 0x891   :  { %v14950_v0 = vpop.f32.mrf.mxu1  ;;  %v14955_v20 = vpop.f32.mrf.mxu0 }
 0x892   :  { %14976 = vmatmul.mubr.msk.bf16.gmra.mxu0 %vm54_vm3, %v5855_v23 }
 0x893   :  { %v5794_v9 = vpop.f32.mrf.mxu0  ;;  %v5839_v16 = vpop.f32.mrf.mxu1 }
 0x894   :  { %v5856_v60 = vpack.c.bf16 %v5794_v9, %v5791_v49 }
 0x895   :  { %v14956_v54 = vpop.f32.mrf.mxu0  ;;  %v14961_v31 = vpop.f32.mrf.mxu1 }
 0x896   :  { %14979 = vmatprep.mubr.msk.bf16.mxu0 %vm54_vm3, %v5856_v60 }
 0x897   :  { %v5842_v25 = vpop.f32.mrf.mxu1 }
 0x898   :  { %v5857_v7 = vpack.c.bf16 %v5842_v25, %v5839_v16 }
 0x899   :  { %v14962_v13 = vpop.f32.mrf.mxu1 }
 0x89a   :  { %14980 = vmatmul.mubr.msk.bf16.gmra.mxu0 %vm54_vm3, %v5857_v7 }
 0x89b   :  { %v14989_v26 = vpop.f32.mrf.mxu1 }
 0x89d   :  { %v6061_v6 = vpop.f32.mrf.mxu1 }
 0x89f   :  { %v14990_v52 = vpop.f32.mrf.mxu1 }
 0x8a1   :  { %v6064_v27 = vpop.f32.mrf.mxu1 }
 0x910   :  { %v14969_v36 = vpop.f32.mrf.mxu0 }
 0x911   :  { %v6070_v48 = vadd.f32 %v14989_v26, %v14969_v36 }
 0x912   :  { %v5928_v1 = vpop.f32.mrf.mxu0 }
 0x913   :  { %v6062_v22 = vadd.f32 %v6061_v6, %v5928_v1  ;;  %v6127_v24 = vadd.f32 %v18106_v29, %v6070_v48 }
 0x914   :  { %v14970_v37 = vpop.f32.mrf.mxu0 }
 0x915   :  { %v6125_v30 = vadd.f32 %v18106_v29, %v6062_v22  ;;  %v6073_v5 = vadd.f32 %v14990_v52, %v14970_v37  ;;  %v18118_v17 = vadd.f32 %v6127_v24, %v17133_v14  ;;  %v14993_v14 = vpop.f32.mrf.mxu1 }
 0x916   :  { %v5931_v15 = vpop.f32.mrf.mxu0 }
 0x917   :  { %v6065_v63 = vadd.f32 %v6064_v27, %v5931_v15  ;;  %v18111_v2 = vadd.f32 %v6125_v30, %v16955_v40  ;;  %v6128_v59 = vadd.f32 %v18106_v29, %v6073_v5  ;;  %v6165_v40 = vsel %vm1937_vm4, %v18118_v17, 0.0  ;;  %v6077_v41 = vpop.f32.mrf.mxu1 }
 0x919   :  { %v6126_v19 = vadd.f32 %v18106_v29, %v6065_v63  ;;  %v6159_v58 = vsel %vm1937_vm4, %v18111_v2, 0.0  ;;  %v18128_v56 = vadd.f32 %v6128_v59, %v17144_v44  ;;  %v14994_v47 = vpop.f32.mrf.mxu1 }
 0x91a   :  { %6160 = vadd.xlane.f32.xlu0 %v6159_v58 }
 0x91b   :  { %v18121_v28 = vadd.f32 %v6126_v19, %v17034_v32  ;;  %v6168_v38 = vsel %vm1937_vm4, %v18128_v56, 0.0  ;;  %v6080_v32 = vpop.f32.mrf.mxu1 }
 0x91d   :  { %v6162_v10 = vsel %vm1937_vm4, %v18121_v28, 0.0  ;;  %v14997_v18 = vpop.f32.mrf.mxu1 }
 0x91e   :  { %6163 = vadd.xlane.f32.xlu1 %v6162_v10  ;;  %6166 = vadd.xlane.f32.xlu0 %v6165_v40  ;;  %v21555_v10 = vld [vmem:[#allocation4_spill] sm:$0xff] }
 0x91f   :  { %v6093_v4 = vpop.f32.mrf.mxu1 }
 0x921   :  { %v14998_v8 = vpop.f32.mrf.mxu1 }
 0x922   :  { %6169 = vadd.xlane.f32.xlu0 %v6168_v38 }
 0x923   :  { %v6096_v57 = vpop.f32.mrf.mxu1 }
 0x925   :  { %v15001_v54 = vpop.f32.mrf.mxu1 }
 0x927   :  { %v6109_v36 = vpop.f32.mrf.mxu1 }
 0x929   :  { %v15002_v15 = vpop.f32.mrf.mxu1 }
 0x949   :  { %v14973_v55 = vpop.f32.mrf.mxu0 }
 0x94a   :  { %v6086_v50 = vadd.f32 %v14993_v14, %v14973_v55 }
 0x94b   :  { %v5944_v46 = vpop.f32.mrf.mxu0 }
 0x94c   :  { %v6078_v39 = vadd.f32 %v6077_v41, %v5944_v46  ;;  %v6131_v44 = vadd.f32 %v18106_v29, %v6086_v50 }
 0x94d   :  { %v14974_v51 = vpop.f32.mrf.mxu0 }
 0x94e   :  { %v6129_v35 = vadd.f32 %v18106_v29, %v6078_v39  ;;  %v6089_v34 = vadd.f32 %v14994_v47, %v14974_v51  ;;  %v18142_v20 = vadd.f32 %v6131_v44, %v17222_v45  ;;  %v6112_v47 = vpop.f32.mrf.mxu1  ;;  %v21558_v44 = vld [vmem:[#allocation5_spill] sm:$0xff] }
 0x94f   :  { %v5947_v61 = vpop.f32.mrf.mxu0 }
 0x950   :  { %v6081_v43 = vadd.f32 %v6080_v32, %v5947_v61  ;;  %v18135_v42 = vadd.f32 %v6129_v35, %v17186_v11  ;;  %v6132_v49 = vadd.f32 %v18106_v29, %v6089_v34  ;;  %v6177_v25 = vsel %vm1937_vm4, %v18142_v20, 0.0 }
 0x952   :  { %v6130_v23 = vadd.f32 %v18106_v29, %v6081_v43  ;;  %v6171_v0 = vsel %vm1937_vm4, %v18135_v42, 0.0  ;;  %v14977_v9 = vpop.f32.mrf.mxu0  ;;  %v18152_v13 = vadd.f32 %v6132_v49, %v17233_v12  ;;  %v21559_v43 = vld [vmem:[#allocation8_spill] sm:$0xff] }
 0x953   :  { %6172 = vadd.xlane.f32.xlu1 %v6171_v0  ;;  %v6102_v16 = vadd.f32 %v14997_v18, %v14977_v9  ;;  %v21556_v18 = vld [vmem:[#allocation6_spill] sm:$0xff] }
 0x954   :  { %v18145_v60 = vadd.f32 %v6130_v23, %v17181_v53  ;;  %v5960_v11 = vpop.f32.mrf.mxu0  ;;  %v6180_v22 = vsel %vm1937_vm4, %v18152_v13, 0.0 }
 0x955   :  { %v6094_v31 = vadd.f32 %v6093_v4, %v5960_v11  ;;  %v6135_v45 = vadd.f32 %v18106_v29, %v6102_v16 }
 0x956   :  { %v6174_v7 = vsel %vm1937_vm4, %v18145_v60, 0.0  ;;  %v14978_v26 = vpop.f32.mrf.mxu0 }
 0x957   :  { %6178 = vadd.xlane.f32.xlu1 %v6177_v25  ;;  %6175 = vadd.xlane.f32.xlu0 %v6174_v7  ;;  %v6133_v53 = vadd.f32 %v18106_v29, %v6094_v31  ;;  %v6105_v6 = vadd.f32 %v14998_v8, %v14978_v26  ;;  %v18163_v24 = vadd.f32 %v6135_v45, %v17297_v3  ;;  %v21557_v8 = vld [vmem:[#allocation7_spill] sm:$0xff] }
 0x958   :  { %v5963_v48 = vpop.f32.mrf.mxu0 }
 0x959   :  { %v6097_v52 = vadd.f32 %v6096_v57, %v5963_v48  ;;  %v18157_v1 = vadd.f32 %v6133_v53, %v17270_v33  ;;  %v6136_v12 = vadd.f32 %v18106_v29, %v6105_v6  ;;  %v6189_v58 = vsel %vm1937_vm4, %v18163_v24, 0.0 }
 0x95a   :  { %v14981_v37 = vpop.f32.mrf.mxu0 }
 0x95b   :  { %6181 = vadd.xlane.f32.xlu0 %v6180_v22  ;;  %v6134_v30 = vadd.f32 %v18106_v29, %v6097_v52  ;;  %v6118_v5 = vadd.f32 %v15001_v54, %v14981_v37  ;;  %v6183_v27 = vsel %vm1937_vm4, %v18157_v1, 0.0  ;;  %v18174_v3 = vadd.f32 %v6136_v12, %v21555_v10  ;;  %v15709_v22 = vld [vmem:[%s21509_s2 + $0x1a0] ss:$8 sps:$4 sm:$0xff]   ;;  %v15712_v37 = vld [vmem:[%s21509_s2 + $0x170] ss:$8 sps:$4 sm:$0xff]  }
 0x95c   :  { %v5976_v63 = vpop.f32.mrf.mxu0  ;;  %6184 = vadd.xlane.f32.xlu1 %v6183_v27  ;;  %15003 = vmatprep.subr.bf16.mxu0 %v15709_v22  ;;  %v15711_v12 = vld [vmem:[%s21509_s2 + $0x180] ss:$8 sps:$4 sm:$0xff]  }
 0x95d   :  { %v6110_v33 = vadd.f32 %v6109_v36, %v5976_v63  ;;  %v18169_v59 = vadd.f32 %v6134_v30, %v17267_v62  ;;  %v6139_v40 = vadd.f32 %v18106_v29, %v6118_v5  ;;  %v6192_v55 = vsel %vm1937_vm4, %v18174_v3, 0.0  ;;  %15004 = vmatpush3.bf16.msra.mxu0 %v15709_v22 }
 0x95e   :  { %v14982_v19 = vpop.f32.mrf.mxu0 }
 0x95f   :  { %v6137_v38 = vadd.f32 %v18106_v29, %v6110_v33  ;;  %v6121_v14 = vadd.f32 %v15002_v15, %v14982_v19  ;;  %v6186_v41 = vsel %vm1937_vm4, %v18169_v59, 0.0  ;;  %v18190_v51 = vadd.f32 %v6139_v40, %v21557_v8 }
 0x960   :  { %v5979_v32 = vpop.f32.mrf.mxu0  ;;  %6190 = vadd.xlane.f32.xlu1 %v6189_v58  ;;  %6187 = vadd.xlane.f32.xlu0 %v6186_v41 }
 0x961   :  { %v6113_v62 = vadd.f32 %v6112_v47, %v5979_v32  ;;  %v18181_v4 = vadd.f32 %v6137_v38, %v21556_v18  ;;  %v6140_v50 = vadd.f32 %v18106_v29, %v6121_v14  ;;  %v6201_v34 = vsel %vm1937_vm4, %v18190_v51, 0.0 }
 0x963   :  { %v6138_v46 = vadd.f32 %v18106_v29, %v6113_v62  ;;  %v6195_v39 = vsel %vm1937_vm4, %v18181_v4, 0.0  ;;  %v18200_v57 = vadd.f32 %v6140_v50, %v21559_v43 }
 0x964   :  { %6196 = vadd.xlane.f32.xlu1 %v6195_v39  ;;  %6193 = vadd.xlane.f32.xlu0 %v6192_v55 }
 0x965   :  { %v18193_v35 = vadd.f32 %v6138_v46, %v21558_v44  ;;  %v6204_v29 = vsel %vm1937_vm4, %v18200_v57, 0.0 }
 0x967   :  { %v6198_v61 = vsel %vm1937_vm4, %v18193_v35, 0.0 }
 0x968   :  { %6202 = vadd.xlane.f32.xlu1 %v6201_v34  ;;  %6199 = vadd.xlane.f32.xlu0 %v6198_v61 }
 0x96c   :  { %6205 = vadd.xlane.f32.xlu0 %v6204_v29 }
 0x9a3   :  { %v6161_v49 = vpop.xlane.xlu0 %6160 }
 0x9a4   :  { %v6208_v23 = vmul.f32 0.015625, %v6161_v49 }
 0x9a6   :  { %v18205_v0 = vsub.f32 %v18111_v2, %v6208_v23 }
 0x9a7   :  { %v6164_v9 = vpop.xlane.xlu1 %6163  ;;  %v6167_v16 = vpop.xlane.xlu0 %6166 }
 0x9a8   :  { %v6209_v54 = vmul.f32 0.015625, %v6164_v9  ;;  %v6210_v11 = vmul.f32 0.015625, %v6167_v16  ;;  %v6240_v31 = vmul.f32 %v18205_v0, %v18205_v0 }
 0x9aa   :  { %v18210_v25 = vsub.f32 %v18121_v28, %v6209_v54  ;;  %v18213_v7 = vsub.f32 %v18118_v17, %v6210_v11  ;;  %v6256_v45 = vsel %vm1937_vm4, %v6240_v31, 0.0 }
 0x9ab   :  { %6257 = vadd.xlane.f32.xlu1 %v6256_v45  ;;  %v6170_v26 = vpop.xlane.xlu0 %6169 }
 0x9ac   :  { %v6211_v53 = vmul.f32 0.015625, %v6170_v26  ;;  %v6241_v2 = vmul.f32 %v18210_v25, %v18210_v25  ;;  %v6242_v6 = vmul.f32 %v18213_v7, %v18213_v7 }
 0x9ae   :  { %v18221_v36 = vsub.f32 %v18128_v56, %v6211_v53  ;;  %v6259_v28 = vsel %vm1937_vm4, %v6241_v2, 0.0  ;;  %v6262_v48 = vsel %vm1937_vm4, %v6242_v6, 0.0  ;;  %v15710_v56 = vld [vmem:[%s21509_s2 + $0x190] ss:$8 sps:$4 sm:$0xff]  }
 0x9af   :  { %6260 = vadd.xlane.f32.xlu0 %v6259_v28  ;;  %6263 = vadd.xlane.f32.xlu1 %v6262_v48 }
 0x9b0   :  { %v6243_v17 = vmul.f32 %v18221_v36, %v18221_v36  ;;  %15005 = vmatprep.subr.bf16.mxu0 %v15710_v56 }
 0x9b1   :  { %15006 = vmatpush3.bf16.msra.mxu0 %v15710_v56 }
 0x9b2   :  { %v6265_v52 = vsel %vm1937_vm4, %v6243_v17, 0.0  ;;  %15007 = vmatprep.subr.bf16.mxu0 %v15711_v12 }
 0x9b3   :  { %6266 = vadd.xlane.f32.xlu0 %v6265_v52 }
 0x9b5   :  { %15008 = vmatpush3.bf16.msra.mxu0 %v15711_v12 }
 0x9b6   :  { %15009 = vmatprep.subr.bf16.mxu0 %v15712_v37 }
 0x9b9   :  { %15010 = vmatpush3.bf16.msra.mxu0 %v15712_v37 }
 0x9dc   :  { %v6173_v30 = vpop.xlane.xlu1 %6172 }
 0x9dd   :  { %v6212_v5 = vmul.f32 0.015625, %v6173_v30 }
 0x9df   :  { %v18241_v27 = vsub.f32 %v18135_v42, %v6212_v5 }
 0x9e0   :  { %v6179_v15 = vpop.xlane.xlu1 %6178  ;;  %v6176_v63 = vpop.xlane.xlu0 %6175 }
 0x9e1   :  { %v6214_v33 = vmul.f32 0.015625, %v6179_v15  ;;  %v6213_v19 = vmul.f32 0.015625, %v6176_v63  ;;  %v6244_v58 = vmul.f32 %v18241_v27, %v18241_v27  ;;  %v15713_v15 = vld [vmem:[%s21509_s2 + $0x1e0] ss:$8 sps:$4 sm:$0xff]  }
 0x9e2   :  { %15027 = vmatprep.subr.bf16.mxu1 %v15713_v15 }
 0x9e3   :  { %v18246_v10 = vsub.f32 %v18142_v20, %v6214_v33  ;;  %v18249_v40 = vsub.f32 %v18145_v60, %v6213_v19  ;;  %v6268_v38 = vsel %vm1937_vm4, %v6244_v58, 0.0  ;;  %15028 = vmatpush3.bf16.msra.mxu1 %v15713_v15 }
 0x9e4   :  { %6269 = vadd.xlane.f32.xlu1 %v6268_v38  ;;  %v6182_v14 = vpop.xlane.xlu0 %6181 }
 0x9e5   :  { %v6215_v41 = vmul.f32 0.015625, %v6182_v14  ;;  %v6246_v42 = vmul.f32 %v18246_v10, %v18246_v10  ;;  %v6245_v47 = vmul.f32 %v18249_v40, %v18249_v40  ;;  %v6185_v32 = vpop.xlane.xlu1 %6184 }
 0x9e6   :  { %v6216_v62 = vmul.f32 0.015625, %v6185_v32 }
 0x9e7   :  { %v18257_v18 = vsub.f32 %v18152_v13, %v6215_v41  ;;  %v6274_v20 = vsel %vm1937_vm4, %v6246_v42, 0.0  ;;  %v6271_v60 = vsel %vm1937_vm4, %v6245_v47, 0.0 }
 0x9e8   :  { %6275 = vadd.xlane.f32.xlu1 %v6274_v20  ;;  %6272 = vadd.xlane.f32.xlu0 %v6271_v60  ;;  %v18262_v55 = vsub.f32 %v18157_v1, %v6216_v62 }
 0x9e9   :  { %v6247_v50 = vmul.f32 %v18257_v18, %v18257_v18  ;;  %v6191_v46 = vpop.xlane.xlu1 %6190  ;;  %v6188_v39 = vpop.xlane.xlu0 %6187 }
 0x9ea   :  { %v6218_v8 = vmul.f32 0.015625, %v6191_v46  ;;  %v6217_v44 = vmul.f32 0.015625, %v6188_v39  ;;  %v6248_v13 = vmul.f32 %v18262_v55, %v18262_v55 }
 0x9eb   :  { %v6277_v34 = vsel %vm1937_vm4, %v6247_v50, 0.0  ;;  %v18319_v50 = vld [vmem:[%s21512_s3 + $0x6] ss:$0 sm:$0xff] }
 0x9ec   :  { %6278 = vadd.xlane.f32.xlu0 %v6277_v34  ;;  %v18270_v61 = vsub.f32 %v18163_v24, %v6218_v8  ;;  %v18273_v43 = vsub.f32 %v18169_v59, %v6217_v44  ;;  %v6280_v1 = vsel %vm1937_vm4, %v6248_v13, 0.0  ;;  %v18327_v34 = vld [vmem:[%s21512_s3 + $0x7] ss:$0 sm:$0xff] }
 0x9ed   :  { %v6197_v29 = vpop.xlane.xlu1 %6196  ;;  %6281 = vadd.xlane.f32.xlu1 %v6280_v1  ;;  %v6194_v49 = vpop.xlane.xlu0 %6193 }
 0x9ee   :  { %v6220_v23 = vmul.f32 0.015625, %v6197_v29  ;;  %v6219_v9 = vmul.f32 0.015625, %v6194_v49  ;;  %v6250_v16 = vmul.f32 %v18270_v61, %v18270_v61  ;;  %v6249_v54 = vmul.f32 %v18273_v43, %v18273_v43 }
 0x9f0   :  { %v18281_v11 = vsub.f32 %v18181_v4, %v6220_v23  ;;  %v18284_v24 = vsub.f32 %v18174_v3, %v6219_v9  ;;  %v6286_v59 = vsel %vm1937_vm4, %v6250_v16, 0.0  ;;  %v6283_v31 = vsel %vm1937_vm4, %v6249_v54, 0.0 }
 0x9f1   :  { %v6203_v45 = vpop.xlane.xlu1 %6202  ;;  %6287 = vadd.xlane.f32.xlu1 %v6286_v59  ;;  %6284 = vadd.xlane.f32.xlu0 %v6283_v31  ;;  %v6200_v26 = vpop.xlane.xlu0 %6199 }
 0x9f2   :  { %v6222_v53 = vmul.f32 0.015625, %v6203_v45  ;;  %v6221_v2 = vmul.f32 0.015625, %v6200_v26  ;;  %v6252_v6 = vmul.f32 %v18281_v11, %v18281_v11  ;;  %v6251_v4 = vmul.f32 %v18284_v24, %v18284_v24 }
 0x9f4   :  { %v18293_v28 = vsub.f32 %v18190_v51, %v6222_v53  ;;  %v18296_v3 = vsub.f32 %v18193_v35, %v6221_v2  ;;  %v6292_v48 = vsel %vm1937_vm4, %v6252_v6, 0.0  ;;  %v6289_v17 = vsel %vm1937_vm4, %v6251_v4, 0.0 }
 0x9f5   :  { %6293 = vadd.xlane.f32.xlu1 %v6292_v48  ;;  %6290 = vadd.xlane.f32.xlu0 %v6289_v17  ;;  %v6206_v52 = vpop.xlane.xlu0 %6205 }
 0x9f6   :  { %v6223_v22 = vmul.f32 0.015625, %v6206_v52  ;;  %v6254_v56 = vmul.f32 %v18293_v28, %v18293_v28  ;;  %v6253_v12 = vmul.f32 %v18296_v3, %v18296_v3 }
 0x9f8   :  { %v18305_v51 = vsub.f32 %v18200_v57, %v6223_v22  ;;  %v6298_v35 = vsel %vm1937_vm4, %v6254_v56, 0.0  ;;  %v6295_v37 = vsel %vm1937_vm4, %v6253_v12, 0.0 }
 0x9f9   :  { %6299 = vadd.xlane.f32.xlu1 %v6298_v35  ;;  %6296 = vadd.xlane.f32.xlu0 %v6295_v37 }
 0x9fa   :  { %v6255_v30 = vmul.f32 %v18305_v51, %v18305_v51 }
 0x9fc   :  { %v6301_v5 = vsel %vm1937_vm4, %v6255_v30, 0.0 }
 0x9fd   :  { %6302 = vadd.xlane.f32.xlu0 %v6301_v5 }
 0xa34   :  { %v6258_v57 = vpop.xlane.xlu1 %6257 }
 0xa35   :  { %v6304_v63 = vmul.f32 0.015625, %v6258_v57 }
 0xa37   :  { %v6320_v33 = vadd.f32 1e-05, %v6304_v63 }
 0xa38   :  { %v6264_v19 = vpop.xlane.xlu1 %6263  ;;  %v6261_v58 = vpop.xlane.xlu0 %6260 }
 0xa39   :  { %15933 = vrsqrt.f32 %v6320_v33  ;;  %v6306_v38 = vmul.f32 0.015625, %v6264_v19  ;;  %v6305_v14 = vmul.f32 0.015625, %v6261_v58 }
 0xa3b   :  { %v6322_v41 = vadd.f32 1e-05, %v6306_v38  ;;  %v6321_v42 = vadd.f32 1e-05, %v6305_v14 }
 0xa3c   :  { %v6267_v47 = vpop.xlane.xlu0 %6266 }
 0xa3d   :  { %15935 = vrsqrt.f32 %v6322_v41  ;;  %v6307_v32 = vmul.f32 0.015625, %v6267_v47 }
 0xa3e   :  { %15937 = vrsqrt.f32 %v6321_v42 }
 0xa3f   :  { %v6323_v62 = vadd.f32 1e-05, %v6307_v32 }
 0xa41   :  { %15939 = vrsqrt.f32 %v6323_v62 }
 0xa46   :  { %v15934_v20 = vpop.eup %15933 }
 0xa47   :  { %v6352_v60 = vmul.f32 %v15934_v20, %v18205_v0 }
 0xa49   :  { %v6368_v13 = vmul.f32 %v6352_v60, %v18319_v50 }
 0xa4a   :  { %v15936_v46 = vpop.eup %15935 }
 0xa4b   :  { %v15938_v39 = vpop.eup %15937  ;;  %v6354_v8 = vmul.f32 %v15936_v46, %v18213_v7  ;;  %v18333_v23 = vadd.f32 %v6368_v13, %v18327_v34 }
 0xa4c   :  { %v6353_v44 = vmul.f32 %v15938_v39, %v18210_v25 }
 0xa4d   :  { %v6370_v29 = vmul.f32 %v6354_v8, %v18319_v50 }
 0xa4e   :  { %v15940_v1 = vpop.eup %15939  ;;  %v6369_v0 = vmul.f32 %v6353_v44, %v18319_v50 }
 0xa4f   :  { %v6355_v49 = vmul.f32 %v15940_v1, %v18221_v36  ;;  %v18342_v16 = vadd.f32 %v6370_v29, %v18327_v34 }
 0xa50   :  { %v18336_v7 = vadd.f32 %v6369_v0, %v18327_v34 }
 0xa51   :  { %v6371_v25 = vmul.f32 %v6355_v49, %v18319_v50 }
 0xa52   :  { %v6418_v9 = vpack.c.bf16 %v18336_v7, %v18333_v23 }
 0xa53   :  { %v18345_v54 = vadd.f32 %v6371_v25, %v18327_v34 }
 0xa54   :  { %15011 = vmatprep.mubr.msk.bf16.mxu0 %vm1937_vm4, %v6418_v9 }
 0xa55   :  { %v6419_v36 = vpack.c.bf16 %v18345_v54, %v18342_v16 }
 0xa57   :  { %15012 = vmatmul.mubr.msk.bf16.vlgmr.msra.gmra.mxu0 %vm1937_vm4, %v6419_v36 }
 0xa6d   :  { %v6270_v59 = vpop.xlane.xlu1 %6269 }
 0xa6e   :  { %v6308_v31 = vmul.f32 0.015625, %v6270_v59 }
 0xa70   :  { %v6324_v45 = vadd.f32 1e-05, %v6308_v31 }
 0xa71   :  { %v6276_v26 = vpop.xlane.xlu1 %6275  ;;  %v6273_v53 = vpop.xlane.xlu0 %6272 }
 0xa72   :  { %15941 = vrsqrt.f32 %v6324_v45  ;;  %v6310_v2 = vmul.f32 0.015625, %v6276_v26  ;;  %v6309_v6 = vmul.f32 0.015625, %v6273_v53 }
 0xa74   :  { %v6326_v4 = vadd.f32 1e-05, %v6310_v2  ;;  %v6325_v48 = vadd.f32 1e-05, %v6309_v6 }
 0xa75   :  { %v6279_v17 = vpop.xlane.xlu0 %6278 }
 0xa76   :  { %15943 = vrsqrt.f32 %v6326_v4  ;;  %v6311_v52 = vmul.f32 0.015625, %v6279_v17  ;;  %v6282_v22 = vpop.xlane.xlu1 %6281 }
 0xa77   :  { %15945 = vrsqrt.f32 %v6325_v48  ;;  %v6312_v56 = vmul.f32 0.015625, %v6282_v22 }
 0xa78   :  { %v6327_v12 = vadd.f32 1e-05, %v6311_v52 }
 0xa79   :  { %v6328_v35 = vadd.f32 1e-05, %v6312_v56 }
 0xa7a   :  { %15947 = vrsqrt.f32 %v6327_v12  ;;  %v6288_v37 = vpop.xlane.xlu1 %6287  ;;  %v6285_v30 = vpop.xlane.xlu0 %6284 }
 0xa7b   :  { %15949 = vrsqrt.f32 %v6328_v35  ;;  %v6314_v5 = vmul.f32 0.015625, %v6288_v37  ;;  %v6313_v15 = vmul.f32 0.015625, %v6285_v30 }
 0xa7d   :  { %v6330_v57 = vadd.f32 1e-05, %v6314_v5  ;;  %v6329_v63 = vadd.f32 1e-05, %v6313_v15 }
 0xa7e   :  { %v6294_v19 = vpop.xlane.xlu1 %6293  ;;  %v6291_v58 = vpop.xlane.xlu0 %6290 }
 0xa7f   :  { %v15942_v33 = vpop.eup %15941  ;;  %15951 = vrsqrt.f32 %v6330_v57  ;;  %v6316_v38 = vmul.f32 0.015625, %v6294_v19  ;;  %v6315_v14 = vmul.f32 0.015625, %v6291_v58 }
 0xa80   :  { %15953 = vrsqrt.f32 %v6329_v63  ;;  %v6356_v41 = vmul.f32 %v15942_v33, %v18241_v27 }
 0xa81   :  { %v6332_v42 = vadd.f32 1e-05, %v6316_v38  ;;  %v6331_v47 = vadd.f32 1e-05, %v6315_v14 }
 0xa82   :  { %v6300_v62 = vpop.xlane.xlu1 %6299  ;;  %v6297_v20 = vpop.xlane.xlu0 %6296  ;;  %v6372_v13 = vmul.f32 %v6356_v41, %v18319_v50 }
 0xa83   :  { %v15944_v32 = vpop.eup %15943  ;;  %15955 = vrsqrt.f32 %v6332_v42  ;;  %v6318_v39 = vmul.f32 0.015625, %v6300_v62  ;;  %v6317_v8 = vmul.f32 0.015625, %v6297_v20  ;;  %v15714_v62 = vld [vmem:[%s21509_s2 + $0x1d0] ss:$8 sps:$4 sm:$0xff]  }
 0xa84   :  { %v15946_v60 = vpop.eup %15945  ;;  %v6358_v46 = vmul.f32 %v15944_v32, %v18246_v10  ;;  %15957 = vrsqrt.f32 %v6331_v47  ;;  %v18359_v59 = vadd.f32 %v6372_v13, %v18327_v34  ;;  %15029 = vmatprep.subr.bf16.mxu1 %v15714_v62  ;;  %v6408_v13 = vld [vmem:[%s21512_s3 + $0x10] ss:$0 sm:$0xff] }
 0xa85   :  { %v6357_v44 = vmul.f32 %v15946_v60, %v18249_v40  ;;  %v6334_v1 = vadd.f32 1e-05, %v6318_v39  ;;  %v6333_v0 = vadd.f32 1e-05, %v6317_v8  ;;  %15030 = vmatpush3.bf16.msra.mxu1 %v15714_v62  ;;  %v15716_v39 = vld [vmem:[%s21509_s2 + $0x1b0] ss:$8 sps:$4 sm:$0xff]  }
 0xa86   :  { %v6303_v27 = vpop.xlane.xlu0 %6302  ;;  %v6374_v10 = vmul.f32 %v6358_v46, %v18319_v50  ;;  %v15715_v46 = vld [vmem:[%s21509_s2 + $0x1c0] ss:$8 sps:$4 sm:$0xff]  }
 0xa87   :  { %v15948_v29 = vpop.eup %15947  ;;  %v6373_v49 = vmul.f32 %v6357_v44, %v18319_v50  ;;  %15959 = vrsqrt.f32 %v6334_v1  ;;  %v6319_v9 = vmul.f32 0.015625, %v6303_v27  ;;  %15031 = vmatprep.subr.bf16.mxu1 %v15715_v46 }
 0xa88   :  { %v6359_v25 = vmul.f32 %v15948_v29, %v18257_v18  ;;  %v15950_v36 = vpop.eup %15949  ;;  %15961 = vrsqrt.f32 %v6333_v0  ;;  %v18369_v53 = vadd.f32 %v6374_v10, %v18327_v34 }
 0xa89   :  { %v18362_v40 = vadd.f32 %v6373_v49, %v18327_v34  ;;  %v6335_v31 = vadd.f32 1e-05, %v6319_v9  ;;  %v6360_v26 = vmul.f32 %v15950_v36, %v18262_v55  ;;  %15032 = vmatpush3.bf16.msra.mxu1 %v15715_v46 }
 0xa8a   :  { %v6375_v45 = vmul.f32 %v6359_v25, %v18319_v50  ;;  %15033 = vmatprep.subr.bf16.mxu1 %v15716_v39 }
 0xa8b   :  { %v6420_v18 = vpack.c.bf16 %v18362_v40, %v18359_v59  ;;  %15963 = vrsqrt.f32 %v6335_v31  ;;  %v6376_v17 = vmul.f32 %v6360_v26, %v18319_v50 }
 0xa8c   :  { %v18372_v2 = vadd.f32 %v6375_v45, %v18327_v34  ;;  %v15952_v6 = vpop.eup %15951 }
 0xa8d   :  { %15015 = vmatprep.mubr.msk.bf16.mxu0 %vm1937_vm4, %v6420_v18  ;;  %v15954_v4 = vpop.eup %15953  ;;  %v6362_v55 = vmul.f32 %v15952_v6, %v18270_v61  ;;  %v18383_v35 = vadd.f32 %v6376_v17, %v18327_v34  ;;  %15034 = vmatpush3.bf16.msra.mxu1 %v15716_v39 }
 0xa8e   :  { %v6421_v48 = vpack.c.bf16 %v18372_v2, %v18369_v53  ;;  %v6361_v52 = vmul.f32 %v15954_v4, %v18273_v43  ;;  %15051 = vmatprep.subr.bf16.mxu1 %v21546_v21 }
 0xa8f   :  { %v6378_v5 = vmul.f32 %v6362_v55, %v18319_v50 }
 0xa90   :  { %15016 = vmatmul.mubr.msk.bf16.gmra.mxu0 %vm1937_vm4, %v6421_v48  ;;  %v15956_v22 = vpop.eup %15955  ;;  %v6377_v56 = vmul.f32 %v6361_v52, %v18319_v50 }
 0xa91   :  { %v15958_v12 = vpop.eup %15957  ;;  %v6364_v61 = vmul.f32 %v15956_v22, %v18281_v11 }
 0xa92   :  { %v6363_v37 = vmul.f32 %v15958_v12, %v18284_v24  ;;  %v18387_v30 = vadd.f32 %v6377_v56, %v18327_v34  ;;  %v18397_v24 = vadd.f32 %v6378_v5, %v18327_v34 }
 0xa93   :  { %v6380_v11 = vmul.f32 %v6364_v61, %v18319_v50 }
 0xa94   :  { %v15960_v15 = vpop.eup %15959  ;;  %v6422_v43 = vpack.c.bf16 %v18387_v30, %v18383_v35  ;;  %v6379_v57 = vmul.f32 %v6363_v37, %v18319_v50 }
 0xa95   :  { %v15962_v63 = vpop.eup %15961  ;;  %v6366_v33 = vmul.f32 %v15960_v15, %v18293_v28  ;;  %v18411_v47 = vadd.f32 %v6380_v11, %v18327_v34 }
 0xa96   :  { %15019 = vmatprep.mubr.msk.bf16.mxu0 %vm1937_vm4, %v6422_v43  ;;  %v18400_v19 = vadd.f32 %v6379_v57, %v18327_v34  ;;  %v6365_v58 = vmul.f32 %v15962_v63, %v18296_v3 }
 0xa97   :  { %v6382_v42 = vmul.f32 %v6366_v33, %v18319_v50 }
 0xa98   :  { %v15964_v38 = vpop.eup %15963  ;;  %v6423_v14 = vpack.c.bf16 %v18400_v19, %v18397_v24  ;;  %v6381_v41 = vmul.f32 %v6365_v58, %v18319_v50 }
 0xa99   :  { %v6367_v28 = vmul.f32 %v15964_v38, %v18305_v51  ;;  %v18423_v51 = vadd.f32 %v6382_v42, %v18327_v34 }
 0xa9a   :  { %15020 = vmatmul.mubr.msk.bf16.gmra.mxu0 %vm1937_vm4, %v6423_v14  ;;  %v18414_v32 = vadd.f32 %v6381_v41, %v18327_v34 }
 0xa9b   :  { %v6383_v3 = vmul.f32 %v6367_v28, %v18319_v50 }
 0xa9c   :  { %v6424_v20 = vpack.c.bf16 %v18414_v32, %v18411_v47 }
 0xa9d   :  { %v18426_v60 = vadd.f32 %v6383_v3, %v18327_v34  ;;  %v21560_v34 = vmov 0  }
 0xa9e   :  { %15023 = vmatprep.mubr.msk.bf16.mxu0 %vm1937_vm4, %v6424_v20 }
 0xa9f   :  { %v6425_v50 = vpack.c.bf16 %v18426_v60, %v18423_v51 }
 0xaa2   :  { %15024 = vmatmul.mubr.msk.bf16.gmra.mxu0 %vm1937_vm4, %v6425_v50 }
 0xaa3   :  { %7123 = vmatprep.mubr.bf16.mxu0 %v21560_v34 }
 0xb17   :  { %v15013_v8 = vpop.f32.mrf.mxu0 }
 0xb18   :  { %v6517_v27 = vadd.f32 %v15013_v8, %v6408_v13 }
 0xb19   :  { %v6508_v44 = vpop.f32.mrf.mxu0 }
 0xb1a   :  { %v6509_v0 = vadd.f32 %v6508_v44, %v6408_v13  ;;  %v6573_v31 = vmax.f32 %v6517_v27, 0.0 }
 0xb1b   :  { %v15014_v1 = vpop.f32.mrf.mxu0 }
 0xb1c   :  { %v6520_v29 = vadd.f32 %v15014_v1, %v6408_v13  ;;  %v6571_v10 = vmax.f32 %v6509_v0, 0.0 }
 0xb1d   :  { %v6511_v49 = vpop.f32.mrf.mxu0 }
 0xb1e   :  { %v6512_v25 = vadd.f32 %v6511_v49, %v6408_v13  ;;  %v6574_v9 = vmax.f32 %v6520_v29, 0.0 }
 0xb20   :  { %v6572_v36 = vmax.f32 %v6512_v25, 0.0  ;;  %v6588_v26 = vpack.c.bf16 %v6574_v9, %v6573_v31 }
 0xb22   :  { %v6587_v45 = vpack.c.bf16 %v6572_v36, %v6571_v10 }
 0xb24   :  { %15035 = vmatprep.mubr.msk.bf16.mxu1 %vm1937_vm4, %v6587_v45  ;;  %v18456_v45 = vld [vmem:[%s21512_s3 + $0x11] ss:$0 sm:$0xff] }
 0xb25   :  { %15036 = vmatmul.mubr.msk.bf16.vlgmr.msra.gmra.mxu1 %vm1937_vm4, %v6588_v26 }
 0xb50   :  { %v15017_v18 = vpop.f32.mrf.mxu0 }
 0xb51   :  { %v6533_v55 = vadd.f32 %v15017_v18, %v6408_v13 }
 0xb52   :  { %v6524_v6 = vpop.f32.mrf.mxu0 }
 0xb53   :  { %v6525_v48 = vadd.f32 %v6524_v6, %v6408_v13  ;;  %v6577_v5 = vmax.f32 %v6533_v55, 0.0 }
 0xb54   :  { %v15018_v4 = vpop.f32.mrf.mxu0 }
 0xb55   :  { %v6536_v17 = vadd.f32 %v15018_v4, %v6408_v13  ;;  %v6575_v12 = vmax.f32 %v6525_v48, 0.0 }
 0xb56   :  { %v6527_v52 = vpop.f32.mrf.mxu0 }
 0xb57   :  { %v6528_v22 = vadd.f32 %v6527_v52, %v6408_v13  ;;  %v6578_v56 = vmax.f32 %v6536_v17, 0.0 }
 0xb59   :  { %v6576_v37 = vmax.f32 %v6528_v22, 0.0  ;;  %v6590_v43 = vpack.c.bf16 %v6578_v56, %v6577_v5 }
 0xb5a   :  { %v15021_v15 = vpop.f32.mrf.mxu0 }
 0xb5b   :  { %v6589_v61 = vpack.c.bf16 %v6576_v37, %v6575_v12  ;;  %v6549_v11 = vadd.f32 %v15021_v15, %v6408_v13 }
 0xb5c   :  { %v6540_v57 = vpop.f32.mrf.mxu0 }
 0xb5d   :  { %15039 = vmatprep.mubr.msk.bf16.mxu1 %vm1937_vm4, %v6589_v61  ;;  %v6541_v33 = vadd.f32 %v6540_v57, %v6408_v13  ;;  %v6581_v62 = vmax.f32 %v6549_v11, 0.0 }
 0xb5e   :  { %15040 = vmatmul.mubr.msk.bf16.gmra.mxu1 %vm1937_vm4, %v6590_v43  ;;  %v15022_v63 = vpop.f32.mrf.mxu0 }
 0xb5f   :  { %v6552_v58 = vadd.f32 %v15022_v63, %v6408_v13  ;;  %v6579_v42 = vmax.f32 %v6541_v33, 0.0 }
 0xb60   :  { %v6543_v38 = vpop.f32.mrf.mxu0 }
 0xb61   :  { %v6544_v14 = vadd.f32 %v6543_v38, %v6408_v13  ;;  %v6582_v41 = vmax.f32 %v6552_v58, 0.0 }
 0xb62   :  { %v15025_v28 = vpop.f32.mrf.mxu0 }
 0xb63   :  { %v6580_v3 = vmax.f32 %v6544_v14, 0.0  ;;  %v6592_v46 = vpack.c.bf16 %v6582_v41, %v6581_v62  ;;  %v6565_v1 = vadd.f32 %v15025_v28, %v6408_v13 }
 0xb64   :  { %v6556_v20 = vpop.f32.mrf.mxu0 }
 0xb65   :  { %v6591_v50 = vpack.c.bf16 %v6580_v3, %v6579_v42  ;;  %v6557_v8 = vadd.f32 %v6556_v20, %v6408_v13  ;;  %v6585_v9 = vmax.f32 %v6565_v1, 0.0 }
 0xb66   :  { %v15026_v39 = vpop.f32.mrf.mxu0 }
 0xb67   :  { %v6568_v44 = vadd.f32 %v15026_v39, %v6408_v13  ;;  %15043 = vmatprep.mubr.msk.bf16.mxu1 %vm1937_vm4, %v6591_v50  ;;  %v6583_v49 = vmax.f32 %v6557_v8, 0.0 }
 0xb68   :  { %v6559_v0 = vpop.f32.mrf.mxu0  ;;  %15044 = vmatmul.mubr.msk.bf16.gmra.mxu1 %vm1937_vm4, %v6592_v46 }
 0xb69   :  { %v6560_v29 = vadd.f32 %v6559_v0, %v6408_v13  ;;  %v6586_v27 = vmax.f32 %v6568_v44, 0.0 }
 0xb6b   :  { %v6584_v25 = vmax.f32 %v6560_v29, 0.0  ;;  %v6594_v36 = vpack.c.bf16 %v6586_v27, %v6585_v9 }
 0xb6d   :  { %v6593_v10 = vpack.c.bf16 %v6584_v25, %v6583_v49 }
 0xb6f   :  { %15047 = vmatprep.mubr.msk.bf16.mxu1 %vm1937_vm4, %v6593_v10 }
 0xb70   :  { %15048 = vmatmul.mubr.msk.bf16.gmra.mxu1 %vm1937_vm4, %v6594_v36 }
 0xb71   :  { %15053 = vmatprep.mubr.msk.bf16.mxu1 %vm16367_vm1, %v21546_v21 }
 0xbe5   :  { %v15037_v31 = vpop.f32.mrf.mxu1 }
 0xbe6   :  { %v6686_v26 = vadd.f32 %v15037_v31, %v18456_v45 }
 0xbe7   :  { %v6677_v13 = vpop.f32.mrf.mxu1 }
 0xbe8   :  { %v6678_v18 = vadd.f32 %v6677_v13, %v18456_v45  ;;  %v18464_v17 = vadd.f32 %v6686_v26, %v18342_v16 }
 0xbe9   :  { %v15038_v6 = vpop.f32.mrf.mxu1 }
 0xbea   :  { %v18461_v4 = vadd.f32 %v6678_v18, %v18333_v23  ;;  %v6689_v55 = vadd.f32 %v15038_v6, %v18456_v45  ;;  %v6764_v16 = vsel %vm1937_vm4, %v18464_v17, 0.0 }
 0xbeb   :  { %v6680_v48 = vpop.f32.mrf.mxu1 }
 0xbec   :  { %v6681_v52 = vadd.f32 %v6680_v48, %v18456_v45  ;;  %v6758_v22 = vsel %vm1937_vm4, %v18461_v4, 0.0  ;;  %v18474_v12 = vadd.f32 %v6689_v55, %v18345_v54 }
 0xbed   :  { %6759 = vadd.xlane.f32.xlu1 %v6758_v22 }
 0xbee   :  { %v18471_v56 = vadd.f32 %v6681_v52, %v18336_v7  ;;  %v6767_v37 = vsel %vm1937_vm4, %v18474_v12, 0.0 }
 0xbf0   :  { %v6761_v23 = vsel %vm1937_vm4, %v18471_v56, 0.0 }
 0xbf1   :  { %6762 = vadd.xlane.f32.xlu0 %v6761_v23  ;;  %6765 = vadd.xlane.f32.xlu1 %v6764_v16 }
 0xbf5   :  { %6768 = vadd.xlane.f32.xlu0 %v6767_v37 }
 0xc1e   :  { %v15041_v5 = vpop.f32.mrf.mxu1 }
 0xc1f   :  { %v6702_v7 = vadd.f32 %v15041_v5, %v18456_v45 }
 0xc20   :  { %v6693_v61 = vpop.f32.mrf.mxu1 }
 0xc21   :  { %v6694_v15 = vadd.f32 %v6693_v61, %v18456_v45  ;;  %v18488_v63 = vadd.f32 %v6702_v7, %v18369_v53 }
 0xc22   :  { %v15042_v54 = vpop.f32.mrf.mxu1 }
 0xc23   :  { %v18485_v43 = vadd.f32 %v6694_v15, %v18359_v59  ;;  %v6705_v33 = vadd.f32 %v15042_v54, %v18456_v45  ;;  %v6776_v53 = vsel %vm1937_vm4, %v18488_v63, 0.0 }
 0xc24   :  { %v6696_v57 = vpop.f32.mrf.mxu1 }
 0xc25   :  { %v6697_v58 = vadd.f32 %v6696_v57, %v18456_v45  ;;  %v6770_v11 = vsel %vm1937_vm4, %v18485_v43, 0.0  ;;  %v18498_v14 = vadd.f32 %v6705_v33, %v18372_v2 }
 0xc26   :  { %6771 = vadd.xlane.f32.xlu1 %v6770_v11  ;;  %v15722_v11 = vld [vmem:[%s21509_s2 + $0x214] ss:$8 sps:$4 sm:$0xff]  }
 0xc27   :  { %v18495_v38 = vadd.f32 %v6697_v58, %v18362_v40  ;;  %v6779_v40 = vsel %vm1937_vm4, %v18498_v14, 0.0  ;;  %v15719_v58 = vld [vmem:[%s21509_s2 + $0x224] ss:$8 sps:$4 sm:$0xff]  }
 0xc28   :  { %v15045_v59 = vpop.f32.mrf.mxu1  ;;  %7099 = vmatprep.subr.bf16.mxu0 %v15719_v58 }
 0xc29   :  { %v6773_v41 = vsel %vm1937_vm4, %v18495_v38, 0.0  ;;  %v6718_v42 = vadd.f32 %v15045_v59, %v18456_v45  ;;  %v15720_v59 = vld [vmem:[%s21509_s2 + $0x210] ss:$8 sps:$4 sm:$0xff]  }
 0xc2a   :  { %6774 = vadd.xlane.f32.xlu0 %v6773_v41  ;;  %6777 = vadd.xlane.f32.xlu1 %v6776_v53  ;;  %v6709_v28 = vpop.f32.mrf.mxu1  ;;  %v15723_v41 = vld [vmem:[%s21509_s2 + $0x200] ss:$8 sps:$4 sm:$0xff]   ;;  %v15725_v53 = vld [vmem:[%s21509_s2 + $0x204] ss:$8 sps:$4 sm:$0xff]  }
 0xc2b   :  { %v6710_v3 = vadd.f32 %v6709_v28, %v18456_v45  ;;  %v18513_v46 = vadd.f32 %v6718_v42, %v18397_v24  ;;  %v15728_v28 = vld [vmem:[%s21509_s2 + $0x1f4] ss:$8 sps:$4 sm:$0xff]   ;;  %v15726_v42 = vld [vmem:[%s21509_s2 + $0x1f0] ss:$8 sps:$4 sm:$0xff]  }
 0xc2c   :  { %v15046_v62 = vpop.f32.mrf.mxu1 }
 0xc2d   :  { %v18509_v2 = vadd.f32 %v6710_v3, %v18383_v35  ;;  %v6721_v20 = vadd.f32 %v15046_v62, %v18456_v45  ;;  %v6788_v49 = vsel %vm1937_vm4, %v18513_v46, 0.0 }
 0xc2e   :  { %6780 = vadd.xlane.f32.xlu0 %v6779_v40  ;;  %v6712_v50 = vpop.f32.mrf.mxu1 }
 0xc2f   :  { %v6713_v39 = vadd.f32 %v6712_v50, %v18456_v45  ;;  %v6782_v8 = vsel %vm1937_vm4, %v18509_v2, 0.0  ;;  %v18522_v35 = vadd.f32 %v6721_v20, %v18400_v19 }
 0xc30   :  { %6783 = vadd.xlane.f32.xlu1 %v6782_v8  ;;  %v15049_v44 = vpop.f32.mrf.mxu1 }
 0xc31   :  { %v18519_v1 = vadd.f32 %v6713_v39, %v18387_v30  ;;  %v6734_v29 = vadd.f32 %v15049_v44, %v18456_v45  ;;  %v6791_v19 = vsel %vm1937_vm4, %v18522_v35, 0.0 }
 0xc32   :  { %v6725_v0 = vpop.f32.mrf.mxu1 }
 0xc33   :  { %v6726_v27 = vadd.f32 %v6725_v0, %v18456_v45  ;;  %v6785_v24 = vsel %vm1937_vm4, %v18519_v1, 0.0  ;;  %v18536_v10 = vadd.f32 %v6734_v29, %v18423_v51 }
 0xc34   :  { %6786 = vadd.xlane.f32.xlu0 %v6785_v24  ;;  %6789 = vadd.xlane.f32.xlu1 %v6788_v49  ;;  %v15050_v25 = vpop.f32.mrf.mxu1 }
 0xc35   :  { %v18531_v30 = vadd.f32 %v6726_v27, %v18411_v47  ;;  %v6737_v36 = vadd.f32 %v15050_v25, %v18456_v45  ;;  %v6800_v51 = vsel %vm1937_vm4, %v18536_v10, 0.0 }
 0xc36   :  { %v6728_v9 = vpop.f32.mrf.mxu1 }
 0xc37   :  { %v6729_v31 = vadd.f32 %v6728_v9, %v18456_v45  ;;  %v6794_v13 = vsel %vm1937_vm4, %v18531_v30, 0.0  ;;  %v18546_v47 = vadd.f32 %v6737_v36, %v18426_v60 }
 0xc38   :  { %6792 = vadd.xlane.f32.xlu0 %v6791_v19  ;;  %6795 = vadd.xlane.f32.xlu1 %v6794_v13 }
 0xc39   :  { %v18543_v26 = vadd.f32 %v6729_v31, %v18414_v32  ;;  %v6803_v45 = vsel %vm1937_vm4, %v18546_v47, 0.0 }
 0xc3b   :  { %v6797_v18 = vsel %vm1937_vm4, %v18543_v26, 0.0 }
 0xc3c   :  { %6798 = vadd.xlane.f32.xlu0 %v6797_v18  ;;  %6801 = vadd.xlane.f32.xlu1 %v6800_v51 }
 0xc40   :  { %6804 = vadd.xlane.f32.xlu0 %v6803_v45 }
 0xc76   :  { %v6760_v6 = vpop.xlane.xlu1 %6759 }
 0xc77   :  { %v6806_v48 = vmul.f32 0.015625, %v6760_v6 }
 0xc79   :  { %v18555_v32 = vsub.f32 %v18461_v4, %v6806_v48 }
 0xc7a   :  { %v6766_v55 = vpop.xlane.xlu1 %6765  ;;  %v6763_v60 = vpop.xlane.xlu0 %6762 }
 0xc7b   :  { %v6808_v52 = vmul.f32 0.015625, %v6766_v55  ;;  %v6807_v22 = vmul.f32 0.015625, %v6763_v60  ;;  %v6838_v23 = vmul.f32 %v18555_v32, %v18555_v32 }
 0xc7d   :  { %v18560_v16 = vsub.f32 %v18464_v17, %v6808_v52  ;;  %v18563_v37 = vsub.f32 %v18471_v56, %v6807_v22  ;;  %v6854_v5 = vsel %vm1937_vm4, %v6838_v23, 0.0 }
 0xc7e   :  { %6855 = vadd.xlane.f32.xlu1 %v6854_v5  ;;  %v6769_v61 = vpop.xlane.xlu0 %6768 }
 0xc7f   :  { %v6809_v7 = vmul.f32 0.015625, %v6769_v61  ;;  %v6840_v4 = vmul.f32 %v18560_v16, %v18560_v16  ;;  %v6839_v15 = vmul.f32 %v18563_v37, %v18563_v37 }
 0xc81   :  { %v18571_v54 = vsub.f32 %v18474_v12, %v6809_v7  ;;  %v6860_v17 = vsel %vm1937_vm4, %v6840_v4, 0.0  ;;  %v6857_v57 = vsel %vm1937_vm4, %v6839_v15, 0.0  ;;  %v15717_v12 = vld [vmem:[%s21509_s2 + $0x220] ss:$8 sps:$4 sm:$0xff]  }
 0xc82   :  { %6861 = vadd.xlane.f32.xlu1 %v6860_v17  ;;  %6858 = vadd.xlane.f32.xlu0 %v6857_v57 }
 0xc83   :  { %v6841_v56 = vmul.f32 %v18571_v54, %v18571_v54  ;;  %7100 = vmatpush1.bf16.msra.mxu0 %v15717_v12 }
 0xc84   :  { %7101 = vmatprep.subr.bf16.mxu0 %v15722_v11 }
 0xc85   :  { %v6863_v33 = vsel %vm1937_vm4, %v6841_v56, 0.0 }
 0xc86   :  { %6864 = vadd.xlane.f32.xlu0 %v6863_v33 }
 0xc87   :  { %7102 = vmatpush1.bf16.msra.mxu0 %v15720_v59 }
 0xc88   :  { %7103 = vmatprep.subr.bf16.mxu0 %v15725_v53 }
 0xc8b   :  { %7104 = vmatpush1.bf16.msra.mxu0 %v15723_v41 }
 0xc8c   :  { %7105 = vmatprep.subr.bf16.mxu0 %v15728_v28 }
 0xc8f   :  { %7106 = vmatpush1.bf16.msra.mxu0 %v15726_v42 }
 0xc90   :  { %15099 = vmatprep.subr.bf16.mxu0 %v21546_v21 }
 0xcaf   :  { %v6772_v3 = vpop.xlane.xlu1 %6771 }
 0xcb0   :  { %v6810_v62 = vmul.f32 0.015625, %v6772_v3 }
 0xcb2   :  { %v18604_v40 = vsub.f32 %v18485_v43, %v6810_v62 }
 0xcb3   :  { %v6778_v20 = vpop.xlane.xlu1 %6777  ;;  %v6775_v50 = vpop.xlane.xlu0 %6774 }
 0xcb4   :  { %v6812_v39 = vmul.f32 0.015625, %v6778_v20  ;;  %v6811_v8 = vmul.f32 0.015625, %v6775_v50  ;;  %v6842_v44 = vmul.f32 %v18604_v40, %v18604_v40 }
 0xcb6   :  { %v18609_v0 = vsub.f32 %v18488_v63, %v6812_v39  ;;  %v18612_v29 = vsub.f32 %v18495_v38, %v6811_v8  ;;  %v6866_v27 = vsel %vm1937_vm4, %v6842_v44, 0.0 }
 0xcb7   :  { %6867 = vadd.xlane.f32.xlu1 %v6866_v27  ;;  %v6781_v24 = vpop.xlane.xlu0 %6780 }
 0xcb8   :  { %v6813_v49 = vmul.f32 0.015625, %v6781_v24  ;;  %v6844_v43 = vmul.f32 %v18609_v0, %v18609_v0  ;;  %v6843_v25 = vmul.f32 %v18612_v29, %v18612_v29 }
 0xcb9   :  { %v6784_v9 = vpop.xlane.xlu1 %6783 }
 0xcba   :  { %v18620_v19 = vsub.f32 %v18498_v14, %v6813_v49  ;;  %v6872_v63 = vsel %vm1937_vm4, %v6844_v43, 0.0  ;;  %v6869_v38 = vsel %vm1937_vm4, %v6843_v25, 0.0  ;;  %v6814_v36 = vmul.f32 0.015625, %v6784_v9 }
 0xcbb   :  { %6873 = vadd.xlane.f32.xlu1 %v6872_v63  ;;  %6870 = vadd.xlane.f32.xlu0 %v6869_v38 }
 0xcbc   :  { %v6845_v31 = vmul.f32 %v18620_v19, %v18620_v19  ;;  %v18627_v13 = vsub.f32 %v18509_v2, %v6814_v36 }
 0xcbd   :  { %v6790_v18 = vpop.xlane.xlu1 %6789  ;;  %v6787_v51 = vpop.xlane.xlu0 %6786 }
 0xcbe   :  { %v6875_v45 = vsel %vm1937_vm4, %v6845_v31, 0.0  ;;  %v6816_v6 = vmul.f32 0.015625, %v6790_v18  ;;  %v6815_v14 = vmul.f32 0.015625, %v6787_v51  ;;  %v6846_v48 = vmul.f32 %v18627_v13, %v18627_v13  ;;  %v18679_v31 = vld [vmem:[%s21512_s3 + $0x12] ss:$0 sm:$0xff] }
 0xcbf   :  { %6876 = vadd.xlane.f32.xlu0 %v6875_v45 }
 0xcc0   :  { %v18633_v55 = vsub.f32 %v18513_v46, %v6816_v6  ;;  %v18636_v60 = vsub.f32 %v18519_v1, %v6815_v14  ;;  %v6878_v52 = vsel %vm1937_vm4, %v6846_v48, 0.0  ;;  %v18686_v14 = vld [vmem:[%s21512_s3 + $0x13] ss:$0 sm:$0xff] }
 0xcc1   :  { %6879 = vadd.xlane.f32.xlu1 %v6878_v52  ;;  %v6796_v2 = vpop.xlane.xlu1 %6795  ;;  %v6793_v22 = vpop.xlane.xlu0 %6792 }
 0xcc2   :  { %v6818_v23 = vmul.f32 0.015625, %v6796_v2  ;;  %v6817_v5 = vmul.f32 0.015625, %v6793_v22  ;;  %v6848_v61 = vmul.f32 %v18633_v55, %v18633_v55  ;;  %v6847_v7 = vmul.f32 %v18636_v60, %v18636_v60 }
 0xcc4   :  { %v18644_v4 = vsub.f32 %v18531_v30, %v6818_v23  ;;  %v18647_v46 = vsub.f32 %v18522_v35, %v6817_v5  ;;  %v6884_v1 = vsel %vm1937_vm4, %v6848_v61, 0.0  ;;  %v6881_v15 = vsel %vm1937_vm4, %v6847_v7, 0.0 }
 0xcc5   :  { %6885 = vadd.xlane.f32.xlu1 %v6884_v1  ;;  %v6802_v17 = vpop.xlane.xlu1 %6801  ;;  %6882 = vadd.xlane.f32.xlu0 %v6881_v15  ;;  %v6799_v57 = vpop.xlane.xlu0 %6798 }
 0xcc6   :  { %v6820_v56 = vmul.f32 0.015625, %v6802_v17  ;;  %v6819_v33 = vmul.f32 0.015625, %v6799_v57  ;;  %v6850_v58 = vmul.f32 %v18644_v4, %v18644_v4  ;;  %v6849_v30 = vmul.f32 %v18647_v46, %v18647_v46 }
 0xcc8   :  { %v18656_v12 = vsub.f32 %v18536_v10, %v6820_v56  ;;  %v18659_v35 = vsub.f32 %v18543_v26, %v6819_v33  ;;  %v6890_v11 = vsel %vm1937_vm4, %v6850_v58, 0.0  ;;  %v6887_v59 = vsel %vm1937_vm4, %v6849_v30, 0.0 }
 0xcc9   :  { %6891 = vadd.xlane.f32.xlu1 %v6890_v11  ;;  %6888 = vadd.xlane.f32.xlu0 %v6887_v59  ;;  %v6805_v41 = vpop.xlane.xlu0 %6804 }
 0xcca   :  { %v6821_v53 = vmul.f32 0.015625, %v6805_v41  ;;  %v6852_v28 = vmul.f32 %v18656_v12, %v18656_v12  ;;  %v6851_v42 = vmul.f32 %v18659_v35, %v18659_v35 }
 0xccc   :  { %v18668_v10 = vsub.f32 %v18546_v47, %v6821_v53  ;;  %v6896_v26 = vsel %vm1937_vm4, %v6852_v28, 0.0  ;;  %v6893_v3 = vsel %vm1937_vm4, %v6851_v42, 0.0 }
 0xccd   :  { %6897 = vadd.xlane.f32.xlu1 %v6896_v26  ;;  %6894 = vadd.xlane.f32.xlu0 %v6893_v3 }
 0xcce   :  { %v6853_v62 = vmul.f32 %v18668_v10, %v18668_v10 }
 0xcd0   :  { %v6899_v20 = vsel %vm1937_vm4, %v6853_v62, 0.0 }
 0xcd1   :  { %6900 = vadd.xlane.f32.xlu0 %v6899_v20 }
 0xd07   :  { %v6856_v50 = vpop.xlane.xlu1 %6855 }
 0xd08   :  { %v6902_v39 = vmul.f32 0.015625, %v6856_v50 }
 0xd0a   :  { %v6918_v8 = vadd.f32 1e-05, %v6902_v39 }
 0xd0b   :  { %v6862_v44 = vpop.xlane.xlu1 %6861  ;;  %v6859_v27 = vpop.xlane.xlu0 %6858 }
 0xd0c   :  { %15965 = vrsqrt.f32 %v6918_v8  ;;  %v6904_v47 = vmul.f32 0.015625, %v6862_v44  ;;  %v6903_v24 = vmul.f32 0.015625, %v6859_v27 }
 0xd0e   :  { %v6919_v49 = vadd.f32 1e-05, %v6903_v24  ;;  %v6920_v43 = vadd.f32 1e-05, %v6904_v47 }
 0xd0f   :  { %v6865_v25 = vpop.xlane.xlu0 %6864 }
 0xd10   :  { %v6905_v9 = vmul.f32 0.015625, %v6865_v25  ;;  %15967 = vrsqrt.f32 %v6919_v49 }
 0xd11   :  { %15969 = vrsqrt.f32 %v6920_v43 }
 0xd12   :  { %v6921_v63 = vadd.f32 1e-05, %v6905_v9 }
 0xd14   :  { %15971 = vrsqrt.f32 %v6921_v63 }
 0xd19   :  { %v15966_v38 = vpop.eup %15965 }
 0xd1a   :  { %v6950_v36 = vmul.f32 %v15966_v38, %v18555_v32 }
 0xd1c   :  { %v6966_v51 = vmul.f32 %v6950_v36, %v18679_v31 }
 0xd1d   :  { %v15968_v18 = vpop.eup %15967 }
 0xd1e   :  { %v6951_v45 = vmul.f32 %v15968_v18, %v18563_v37  ;;  %v15970_v6 = vpop.eup %15969  ;;  %v18691_v2 = vadd.f32 %v6966_v51, %v18686_v14 }
 0xd1f   :  { %v6952_v22 = vmul.f32 %v15970_v6, %v18560_v16 }
 0xd20   :  { %v6967_v52 = vmul.f32 %v6951_v45, %v18679_v31 }
 0xd21   :  { %v15972_v48 = vpop.eup %15971  ;;  %v6968_v61 = vmul.f32 %v6952_v22, %v18679_v31 }
 0xd22   :  { %v6953_v32 = vmul.f32 %v15972_v48, %v18571_v54  ;;  %v18695_v23 = vadd.f32 %v6967_v52, %v18686_v14 }
 0xd23   :  { %v18707_v7 = vadd.f32 %v6968_v61, %v18686_v14 }
 0xd24   :  { %v7006_v37 = vpack.c.bf16 %v18695_v23, %v18691_v2  ;;  %v6969_v5 = vmul.f32 %v6953_v32, %v18679_v31 }
 0xd26   :  { %14113 = vmatmul.mubr.msk.bf16.vlgmr.msra.gmra.mxu0 %vm1937_vm4, %v7006_v37  ;;  %v18704_v54 = vadd.f32 %v6969_v5, %v18686_v14 }
 0xd27   :  { %7133 = vmatprep.mubr.bf16.mxu0 %v21560_v34 }
 0xd28   :  { %v7007_v16 = vpack.c.bf16 %v18704_v54, %v18707_v7 }
 0xd2e   :  { %14114 = vmatmul.mubr.msk.bf16.gmra.mxu0 %vm1937_vm4, %v7007_v16 }
 0xd2f   :  { %7143 = vmatprep.mubr.bf16.mxu0 %v21560_v34 }
 0xd40   :  { %v6868_v1 = vpop.xlane.xlu1 %6867 }
 0xd41   :  { %v6906_v15 = vmul.f32 0.015625, %v6868_v1 }
 0xd43   :  { %v6922_v17 = vadd.f32 1e-05, %v6906_v15 }
 0xd44   :  { %v6874_v57 = vpop.xlane.xlu1 %6873  ;;  %v6871_v56 = vpop.xlane.xlu0 %6870 }
 0xd45   :  { %15973 = vrsqrt.f32 %v6922_v17  ;;  %v6908_v33 = vmul.f32 0.015625, %v6874_v57  ;;  %v6907_v58 = vmul.f32 0.015625, %v6871_v56 }
 0xd47   :  { %v6923_v30 = vadd.f32 1e-05, %v6907_v58  ;;  %v6924_v11 = vadd.f32 1e-05, %v6908_v33 }
 0xd48   :  { %v6877_v59 = vpop.xlane.xlu0 %6876 }
 0xd49   :  { %v6909_v41 = vmul.f32 0.015625, %v6877_v59  ;;  %15975 = vrsqrt.f32 %v6923_v30 }
 0xd4a   :  { %v6880_v53 = vpop.xlane.xlu1 %6879  ;;  %15977 = vrsqrt.f32 %v6924_v11 }
 0xd4b   :  { %v6925_v28 = vadd.f32 1e-05, %v6909_v41  ;;  %v6910_v42 = vmul.f32 0.015625, %v6880_v53 }
 0xd4d   :  { %15979 = vrsqrt.f32 %v6925_v28  ;;  %v6926_v3 = vadd.f32 1e-05, %v6910_v42 }
 0xd4e   :  { %v6883_v26 = vpop.xlane.xlu0 %6882  ;;  %v6886_v62 = vpop.xlane.xlu1 %6885 }
 0xd4f   :  { %v6911_v20 = vmul.f32 0.015625, %v6883_v26  ;;  %v6912_v8 = vmul.f32 0.015625, %v6886_v62  ;;  %15981 = vrsqrt.f32 %v6926_v3 }
 0xd51   :  { %v6927_v39 = vadd.f32 1e-05, %v6911_v20  ;;  %v6928_v43 = vadd.f32 1e-05, %v6912_v8 }
 0xd52   :  { %v15974_v50 = vpop.eup %15973  ;;  %v6889_v44 = vpop.xlane.xlu0 %6888 }
 0xd53   :  { %v6954_v27 = vmul.f32 %v15974_v50, %v18604_v40  ;;  %v6913_v47 = vmul.f32 0.015625, %v6889_v44  ;;  %15983 = vrsqrt.f32 %v6927_v39  ;;  %v6892_v36 = vpop.xlane.xlu1 %6891 }
 0xd54   :  { %v6914_v48 = vmul.f32 0.015625, %v6892_v36 }
 0xd55   :  { %v6929_v24 = vadd.f32 1e-05, %v6913_v47  ;;  %v6970_v63 = vmul.f32 %v6954_v27, %v18679_v31 }
 0xd56   :  { %v15976_v49 = vpop.eup %15975  ;;  %v6895_v25 = vpop.xlane.xlu0 %6894  ;;  %v6930_v61 = vadd.f32 1e-05, %v6914_v48 }
 0xd57   :  { %v6955_v9 = vmul.f32 %v15976_v49, %v18612_v29  ;;  %v15978_v38 = vpop.eup %15977  ;;  %15985 = vrsqrt.f32 %v6929_v24  ;;  %v6915_v51 = vmul.f32 0.015625, %v6895_v25  ;;  %v18720_v52 = vadd.f32 %v6970_v63, %v18686_v14  ;;  %v6898_v16 = vpop.xlane.xlu1 %6897 }
 0xd58   :  { %15987 = vrsqrt.f32 %v6928_v43  ;;  %v6956_v6 = vmul.f32 %v15978_v38, %v18609_v0  ;;  %v6916_v33 = vmul.f32 0.015625, %v6898_v16 }
 0xd59   :  { %v6971_v45 = vmul.f32 %v6955_v9, %v18679_v31  ;;  %v6931_v32 = vadd.f32 1e-05, %v6915_v51 }
 0xd5a   :  { %v15980_v18 = vpop.eup %15979  ;;  %v6901_v5 = vpop.xlane.xlu0 %6900  ;;  %v6932_v28 = vadd.f32 1e-05, %v6916_v33 }
 0xd5b   :  { %v6957_v40 = vmul.f32 %v15980_v18, %v18620_v19  ;;  %v18723_v29 = vadd.f32 %v6971_v45, %v18686_v14  ;;  %v6972_v19 = vmul.f32 %v6956_v6, %v18679_v31  ;;  %15989 = vrsqrt.f32 %v6931_v32  ;;  %v21566_v32 = vld [vmem:[#allocation9_spill] sm:$0xff] }
 0xd5c   :  { %v15982_v0 = vpop.eup %15981  ;;  %v6917_v15 = vmul.f32 0.015625, %v6901_v5  ;;  %15991 = vrsqrt.f32 %v6930_v61 }
 0xd5d   :  { %v7008_v22 = vpack.c.bf16 %v18723_v29, %v18720_v52  ;;  %v6973_v37 = vmul.f32 %v6957_v40, %v18679_v31  ;;  %v6958_v56 = vmul.f32 %v15982_v0, %v18627_v13  ;;  %v18737_v58 = vadd.f32 %v6972_v19, %v18686_v14  ;;  %v21565_v40 = vld [vmem:[#allocation2_spill] sm:$0xff] }
 0xd5e   :  { %v6933_v30 = vadd.f32 1e-05, %v6917_v15 }
 0xd5f   :  { %14115 = vmatmul.mubr.msk.bf16.gmra.mxu0 %vm1937_vm4, %v7008_v22  ;;  %v18732_v17 = vadd.f32 %v6973_v37, %v18686_v14 }
 0xd60   :  { %7153 = vmatprep.mubr.bf16.mxu0 %v21560_v34  ;;  %v15984_v1 = vpop.eup %15983  ;;  %15993 = vrsqrt.f32 %v6933_v30 }
 0xd61   :  { %v6959_v57 = vmul.f32 %v15984_v1, %v18636_v60  ;;  %v7009_v11 = vpack.c.bf16 %v18732_v17, %v18737_v58  ;;  %v6974_v60 = vmul.f32 %v6958_v56, %v18679_v31  ;;  %15995 = vrsqrt.f32 %v6932_v28 }
 0xd63   :  { %v6975_v59 = vmul.f32 %v6959_v57, %v18679_v31  ;;  %v18751_v3 = vadd.f32 %v6974_v60, %v18686_v14 }
 0xd64   :  { %v15986_v41 = vpop.eup %15985 }
 0xd65   :  { %v15988_v53 = vpop.eup %15987  ;;  %v6961_v13 = vmul.f32 %v15986_v41, %v18647_v46  ;;  %v18747_v42 = vadd.f32 %v6975_v59, %v18686_v14 }
 0xd66   :  { %v6960_v26 = vmul.f32 %v15988_v53, %v18633_v55 }
 0xd67   :  { %14116 = vmatmul.mubr.msk.bf16.gmra.mxu0 %vm1937_vm4, %v7009_v11  ;;  %v7010_v62 = vpack.c.bf16 %v18747_v42, %v18751_v3  ;;  %v6977_v20 = vmul.f32 %v6961_v13, %v18679_v31 }
 0xd68   :  { %7163 = vmatprep.mubr.bf16.mxu0 %v21560_v34  ;;  %v15990_v50 = vpop.eup %15989  ;;  %v6976_v46 = vmul.f32 %v6960_v26, %v18679_v31 }
 0xd69   :  { %v15992_v39 = vpop.eup %15991  ;;  %v6963_v8 = vmul.f32 %v15990_v50, %v18659_v35  ;;  %v18761_v55 = vadd.f32 %v6977_v20, %v18686_v14 }
 0xd6a   :  { %v6962_v44 = vmul.f32 %v15992_v39, %v18644_v4  ;;  %v18765_v27 = vadd.f32 %v6976_v46, %v18686_v14 }
 0xd6b   :  { %v6979_v24 = vmul.f32 %v6963_v8, %v18679_v31 }
 0xd6c   :  { %v7011_v47 = vpack.c.bf16 %v18761_v55, %v18765_v27  ;;  %v6978_v43 = vmul.f32 %v6962_v44, %v18679_v31 }
 0xd6d   :  { %v15994_v49 = vpop.eup %15993  ;;  %v18775_v4 = vadd.f32 %v6979_v24, %v18686_v14 }
 0xd6e   :  { %v15996_v25 = vpop.eup %15995  ;;  %v6965_v35 = vmul.f32 %v15994_v49, %v18668_v10  ;;  %v18779_v63 = vadd.f32 %v6978_v43, %v18686_v14 }
 0xd6f   :  { %14117 = vmatmul.mubr.msk.bf16.gmra.mxu0 %vm1937_vm4, %v7010_v62  ;;  %21561 = vst [vmem:[#allocation4_spill] sm:$0xff] %v18775_v4  ;;  %v6964_v9 = vmul.f32 %v15996_v25, %v18656_v12 }
 0xd70   :  { %7173 = vmatprep.mubr.bf16.mxu0 %v21560_v34  ;;  %21562 = vst [vmem:[#allocation6_spill] sm:$0xff] %v18779_v63  ;;  %v7012_v38 = vpack.c.bf16 %v18775_v4, %v18779_v63  ;;  %v6981_v36 = vmul.f32 %v6965_v35, %v18679_v31 }
 0xd71   :  { %v6980_v18 = vmul.f32 %v6964_v9, %v18679_v31  ;;  %v14104_v31 = vld [vmem:[%s21512_s3 + $0x14] ss:$8 sm:$0x3] }
 0xd72   :  { %v18788_v10 = vadd.f32 %v6981_v36, %v18686_v14  ;;  %v18802_v6 = vrot.slane %v14104_v31, %v21565_v40 }
 0xd73   :  { %v18791_v51 = vadd.f32 %v6980_v18, %v18686_v14  ;;  %v18805_v14 = vrot.slane %v14104_v31, %v21566_v32 }
 0xd74   :  { %21563 = vst [vmem:[#allocation7_spill] sm:$0xff] %v18788_v10 }
 0xd75   :  { %21564 = vst [vmem:[#allocation5_spill] sm:$0xff] %v18791_v51  ;;  %v7013_v12 = vpack.c.bf16 %v18788_v10, %v18791_v51 }
 0xd77   :  { %14118 = vmatmul.mubr.msk.bf16.gmra.mxu0 %vm1937_vm4, %v7011_v47 }
 0xd78   :  { %7183 = vmatprep.mubr.bf16.mxu0 %v21560_v34 }
 0xd7f   :  { %14119 = vmatmul.mubr.msk.bf16.gmra.mxu0 %vm1937_vm4, %v7012_v38 }
 0xd80   :  { %7193 = vmatprep.mubr.bf16.mxu0 %v21560_v34 }
 0xd87   :  { %14120 = vmatmul.mubr.msk.bf16.gmra.mxu0 %vm1937_vm4, %v7013_v12 }
 0xd88   :  { %15101 = vmatprep.mubr.msk.bf16.mxu0 %vm16367_vm1, %v21546_v21 }
 0xde6   :  { %v7125_v45 = vpop.f32.mrf.mxu0 }
 0xde7   :  { %v7126_v37 = vadd.f32 %v7125_v45, %v18802_v6 }
 0xde8   :  { %v7127_v48 = vpop.f32.mrf.mxu0 }
 0xde9   :  { %v7128_v19 = vadd.f32 %v7127_v48, %v18805_v14 }
 0xdea   :  { %v7129_v22 = vpop.f32.mrf.mxu0 }
 0xdeb   :  { %v7130_v5 = vadd.f32 %v7129_v22, %v18802_v6 }
 0xdec   :  { %v7131_v61 = vpop.f32.mrf.mxu0 }
 0xded   :  { %v18810_v0 = vpack.c.bf16 %v7130_v5, %v7126_v37  ;;  %v7132_v16 = vadd.f32 %v7131_v61, %v18805_v14 }
 0xdee   :  { %v7135_v1 = vpop.f32.mrf.mxu0 }
 0xdef   :  { %v18813_v15 = vpack.c.bf16 %v7132_v16, %v7128_v19  ;;  %7221 = vrot.lane.b32.xlu1 %v18810_v0, %s16369_s23  ;;  %v7136_v33 = vadd.f32 %v7135_v1, %v18802_v6 }
 0xdf0   :  { %v18817_v57 = vpop.f32.mrf.mxu0 }
 0xdf1   :  { %15100 = vmatpush3.bf16.msra.mxu0 %v18813_v15 }
 0xdf2   :  { %v7139_v56 = vpop.f32.mrf.mxu0  ;;  %15111 = vmatprep.subr.bf16.mxu0 %v21546_v21 }
 0xdf3   :  { %v7140_v30 = vadd.f32 %v7139_v56, %v18802_v6 }
 0xdf4   :  { %v18827_v59 = vpop.f32.mrf.mxu0 }
 0xdf5   :  { %v18823_v11 = vpack.c.bf16 %v7140_v30, %v7136_v33 }
 0xdf7   :  { %7271 = vrot.lane.b32.xlu0 %v18823_v11, %s16369_s23 }
 0xe1f   :  { %v7145_v41 = vpop.f32.mrf.mxu0 }
 0xe20   :  { %v7146_v60 = vadd.f32 %v7145_v41, %v18802_v6 }
 0xe21   :  { %v18829_v53 = vpop.f32.mrf.mxu0 }
 0xe23   :  { %v7149_v28 = vpop.f32.mrf.mxu0 }
 0xe24   :  { %v7150_v13 = vadd.f32 %v7149_v28, %v18802_v6 }
 0xe25   :  { %v18833_v26 = vpop.f32.mrf.mxu0 }
 0xe26   :  { %v18835_v62 = vpack.c.bf16 %v7150_v13, %v7146_v60 }
 0xe27   :  { %v7155_v20 = vpop.f32.mrf.mxu0 }
 0xe28   :  { %7321 = vrot.lane.b32.xlu1 %v18835_v62, %s16369_s23  ;;  %v7156_v39 = vadd.f32 %v7155_v20, %v18802_v6 }
 0xe29   :  { %v18839_v50 = vpop.f32.mrf.mxu0 }
 0xe2b   :  { %v7159_v46 = vpop.f32.mrf.mxu0 }
 0xe2c   :  { %v7160_v8 = vadd.f32 %v7159_v46, %v18802_v6 }
 0xe2d   :  { %v18843_v44 = vpop.f32.mrf.mxu0 }
 0xe2e   :  { %v18845_v47 = vpack.c.bf16 %v7160_v8, %v7156_v39 }
 0xe2f   :  { %v7165_v24 = vpop.f32.mrf.mxu0 }
 0xe30   :  { %7371 = vrot.lane.b32.xlu1 %v18845_v47, %s16369_s23  ;;  %v7166_v25 = vadd.f32 %v7165_v24, %v18802_v6 }
 0xe31   :  { %v18849_v49 = vpop.f32.mrf.mxu0 }
 0xe33   :  { %v7169_v43 = vpop.f32.mrf.mxu0 }
 0xe34   :  { %v7170_v35 = vadd.f32 %v7169_v43, %v18802_v6 }
 0xe35   :  { %v18853_v9 = vpop.f32.mrf.mxu0 }
 0xe36   :  { %v18855_v38 = vpack.c.bf16 %v7170_v35, %v7166_v25 }
 0xe37   :  { %v7175_v36 = vpop.f32.mrf.mxu0 }
 0xe38   :  { %7421 = vrot.lane.b32.xlu0 %v18855_v38, %s16369_s23  ;;  %v7176_v31 = vadd.f32 %v7175_v36, %v18802_v6 }
 0xe39   :  { %v18859_v18 = vpop.f32.mrf.mxu0 }
 0xe3b   :  { %v7179_v12 = vpop.f32.mrf.mxu0 }
 0xe3c   :  { %v7180_v45 = vadd.f32 %v7179_v12, %v18802_v6 }
 0xe3d   :  { %v18863_v48 = vpop.f32.mrf.mxu0 }
 0xe3e   :  { %v18865_v22 = vpack.c.bf16 %v7180_v45, %v7176_v31 }
 0xe3f   :  { %v7185_v37 = vpop.f32.mrf.mxu0 }
 0xe40   :  { %7471 = vrot.lane.b32.xlu1 %v18865_v22, %s16369_s23  ;;  %v7186_v19 = vadd.f32 %v7185_v37, %v18802_v6 }
 0xe41   :  { %v18869_v5 = vpop.f32.mrf.mxu0 }
 0xe43   :  { %v7189_v61 = vpop.f32.mrf.mxu0 }
 0xe44   :  { %v7190_v16 = vadd.f32 %v7189_v61, %v18802_v6 }
 0xe45   :  { %v18873_v1 = vpop.f32.mrf.mxu0 }
 0xe46   :  { %v18875_v56 = vpack.c.bf16 %v7190_v16, %v7186_v19  ;;  %v7142_v16 = vadd.f32 %v18827_v59, %v18805_v14 }
 0xe47   :  { %v7195_v33 = vpop.f32.mrf.mxu0 }
 0xe48   :  { %7521 = vrot.lane.b32.xlu0 %v18875_v56, %s16369_s23  ;;  %v7196_v28 = vadd.f32 %v7195_v33, %v18802_v6  ;;  %v7138_v33 = vadd.f32 %v18817_v57, %v18805_v14 }
 0xe49   :  { %v18879_v30 = vpop.f32.mrf.mxu0 }
 0xe4b   :  { %v7199_v41 = vpop.f32.mrf.mxu0 }
 0xe4c   :  { %v7200_v60 = vadd.f32 %v7199_v41, %v18802_v6  ;;  %v18935_v41 = vpack.c.bf16 %v7142_v16, %v7138_v33 }
 0xe4e   :  { %v18883_v13 = vpack.c.bf16 %v7200_v60, %v7196_v28 }
 0xe50   :  { %7571 = vrot.lane.b32.xlu1 %v18883_v13, %s16369_s23 }
 0xe61   :  { %v7222_v20 = vpop.permute.xlu1 %7221 }
 0xe62   :  { %v7227_v46 = vsel %vm54_vm3, %v7222_v20, 0 }
 0xe63   :  { %15052 = vmatpush3.bf16.xpose.msra.mxu1 %v7227_v46 }
 0xe64   :  { %15057 = vmatprep.subr.bf16.mxu1 %v21546_v21 }
 0xe69   :  { %v7272_v39 = vpop.permute.xlu0 %7271 }
 0xe6a   :  { %v7277_v8 = vsel %vm54_vm3, %v7272_v39, 0  ;;  %15054 = vmatmul.mubr.msk.bf16.vlgmr.msra.gmra.mxu1 %vm54_vm3, %v18810_v0 }
 0xe6b   :  { %15058 = vmatpush3.bf16.xpose.msra.mxu1 %v7277_v8  ;;  %15059 = vmatprep.mubr.msk.bf16.mxu1 %vm16367_vm1, %v21546_v21 }
 0xe6c   :  { %15063 = vmatprep.subr.bf16.mxu1 %v21546_v21 }
 0xe72   :  { %15060 = vmatmul.mubr.msk.bf16.vlgmr.msra.gmra.mxu1 %vm54_vm3, %v18823_v11 }
 0xe73   :  { %15065 = vmatprep.mubr.msk.bf16.mxu1 %vm16367_vm1, %v21546_v21 }
 0xe9a   :  { %v7322_v6 = vpop.permute.xlu1 %7321 }
 0xe9b   :  { %v7327_v24 = vsel %vm54_vm3, %v7322_v6, 0 }
 0xe9c   :  { %15064 = vmatpush3.bf16.xpose.msra.mxu1 %v7327_v24 }
 0xe9d   :  { %15069 = vmatprep.subr.bf16.mxu1 %v21546_v21 }
 0xea2   :  { %v7372_v43 = vpop.permute.xlu1 %7371 }
 0xea3   :  { %v7377_v25 = vsel %vm54_vm3, %v7372_v43, 0  ;;  %15066 = vmatmul.mubr.msk.bf16.vlgmr.msra.gmra.mxu1 %vm54_vm3, %v18835_v62 }
 0xea4   :  { %15070 = vmatpush3.bf16.xpose.msra.mxu1 %v7377_v25  ;;  %15071 = vmatprep.mubr.msk.bf16.mxu1 %vm16367_vm1, %v21546_v21 }
 0xea5   :  { %15075 = vmatprep.subr.bf16.mxu1 %v21546_v21 }
 0xeaa   :  { %v7422_v35 = vpop.permute.xlu0 %7421 }
 0xeab   :  { %v7427_v36 = vsel %vm54_vm3, %v7422_v35, 0  ;;  %15072 = vmatmul.mubr.msk.bf16.vlgmr.msra.gmra.mxu1 %vm54_vm3, %v18845_v47 }
 0xeac   :  { %15076 = vmatpush3.bf16.xpose.msra.mxu1 %v7427_v36  ;;  %15077 = vmatprep.mubr.msk.bf16.mxu1 %vm16367_vm1, %v21546_v21 }
 0xead   :  { %15081 = vmatprep.subr.bf16.mxu1 %v21546_v21 }
 0xeb2   :  { %v7472_v12 = vpop.permute.xlu1 %7471 }
 0xeb3   :  { %v7477_v31 = vsel %vm54_vm3, %v7472_v12, 0  ;;  %15078 = vmatmul.mubr.msk.bf16.vlgmr.msra.gmra.mxu1 %vm54_vm3, %v18855_v38 }
 0xeb4   :  { %15082 = vmatpush3.bf16.xpose.msra.mxu1 %v7477_v31  ;;  %15083 = vmatprep.mubr.msk.bf16.mxu1 %vm16367_vm1, %v21546_v21 }
 0xeb5   :  { %15087 = vmatprep.subr.bf16.mxu1 %v21546_v21 }
 0xeba   :  { %v7522_v45 = vpop.permute.xlu0 %7521 }
 0xebb   :  { %v7527_v37 = vsel %vm54_vm3, %v7522_v45, 0  ;;  %15084 = vmatmul.mubr.msk.bf16.vlgmr.msra.gmra.mxu1 %vm54_vm3, %v18865_v22 }
 0xebc   :  { %15088 = vmatpush3.bf16.xpose.msra.mxu1 %v7527_v37  ;;  %15089 = vmatprep.mubr.msk.bf16.mxu1 %vm16367_vm1, %v21546_v21 }
 0xebd   :  { %15093 = vmatprep.subr.bf16.mxu1 %v21546_v21 }
 0xec2   :  { %v7572_v61 = vpop.permute.xlu1 %7571 }
 0xec3   :  { %v7577_v19 = vsel %vm54_vm3, %v7572_v61, 0  ;;  %15090 = vmatmul.mubr.msk.bf16.vlgmr.msra.gmra.mxu1 %vm54_vm3, %v18875_v56 }
 0xec4   :  { %15094 = vmatpush3.bf16.xpose.msra.mxu1 %v7577_v19  ;;  %15095 = vmatprep.mubr.msk.bf16.mxu1 %vm16367_vm1, %v21546_v21 }
 0xec5   :  { %15105 = vmatprep.subr.bf16.mxu1 %v21546_v21 }
 0xecb   :  { %15096 = vmatmul.mubr.msk.bf16.vlgmr.msra.gmra.mxu1 %vm54_vm3, %v18883_v13 }
 0xecc   :  { %15106 = vmatpush3.bf16.msra.mxu1 %v18935_v41  ;;  %15107 = vmatprep.mubr.msk.bf16.mxu1 %vm16367_vm1, %v21546_v21 }
 0xecd   :  { %15117 = vmatprep.subr.bf16.mxu1 %v21546_v21 }
 0xf2a   :  { %v18943_v28 = vpop.f32.mrf.mxu1 }
 0xf2b   :  { %v7620_v59 = vsel %vm4321_vm6, %v18943_v28, -inf }
 0xf2c   :  { %v15055_v60 = vpop.f32.mrf.mxu1  ;;  %7621 = vmax.xlane.f32.xlu0 %v7620_v59 }
 0xf2e   :  { %v18947_v57 = vpop.f32.mrf.mxu1 }
 0xf2f   :  { %v7623_v20 = vsel %vm4321_vm6, %v18947_v57, -inf }
 0xf30   :  { %v15056_v46 = vpop.f32.mrf.mxu1  ;;  %7624 = vmax.xlane.f32.xlu1 %v7623_v20 }
 0xf32   :  { %v18951_v39 = vpop.f32.mrf.mxu1 }
 0xf33   :  { %v7626_v8 = vsel %vm4321_vm6, %v18951_v39, -inf }
 0xf34   :  { %7627 = vmax.xlane.f32.xlu0 %v7626_v8  ;;  %v15061_v6 = vpop.f32.mrf.mxu1 }
 0xf36   :  { %v18955_v24 = vpop.f32.mrf.mxu1 }
 0xf37   :  { %v7629_v43 = vsel %vm4321_vm6, %v18955_v24, -inf }
 0xf38   :  { %7630 = vmax.xlane.f32.xlu0 %v7629_v43  ;;  %v15062_v25 = vpop.f32.mrf.mxu1 }
 0xf63   :  { %v18959_v35 = vpop.f32.mrf.mxu1 }
 0xf64   :  { %v7632_v36 = vsel %vm4321_vm6, %v18959_v35, -inf }
 0xf65   :  { %7633 = vmax.xlane.f32.xlu1 %v7632_v36  ;;  %v15067_v12 = vpop.f32.mrf.mxu1 }
 0xf67   :  { %v18963_v31 = vpop.f32.mrf.mxu1 }
 0xf68   :  { %v7635_v45 = vsel %vm4321_vm6, %v18963_v31, -inf }
 0xf69   :  { %7636 = vmax.xlane.f32.xlu0 %v7635_v45  ;;  %v15068_v37 = vpop.f32.mrf.mxu1 }
 0xf6b   :  { %v18967_v61 = vpop.f32.mrf.mxu1 }
 0xf6c   :  { %v7638_v19 = vsel %vm4321_vm6, %v18967_v61, -inf }
 0xf6d   :  { %7639 = vmax.xlane.f32.xlu1 %v7638_v19  ;;  %v15073_v16 = vpop.f32.mrf.mxu1 }
 0xf6f   :  { %v18971_v33 = vpop.f32.mrf.mxu1 }
 0xf70   :  { %v7641_v59 = vsel %vm4321_vm6, %v18971_v33, -inf }
 0xf71   :  { %7642 = vmax.xlane.f32.xlu0 %v7641_v59  ;;  %v15074_v60 = vpop.f32.mrf.mxu1 }
 0xf73   :  { %v18975_v20 = vpop.f32.mrf.mxu1 }
 0xf74   :  { %v7644_v46 = vsel %vm4321_vm6, %v18975_v20, -inf }
 0xf75   :  { %7645 = vmax.xlane.f32.xlu1 %v7644_v46  ;;  %v15079_v8 = vpop.f32.mrf.mxu1 }
 0xf77   :  { %v18979_v6 = vpop.f32.mrf.mxu1 }
 0xf78   :  { %v7647_v43 = vsel %vm4321_vm6, %v18979_v6, -inf }
 0xf79   :  { %7648 = vmax.xlane.f32.xlu0 %v7647_v43  ;;  %v15080_v25 = vpop.f32.mrf.mxu1 }
 0xf7b   :  { %v18983_v36 = vpop.f32.mrf.mxu1 }
 0xf7c   :  { %v7650_v12 = vsel %vm4321_vm6, %v18983_v36, -inf }
 0xf7d   :  { %7651 = vmax.xlane.f32.xlu1 %v7650_v12  ;;  %v15085_v45 = vpop.f32.mrf.mxu1 }
 0xf7f   :  { %v18987_v37 = vpop.f32.mrf.mxu1 }
 0xf80   :  { %v7653_v19 = vsel %vm4321_vm6, %v18987_v37, -inf }
 0xf81   :  { %7654 = vmax.xlane.f32.xlu0 %v7653_v19  ;;  %v15086_v16 = vpop.f32.mrf.mxu1 }
 0xf83   :  { %v18991_v59 = vpop.f32.mrf.mxu1 }
 0xf84   :  { %v7656_v60 = vsel %vm4321_vm6, %v18991_v59, -inf }
 0xf85   :  { %7657 = vmax.xlane.f32.xlu1 %v7656_v60  ;;  %v15091_v46 = vpop.f32.mrf.mxu1 }
 0xf87   :  { %v18995_v8 = vpop.f32.mrf.mxu1 }
 0xf88   :  { %v7659_v43 = vsel %vm4321_vm6, %v18995_v8, -inf }
 0xf89   :  { %7660 = vmax.xlane.f32.xlu0 %v7659_v43  ;;  %v15092_v25 = vpop.f32.mrf.mxu1 }
 0xf8b   :  { %v18999_v12 = vpop.f32.mrf.mxu1 }
 0xf8c   :  { %v7662_v45 = vsel %vm4321_vm6, %v18999_v12, -inf }
 0xf8d   :  { %7663 = vmax.xlane.f32.xlu1 %v7662_v45  ;;  %v15097_v19 = vpop.f32.mrf.mxu1 }
 0xf8f   :  { %v19003_v16 = vpop.f32.mrf.mxu1 }
 0xf90   :  { %v7665_v60 = vsel %vm4321_vm6, %v19003_v16, -inf }
 0xf91   :  { %7666 = vmax.xlane.f32.xlu0 %v7665_v60  ;;  %v15098_v46 = vpop.f32.mrf.mxu1 }
 0xf9e   :  { %8170 = vrot.lane.b32.xlu1 %v18810_v0, %s16370_s24 }
 0xfb5   :  { %v7622_v32 = vpop.xlane.xlu0 %7621 }
 0xfb6   :  { %v7668_v43 = vsub.f32 %v18943_v28, %v7622_v32 }
 0xfb8   :  { %v7684_v25 = vmul.f32 1.442695, %v7668_v43 }
 0xfb9   :  { %v7625_v40 = vpop.xlane.xlu1 %7624 }
 0xfba   :  { %15997 = vpow2.f32 %v7684_v25  ;;  %v7669_v34 = vsub.f32 %v18947_v57, %v7625_v40 }
 0xfbc   :  { %v7686_v45 = vmul.f32 1.442695, %v7669_v34 }
 0xfbd   :  { %v7628_v19 = vpop.xlane.xlu0 %7627 }
 0xfbe   :  { %15999 = vpow2.f32 %v7686_v45  ;;  %v7670_v10 = vsub.f32 %v18951_v39, %v7628_v19 }
 0xfc0   :  { %v7688_v4 = vmul.f32 1.442695, %v7670_v10 }
 0xfc1   :  { %v7631_v51 = vpop.xlane.xlu0 %7630 }
 0xfc2   :  { %16001 = vpow2.f32 %v7688_v4  ;;  %v7671_v60 = vsub.f32 %v18955_v24, %v7631_v51 }
 0xfc4   :  { %v7690_v46 = vmul.f32 1.442695, %v7671_v60 }
 0xfc6   :  { %16003 = vpow2.f32 %v7690_v46 }
 0xfc7   :  { %v19013_v63 = vpop.eup %15997 }
 0xfc8   :  { %v7716_v32 = vsel %vm4321_vm6, %v19013_v63, 0.0 }
 0xfc9   :  { %7717 = vadd.xlane.f32.xlu1 %v7716_v32 }
 0xfcb   :  { %v19017_v28 = vpop.eup %15999 }
 0xfcc   :  { %v7719_v34 = vsel %vm4321_vm6, %v19017_v28, 0.0 }
 0xfcd   :  { %7720 = vadd.xlane.f32.xlu0 %v7719_v34 }
 0xfcf   :  { %v19021_v40 = vpop.eup %16001 }
 0xfd0   :  { %v7722_v4 = vsel %vm4321_vm6, %v19021_v40, 0.0 }
 0xfd1   :  { %7723 = vadd.xlane.f32.xlu1 %v7722_v4 }
 0xfd3   :  { %v19025_v10 = vpop.eup %16003 }
 0xfd4   :  { %v7725_v51 = vsel %vm4321_vm6, %v19025_v10, 0.0 }
 0xfd5   :  { %7726 = vadd.xlane.f32.xlu0 %v7725_v51 }
 0xfee   :  { %v7634_v57 = vpop.xlane.xlu1 %7633 }
 0xfef   :  { %v7672_v39 = vsub.f32 %v18959_v35, %v7634_v57 }
 0xff1   :  { %v7692_v24 = vmul.f32 1.442695, %v7672_v39 }
 0xff2   :  { %v7637_v43 = vpop.xlane.xlu0 %7636 }
 0xff3   :  { %16005 = vpow2.f32 %v7692_v24  ;;  %v7673_v25 = vsub.f32 %v18963_v31, %v7637_v43 }
 0xff5   :  { %v7694_v45 = vmul.f32 1.442695, %v7673_v25 }
 0xff6   :  { %v7640_v19 = vpop.xlane.xlu1 %7639 }
 0xff7   :  { %16007 = vpow2.f32 %v7694_v45  ;;  %v7674_v60 = vsub.f32 %v18967_v61, %v7640_v19 }
 0xff9   :  { %v7696_v46 = vmul.f32 1.442695, %v7674_v60 }
 0xffa   :  { %v7643_v32 = vpop.xlane.xlu0 %7642 }
 0xffb   :  { %16009 = vpow2.f32 %v7696_v46  ;;  %v7675_v34 = vsub.f32 %v18971_v33, %v7643_v32 }
 0xffd   :  { %v7698_v4 = vmul.f32 1.442695, %v7675_v34 }
 0xffe   :  { %v7646_v51 = vpop.xlane.xlu1 %7645 }
 0xfff   :  { %16011 = vpow2.f32 %v7698_v4  ;;  %v7676_v35 = vsub.f32 %v18975_v20, %v7646_v51 }
0x1000   :  { %v19034_v57 = vpop.eup %16005 }
0x1001   :  { %v7700_v39 = vmul.f32 1.442695, %v7676_v35  ;;  %v7728_v31 = vsel %vm4321_vm6, %v19034_v57, 0.0 }
0x1002   :  { %7729 = vadd.xlane.f32.xlu1 %v7728_v31  ;;  %v7649_v24 = vpop.xlane.xlu0 %7648 }
0x1003   :  { %16013 = vpow2.f32 %v7700_v39  ;;  %v7677_v61 = vsub.f32 %v18979_v6, %v7649_v24 }
0x1004   :  { %v19039_v43 = vpop.eup %16007 }
0x1005   :  { %v7702_v25 = vmul.f32 1.442695, %v7677_v61  ;;  %v7731_v33 = vsel %vm4321_vm6, %v19039_v43, 0.0 }
0x1006   :  { %v7652_v45 = vpop.xlane.xlu1 %7651  ;;  %7732 = vadd.xlane.f32.xlu0 %v7731_v33 }
0x1007   :  { %16015 = vpow2.f32 %v7702_v25  ;;  %v7678_v20 = vsub.f32 %v18983_v36, %v7652_v45 }
0x1008   :  { %v19044_v19 = vpop.eup %16009 }
0x1009   :  { %v7704_v60 = vmul.f32 1.442695, %v7678_v20  ;;  %v7734_v46 = vsel %vm4321_vm6, %v19044_v19, 0.0 }
0x100a   :  { %7735 = vadd.xlane.f32.xlu1 %v7734_v46  ;;  %v7655_v32 = vpop.xlane.xlu0 %7654 }
0x100b   :  { %16017 = vpow2.f32 %v7704_v60  ;;  %v7679_v6 = vsub.f32 %v18987_v37, %v7655_v32 }
0x100c   :  { %v19049_v34 = vpop.eup %16011 }
0x100d   :  { %v7706_v4 = vmul.f32 1.442695, %v7679_v6  ;;  %v7737_v51 = vsel %vm4321_vm6, %v19049_v34, 0.0 }
0x100e   :  { %v7658_v35 = vpop.xlane.xlu1 %7657  ;;  %7738 = vadd.xlane.f32.xlu0 %v7737_v51 }
0x100f   :  { %16019 = vpow2.f32 %v7706_v4  ;;  %v7680_v36 = vsub.f32 %v18991_v59, %v7658_v35 }
0x1010   :  { %v19054_v39 = vpop.eup %16013 }
0x1011   :  { %v7708_v31 = vmul.f32 1.442695, %v7680_v36  ;;  %v7740_v24 = vsel %vm4321_vm6, %v19054_v39, 0.0 }
0x1012   :  { %7741 = vadd.xlane.f32.xlu1 %v7740_v24  ;;  %v7661_v61 = vpop.xlane.xlu0 %7660 }
0x1013   :  { %16021 = vpow2.f32 %v7708_v31  ;;  %v7681_v37 = vsub.f32 %v18995_v8, %v7661_v61 }
0x1014   :  { %v19059_v25 = vpop.eup %16015 }
0x1015   :  { %v7710_v33 = vmul.f32 1.442695, %v7681_v37  ;;  %v7743_v45 = vsel %vm4321_vm6, %v19059_v25, 0.0 }
0x1016   :  { %v7664_v20 = vpop.xlane.xlu1 %7663  ;;  %7744 = vadd.xlane.f32.xlu0 %v7743_v45 }
0x1017   :  { %16023 = vpow2.f32 %v7710_v33  ;;  %v7682_v59 = vsub.f32 %v18999_v12, %v7664_v20  ;;  %v7152_v20 = vadd.f32 %v18833_v26, %v18805_v14 }
0x1018   :  { %v19064_v60 = vpop.eup %16017 }
0x1019   :  { %v7712_v46 = vmul.f32 1.442695, %v7682_v59  ;;  %v7746_v32 = vsel %vm4321_vm6, %v19064_v60, 0.0 }
0x101a   :  { %7747 = vadd.xlane.f32.xlu1 %v7746_v32  ;;  %v7667_v6 = vpop.xlane.xlu0 %7666 }
0x101b   :  { %16025 = vpow2.f32 %v7712_v46  ;;  %v7683_v8 = vsub.f32 %v19003_v16, %v7667_v6  ;;  %v7148_v46 = vadd.f32 %v18829_v53, %v18805_v14  ;;  %v7158_v6 = vadd.f32 %v18839_v50, %v18805_v14 }
0x101c   :  { %v19069_v4 = vpop.eup %16019 }
0x101d   :  { %v7714_v51 = vmul.f32 1.442695, %v7683_v8  ;;  %v7749_v35 = vsel %vm4321_vm6, %v19069_v4, 0.0 }
0x101e   :  { %7750 = vadd.xlane.f32.xlu0 %v7749_v35 }
0x101f   :  { %16027 = vpow2.f32 %v7714_v51 }
0x1020   :  { %v19073_v12 = vpop.eup %16021 }
0x1021   :  { %v7752_v36 = vsel %vm4321_vm6, %v19073_v12, 0.0 }
0x1022   :  { %7753 = vadd.xlane.f32.xlu1 %v7752_v36 }
0x1024   :  { %v19077_v31 = vpop.eup %16023 }
0x1025   :  { %v7755_v24 = vsel %vm4321_vm6, %v19077_v31, 0.0 }
0x1026   :  { %7756 = vadd.xlane.f32.xlu0 %v7755_v24 }
0x1028   :  { %v19081_v16 = vpop.eup %16025 }
0x1029   :  { %v7758_v61 = vsel %vm4321_vm6, %v19081_v16, 0.0 }
0x102a   :  { %7759 = vadd.xlane.f32.xlu1 %v7758_v61  ;;  %v7172_v61 = vadd.f32 %v18853_v9, %v18805_v14 }
0x102c   :  { %v19085_v37 = vpop.eup %16027 }
0x102d   :  { %v7761_v33 = vsel %vm4321_vm6, %v19085_v37, 0.0 }
0x102e   :  { %7762 = vadd.xlane.f32.xlu0 %v7761_v33 }
0x103b   :  { %8168 = vrot.lane.b32.xlu1 %v18810_v0, %s16371_s25  ;;  %v19105_v0 = vpop.permute.xlu1 %8170 }
0x103f   :  { %8219 = vrot.lane.b32.xlu1 %v18823_v11, %s16371_s25 }
0x1043   :  { %8323 = vrot.lane.b32.xlu1 %v18845_v47, %s16370_s24 }
0x1044   :  { %8221 = vrot.lane.b32.xlu0 %v18823_v11, %s16370_s24 }
0x1047   :  { %8321 = vrot.lane.b32.xlu1 %v18845_v47, %s16371_s25 }
0x1048   :  { %8272 = vrot.lane.b32.xlu0 %v18835_v62, %s16370_s24 }
0x104b   :  { %8425 = vrot.lane.b32.xlu1 %v18865_v22, %s16370_s24 }
0x104c   :  { %8270 = vrot.lane.b32.xlu0 %v18835_v62, %s16371_s25 }
0x104f   :  { %8423 = vrot.lane.b32.xlu1 %v18865_v22, %s16371_s25 }
0x1050   :  { %8374 = vrot.lane.b32.xlu0 %v18855_v38, %s16370_s24 }
0x1052   :  { %v7718_v11 = vpop.xlane.xlu1 %7717 }
0x1053   :  { %8527 = vrot.lane.b32.xlu1 %v18883_v13, %s16370_s24  ;;  %16029 = vrcp.f32 %v7718_v11 }
0x1054   :  { %8372 = vrot.lane.b32.xlu0 %v18855_v38, %s16371_s25 }
0x1056   :  { %v7721_v47 = vpop.xlane.xlu0 %7720 }
0x1057   :  { %16031 = vrcp.f32 %v7721_v47  ;;  %8525 = vrot.lane.b32.xlu1 %v18883_v13, %s16371_s25  ;;  %v7168_v47 = vadd.f32 %v18849_v49, %v18805_v14  ;;  %v7182_v49 = vadd.f32 %v18863_v48, %v18805_v14 }
0x1058   :  { %8476 = vrot.lane.b32.xlu0 %v18875_v56, %s16370_s24 }
0x105a   :  { %v7724_v62 = vpop.xlane.xlu1 %7723 }
0x105b   :  { %8761 = vrot.lane.b32.xlu1 %v18813_v15, %s16371_s25  ;;  %16033 = vrcp.f32 %v7724_v62  ;;  %v19129_v15 = vpack.c.bf16 %v7152_v20, %v7148_v46 }
0x105c   :  { %8474 = vrot.lane.b32.xlu0 %v18875_v56, %s16371_s25 }
0x105e   :  { %v7727_v22 = vpop.xlane.xlu0 %7726 }
0x105f   :  { %16035 = vrcp.f32 %v7727_v22 }
0x1060   :  { %v16030_v38 = vpop.eup %16029 }
0x1061   :  { %v7780_v13 = vmul.f32 %v16030_v38, %v19013_v63  ;;  %v7162_v63 = vadd.f32 %v18843_v44, %v18805_v14  ;;  %v19155_v38 = vpack.c.bf16 %v7172_v61, %v7168_v47 }
0x1063   :  { %v19142_v51 = vpack.c.bf16 %v7162_v63, %v7158_v6  ;;  %v7188_v63 = vadd.f32 %v18869_v5, %v18805_v14 }
0x1064   :  { %v16032_v45 = vpop.eup %16031 }
0x1065   :  { %v7781_v59 = vmul.f32 %v16032_v45, %v19017_v28 }
0x1067   :  { %v7796_v32 = vpack.c.bf16 %v7781_v59, %v7780_v13  ;;  %v7178_v13 = vadd.f32 %v18859_v18, %v18805_v14  ;;  %v7192_v18 = vadd.f32 %v18873_v1, %v18805_v14 }
0x1068   :  { %v16034_v56 = vpop.eup %16033 }
0x1069   :  { %15102 = vmatmul.mubr.msk.bf16.vlgmr.msra.gmra.mxu0 %vm4321_vm6, %v7796_v32  ;;  %v7782_v28 = vmul.f32 %v16034_v56, %v19021_v40  ;;  %v19168_v32 = vpack.c.bf16 %v7182_v49, %v7178_v13  ;;  %v19181_v6 = vpack.c.bf16 %v7192_v18, %v7188_v63 }
0x106a   :  { %15112 = vmatpush3.bf16.msra.mxu0 %v19129_v15  ;;  %15113 = vmatprep.mubr.msk.bf16.mxu0 %vm16367_vm1, %v21546_v21 }
0x106b   :  { %15123 = vmatprep.subr.bf16.mxu0 %v21546_v21 }
0x106c   :  { %v16036_v26 = vpop.eup %16035 }
0x106d   :  { %v7783_v53 = vmul.f32 %v16036_v26, %v19025_v10 }
0x106f   :  { %v7797_v8 = vpack.c.bf16 %v7783_v53, %v7782_v28 }
0x1071   :  { %15108 = vmatmul.mubr.msk.bf16.vlgmr.msra.gmra.mxu1 %vm4321_vm6, %v7797_v8  ;;  %v7201_v8 = vpop.f32.mrf.mxu0 }
0x1072   :  { %15118 = vmatpush3.bf16.msra.mxu1 %v19142_v51  ;;  %15119 = vmatprep.mubr.msk.bf16.mxu1 %vm16367_vm1, %v21546_v21  ;;  %v7202_v5 = vadd.f32 %v7201_v8, %v18805_v14 }
0x1073   :  { %15129 = vmatprep.subr.bf16.mxu1 %v21546_v21 }
0x108b   :  { %v7730_v44 = vpop.xlane.xlu1 %7729 }
0x108c   :  { %16037 = vrcp.f32 %v7730_v44 }
0x108f   :  { %v7733_v40 = vpop.xlane.xlu0 %7732 }
0x1090   :  { %16039 = vrcp.f32 %v7733_v40 }
0x1093   :  { %v7736_v10 = vpop.xlane.xlu1 %7735 }
0x1094   :  { %16041 = vrcp.f32 %v7736_v10  ;;  %v7198_v10 = vadd.f32 %v18879_v30, %v18805_v14 }
0x1097   :  { %v7739_v35 = vpop.xlane.xlu0 %7738 }
0x1098   :  { %16043 = vrcp.f32 %v7739_v35 }
0x1099   :  { %v16038_v50 = vpop.eup %16037 }
0x109a   :  { %v7784_v33 = vmul.f32 %v16038_v50, %v19034_v57 }
0x109b   :  { %v7742_v36 = vpop.xlane.xlu1 %7741 }
0x109c   :  { %16045 = vrcp.f32 %v7742_v36 }
0x109d   :  { %v16040_v24 = vpop.eup %16039 }
0x109e   :  { %v7785_v11 = vmul.f32 %v16040_v24, %v19039_v43  ;;  %v19193_v24 = vpack.c.bf16 %v7202_v5, %v7198_v10 }
0x109f   :  { %v7745_v62 = vpop.xlane.xlu0 %7744 }
0x10a0   :  { %16047 = vrcp.f32 %v7745_v62  ;;  %v7798_v22 = vpack.c.bf16 %v7785_v11, %v7784_v33 }
0x10a1   :  { %v16042_v45 = vpop.eup %16041 }
0x10a2   :  { %15114 = vmatmul.mubr.msk.bf16.vlgmr.msra.gmra.mxu0 %vm4321_vm6, %v7798_v22  ;;  %v7786_v57 = vmul.f32 %v16042_v45, %v19044_v19  ;;  %v8176_v22 = vsel %vm54_vm3, %v19105_v0, 0 }
0x10a3   :  { %15124 = vmatpush3.bf16.msra.mxu0 %v19155_v38  ;;  %v7748_v20 = vpop.xlane.xlu1 %7747  ;;  %15125 = vmatprep.mubr.msk.bf16.mxu0 %vm16367_vm1, %v21546_v21 }
0x10a4   :  { %15135 = vmatprep.subr.bf16.mxu0 %v21546_v21  ;;  %16049 = vrcp.f32 %v7748_v20 }
0x10a5   :  { %v16044_v9 = vpop.eup %16043 }
0x10a6   :  { %v7787_v43 = vmul.f32 %v16044_v9, %v19049_v34 }
0x10a7   :  { %v7751_v59 = vpop.xlane.xlu0 %7750 }
0x10a8   :  { %16051 = vrcp.f32 %v7751_v59  ;;  %v7799_v46 = vpack.c.bf16 %v7787_v43, %v7786_v57 }
0x10a9   :  { %v16046_v56 = vpop.eup %16045 }
0x10aa   :  { %15120 = vmatmul.mubr.msk.bf16.vlgmr.msra.gmra.mxu1 %vm4321_vm6, %v7799_v46  ;;  %v7788_v19 = vmul.f32 %v16046_v56, %v19054_v39 }
0x10ab   :  { %15130 = vmatpush3.bf16.msra.mxu1 %v19168_v32  ;;  %v7754_v26 = vpop.xlane.xlu1 %7753  ;;  %15131 = vmatprep.mubr.msk.bf16.mxu1 %vm16367_vm1, %v21546_v21 }
0x10ac   :  { %15141 = vmatprep.subr.bf16.mxu1 %v21546_v21  ;;  %16053 = vrcp.f32 %v7754_v26 }
0x10ad   :  { %v16048_v48 = vpop.eup %16047 }
0x10ae   :  { %v7789_v34 = vmul.f32 %v16048_v48, %v19059_v25 }
0x10af   :  { %v7757_v28 = vpop.xlane.xlu0 %7756 }
0x10b0   :  { %16055 = vrcp.f32 %v7757_v28  ;;  %v7800_v53 = vpack.c.bf16 %v7789_v34, %v7788_v19 }
0x10b1   :  { %v16050_v44 = vpop.eup %16049 }
0x10b2   :  { %15126 = vmatmul.mubr.msk.bf16.vlgmr.msra.gmra.mxu0 %vm4321_vm6, %v7800_v53  ;;  %v7790_v25 = vmul.f32 %v16050_v44, %v19064_v60 }
0x10b3   :  { %15136 = vmatpush3.bf16.msra.mxu0 %v19181_v6  ;;  %v7760_v1 = vpop.xlane.xlu1 %7759  ;;  %15137 = vmatprep.mubr.msk.bf16.mxu0 %vm16367_vm1, %v21546_v21 }
0x10b4   :  { %15147 = vmatprep.subr.bf16.mxu0 %v21546_v21  ;;  %16057 = vrcp.f32 %v7760_v1 }
0x10b5   :  { %v16052_v39 = vpop.eup %16051 }
0x10b6   :  { %v7791_v40 = vmul.f32 %v16052_v39, %v19069_v4 }
0x10b7   :  { %v8169_v35 = vpop.permute.xlu1 %8168  ;;  %v7763_v50 = vpop.xlane.xlu0 %7762 }
0x10b8   :  { %16059 = vrcp.f32 %v7763_v50  ;;  %v7801_v36 = vpack.c.bf16 %v7791_v40, %v7790_v25 }
0x10b9   :  { %v16054_v61 = vpop.eup %16053 }
0x10ba   :  { %15132 = vmatmul.mubr.msk.bf16.vlgmr.msra.gmra.mxu1 %vm4321_vm6, %v7801_v36  ;;  %v7792_v14 = vmul.f32 %v16054_v61, %v19073_v12 }
0x10bb   :  { %15142 = vmatpush3.bf16.msra.mxu1 %v19193_v24  ;;  %v8220_v33 = vpop.permute.xlu1 %8219  ;;  %v8222_v11 = vpop.permute.xlu0 %8221  ;;  %15143 = vmatprep.mubr.msk.bf16.mxu1 %vm16367_vm1, %v21546_v21 }
0x10bc   :  { %15153 = vmatprep.subr.bf16.mxu1 %v21546_v21  ;;  %v8227_v43 = vsel %vm54_vm3, %v8222_v11, 0 }
0x10bd   :  { %v16056_v60 = vpop.eup %16055 }
0x10be   :  { %v7793_v30 = vmul.f32 %v16056_v60, %v19077_v31 }
0x10bf   :  { %v8324_v4 = vpop.permute.xlu1 %8323  ;;  %v8273_v47 = vpop.permute.xlu0 %8272 }
0x10c0   :  { %v7802_v62 = vpack.c.bf16 %v7793_v30, %v7792_v14  ;;  %v8278_v0 = vsel %vm54_vm3, %v8273_v47, 0  ;;  %v8329_v46 = vsel %vm54_vm3, %v8324_v4, 0 }
0x10c1   :  { %v16058_v45 = vpop.eup %16057 }
0x10c2   :  { %15138 = vmatmul.mubr.msk.bf16.vlgmr.msra.gmra.mxu0 %vm4321_vm6, %v7802_v62  ;;  %v7794_v31 = vmul.f32 %v16058_v45, %v19081_v16 }
0x10c3   :  { %15148 = vmatpush3.bf16.xpose.msra.mxu0 %v8176_v22  ;;  %15149 = vmatprep.mubr.msk.bf16.mxu0 %vm16367_vm1, %v21546_v21  ;;  %v8322_v20 = vpop.permute.xlu1 %8321  ;;  %v8271_v12 = vpop.permute.xlu0 %8270 }
0x10c4   :  { %15159 = vmatprep.subr.bf16.mxu0 %v21546_v21 }
0x10c5   :  { %v16060_v9 = vpop.eup %16059 }
0x10c6   :  { %v7795_v49 = vmul.f32 %v16060_v9, %v19085_v37 }
0x10c7   :  { %v8426_v13 = vpop.permute.xlu1 %8425  ;;  %v8375_v59 = vpop.permute.xlu0 %8374 }
0x10c8   :  { %v7803_v57 = vpack.c.bf16 %v7795_v49, %v7794_v31  ;;  %v8380_v56 = vsel %vm54_vm3, %v8375_v59, 0  ;;  %v8431_v18 = vsel %vm54_vm3, %v8426_v13, 0 }
0x10ca   :  { %15144 = vmatmul.mubr.msk.bf16.vlgmr.msra.gmra.mxu1 %vm4321_vm6, %v7803_v57  ;;  %15150 = vmatmul.mubr.msk.bf16.vlgmr.msra.gmra.mxu0 %vm54_vm3, %v8169_v35 }
0x10cb   :  { %15154 = vmatpush3.bf16.xpose.msra.mxu1 %v8227_v43  ;;  %15160 = vmatpush3.bf16.xpose.msra.mxu0 %v8278_v0  ;;  %v8424_v16 = vpop.permute.xlu1 %8423  ;;  %v8373_v37 = vpop.permute.xlu0 %8372 }
0x10cc   :  { %15155 = vmatprep.mubr.msk.bf16.mxu1 %vm16367_vm1, %v21546_v21  ;;  %15161 = vmatprep.mubr.msk.bf16.mxu0 %vm16367_vm1, %v21546_v21 }
0x10cd   :  { %15165 = vmatprep.subr.bf16.mxu1 %v21546_v21  ;;  %15171 = vmatprep.subr.bf16.mxu0 %v21546_v21 }
0x10cf   :  { %v8528_v26 = vpop.permute.xlu1 %8527  ;;  %v8477_v48 = vpop.permute.xlu0 %8476 }
0x10d0   :  { %v8482_v19 = vsel %vm54_vm3, %v8477_v48, 0  ;;  %v8533_v28 = vsel %vm54_vm3, %v8528_v26, 0 }
0x10d2   :  { %15156 = vmatmul.mubr.msk.bf16.vlgmr.msra.gmra.mxu1 %vm54_vm3, %v8220_v33  ;;  %15162 = vmatmul.mubr.msk.bf16.vlgmr.msra.gmra.mxu0 %vm54_vm3, %v8271_v12 }
0x10d3   :  { %15166 = vmatpush3.bf16.xpose.msra.mxu1 %v8329_v46  ;;  %15172 = vmatpush3.bf16.xpose.msra.mxu0 %v8380_v56  ;;  %v8526_v34 = vpop.permute.xlu1 %8525  ;;  %v8475_v63 = vpop.permute.xlu0 %8474 }
0x10d4   :  { %15167 = vmatprep.mubr.msk.bf16.mxu1 %vm16367_vm1, %v21546_v21  ;;  %15173 = vmatprep.mubr.msk.bf16.mxu0 %vm16367_vm1, %v21546_v21 }
0x10d5   :  { %15177 = vmatprep.subr.bf16.mxu1 %v21546_v21  ;;  %15183 = vmatprep.subr.bf16.mxu0 %v21546_v21 }
0x10d7   :  { %v8762_v53 = vpop.permute.xlu1 %8761 }
0x10da   :  { %15168 = vmatmul.mubr.msk.bf16.vlgmr.msra.gmra.mxu1 %vm54_vm3, %v8322_v20  ;;  %15174 = vmatmul.mubr.msk.bf16.vlgmr.msra.gmra.mxu0 %vm54_vm3, %v8373_v37 }
0x10db   :  { %15178 = vmatpush3.bf16.xpose.msra.mxu1 %v8431_v18  ;;  %15184 = vmatpush3.bf16.xpose.msra.mxu0 %v8482_v19 }
0x10dc   :  { %15179 = vmatprep.mubr.msk.bf16.mxu1 %vm16367_vm1, %v21546_v21  ;;  %15185 = vmatprep.mubr.msk.bf16.mxu0 %vm16367_vm1, %v21546_v21 }
0x10dd   :  { %15189 = vmatprep.subr.bf16.mxu1 %v21546_v21  ;;  %15195 = vmatprep.subr.bf16.mxu0 %v21546_v21 }
0x10e2   :  { %15180 = vmatmul.mubr.msk.bf16.vlgmr.msra.gmra.mxu1 %vm54_vm3, %v8424_v16  ;;  %15186 = vmatmul.mubr.msk.bf16.vlgmr.msra.gmra.mxu0 %vm54_vm3, %v8475_v63 }
0x10e3   :  { %15190 = vmatpush3.bf16.xpose.msra.mxu1 %v8533_v28  ;;  %15196 = vmatpush3.bf16.msra.mxu0 %v8762_v53 }
0x10e4   :  { %15191 = vmatprep.mubr.msk.bf16.mxu1 %vm16367_vm1, %v21546_v21  ;;  %15201 = vmatprep.subr.bf16.mxu1 %v21546_v21 }
0x10e5   :  { %15197 = vmatprep.mubr.msk.bf16.mxu0 %vm16367_vm1, %v21546_v21  ;;  %15207 = vmatprep.subr.bf16.mxu0 %v21546_v21 }
0x10ea   :  { %15192 = vmatmul.mubr.msk.bf16.vlgmr.msra.gmra.mxu1 %vm54_vm3, %v8526_v34 }
0x10eb   :  { %15203 = vmatprep.mubr.msk.bf16.mxu1 %vm16367_vm1, %v21546_v21 }
0x1129   :  { %v19252_v8 = vpop.f32.mrf.mxu0 }
0x112b   :  { %v15103_v44 = vpop.f32.mrf.mxu0 }
0x112d   :  { %v19254_v1 = vpop.f32.mrf.mxu0 }
0x112f   :  { %v15104_v5 = vpop.f32.mrf.mxu0 }
0x1131   :  { %v19258_v25 = vpop.f32.mrf.mxu1 }
0x1133   :  { %v15109_v40 = vpop.f32.mrf.mxu1 }
0x1135   :  { %v19260_v10 = vpop.f32.mrf.mxu1 }
0x1137   :  { %v15110_v50 = vpop.f32.mrf.mxu1 }
0x1162   :  { %v19264_v36 = vpop.f32.mrf.mxu0 }
0x1164   :  { %v15115_v61 = vpop.f32.mrf.mxu0 }
0x1166   :  { %v19266_v33 = vpop.f32.mrf.mxu0 }
0x1168   :  { %v15116_v60 = vpop.f32.mrf.mxu0 }
0x116a   :  { %v19270_v14 = vpop.f32.mrf.mxu1 }
0x116c   :  { %v15121_v30 = vpop.f32.mrf.mxu1 }
0x116e   :  { %v19272_v4 = vpop.f32.mrf.mxu1 }
0x1170   :  { %v15122_v62 = vpop.f32.mrf.mxu1 }
0x1172   :  { %v19276_v22 = vpop.f32.mrf.mxu0 }
0x1174   :  { %v15127_v45 = vpop.f32.mrf.mxu0 }
0x1176   :  { %v19278_v20 = vpop.f32.mrf.mxu0 }
0x1178   :  { %v15128_v12 = vpop.f32.mrf.mxu0 }
0x117a   :  { %v19282_v31 = vpop.f32.mrf.mxu1 }
0x117c   :  { %v15133_v49 = vpop.f32.mrf.mxu1 }
0x117e   :  { %v19284_v57 = vpop.f32.mrf.mxu1 }
0x1180   :  { %v15134_v0 = vpop.f32.mrf.mxu1 }
0x1182   :  { %v19288_v13 = vpop.f32.mrf.mxu0 }
0x1184   :  { %v15139_v59 = vpop.f32.mrf.mxu0 }
0x1186   :  { %v19290_v16 = vpop.f32.mrf.mxu0 }
0x1188   :  { %v15140_v46 = vpop.f32.mrf.mxu0 }
0x118a   :  { %v19294_v56 = vpop.f32.mrf.mxu1  ;;  %v19296_v26 = vpop.f32.mrf.mxu0 }
0x118b   :  { %v8576_v48 = vsel %vm4321_vm6, %v19296_v26, -inf }
0x118c   :  { %8577 = vmax.xlane.f32.xlu0 %v8576_v48  ;;  %v15145_v18 = vpop.f32.mrf.mxu1  ;;  %v15151_v19 = vpop.f32.mrf.mxu0 }
0x118e   :  { %v19300_v34 = vpop.f32.mrf.mxu1  ;;  %v19302_v63 = vpop.f32.mrf.mxu0 }
0x118f   :  { %v8579_v53 = vsel %vm4321_vm6, %v19302_v63, -inf }
0x1190   :  { %8580 = vmax.xlane.f32.xlu1 %v8579_v53  ;;  %v15146_v44 = vpop.f32.mrf.mxu1  ;;  %v15152_v5 = vpop.f32.mrf.mxu0 }
0x1192   :  { %v19308_v40 = vpop.f32.mrf.mxu1  ;;  %v19310_v50 = vpop.f32.mrf.mxu0 }
0x1193   :  { %v8582_v61 = vsel %vm4321_vm6, %v19308_v40, -inf  ;;  %v8588_v60 = vsel %vm4321_vm6, %v19310_v50, -inf }
0x1194   :  { %8583 = vmax.xlane.f32.xlu0 %v8582_v61  ;;  %v15157_v30 = vpop.f32.mrf.mxu1  ;;  %8589 = vmax.xlane.f32.xlu1 %v8588_v60  ;;  %v15163_v62 = vpop.f32.mrf.mxu0 }
0x1196   :  { %v19316_v45 = vpop.f32.mrf.mxu1  ;;  %v19318_v12 = vpop.f32.mrf.mxu0 }
0x1197   :  { %v8585_v49 = vsel %vm4321_vm6, %v19316_v45, -inf  ;;  %v8591_v19 = vsel %vm4321_vm6, %v19318_v12, -inf }
0x1198   :  { %8586 = vmax.xlane.f32.xlu0 %v8585_v49  ;;  %v15158_v0 = vpop.f32.mrf.mxu1  ;;  %v15164_v59 = vpop.f32.mrf.mxu0 }
0x119a   :  { %v19322_v46 = vpop.f32.mrf.mxu1  ;;  %v19324_v48 = vpop.f32.mrf.mxu0 }
0x119b   :  { %v8594_v18 = vsel %vm4321_vm6, %v19322_v46, -inf  ;;  %v8600_v30 = vsel %vm4321_vm6, %v19324_v48, -inf }
0x119c   :  { %v15169_v53 = vpop.f32.mrf.mxu1  ;;  %8595 = vmax.xlane.f32.xlu1 %v8594_v18  ;;  %8592 = vmax.xlane.f32.xlu0 %v8591_v19  ;;  %v15175_v44 = vpop.f32.mrf.mxu0 }
0x119e   :  { %v19330_v5 = vpop.f32.mrf.mxu1  ;;  %v19332_v61 = vpop.f32.mrf.mxu0 }
0x119f   :  { %v8597_v60 = vsel %vm4321_vm6, %v19330_v5, -inf }
0x11a0   :  { %v15170_v62 = vpop.f32.mrf.mxu1  ;;  %8598 = vmax.xlane.f32.xlu0 %v8597_v60  ;;  %8601 = vmax.xlane.f32.xlu1 %v8600_v30  ;;  %v15176_v49 = vpop.f32.mrf.mxu0 }
0x11a2   :  { %v19338_v0 = vpop.f32.mrf.mxu1  ;;  %v19340_v59 = vpop.f32.mrf.mxu0 }
0x11a3   :  { %v8606_v18 = vsel %vm4321_vm6, %v19338_v0, -inf }
0x11a4   :  { %v15181_v19 = vpop.f32.mrf.mxu1  ;;  %8607 = vmax.xlane.f32.xlu1 %v8606_v18  ;;  %v15187_v53 = vpop.f32.mrf.mxu0  ;;  %v8603_v18 = vsel %vm4321_vm6, %v19332_v61, -inf }
0x11a6   :  { %v19344_v44 = vpop.f32.mrf.mxu1  ;;  %v19346_v28 = vpop.f32.mrf.mxu0 }
0x11a8   :  { %v15182_v37 = vpop.f32.mrf.mxu1  ;;  %v15188_v43 = vpop.f32.mrf.mxu0 }
0x11a9   :  { %v8609_v37 = vsel %vm4321_vm6, %v19344_v44, -inf  ;;  %v8612_v43 = vsel %vm4321_vm6, %v19340_v59, -inf }
0x11aa   :  { %v19348_v62 = vpop.f32.mrf.mxu1 }
0x11ab   :  { %v8618_v19 = vsel %vm4321_vm6, %v19348_v62, -inf }
0x11ac   :  { %v15193_v60 = vpop.f32.mrf.mxu1 }
0x11ae   :  { %v19350_v30 = vpop.f32.mrf.mxu1 }
0x11b0   :  { %v15194_v49 = vpop.f32.mrf.mxu1 }
0x11b5   :  { %8857 = vrot.lane.b32.xlu1 %v19129_v15, %s16371_s25  ;;  %v8615_v15 = vsel %vm4321_vm6, %v19346_v28, -inf }
0x11b6   :  { %8809 = vrot.lane.b32.xlu0 %v18935_v41, %s16371_s25  ;;  %v8621_v41 = vsel %vm4321_vm6, %v19350_v30, -inf }
0x11d5   :  { %8604 = vmax.xlane.f32.xlu0 %v8603_v18 }
0x11d9   :  { %8610 = vmax.xlane.f32.xlu0 %v8609_v37  ;;  %8613 = vmax.xlane.f32.xlu1 %v8612_v43 }
0x11dd   :  { %8619 = vmax.xlane.f32.xlu1 %v8618_v19  ;;  %8616 = vmax.xlane.f32.xlu0 %v8615_v15 }
0x11e1   :  { %8622 = vmax.xlane.f32.xlu0 %v8621_v41 }
0x1215   :  { %v8578_v53 = vpop.xlane.xlu0 %8577 }
0x1216   :  { %v8624_v60 = vsub.f32 %v19296_v26, %v8578_v53 }
0x1218   :  { %v8640_v49 = vmul.f32 1.442695, %v8624_v60 }
0x1219   :  { %v8581_v18 = vpop.xlane.xlu1 %8580 }
0x121a   :  { %16061 = vpow2.f32 %v8640_v49  ;;  %v8625_v37 = vsub.f32 %v19302_v63, %v8581_v18 }
0x121c   :  { %v8642_v43 = vmul.f32 1.442695, %v8625_v37 }
0x121d   :  { %v8590_v9 = vpop.xlane.xlu1 %8589  ;;  %v8584_v47 = vpop.xlane.xlu0 %8583 }
0x121e   :  { %16063 = vpow2.f32 %v8642_v43  ;;  %v8628_v11 = vsub.f32 %v19310_v50, %v8590_v9  ;;  %v8626_v19 = vsub.f32 %v19308_v40, %v8584_v47 }
0x1220   :  { %v8644_v15 = vmul.f32 1.442695, %v8626_v19  ;;  %v8648_v35 = vmul.f32 1.442695, %v8628_v11 }
0x1221   :  { %v8587_v39 = vpop.xlane.xlu0 %8586 }
0x1222   :  { %v8627_v41 = vsub.f32 %v19316_v45, %v8587_v39  ;;  %16065 = vpow2.f32 %v8644_v15 }
0x1223   :  { %16067 = vpow2.f32 %v8648_v35 }
0x1224   :  { %v8646_v26 = vmul.f32 1.442695, %v8627_v41 }
0x1225   :  { %v8596_v53 = vpop.xlane.xlu1 %8595  ;;  %v8593_v60 = vpop.xlane.xlu0 %8592 }
0x1226   :  { %16069 = vpow2.f32 %v8646_v26  ;;  %v8630_v63 = vsub.f32 %v19322_v46, %v8596_v53  ;;  %v8629_v41 = vsub.f32 %v19318_v12, %v8593_v60 }
0x1227   :  { %v19374_v49 = vpop.eup %16061 }
0x1228   :  { %v8652_v18 = vmul.f32 1.442695, %v8630_v63  ;;  %v8672_v9 = vsel %vm4321_vm6, %v19374_v49, 0.0  ;;  %v8650_v53 = vmul.f32 1.442695, %v8629_v41 }
0x1229   :  { %8673 = vadd.xlane.f32.xlu1 %v8672_v9  ;;  %v8599_v47 = vpop.xlane.xlu0 %8598  ;;  %v8602_v26 = vpop.xlane.xlu1 %8601 }
0x122a   :  { %16071 = vpow2.f32 %v8652_v18  ;;  %v8631_v63 = vsub.f32 %v19330_v5, %v8599_v47  ;;  %v8632_v18 = vsub.f32 %v19324_v48, %v8602_v26 }
0x122b   :  { %v19378_v11 = vpop.eup %16063  ;;  %16073 = vpow2.f32 %v8650_v53 }
0x122c   :  { %v8675_v39 = vsel %vm4321_vm6, %v19378_v11, 0.0 }
0x122d   :  { %8676 = vadd.xlane.f32.xlu0 %v8675_v39  ;;  %v8810_v35 = vpop.permute.xlu0 %8809  ;;  %v8608_v9 = vpop.xlane.xlu1 %8607  ;;  %v8654_v39 = vmul.f32 1.442695, %v8631_v63 }
0x122e   :  { %15202 = vmatpush3.bf16.msra.mxu1 %v8810_v35  ;;  %v8656_v35 = vmul.f32 1.442695, %v8632_v18 }
0x122f   :  { %15213 = vmatprep.subr.bf16.mxu1 %v21546_v21  ;;  %v19383_v40 = vpop.eup %16065  ;;  %16075 = vpow2.f32 %v8654_v39 }
0x1230   :  { %v8678_v50 = vsel %vm4321_vm6, %v19383_v40, 0.0  ;;  %v19387_v45 = vpop.eup %16067  ;;  %16077 = vpow2.f32 %v8656_v35 }
0x1231   :  { %8679 = vadd.xlane.f32.xlu1 %v8678_v50  ;;  %v8684_v43 = vsel %vm4321_vm6, %v19387_v45, 0.0  ;;  %v8634_v50 = vsub.f32 %v19338_v0, %v8608_v9 }
0x1233   :  { %v19389_v46 = vpop.eup %16069 }
0x1234   :  { %v8681_v37 = vsel %vm4321_vm6, %v19389_v46, 0.0 }
0x1235   :  { %8682 = vadd.xlane.f32.xlu0 %v8681_v37  ;;  %8685 = vadd.xlane.f32.xlu1 %v8684_v43  ;;  %v19407_v37 = vpop.permute.xlu1 %8857 }
0x1237   :  { %v19395_v19 = vpop.eup %16071 }
0x1238   :  { %v8690_v15 = vsel %vm4321_vm6, %v19395_v19, 0.0  ;;  %v19412_v0 = vpop.eup %16073 }
0x1239   :  { %8691 = vadd.xlane.f32.xlu1 %v8690_v15  ;;  %v8687_v39 = vsel %vm4321_vm6, %v19412_v0, 0.0 }
0x124a   :  { %8953 = vrot.lane.b32.xlu1 %v19155_v38, %s16371_s25  ;;  %v8660_v38 = vmul.f32 1.442695, %v8634_v50 }
0x124b   :  { %8905 = vrot.lane.b32.xlu0 %v19142_v51, %s16371_s25 }
0x124c   :  { %16079 = vpow2.f32 %v8660_v38 }
0x125e   :  { %v8605_v51 = vpop.xlane.xlu0 %8604 }
0x125f   :  { %v8633_v12 = vsub.f32 %v19332_v61, %v8605_v51 }
0x1261   :  { %v8658_v60 = vmul.f32 1.442695, %v8633_v12 }
0x1262   :  { %v8614_v43 = vpop.xlane.xlu1 %8613  ;;  %v8611_v5 = vpop.xlane.xlu0 %8610 }
0x1263   :  { %16081 = vpow2.f32 %v8658_v60  ;;  %v8636_v48 = vsub.f32 %v19340_v59, %v8614_v43  ;;  %v8635_v47 = vsub.f32 %v19344_v44, %v8611_v5  ;;  %v19418_v59 = vpop.eup %16075 }
0x1264   :  { %v19420_v35 = vpop.eup %16077 }
0x1265   :  { %v8664_v15 = vmul.f32 1.442695, %v8636_v48  ;;  %v8662_v41 = vmul.f32 1.442695, %v8635_v47  ;;  %v19427_v51 = vpop.eup %16079 }
0x1266   :  { %v8620_v26 = vpop.xlane.xlu1 %8619  ;;  %v8617_v53 = vpop.xlane.xlu0 %8616 }
0x1267   :  { %16083 = vpow2.f32 %v8664_v15  ;;  %v8638_v63 = vsub.f32 %v19348_v62, %v8620_v26  ;;  %v8637_v61 = vsub.f32 %v19346_v28, %v8617_v53  ;;  %v8693_v28 = vsel %vm4321_vm6, %v19418_v59, 0.0 }
0x1268   :  { %16085 = vpow2.f32 %v8662_v41  ;;  %v8696_v62 = vsel %vm4321_vm6, %v19420_v35, 0.0 }
0x1269   :  { %v8668_v18 = vmul.f32 1.442695, %v8638_v63  ;;  %v8666_v9 = vmul.f32 1.442695, %v8637_v61 }
0x126a   :  { %8688 = vadd.xlane.f32.xlu0 %v8687_v39  ;;  %v8623_v44 = vpop.xlane.xlu0 %8622 }
0x126b   :  { %16087 = vpow2.f32 %v8668_v18  ;;  %v8639_v50 = vsub.f32 %v19350_v30, %v8623_v44  ;;  %v8702_v30 = vsel %vm4321_vm6, %v19427_v51, 0.0 }
0x126c   :  { %16089 = vpow2.f32 %v8666_v9 }
0x126d   :  { %v8670_v38 = vmul.f32 1.442695, %v8639_v50 }
0x126e   :  { %8694 = vadd.xlane.f32.xlu0 %v8693_v28  ;;  %8697 = vadd.xlane.f32.xlu1 %v8696_v62 }
0x126f   :  { %16091 = vpow2.f32 %v8670_v38 }
0x1270   :  { %v19429_v12 = vpop.eup %16081 }
0x1271   :  { %v8699_v60 = vsel %vm4321_vm6, %v19429_v12, 0.0 }
0x1272   :  { %8700 = vadd.xlane.f32.xlu0 %v8699_v60  ;;  %8703 = vadd.xlane.f32.xlu1 %v8702_v30 }
0x1274   :  { %v19435_v43 = vpop.eup %16083 }
0x1275   :  { %v19437_v5 = vpop.eup %16085  ;;  %v8708_v48 = vsel %vm4321_vm6, %v19435_v43, 0.0 }
0x1276   :  { %v8705_v47 = vsel %vm4321_vm6, %v19437_v5, 0.0  ;;  %8709 = vadd.xlane.f32.xlu1 %v8708_v48 }
0x1277   :  { %8706 = vadd.xlane.f32.xlu0 %v8705_v47 }
0x1278   :  { %v19443_v15 = vpop.eup %16087 }
0x1279   :  { %v19445_v41 = vpop.eup %16089  ;;  %v8714_v26 = vsel %vm4321_vm6, %v19443_v15, 0.0 }
0x127a   :  { %v8711_v53 = vsel %vm4321_vm6, %v19445_v41, 0.0  ;;  %8715 = vadd.xlane.f32.xlu1 %v8714_v26 }
0x127b   :  { %8712 = vadd.xlane.f32.xlu0 %v8711_v53 }
0x127c   :  { %v19451_v63 = vpop.eup %16091 }
0x127d   :  { %v8717_v61 = vsel %vm4321_vm6, %v19451_v63, 0.0 }
0x127f   :  { %8718 = vadd.xlane.f32.xlu0 %v8717_v61 }
0x128b   :  { %9049 = vrot.lane.b32.xlu1 %v19181_v6, %s16371_s25 }
0x128f   :  { %9097 = vrot.lane.b32.xlu1 %v19193_v24, %s16371_s25 }
0x1295   :  { %9001 = vrot.lane.b32.xlu0 %v19168_v32, %s16371_s25 }
0x12b2   :  { %v8674_v18 = vpop.xlane.xlu1 %8673 }
0x12b3   :  { %16093 = vrcp.f32 %v8674_v18 }
0x12b6   :  { %v8677_v9 = vpop.xlane.xlu0 %8676 }
0x12b7   :  { %16095 = vrcp.f32 %v8677_v9 }
0x12ba   :  { %v8680_v39 = vpop.xlane.xlu1 %8679 }
0x12bb   :  { %16097 = vrcp.f32 %v8680_v39 }
0x12be   :  { %v8683_v44 = vpop.xlane.xlu0 %8682 }
0x12bf   :  { %16099 = vrcp.f32 %v8683_v44 }
0x12c0   :  { %v16094_v50 = vpop.eup %16093 }
0x12c1   :  { %v8736_v28 = vmul.f32 %v16094_v50, %v19374_v49 }
0x12c2   :  { %v8906_v49 = vpop.permute.xlu0 %8905 }
0x12c4   :  { %v16096_v38 = vpop.eup %16095 }
0x12c5   :  { %v8737_v6 = vmul.f32 %v16096_v38, %v19378_v11  ;;  %v8686_v11 = vpop.xlane.xlu1 %8685 }
0x12c6   :  { %16101 = vrcp.f32 %v8686_v11 }
0x12c7   :  { %v8752_v62 = vpack.c.bf16 %v8737_v6, %v8736_v28 }
0x12c8   :  { %v16098_v24 = vpop.eup %16097 }
0x12c9   :  { %15198 = vmatmul.mubr.msk.bf16.vlgmr.msra.gmra.mxu0 %vm4321_vm6, %v8752_v62  ;;  %v8738_v60 = vmul.f32 %v16098_v24, %v19383_v40 }
0x12ca   :  { %15208 = vmatpush3.bf16.msra.mxu0 %v19407_v37  ;;  %15209 = vmatprep.mubr.msk.bf16.mxu0 %vm16367_vm1, %v21546_v21  ;;  %v8692_v37 = vpop.xlane.xlu1 %8691 }
0x12cb   :  { %15219 = vmatprep.subr.bf16.mxu0 %v21546_v21 }
0x12cc   :  { %v16100_v32 = vpop.eup %16099 }
0x12cd   :  { %v8739_v30 = vmul.f32 %v16100_v32, %v19389_v46 }
0x12ce   :  { %v8954_v26 = vpop.permute.xlu1 %8953 }
0x12cf   :  { %v8753_v48 = vpack.c.bf16 %v8739_v30, %v8738_v60 }
0x12d1   :  { %15204 = vmatmul.mubr.msk.bf16.vlgmr.msra.gmra.mxu1 %vm4321_vm6, %v8753_v48 }
0x12d2   :  { %15214 = vmatpush3.bf16.msra.mxu1 %v8906_v49  ;;  %15215 = vmatprep.mubr.msk.bf16.mxu1 %vm16367_vm1, %v21546_v21 }
0x12d3   :  { %15225 = vmatprep.subr.bf16.mxu1 %v21546_v21  ;;  %v16102_v18 = vpop.eup %16101 }
0x12d4   :  { %v8740_v50 = vmul.f32 %v16102_v18, %v19387_v45  ;;  %v15729_v18 = vld [vmem:[%s21509_s2 + $0x240] ss:$8 sps:$4 sm:$0xff]  }
0x12f3   :  { %v8689_v47 = vpop.xlane.xlu0 %8688 }
0x12f4   :  { %16103 = vrcp.f32 %v8689_v47 }
0x12f5   :  { %16105 = vrcp.f32 %v8692_v37 }
0x12f7   :  { %v8695_v40 = vpop.xlane.xlu0 %8694  ;;  %v8698_v53 = vpop.xlane.xlu1 %8697 }
0x12f8   :  { %16107 = vrcp.f32 %v8695_v40 }
0x12f9   :  { %16109 = vrcp.f32 %v8698_v53 }
0x12fb   :  { %v8701_v46 = vpop.xlane.xlu0 %8700  ;;  %v8704_v61 = vpop.xlane.xlu1 %8703 }
0x12fc   :  { %16111 = vrcp.f32 %v8701_v46 }
0x12fd   :  { %16113 = vrcp.f32 %v8704_v61 }
0x12ff   :  { %v8710_v9 = vpop.xlane.xlu1 %8709 }
0x1300   :  { %v8707_v39 = vpop.xlane.xlu0 %8706 }
0x1301   :  { %v16104_v44 = vpop.eup %16103  ;;  %16115 = vrcp.f32 %v8707_v39 }
0x1302   :  { %v8741_v38 = vmul.f32 %v16104_v44, %v19412_v0  ;;  %v16106_v28 = vpop.eup %16105  ;;  %16117 = vrcp.f32 %v8710_v9 }
0x1303   :  { %v8716_v6 = vpop.xlane.xlu1 %8715  ;;  %v8742_v60 = vmul.f32 %v16106_v28, %v19395_v19  ;;  %v15732_v28 = vld [vmem:[%s21509_s2 + $0x250] ss:$8 sps:$4 sm:$0xff]  }
0x1304   :  { %v8713_v62 = vpop.xlane.xlu0 %8712  ;;  %v8754_v24 = vpack.c.bf16 %v8741_v38, %v8740_v50 }
0x1305   :  { %v16108_v32 = vpop.eup %16107  ;;  %16119 = vrcp.f32 %v8713_v62  ;;  %v15730_v62 = vld [vmem:[%s21509_s2 + $0x230] ss:$8 sps:$4 sm:$0xff]  }
0x1306   :  { %v8743_v30 = vmul.f32 %v16108_v32, %v19418_v59  ;;  %15210 = vmatmul.mubr.msk.bf16.vlgmr.msra.gmra.mxu0 %vm4321_vm6, %v8754_v24  ;;  %v16110_v48 = vpop.eup %16109  ;;  %16121 = vrcp.f32 %v8716_v6  ;;  %v21567_v24 = vpack.c.bf16 %v19254_v1, %v19252_v8  ;;  %v21570_v32 = vpack.c.bf16 %v19272_v4, %v19270_v14 }
0x1307   :  { %15220 = vmatpush3.bf16.msra.mxu0 %v8954_v26  ;;  %15221 = vmatprep.mubr.msk.bf16.mxu0 %vm16367_vm1, %v21546_v21  ;;  %v8744_v11 = vmul.f32 %v16110_v48, %v19420_v35  ;;  %v9050_v26 = vpop.permute.xlu1 %9049  ;;  %v15731_v35 = vld [vmem:[%s21509_s2 + $0x260] ss:$8 sps:$4 sm:$0xff]   ;;  %v21571_v8 = vpack.c.bf16 %v19278_v20, %v19276_v22  ;;  %v21572_v1 = vpack.c.bf16 %v19284_v57, %v19282_v31 }
0x1308   :  { %v8719_v45 = vpop.xlane.xlu0 %8718  ;;  %v8755_v0 = vpack.c.bf16 %v8743_v30, %v8742_v60  ;;  %15231 = vmatprep.subr.bf16.mxu0 %v21546_v21 }
0x1309   :  { %v16112_v49 = vpop.eup %16111  ;;  %16123 = vrcp.f32 %v8719_v45 }
0x130a   :  { %v8745_v19 = vmul.f32 %v16112_v49, %v19429_v12  ;;  %15216 = vmatmul.mubr.msk.bf16.vlgmr.msra.gmra.mxu1 %vm4321_vm6, %v8755_v0  ;;  %v16114_v47 = vpop.eup %16113 }
0x130b   :  { %15227 = vmatprep.mubr.msk.bf16.mxu1 %vm16367_vm1, %v21546_v21  ;;  %v8746_v12 = vmul.f32 %v16114_v47, %v19427_v51  ;;  %v9098_v38 = vpop.permute.xlu1 %9097 }
0x130c   :  { %v9002_v59 = vpop.permute.xlu0 %9001  ;;  %v8756_v37 = vpack.c.bf16 %v8745_v19, %v8744_v11 }
0x130d   :  { %15226 = vmatpush3.bf16.msra.mxu1 %v9002_v59 }
0x130e   :  { %15222 = vmatmul.mubr.msk.bf16.vlgmr.msra.gmra.mxu0 %vm4321_vm6, %v8756_v37  ;;  %15237 = vmatprep.subr.bf16.mxu1 %v21546_v21  ;;  %v16116_v40 = vpop.eup %16115 }
0x130f   :  { %15232 = vmatpush3.bf16.msra.mxu0 %v9050_v26  ;;  %15233 = vmatprep.mubr.msk.bf16.mxu0 %vm16367_vm1, %v21546_v21  ;;  %v8747_v53 = vmul.f32 %v16116_v40, %v19437_v5  ;;  %v16118_v46 = vpop.eup %16117 }
0x1310   :  { %15243 = vmatprep.subr.bf16.mxu0 %v15731_v35  ;;  %v8748_v44 = vmul.f32 %v16118_v46, %v19435_v43 }
0x1311   :  { %v8757_v61 = vpack.c.bf16 %v8747_v53, %v8746_v12 }
0x1312   :  { %v16120_v9 = vpop.eup %16119 }
0x1313   :  { %v16122_v39 = vpop.eup %16121  ;;  %v8749_v50 = vmul.f32 %v16120_v9, %v19445_v41  ;;  %15228 = vmatmul.mubr.msk.bf16.vlgmr.msra.gmra.mxu1 %vm4321_vm6, %v8757_v61 }
0x1314   :  { %15238 = vmatpush3.bf16.msra.mxu1 %v9098_v38  ;;  %15239 = vmatprep.mubr.msk.bf16.mxu1 %vm16367_vm1, %v21546_v21  ;;  %v8750_v6 = vmul.f32 %v16122_v39, %v19443_v15  ;;  %v21568_v15 = vpack.c.bf16 %v19260_v10, %v19258_v25  ;;  %v21573_v25 = vpack.c.bf16 %v19290_v16, %v19288_v13 }
0x1315   :  { %v8758_v5 = vpack.c.bf16 %v8749_v50, %v8748_v44  ;;  %15263 = vmatprep.subr.bf16.mxu1 %v15729_v18  ;;  %v21574_v10 = vpack.c.bf16 %v19300_v34, %v19294_v56 }
0x1316   :  { %v16124_v51 = vpop.eup %16123 }
0x1317   :  { %v8751_v43 = vmul.f32 %v16124_v51, %v19451_v63  ;;  %15234 = vmatmul.mubr.msk.bf16.vlgmr.msra.gmra.mxu0 %vm4321_vm6, %v8758_v5  ;;  %v21569_v63 = vpack.c.bf16 %v19266_v33, %v19264_v36 }
0x1318   :  { %15244 = vmatpush3.bf16.msra.mxu0 %v15731_v35 }
0x1319   :  { %v8759_v41 = vpack.c.bf16 %v8751_v43, %v8750_v6  ;;  %15245 = vmatprep.subr.bf16.mxu0 %v15732_v28 }
0x131b   :  { %15240 = vmatmul.mubr.msk.bf16.vlgmr.msra.gmra.mxu1 %vm4321_vm6, %v8759_v41 }
0x131c   :  { %15264 = vmatpush3.bf16.msra.mxu1 %v15729_v18  ;;  %15267 = vmatprep.mubr.msk.bf16.mxu1 %vm54_vm3, %v21567_v24 }
0x131d   :  { %15265 = vmatprep.subr.bf16.mxu1 %v15730_v62  ;;  %15246 = vmatpush3.bf16.msra.mxu0 %v15732_v28 }
0x1320   :  { %15266 = vmatpush3.bf16.msra.mxu1 %v15730_v62 }
0x1323   :  { %15268 = vmatmul.mubr.msk.bf16.vlgmr.msra.gmra.mxu1 %vm54_vm3, %v21568_v15 }
0x1324   :  { %15271 = vmatprep.mubr.msk.bf16.mxu1 %vm54_vm3, %v21569_v63  ;;  %v19557_v63 = vld [vmem:[%s21512_s3 + $0x15] ss:$0 sm:$0xff] }
0x132b   :  { %15272 = vmatmul.mubr.msk.bf16.gmra.mxu1 %vm54_vm3, %v21570_v32 }
0x132c   :  { %15275 = vmatprep.mubr.msk.bf16.mxu1 %vm54_vm3, %v21571_v8 }
0x1333   :  { %15276 = vmatmul.mubr.msk.bf16.gmra.mxu1 %vm54_vm3, %v21572_v1 }
0x1334   :  { %15279 = vmatprep.mubr.msk.bf16.mxu1 %vm54_vm3, %v21573_v25 }
0x133b   :  { %15280 = vmatmul.mubr.msk.bf16.gmra.mxu1 %vm54_vm3, %v21574_v10 }
0x1389   :  { %v8801_v36 = vpop.f32.mrf.mxu0 }
0x138b   :  { %v15199_v33 = vpop.f32.mrf.mxu0 }
0x138d   :  { %v8804_v14 = vpop.f32.mrf.mxu0 }
0x138e   :  { %v9148_v4 = vpack.c.bf16 %v8804_v14, %v8801_v36 }
0x138f   :  { %v15200_v22 = vpop.f32.mrf.mxu0 }
0x1390   :  { %15247 = vmatprep.mubr.msk.bf16.mxu0 %vm54_vm3, %v9148_v4 }
0x1391   :  { %v8849_v20 = vpop.f32.mrf.mxu1 }
0x1393   :  { %v15205_v31 = vpop.f32.mrf.mxu1 }
0x1395   :  { %v8852_v57 = vpop.f32.mrf.mxu1 }
0x1396   :  { %v9149_v60 = vpack.c.bf16 %v8852_v57, %v8849_v20 }
0x1397   :  { %v15206_v30 = vpop.f32.mrf.mxu1 }
0x1398   :  { %15248 = vmatmul.mubr.msk.bf16.vlgmr.msra.gmra.mxu0 %vm54_vm3, %v9149_v60 }
0x13c6   :  { %v8897_v13 = vpop.f32.mrf.mxu0 }
0x13c8   :  { %v15211_v16 = vpop.f32.mrf.mxu0 }
0x13ca   :  { %v8900_v48 = vpop.f32.mrf.mxu0  ;;  %v8945_v56 = vpop.f32.mrf.mxu1 }
0x13cb   :  { %v9150_v34 = vpack.c.bf16 %v8900_v48, %v8897_v13 }
0x13cc   :  { %v15212_v45 = vpop.f32.mrf.mxu0  ;;  %v15217_v0 = vpop.f32.mrf.mxu1 }
0x13cd   :  { %15251 = vmatprep.mubr.msk.bf16.mxu0 %vm54_vm3, %v9150_v34 }
0x13ce   :  { %v8948_v49 = vpop.f32.mrf.mxu1  ;;  %v8993_v11 = vpop.f32.mrf.mxu0 }
0x13cf   :  { %v9151_v19 = vpack.c.bf16 %v8948_v49, %v8945_v56 }
0x13d0   :  { %v15218_v59 = vpop.f32.mrf.mxu1  ;;  %v15223_v37 = vpop.f32.mrf.mxu0 }
0x13d1   :  { %15252 = vmatmul.mubr.msk.bf16.gmra.mxu0 %vm54_vm3, %v9151_v19 }
0x13d2   :  { %v8996_v47 = vpop.f32.mrf.mxu0 }
0x13d3   :  { %v9152_v26 = vpack.c.bf16 %v8996_v47, %v8993_v11  ;;  %v9041_v40 = vpop.f32.mrf.mxu1 }
0x13d4   :  { %v15224_v35 = vpop.f32.mrf.mxu0 }
0x13d5   :  { %15255 = vmatprep.mubr.msk.bf16.mxu0 %vm54_vm3, %v9152_v26  ;;  %v15229_v12 = vpop.f32.mrf.mxu1 }
0x13d7   :  { %v9044_v53 = vpop.f32.mrf.mxu1  ;;  %v9089_v46 = vpop.f32.mrf.mxu0 }
0x13d8   :  { %v9153_v61 = vpack.c.bf16 %v9044_v53, %v9041_v40 }
0x13d9   :  { %v15230_v18 = vpop.f32.mrf.mxu1  ;;  %v15235_v9 = vpop.f32.mrf.mxu0 }
0x13da   :  { %15256 = vmatmul.mubr.msk.bf16.gmra.mxu0 %vm54_vm3, %v9153_v61 }
0x13db   :  { %v9092_v39 = vpop.f32.mrf.mxu0  ;;  %v9137_v44 = vpop.f32.mrf.mxu1 }
0x13dc   :  { %v9154_v50 = vpack.c.bf16 %v9092_v39, %v9089_v46 }
0x13dd   :  { %v15236_v38 = vpop.f32.mrf.mxu0  ;;  %v15241_v51 = vpop.f32.mrf.mxu1 }
0x13de   :  { %15259 = vmatprep.mubr.msk.bf16.mxu0 %vm54_vm3, %v9154_v50 }
0x13df   :  { %v9140_v5 = vpop.f32.mrf.mxu1 }
0x13e0   :  { %v9155_v28 = vpack.c.bf16 %v9140_v5, %v9137_v44 }
0x13e1   :  { %v15242_v6 = vpop.f32.mrf.mxu1 }
0x13e2   :  { %15260 = vmatmul.mubr.msk.bf16.gmra.mxu0 %vm54_vm3, %v9155_v28 }
0x13e3   :  { %v15269_v43 = vpop.f32.mrf.mxu1 }
0x13e5   :  { %v9359_v41 = vpop.f32.mrf.mxu1 }
0x13e7   :  { %v15270_v15 = vpop.f32.mrf.mxu1 }
0x13e9   :  { %v9362_v33 = vpop.f32.mrf.mxu1 }
0x1458   :  { %v15249_v62 = vpop.f32.mrf.mxu0 }
0x1459   :  { %v9368_v24 = vadd.f32 %v15269_v43, %v15249_v62 }
0x145a   :  { %v9226_v32 = vpop.f32.mrf.mxu0 }
0x145b   :  { %v9360_v8 = vadd.f32 %v9359_v41, %v9226_v32  ;;  %v9425_v25 = vadd.f32 %v19557_v63, %v9368_v24 }
0x145c   :  { %v15250_v1 = vpop.f32.mrf.mxu0 }
0x145d   :  { %v9423_v10 = vadd.f32 %v19557_v63, %v9360_v8  ;;  %v9371_v36 = vadd.f32 %v15270_v15, %v15250_v1  ;;  %v19569_v60 = vadd.f32 %v9425_v25, %v18707_v7  ;;  %v15273_v7 = vpop.f32.mrf.mxu1 }
0x145e   :  { %v9229_v14 = vpop.f32.mrf.mxu0 }
0x145f   :  { %v9363_v4 = vadd.f32 %v9362_v33, %v9229_v14  ;;  %v19562_v22 = vadd.f32 %v9423_v10, %v18691_v2  ;;  %v9426_v20 = vadd.f32 %v19557_v63, %v9371_v36  ;;  %v9463_v2 = vsel %vm1937_vm4, %v19569_v60, 0.0  ;;  %v9375_v56 = vpop.f32.mrf.mxu1 }
0x1461   :  { %v9424_v31 = vadd.f32 %v19557_v63, %v9363_v4  ;;  %v9457_v57 = vsel %vm1937_vm4, %v19562_v22, 0.0  ;;  %v19579_v16 = vadd.f32 %v9426_v20, %v18704_v54  ;;  %v15274_v34 = vpop.f32.mrf.mxu1 }
0x1462   :  { %9458 = vadd.xlane.f32.xlu0 %v9457_v57 }
0x1463   :  { %v19572_v30 = vadd.f32 %v9424_v31, %v18695_v23  ;;  %v9466_v48 = vsel %vm1937_vm4, %v19579_v16, 0.0  ;;  %v9378_v23 = vpop.f32.mrf.mxu1 }
0x1465   :  { %v9460_v13 = vsel %vm1937_vm4, %v19572_v30, 0.0  ;;  %v15277_v45 = vpop.f32.mrf.mxu1 }
0x1466   :  { %9461 = vadd.xlane.f32.xlu1 %v9460_v13  ;;  %9464 = vadd.xlane.f32.xlu0 %v9463_v2 }
0x1467   :  { %v9391_v0 = vpop.f32.mrf.mxu1 }
0x1469   :  { %v15278_v37 = vpop.f32.mrf.mxu1 }
0x146a   :  { %9467 = vadd.xlane.f32.xlu0 %v9466_v48 }
0x146b   :  { %v9394_v46 = vpop.f32.mrf.mxu1 }
0x146d   :  { %v15281_v51 = vpop.f32.mrf.mxu1 }
0x146f   :  { %v9407_v24 = vpop.f32.mrf.mxu1 }
0x1471   :  { %v15282_v4 = vpop.f32.mrf.mxu1 }
0x1491   :  { %v15253_v49 = vpop.f32.mrf.mxu0 }
0x1492   :  { %v9384_v11 = vadd.f32 %v15273_v7, %v15253_v49 }
0x1493   :  { %v9242_v19 = vpop.f32.mrf.mxu0 }
0x1494   :  { %v9376_v59 = vadd.f32 %v9375_v56, %v9242_v19  ;;  %v9429_v54 = vadd.f32 %v19557_v63, %v9384_v11 }
0x1495   :  { %v15254_v47 = vpop.f32.mrf.mxu0 }
0x1496   :  { %v9427_v26 = vadd.f32 %v19557_v63, %v9376_v59  ;;  %v9387_v40 = vadd.f32 %v15274_v34, %v15254_v47  ;;  %v19593_v39 = vadd.f32 %v9429_v54, %v18737_v58  ;;  %v9410_v34 = vpop.f32.mrf.mxu1  ;;  %v21576_v59 = vld [vmem:[#allocation5_spill] sm:$0xff]  ;;  %v21577_v47 = vld [vmem:[#allocation4_spill] sm:$0xff] }
0x1497   :  { %v9245_v35 = vpop.f32.mrf.mxu0 }
0x1498   :  { %v9379_v12 = vadd.f32 %v9378_v23, %v9245_v35  ;;  %v19586_v53 = vadd.f32 %v9427_v26, %v18720_v52  ;;  %v9430_v61 = vadd.f32 %v19557_v63, %v9387_v40  ;;  %v9475_v28 = vsel %vm1937_vm4, %v19593_v39, 0.0  ;;  %v21578_v35 = vld [vmem:[#allocation7_spill] sm:$0xff] }
0x149a   :  { %v9428_v18 = vadd.f32 %v19557_v63, %v9379_v12  ;;  %v9469_v9 = vsel %vm1937_vm4, %v19586_v53, 0.0  ;;  %v15257_v44 = vpop.f32.mrf.mxu0  ;;  %v19603_v43 = vadd.f32 %v9430_v61, %v18732_v17 }
0x149b   :  { %9470 = vadd.xlane.f32.xlu1 %v9469_v9  ;;  %v9400_v50 = vadd.f32 %v15277_v45, %v15257_v44  ;;  %v21575_v45 = vld [vmem:[#allocation6_spill] sm:$0xff] }
0x149c   :  { %v19596_v38 = vadd.f32 %v9428_v18, %v18723_v29  ;;  %v9258_v52 = vpop.f32.mrf.mxu0  ;;  %v9478_v1 = vsel %vm1937_vm4, %v19603_v43, 0.0 }
0x149d   :  { %v9392_v5 = vadd.f32 %v9391_v0, %v9258_v52  ;;  %v9433_v58 = vadd.f32 %v19557_v63, %v9400_v50 }
0x149e   :  { %v9472_v6 = vsel %vm1937_vm4, %v19596_v38, 0.0  ;;  %v15258_v41 = vpop.f32.mrf.mxu0 }
0x149f   :  { %9476 = vadd.xlane.f32.xlu1 %v9475_v28  ;;  %9473 = vadd.xlane.f32.xlu0 %v9472_v6  ;;  %v9431_v29 = vadd.f32 %v19557_v63, %v9392_v5  ;;  %v9403_v62 = vadd.f32 %v15278_v37, %v15258_v41  ;;  %v19614_v10 = vadd.f32 %v9433_v58, %v18765_v27 }
0x14a0   :  { %v9261_v15 = vpop.f32.mrf.mxu0 }
0x14a1   :  { %v9395_v32 = vadd.f32 %v9394_v46, %v9261_v15  ;;  %v19608_v8 = vadd.f32 %v9431_v29, %v18751_v3  ;;  %v9434_v17 = vadd.f32 %v19557_v63, %v9403_v62  ;;  %v9487_v13 = vsel %vm1937_vm4, %v19614_v10, 0.0 }
0x14a2   :  { %v15261_v25 = vpop.f32.mrf.mxu0 }
0x14a3   :  { %9479 = vadd.xlane.f32.xlu0 %v9478_v1  ;;  %v9432_v36 = vadd.f32 %v19557_v63, %v9395_v32  ;;  %v9416_v33 = vadd.f32 %v15281_v51, %v15261_v25  ;;  %v9481_v14 = vsel %vm1937_vm4, %v19608_v8, 0.0  ;;  %v19625_v27 = vadd.f32 %v9434_v17, %v18761_v55  ;;  %v15733_v32 = vld [vmem:[%s21509_s2 + $0x2a0] ss:$8 sps:$4 sm:$0xff]   ;;  %v15736_v17 = vld [vmem:[%s21509_s2 + $0x270] ss:$8 sps:$4 sm:$0xff]  }
0x14a4   :  { %v9274_v20 = vpop.f32.mrf.mxu0  ;;  %9482 = vadd.xlane.f32.xlu1 %v9481_v14  ;;  %15283 = vmatprep.subr.bf16.mxu0 %v15733_v32  ;;  %v15735_v1 = vld [vmem:[%s21509_s2 + $0x280] ss:$8 sps:$4 sm:$0xff]  }
0x14a5   :  { %v9408_v3 = vadd.f32 %v9407_v24, %v9274_v20  ;;  %v19620_v31 = vadd.f32 %v9432_v36, %v18747_v42  ;;  %v9437_v2 = vadd.f32 %v19557_v63, %v9416_v33  ;;  %v9490_v55 = vsel %vm1937_vm4, %v19625_v27, 0.0  ;;  %15284 = vmatpush3.bf16.msra.mxu0 %v15733_v32 }
0x14a6   :  { %v15262_v57 = vpop.f32.mrf.mxu0 }
0x14a7   :  { %v9435_v48 = vadd.f32 %v19557_v63, %v9408_v3  ;;  %v9419_v7 = vadd.f32 %v15282_v4, %v15262_v57  ;;  %v9484_v56 = vsel %vm1937_vm4, %v19620_v31, 0.0  ;;  %v19641_v37 = vadd.f32 %v9437_v2, %v21576_v59 }
0x14a8   :  { %v9277_v23 = vpop.f32.mrf.mxu0  ;;  %9488 = vadd.xlane.f32.xlu1 %v9487_v13  ;;  %9485 = vadd.xlane.f32.xlu0 %v9484_v56 }
0x14a9   :  { %v9411_v42 = vadd.f32 %v9410_v34, %v9277_v23  ;;  %v19632_v0 = vadd.f32 %v9435_v48, %v21575_v45  ;;  %v9438_v49 = vadd.f32 %v19557_v63, %v9419_v7  ;;  %v9499_v26 = vsel %vm1937_vm4, %v19641_v37, 0.0 }
0x14ab   :  { %v9436_v11 = vadd.f32 %v19557_v63, %v9411_v42  ;;  %v9493_v19 = vsel %vm1937_vm4, %v19632_v0, 0.0  ;;  %v19651_v12 = vadd.f32 %v9438_v49, %v21578_v35 }
0x14ac   :  { %9494 = vadd.xlane.f32.xlu1 %v9493_v19  ;;  %9491 = vadd.xlane.f32.xlu0 %v9490_v55 }
0x14ad   :  { %v19644_v54 = vadd.f32 %v9436_v11, %v21577_v47  ;;  %v9502_v63 = vsel %vm1937_vm4, %v19651_v12, 0.0 }
0x14af   :  { %v9496_v40 = vsel %vm1937_vm4, %v19644_v54, 0.0 }
0x14b0   :  { %9500 = vadd.xlane.f32.xlu1 %v9499_v26  ;;  %9497 = vadd.xlane.f32.xlu0 %v9496_v40 }
0x14b4   :  { %9503 = vadd.xlane.f32.xlu0 %v9502_v63 }
0x14eb   :  { %v9459_v46 = vpop.xlane.xlu0 %9458 }
0x14ec   :  { %v9505_v61 = vmul.f32 0.015625, %v9459_v46 }
0x14ee   :  { %v19656_v18 = vsub.f32 %v19562_v22, %v9505_v61 }
0x14ef   :  { %v9462_v9 = vpop.xlane.xlu1 %9461  ;;  %v9465_v44 = vpop.xlane.xlu0 %9464 }
0x14f0   :  { %v9506_v50 = vmul.f32 0.015625, %v9462_v9  ;;  %v9507_v51 = vmul.f32 0.015625, %v9465_v44  ;;  %v9537_v52 = vmul.f32 %v19656_v18, %v19656_v18 }
0x14f2   :  { %v19661_v5 = vsub.f32 %v19572_v30, %v9506_v50  ;;  %v19664_v28 = vsub.f32 %v19569_v60, %v9507_v51  ;;  %v9553_v6 = vsel %vm1937_vm4, %v9537_v52, 0.0 }
0x14f3   :  { %9554 = vadd.xlane.f32.xlu1 %v9553_v6  ;;  %v9468_v58 = vpop.xlane.xlu0 %9467 }
0x14f4   :  { %v9508_v41 = vmul.f32 0.015625, %v9468_v58  ;;  %v9538_v22 = vmul.f32 %v19661_v5, %v19661_v5  ;;  %v9539_v29 = vmul.f32 %v19664_v28, %v19664_v28 }
0x14f6   :  { %v19672_v62 = vsub.f32 %v19579_v16, %v9508_v41  ;;  %v9556_v30 = vsel %vm1937_vm4, %v9538_v22, 0.0  ;;  %v9559_v24 = vsel %vm1937_vm4, %v9539_v29, 0.0  ;;  %v15734_v16 = vld [vmem:[%s21509_s2 + $0x290] ss:$8 sps:$4 sm:$0xff]  }
0x14f7   :  { %9557 = vadd.xlane.f32.xlu0 %v9556_v30  ;;  %9560 = vadd.xlane.f32.xlu1 %v9559_v24 }
0x14f8   :  { %v9540_v60 = vmul.f32 %v19672_v62, %v19672_v62  ;;  %15285 = vmatprep.subr.bf16.mxu0 %v15734_v16 }
0x14f9   :  { %15286 = vmatpush3.bf16.msra.mxu0 %v15734_v16 }
0x14fa   :  { %v9562_v15 = vsel %vm1937_vm4, %v9540_v60, 0.0  ;;  %15287 = vmatprep.subr.bf16.mxu0 %v15735_v1 }
0x14fb   :  { %9563 = vadd.xlane.f32.xlu0 %v9562_v15 }
0x14fd   :  { %15288 = vmatpush3.bf16.msra.mxu0 %v15735_v1 }
0x14fe   :  { %15289 = vmatprep.subr.bf16.mxu0 %v15736_v17 }
0x1501   :  { %15290 = vmatpush3.bf16.msra.mxu0 %v15736_v17 }
0x1524   :  { %v9471_v25 = vpop.xlane.xlu1 %9470 }
0x1525   :  { %v9509_v36 = vmul.f32 0.015625, %v9471_v25 }
0x1527   :  { %v19692_v33 = vsub.f32 %v19586_v53, %v9509_v36 }
0x1528   :  { %v9477_v14 = vpop.xlane.xlu1 %9476  ;;  %v9474_v4 = vpop.xlane.xlu0 %9473 }
0x1529   :  { %v9511_v20 = vmul.f32 0.015625, %v9477_v14  ;;  %v9510_v3 = vmul.f32 0.015625, %v9474_v4  ;;  %v9541_v57 = vmul.f32 %v19692_v33, %v19692_v33  ;;  %v15737_v14 = vld [vmem:[%s21509_s2 + $0x2e0] ss:$8 sps:$4 sm:$0xff]  }
0x152a   :  { %15307 = vmatprep.subr.bf16.mxu1 %v15737_v14 }
0x152b   :  { %v19697_v13 = vsub.f32 %v19593_v39, %v9511_v20  ;;  %v19700_v2 = vsub.f32 %v19596_v38, %v9510_v3  ;;  %v9565_v48 = vsel %vm1937_vm4, %v9541_v57, 0.0  ;;  %15308 = vmatpush3.bf16.msra.mxu1 %v15737_v14 }
0x152c   :  { %9566 = vadd.xlane.f32.xlu1 %v9565_v48  ;;  %v9480_v7 = vpop.xlane.xlu0 %9479 }
0x152d   :  { %v9512_v56 = vmul.f32 0.015625, %v9480_v7  ;;  %v9543_v53 = vmul.f32 %v19697_v13, %v19697_v13  ;;  %v9542_v34 = vmul.f32 %v19700_v2, %v19700_v2  ;;  %v9483_v23 = vpop.xlane.xlu1 %9482 }
0x152e   :  { %v9513_v42 = vmul.f32 0.015625, %v9483_v23 }
0x152f   :  { %v19708_v45 = vsub.f32 %v19603_v43, %v9512_v56  ;;  %v9571_v39 = vsel %vm1937_vm4, %v9543_v53, 0.0  ;;  %v9568_v38 = vsel %vm1937_vm4, %v9542_v34, 0.0 }
0x1530   :  { %9572 = vadd.xlane.f32.xlu1 %v9571_v39  ;;  %9569 = vadd.xlane.f32.xlu0 %v9568_v38  ;;  %v19713_v55 = vsub.f32 %v19608_v8, %v9513_v42 }
0x1531   :  { %v9544_v49 = vmul.f32 %v19708_v45, %v19708_v45  ;;  %v9489_v11 = vpop.xlane.xlu1 %9488  ;;  %v9486_v19 = vpop.xlane.xlu0 %9485 }
0x1532   :  { %v9515_v59 = vmul.f32 0.015625, %v9489_v11  ;;  %v9514_v47 = vmul.f32 0.015625, %v9486_v19  ;;  %v9545_v43 = vmul.f32 %v19713_v55, %v19713_v55 }
0x1533   :  { %v9574_v26 = vsel %vm1937_vm4, %v9544_v49, 0.0  ;;  %v19770_v49 = vld [vmem:[%s21512_s3 + $0x16] ss:$0 sm:$0xff] }
0x1534   :  { %9575 = vadd.xlane.f32.xlu0 %v9574_v26  ;;  %v19721_v40 = vsub.f32 %v19614_v10, %v9515_v59  ;;  %v19724_v35 = vsub.f32 %v19620_v31, %v9514_v47  ;;  %v9577_v8 = vsel %vm1937_vm4, %v9545_v43, 0.0  ;;  %v19778_v26 = vld [vmem:[%s21512_s3 + $0x17] ss:$0 sm:$0xff] }
0x1535   :  { %v9495_v63 = vpop.xlane.xlu1 %9494  ;;  %9578 = vadd.xlane.f32.xlu1 %v9577_v8  ;;  %v9492_v46 = vpop.xlane.xlu0 %9491 }
0x1536   :  { %v9517_v61 = vmul.f32 0.015625, %v9495_v63  ;;  %v9516_v9 = vmul.f32 0.015625, %v9492_v46  ;;  %v9547_v44 = vmul.f32 %v19721_v40, %v19721_v40  ;;  %v9546_v50 = vmul.f32 %v19724_v35, %v19724_v35 }
0x1538   :  { %v19732_v51 = vsub.f32 %v19632_v0, %v9517_v61  ;;  %v19735_v10 = vsub.f32 %v19625_v27, %v9516_v9  ;;  %v9583_v31 = vsel %vm1937_vm4, %v9547_v44, 0.0  ;;  %v9580_v52 = vsel %vm1937_vm4, %v9546_v50, 0.0 }
0x1539   :  { %v9501_v6 = vpop.xlane.xlu1 %9500  ;;  %9584 = vadd.xlane.f32.xlu1 %v9583_v31  ;;  %9581 = vadd.xlane.f32.xlu0 %v9580_v52  ;;  %v9498_v58 = vpop.xlane.xlu0 %9497 }
0x153a   :  { %v9519_v41 = vmul.f32 0.015625, %v9501_v6  ;;  %v9518_v22 = vmul.f32 0.015625, %v9498_v58  ;;  %v9549_v29 = vmul.f32 %v19732_v51, %v19732_v51  ;;  %v9548_v0 = vmul.f32 %v19735_v10, %v19735_v10 }
0x153c   :  { %v19744_v30 = vsub.f32 %v19641_v37, %v9519_v41  ;;  %v19747_v27 = vsub.f32 %v19644_v54, %v9518_v22  ;;  %v9589_v24 = vsel %vm1937_vm4, %v9549_v29, 0.0  ;;  %v9586_v60 = vsel %vm1937_vm4, %v9548_v0, 0.0 }
0x153d   :  { %9590 = vadd.xlane.f32.xlu1 %v9589_v24  ;;  %9587 = vadd.xlane.f32.xlu0 %v9586_v60  ;;  %v9504_v15 = vpop.xlane.xlu0 %9503 }
0x153e   :  { %v9520_v32 = vmul.f32 0.015625, %v9504_v15  ;;  %v9551_v16 = vmul.f32 %v19744_v30, %v19744_v30  ;;  %v9550_v1 = vmul.f32 %v19747_v27, %v19747_v27 }
0x1540   :  { %v19756_v37 = vsub.f32 %v19651_v12, %v9520_v32  ;;  %v9595_v54 = vsel %vm1937_vm4, %v9551_v16, 0.0  ;;  %v9592_v17 = vsel %vm1937_vm4, %v9550_v1, 0.0 }
0x1541   :  { %9596 = vadd.xlane.f32.xlu1 %v9595_v54  ;;  %9593 = vadd.xlane.f32.xlu0 %v9592_v17 }
0x1542   :  { %v9552_v25 = vmul.f32 %v19756_v37, %v19756_v37 }
0x1544   :  { %v9598_v36 = vsel %vm1937_vm4, %v9552_v25, 0.0 }
0x1545   :  { %9599 = vadd.xlane.f32.xlu0 %v9598_v36 }
0x157c   :  { %v9555_v12 = vpop.xlane.xlu1 %9554 }
0x157d   :  { %v9601_v4 = vmul.f32 0.015625, %v9555_v12 }
0x157f   :  { %v9617_v20 = vadd.f32 1e-05, %v9601_v4 }
0x1580   :  { %v9561_v3 = vpop.xlane.xlu1 %9560  ;;  %v9558_v57 = vpop.xlane.xlu0 %9557 }
0x1581   :  { %16125 = vrsqrt.f32 %v9617_v20  ;;  %v9603_v48 = vmul.f32 0.015625, %v9561_v3  ;;  %v9602_v7 = vmul.f32 0.015625, %v9558_v57 }
0x1583   :  { %v9619_v56 = vadd.f32 1e-05, %v9603_v48  ;;  %v9618_v53 = vadd.f32 1e-05, %v9602_v7 }
0x1584   :  { %v9564_v34 = vpop.xlane.xlu0 %9563 }
0x1585   :  { %16127 = vrsqrt.f32 %v9619_v56  ;;  %v9604_v23 = vmul.f32 0.015625, %v9564_v34 }
0x1586   :  { %16129 = vrsqrt.f32 %v9618_v53 }
0x1587   :  { %v9620_v42 = vadd.f32 1e-05, %v9604_v23 }
0x1589   :  { %16131 = vrsqrt.f32 %v9620_v42 }
0x158e   :  { %v16126_v39 = vpop.eup %16125 }
0x158f   :  { %v9649_v38 = vmul.f32 %v16126_v39, %v19656_v18 }
0x1591   :  { %v9665_v43 = vmul.f32 %v9649_v38, %v19770_v49 }
0x1592   :  { %v16128_v11 = vpop.eup %16127 }
0x1593   :  { %v16130_v19 = vpop.eup %16129  ;;  %v9651_v59 = vmul.f32 %v16128_v11, %v19664_v28  ;;  %v19784_v61 = vadd.f32 %v9665_v43, %v19778_v26 }
0x1594   :  { %v9650_v47 = vmul.f32 %v16130_v19, %v19661_v5 }
0x1595   :  { %v9667_v63 = vmul.f32 %v9651_v59, %v19770_v49 }
0x1596   :  { %v16132_v8 = vpop.eup %16131  ;;  %v9666_v18 = vmul.f32 %v9650_v47, %v19770_v49 }
0x1597   :  { %v9652_v46 = vmul.f32 %v16132_v8, %v19672_v62  ;;  %v19793_v44 = vadd.f32 %v9667_v63, %v19778_v26 }
0x1598   :  { %v19787_v28 = vadd.f32 %v9666_v18, %v19778_v26 }
0x1599   :  { %v9668_v5 = vmul.f32 %v9652_v46, %v19770_v49 }
0x159a   :  { %v9715_v9 = vpack.c.bf16 %v19787_v28, %v19784_v61 }
0x159b   :  { %v19796_v50 = vadd.f32 %v9668_v5, %v19778_v26 }
0x159c   :  { %15291 = vmatprep.mubr.msk.bf16.mxu0 %vm1937_vm4, %v9715_v9 }
0x159d   :  { %v9716_v62 = vpack.c.bf16 %v19796_v50, %v19793_v44 }
0x159f   :  { %15292 = vmatmul.mubr.msk.bf16.vlgmr.msra.gmra.mxu0 %vm1937_vm4, %v9716_v62 }
0x15b5   :  { %v9567_v31 = vpop.xlane.xlu1 %9566 }
0x15b6   :  { %v9605_v52 = vmul.f32 0.015625, %v9567_v31 }
0x15b8   :  { %v9621_v6 = vadd.f32 1e-05, %v9605_v52 }
0x15b9   :  { %v9573_v58 = vpop.xlane.xlu1 %9572  ;;  %v9570_v41 = vpop.xlane.xlu0 %9569 }
0x15ba   :  { %16133 = vrsqrt.f32 %v9621_v6  ;;  %v9607_v22 = vmul.f32 0.015625, %v9573_v58  ;;  %v9606_v29 = vmul.f32 0.015625, %v9570_v41 }
0x15bc   :  { %v9623_v0 = vadd.f32 1e-05, %v9607_v22  ;;  %v9622_v24 = vadd.f32 1e-05, %v9606_v29 }
0x15bd   :  { %v9576_v60 = vpop.xlane.xlu0 %9575 }
0x15be   :  { %16135 = vrsqrt.f32 %v9623_v0  ;;  %v9608_v15 = vmul.f32 0.015625, %v9576_v60  ;;  %v9579_v32 = vpop.xlane.xlu1 %9578 }
0x15bf   :  { %16137 = vrsqrt.f32 %v9622_v24  ;;  %v9609_v16 = vmul.f32 0.015625, %v9579_v32 }
0x15c0   :  { %v9624_v1 = vadd.f32 1e-05, %v9608_v15 }
0x15c1   :  { %v9625_v54 = vadd.f32 1e-05, %v9609_v16 }
0x15c2   :  { %16139 = vrsqrt.f32 %v9624_v1  ;;  %v9585_v17 = vpop.xlane.xlu1 %9584  ;;  %v9582_v25 = vpop.xlane.xlu0 %9581 }
0x15c3   :  { %16141 = vrsqrt.f32 %v9625_v54  ;;  %v9611_v36 = vmul.f32 0.015625, %v9585_v17  ;;  %v9610_v14 = vmul.f32 0.015625, %v9582_v25 }
0x15c5   :  { %v9627_v12 = vadd.f32 1e-05, %v9611_v36  ;;  %v9626_v4 = vadd.f32 1e-05, %v9610_v14 }
0x15c6   :  { %v9591_v3 = vpop.xlane.xlu1 %9590  ;;  %v9588_v57 = vpop.xlane.xlu0 %9587 }
0x15c7   :  { %v16134_v20 = vpop.eup %16133  ;;  %16143 = vrsqrt.f32 %v9627_v12  ;;  %v9613_v48 = vmul.f32 0.015625, %v9591_v3  ;;  %v9612_v7 = vmul.f32 0.015625, %v9588_v57 }
0x15c8   :  { %16145 = vrsqrt.f32 %v9626_v4  ;;  %v9653_v56 = vmul.f32 %v16134_v20, %v19692_v33 }
0x15c9   :  { %v9629_v53 = vadd.f32 1e-05, %v9613_v48  ;;  %v9628_v34 = vadd.f32 1e-05, %v9612_v7 }
0x15ca   :  { %v9597_v42 = vpop.xlane.xlu1 %9596  ;;  %v9594_v39 = vpop.xlane.xlu0 %9593  ;;  %v9669_v43 = vmul.f32 %v9653_v56, %v19770_v49 }
0x15cb   :  { %v16136_v23 = vpop.eup %16135  ;;  %16147 = vrsqrt.f32 %v9629_v53  ;;  %v9615_v19 = vmul.f32 0.015625, %v9597_v42  ;;  %v9614_v59 = vmul.f32 0.015625, %v9594_v39  ;;  %v15738_v42 = vld [vmem:[%s21509_s2 + $0x2d0] ss:$8 sps:$4 sm:$0xff]  }
0x15cc   :  { %v16138_v38 = vpop.eup %16137  ;;  %v9655_v11 = vmul.f32 %v16136_v23, %v19697_v13  ;;  %16149 = vrsqrt.f32 %v9628_v34  ;;  %v19810_v31 = vadd.f32 %v9669_v43, %v19778_v26  ;;  %15309 = vmatprep.subr.bf16.mxu1 %v15738_v42  ;;  %v9705_v43 = vld [vmem:[%s21512_s3 + $0x20] ss:$0 sm:$0xff] }
0x15cd   :  { %v9654_v47 = vmul.f32 %v16138_v38, %v19700_v2  ;;  %v9631_v8 = vadd.f32 1e-05, %v9615_v19  ;;  %v9630_v18 = vadd.f32 1e-05, %v9614_v59  ;;  %15310 = vmatpush3.bf16.msra.mxu1 %v15738_v42  ;;  %v15740_v19 = vld [vmem:[%s21509_s2 + $0x2b0] ss:$8 sps:$4 sm:$0xff]  }
0x15ce   :  { %v9600_v33 = vpop.xlane.xlu0 %9599  ;;  %v9671_v13 = vmul.f32 %v9655_v11, %v19770_v49  ;;  %v15739_v11 = vld [vmem:[%s21509_s2 + $0x2c0] ss:$8 sps:$4 sm:$0xff]  }
0x15cf   :  { %v16140_v63 = vpop.eup %16139  ;;  %v9670_v46 = vmul.f32 %v9654_v47, %v19770_v49  ;;  %16151 = vrsqrt.f32 %v9631_v8  ;;  %v9616_v9 = vmul.f32 0.015625, %v9600_v33  ;;  %15311 = vmatprep.subr.bf16.mxu1 %v15739_v11 }
0x15d0   :  { %v9656_v5 = vmul.f32 %v16140_v63, %v19708_v45  ;;  %v16142_v62 = vpop.eup %16141  ;;  %16153 = vrsqrt.f32 %v9630_v18  ;;  %v19820_v41 = vadd.f32 %v9671_v13, %v19778_v26 }
0x15d1   :  { %v19813_v2 = vadd.f32 %v9670_v46, %v19778_v26  ;;  %v9632_v52 = vadd.f32 1e-05, %v9616_v9  ;;  %v9657_v58 = vmul.f32 %v16142_v62, %v19713_v55  ;;  %15312 = vmatpush3.bf16.msra.mxu1 %v15739_v11 }
0x15d2   :  { %v9672_v6 = vmul.f32 %v9656_v5, %v19770_v49  ;;  %15313 = vmatprep.subr.bf16.mxu1 %v15740_v19 }
0x15d3   :  { %v9717_v45 = vpack.c.bf16 %v19813_v2, %v19810_v31  ;;  %16155 = vrsqrt.f32 %v9632_v52  ;;  %v9673_v60 = vmul.f32 %v9657_v58, %v19770_v49 }
0x15d4   :  { %v19823_v22 = vadd.f32 %v9672_v6, %v19778_v26  ;;  %v16144_v29 = vpop.eup %16143 }
0x15d5   :  { %15295 = vmatprep.mubr.msk.bf16.mxu0 %vm1937_vm4, %v9717_v45  ;;  %v16146_v0 = vpop.eup %16145  ;;  %v9659_v55 = vmul.f32 %v16144_v29, %v19721_v40  ;;  %v19834_v54 = vadd.f32 %v9673_v60, %v19778_v26  ;;  %15314 = vmatpush3.bf16.msra.mxu1 %v15740_v19 }
0x15d6   :  { %v9718_v24 = vpack.c.bf16 %v19823_v22, %v19820_v41  ;;  %v9658_v15 = vmul.f32 %v16146_v0, %v19724_v35  ;;  %15331 = vmatprep.subr.bf16.mxu1 %v21546_v21 }
0x15d7   :  { %v9675_v36 = vmul.f32 %v9659_v55, %v19770_v49 }
0x15d8   :  { %15296 = vmatmul.mubr.msk.bf16.gmra.mxu0 %vm1937_vm4, %v9718_v24  ;;  %v16148_v32 = vpop.eup %16147  ;;  %v9674_v16 = vmul.f32 %v9658_v15, %v19770_v49 }
0x15d9   :  { %v16150_v1 = vpop.eup %16149  ;;  %v9661_v40 = vmul.f32 %v16148_v32, %v19732_v51 }
0x15da   :  { %v9660_v17 = vmul.f32 %v16150_v1, %v19735_v10  ;;  %v19838_v25 = vadd.f32 %v9674_v16, %v19778_v26  ;;  %v19848_v10 = vadd.f32 %v9675_v36, %v19778_v26 }
0x15db   :  { %v9677_v51 = vmul.f32 %v9661_v40, %v19770_v49 }
0x15dc   :  { %v16152_v14 = vpop.eup %16151  ;;  %v9719_v35 = vpack.c.bf16 %v19838_v25, %v19834_v54  ;;  %v9676_v12 = vmul.f32 %v9660_v17, %v19770_v49 }
0x15dd   :  { %v16154_v4 = vpop.eup %16153  ;;  %v9663_v20 = vmul.f32 %v16152_v14, %v19744_v30  ;;  %v19862_v34 = vadd.f32 %v9677_v51, %v19778_v26 }
0x15de   :  { %15299 = vmatprep.mubr.msk.bf16.mxu0 %vm1937_vm4, %v9719_v35  ;;  %v19851_v3 = vadd.f32 %v9676_v12, %v19778_v26  ;;  %v9662_v57 = vmul.f32 %v16154_v4, %v19747_v27 }
0x15df   :  { %v9679_v53 = vmul.f32 %v9663_v20, %v19770_v49 }
0x15e0   :  { %v16156_v48 = vpop.eup %16155  ;;  %v9720_v7 = vpack.c.bf16 %v19851_v3, %v19848_v10  ;;  %v9678_v56 = vmul.f32 %v9662_v57, %v19770_v49 }
0x15e1   :  { %v9664_v30 = vmul.f32 %v16156_v48, %v19756_v37  ;;  %v19874_v37 = vadd.f32 %v9679_v53, %v19778_v26 }
0x15e2   :  { %15300 = vmatmul.mubr.msk.bf16.gmra.mxu0 %vm1937_vm4, %v9720_v7  ;;  %v19865_v23 = vadd.f32 %v9678_v56, %v19778_v26 }
0x15e3   :  { %v9680_v27 = vmul.f32 %v9664_v30, %v19770_v49 }
0x15e4   :  { %v9721_v39 = vpack.c.bf16 %v19865_v23, %v19862_v34 }
0x15e5   :  { %v19877_v38 = vadd.f32 %v9680_v27, %v19778_v26  ;;  %v21579_v26 = vmov 0  }
0x15e6   :  { %15303 = vmatprep.mubr.msk.bf16.mxu0 %vm1937_vm4, %v9721_v39 }
0x15e7   :  { %v9722_v49 = vpack.c.bf16 %v19877_v38, %v19874_v37 }
0x15ea   :  { %15304 = vmatmul.mubr.msk.bf16.gmra.mxu0 %vm1937_vm4, %v9722_v49 }
0x15eb   :  { %10420 = vmatprep.mubr.bf16.mxu0 %v21579_v26 }
0x165f   :  { %v15293_v59 = vpop.f32.mrf.mxu0 }
0x1660   :  { %v9814_v33 = vadd.f32 %v15293_v59, %v9705_v43 }
0x1661   :  { %v9805_v47 = vpop.f32.mrf.mxu0 }
0x1662   :  { %v9806_v18 = vadd.f32 %v9805_v47, %v9705_v43  ;;  %v9870_v52 = vmax.f32 %v9814_v33, 0.0 }
0x1663   :  { %v15294_v8 = vpop.f32.mrf.mxu0 }
0x1664   :  { %v9817_v63 = vadd.f32 %v15294_v8, %v9705_v43  ;;  %v9868_v13 = vmax.f32 %v9806_v18, 0.0 }
0x1665   :  { %v9808_v46 = vpop.f32.mrf.mxu0 }
0x1666   :  { %v9809_v5 = vadd.f32 %v9808_v46, %v9705_v43  ;;  %v9871_v9 = vmax.f32 %v9817_v63, 0.0 }
0x1668   :  { %v9869_v62 = vmax.f32 %v9809_v5, 0.0  ;;  %v9885_v58 = vpack.c.bf16 %v9871_v9, %v9870_v52 }
0x166a   :  { %v9884_v6 = vpack.c.bf16 %v9869_v62, %v9868_v13 }
0x166c   :  { %15315 = vmatprep.mubr.msk.bf16.mxu1 %vm1937_vm4, %v9884_v6  ;;  %v19907_v6 = vld [vmem:[%s21512_s3 + $0x21] ss:$0 sm:$0xff] }
0x166d   :  { %15316 = vmatmul.mubr.msk.bf16.vlgmr.msra.gmra.mxu1 %vm1937_vm4, %v9885_v58 }
0x1698   :  { %v15297_v45 = vpop.f32.mrf.mxu0 }
0x1699   :  { %v9830_v55 = vadd.f32 %v15297_v45, %v9705_v43 }
0x169a   :  { %v9821_v29 = vpop.f32.mrf.mxu0 }
0x169b   :  { %v9822_v24 = vadd.f32 %v9821_v29, %v9705_v43  ;;  %v9874_v36 = vmax.f32 %v9830_v55, 0.0 }
0x169c   :  { %v15298_v0 = vpop.f32.mrf.mxu0 }
0x169d   :  { %v9833_v60 = vadd.f32 %v15298_v0, %v9705_v43  ;;  %v9872_v1 = vmax.f32 %v9822_v24, 0.0 }
0x169e   :  { %v9824_v15 = vpop.f32.mrf.mxu0 }
0x169f   :  { %v9825_v32 = vadd.f32 %v9824_v15, %v9705_v43  ;;  %v9875_v16 = vmax.f32 %v9833_v60, 0.0 }
0x16a1   :  { %v9873_v17 = vmax.f32 %v9825_v32, 0.0  ;;  %v9887_v35 = vpack.c.bf16 %v9875_v16, %v9874_v36 }
0x16a2   :  { %v15301_v14 = vpop.f32.mrf.mxu0 }
0x16a3   :  { %v9886_v40 = vpack.c.bf16 %v9873_v17, %v9872_v1  ;;  %v9846_v51 = vadd.f32 %v15301_v14, %v9705_v43 }
0x16a4   :  { %v9837_v12 = vpop.f32.mrf.mxu0 }
0x16a5   :  { %15319 = vmatprep.mubr.msk.bf16.mxu1 %vm1937_vm4, %v9886_v40  ;;  %v9838_v20 = vadd.f32 %v9837_v12, %v9705_v43  ;;  %v9878_v42 = vmax.f32 %v9846_v51, 0.0 }
0x16a6   :  { %15320 = vmatmul.mubr.msk.bf16.gmra.mxu1 %vm1937_vm4, %v9887_v35  ;;  %v15302_v4 = vpop.f32.mrf.mxu0 }
0x16a7   :  { %v9849_v57 = vadd.f32 %v15302_v4, %v9705_v43  ;;  %v9876_v53 = vmax.f32 %v9838_v20, 0.0 }
0x16a8   :  { %v9840_v48 = vpop.f32.mrf.mxu0 }
0x16a9   :  { %v9841_v7 = vadd.f32 %v9840_v48, %v9705_v43  ;;  %v9879_v56 = vmax.f32 %v9849_v57, 0.0 }
0x16aa   :  { %v15305_v30 = vpop.f32.mrf.mxu0 }
0x16ab   :  { %v9877_v27 = vmax.f32 %v9841_v7, 0.0  ;;  %v9889_v11 = vpack.c.bf16 %v9879_v56, %v9878_v42  ;;  %v9862_v8 = vadd.f32 %v15305_v30, %v9705_v43 }
0x16ac   :  { %v9853_v39 = vpop.f32.mrf.mxu0 }
0x16ad   :  { %v9888_v49 = vpack.c.bf16 %v9877_v27, %v9876_v53  ;;  %v9854_v59 = vadd.f32 %v9853_v39, %v9705_v43  ;;  %v9882_v9 = vmax.f32 %v9862_v8, 0.0 }
0x16ae   :  { %v15306_v19 = vpop.f32.mrf.mxu0 }
0x16af   :  { %v9865_v47 = vadd.f32 %v15306_v19, %v9705_v43  ;;  %15323 = vmatprep.mubr.msk.bf16.mxu1 %vm1937_vm4, %v9888_v49  ;;  %v9880_v46 = vmax.f32 %v9854_v59, 0.0 }
0x16b0   :  { %v9856_v18 = vpop.f32.mrf.mxu0  ;;  %15324 = vmatmul.mubr.msk.bf16.gmra.mxu1 %vm1937_vm4, %v9889_v11 }
0x16b1   :  { %v9857_v63 = vadd.f32 %v9856_v18, %v9705_v43  ;;  %v9883_v33 = vmax.f32 %v9865_v47, 0.0 }
0x16b3   :  { %v9881_v5 = vmax.f32 %v9857_v63, 0.0  ;;  %v9891_v62 = vpack.c.bf16 %v9883_v33, %v9882_v9 }
0x16b5   :  { %v9890_v13 = vpack.c.bf16 %v9881_v5, %v9880_v46 }
0x16b7   :  { %15327 = vmatprep.mubr.msk.bf16.mxu1 %vm1937_vm4, %v9890_v13 }
0x16b8   :  { %15328 = vmatmul.mubr.msk.bf16.gmra.mxu1 %vm1937_vm4, %v9891_v62 }
0x16b9   :  { %15333 = vmatprep.mubr.msk.bf16.mxu1 %vm16367_vm1, %v21546_v21 }
0x172d   :  { %v15317_v52 = vpop.f32.mrf.mxu1 }
0x172e   :  { %v9983_v58 = vadd.f32 %v15317_v52, %v19907_v6 }
0x172f   :  { %v9974_v43 = vpop.f32.mrf.mxu1 }
0x1730   :  { %v9975_v45 = vadd.f32 %v9974_v43, %v19907_v6  ;;  %v19915_v60 = vadd.f32 %v9983_v58, %v19793_v44 }
0x1731   :  { %v15318_v29 = vpop.f32.mrf.mxu1 }
0x1732   :  { %v19912_v0 = vadd.f32 %v9975_v45, %v19784_v61  ;;  %v9986_v55 = vadd.f32 %v15318_v29, %v19907_v6  ;;  %v10061_v44 = vsel %vm1937_vm4, %v19915_v60, 0.0 }
0x1733   :  { %v9977_v24 = vpop.f32.mrf.mxu1 }
0x1734   :  { %v9978_v15 = vadd.f32 %v9977_v24, %v19907_v6  ;;  %v10055_v32 = vsel %vm1937_vm4, %v19912_v0, 0.0  ;;  %v19925_v1 = vadd.f32 %v9986_v55, %v19796_v50 }
0x1735   :  { %10056 = vadd.xlane.f32.xlu1 %v10055_v32 }
0x1736   :  { %v19922_v16 = vadd.f32 %v9978_v15, %v19787_v28  ;;  %v10064_v17 = vsel %vm1937_vm4, %v19925_v1, 0.0 }
0x1738   :  { %v10058_v61 = vsel %vm1937_vm4, %v19922_v16, 0.0 }
0x1739   :  { %10059 = vadd.xlane.f32.xlu0 %v10058_v61  ;;  %10062 = vadd.xlane.f32.xlu1 %v10061_v44 }
0x173d   :  { %10065 = vadd.xlane.f32.xlu0 %v10064_v17 }
0x1766   :  { %v15321_v36 = vpop.f32.mrf.mxu1 }
0x1767   :  { %v9999_v28 = vadd.f32 %v15321_v36, %v19907_v6 }
0x1768   :  { %v9990_v40 = vpop.f32.mrf.mxu1 }
0x1769   :  { %v9991_v14 = vadd.f32 %v9990_v40, %v19907_v6  ;;  %v19939_v4 = vadd.f32 %v9999_v28, %v19820_v41 }
0x176a   :  { %v15322_v50 = vpop.f32.mrf.mxu1 }
0x176b   :  { %v19936_v35 = vadd.f32 %v9991_v14, %v19810_v31  ;;  %v10002_v20 = vadd.f32 %v15322_v50, %v19907_v6  ;;  %v10073_v41 = vsel %vm1937_vm4, %v19939_v4, 0.0 }
0x176c   :  { %v9993_v12 = vpop.f32.mrf.mxu1 }
0x176d   :  { %v9994_v57 = vadd.f32 %v9993_v12, %v19907_v6  ;;  %v10067_v51 = vsel %vm1937_vm4, %v19936_v35, 0.0  ;;  %v19949_v7 = vadd.f32 %v10002_v20, %v19823_v22 }
0x176e   :  { %10068 = vadd.xlane.f32.xlu1 %v10067_v51  ;;  %v15746_v51 = vld [vmem:[%s21509_s2 + $0x314] ss:$8 sps:$4 sm:$0xff]  }
0x176f   :  { %v19946_v48 = vadd.f32 %v9994_v57, %v19813_v2  ;;  %v10076_v2 = vsel %vm1937_vm4, %v19949_v7, 0.0  ;;  %v15743_v57 = vld [vmem:[%s21509_s2 + $0x324] ss:$8 sps:$4 sm:$0xff]  }
0x1770   :  { %v15325_v31 = vpop.f32.mrf.mxu1  ;;  %10396 = vmatprep.subr.bf16.mxu0 %v15743_v57 }
0x1771   :  { %v10070_v56 = vsel %vm1937_vm4, %v19946_v48, 0.0  ;;  %v10015_v53 = vadd.f32 %v15325_v31, %v19907_v6  ;;  %v15744_v31 = vld [vmem:[%s21509_s2 + $0x310] ss:$8 sps:$4 sm:$0xff]  }
0x1772   :  { %10071 = vadd.xlane.f32.xlu0 %v10070_v56  ;;  %10074 = vadd.xlane.f32.xlu1 %v10073_v41  ;;  %v10006_v30 = vpop.f32.mrf.mxu1  ;;  %v15747_v56 = vld [vmem:[%s21509_s2 + $0x300] ss:$8 sps:$4 sm:$0xff]   ;;  %v15749_v41 = vld [vmem:[%s21509_s2 + $0x304] ss:$8 sps:$4 sm:$0xff]  }
0x1773   :  { %v10007_v27 = vadd.f32 %v10006_v30, %v19907_v6  ;;  %v19964_v11 = vadd.f32 %v10015_v53, %v19848_v10  ;;  %v15752_v30 = vld [vmem:[%s21509_s2 + $0x2f4] ss:$8 sps:$4 sm:$0xff]   ;;  %v15750_v53 = vld [vmem:[%s21509_s2 + $0x2f0] ss:$8 sps:$4 sm:$0xff]  }
0x1774   :  { %v15326_v42 = vpop.f32.mrf.mxu1 }
0x1775   :  { %v19960_v22 = vadd.f32 %v10007_v27, %v19834_v54  ;;  %v10018_v39 = vadd.f32 %v15326_v42, %v19907_v6  ;;  %v10085_v46 = vsel %vm1937_vm4, %v19964_v11, 0.0 }
0x1776   :  { %10077 = vadd.xlane.f32.xlu0 %v10076_v2  ;;  %v10009_v49 = vpop.f32.mrf.mxu1 }
0x1777   :  { %v10010_v19 = vadd.f32 %v10009_v49, %v19907_v6  ;;  %v10079_v59 = vsel %vm1937_vm4, %v19960_v22, 0.0  ;;  %v19973_v54 = vadd.f32 %v10018_v39, %v19851_v3 }
0x1778   :  { %10080 = vadd.xlane.f32.xlu1 %v10079_v59  ;;  %v15329_v47 = vpop.f32.mrf.mxu1 }
0x1779   :  { %v19970_v8 = vadd.f32 %v10010_v19, %v19838_v25  ;;  %v10031_v63 = vadd.f32 %v15329_v47, %v19907_v6  ;;  %v10088_v3 = vsel %vm1937_vm4, %v19973_v54, 0.0 }
0x177a   :  { %v10022_v18 = vpop.f32.mrf.mxu1 }
0x177b   :  { %v10023_v33 = vadd.f32 %v10022_v18, %v19907_v6  ;;  %v10082_v10 = vsel %vm1937_vm4, %v19970_v8, 0.0  ;;  %v19987_v13 = vadd.f32 %v10031_v63, %v19874_v37 }
0x177c   :  { %10083 = vadd.xlane.f32.xlu0 %v10082_v10  ;;  %10086 = vadd.xlane.f32.xlu1 %v10085_v46  ;;  %v15330_v5 = vpop.f32.mrf.mxu1 }
0x177d   :  { %v19982_v25 = vadd.f32 %v10023_v33, %v19862_v34  ;;  %v10034_v62 = vadd.f32 %v15330_v5, %v19907_v6  ;;  %v10097_v37 = vsel %vm1937_vm4, %v19987_v13, 0.0 }
0x177e   :  { %v10025_v9 = vpop.f32.mrf.mxu1 }
0x177f   :  { %v10026_v52 = vadd.f32 %v10025_v9, %v19907_v6  ;;  %v10091_v43 = vsel %vm1937_vm4, %v19982_v25, 0.0  ;;  %v19997_v34 = vadd.f32 %v10034_v62, %v19877_v38 }
0x1780   :  { %10089 = vadd.xlane.f32.xlu0 %v10088_v3  ;;  %10092 = vadd.xlane.f32.xlu1 %v10091_v43 }
0x1781   :  { %v19994_v58 = vadd.f32 %v10026_v52, %v19865_v23  ;;  %v10100_v6 = vsel %vm1937_vm4, %v19997_v34, 0.0 }
0x1783   :  { %v10094_v45 = vsel %vm1937_vm4, %v19994_v58, 0.0 }
0x1784   :  { %10095 = vadd.xlane.f32.xlu0 %v10094_v45  ;;  %10098 = vadd.xlane.f32.xlu1 %v10097_v37 }
0x1788   :  { %10101 = vadd.xlane.f32.xlu0 %v10100_v6 }
0x17be   :  { %v10057_v29 = vpop.xlane.xlu1 %10056 }
0x17bf   :  { %v10103_v24 = vmul.f32 0.015625, %v10057_v29 }
0x17c1   :  { %v20006_v23 = vsub.f32 %v19912_v0, %v10103_v24 }
0x17c2   :  { %v10063_v55 = vpop.xlane.xlu1 %10062  ;;  %v10060_v38 = vpop.xlane.xlu0 %10059 }
0x17c3   :  { %v10105_v15 = vmul.f32 0.015625, %v10063_v55  ;;  %v10104_v32 = vmul.f32 0.015625, %v10060_v38  ;;  %v10135_v61 = vmul.f32 %v20006_v23, %v20006_v23 }
0x17c5   :  { %v20011_v44 = vsub.f32 %v19915_v60, %v10105_v15  ;;  %v20014_v17 = vsub.f32 %v19922_v16, %v10104_v32  ;;  %v10151_v36 = vsel %vm1937_vm4, %v10135_v61, 0.0 }
0x17c6   :  { %10152 = vadd.xlane.f32.xlu1 %v10151_v36  ;;  %v10066_v40 = vpop.xlane.xlu0 %10065 }
0x17c7   :  { %v10106_v28 = vmul.f32 0.015625, %v10066_v40  ;;  %v10137_v0 = vmul.f32 %v20011_v44, %v20011_v44  ;;  %v10136_v14 = vmul.f32 %v20014_v17, %v20014_v17 }
0x17c9   :  { %v20022_v50 = vsub.f32 %v19925_v1, %v10106_v28  ;;  %v10157_v60 = vsel %vm1937_vm4, %v10137_v0, 0.0  ;;  %v10154_v12 = vsel %vm1937_vm4, %v10136_v14, 0.0  ;;  %v15741_v1 = vld [vmem:[%s21509_s2 + $0x320] ss:$8 sps:$4 sm:$0xff]  }
0x17ca   :  { %10158 = vadd.xlane.f32.xlu1 %v10157_v60  ;;  %10155 = vadd.xlane.f32.xlu0 %v10154_v12 }
0x17cb   :  { %v10138_v16 = vmul.f32 %v20022_v50, %v20022_v50  ;;  %10397 = vmatpush1.bf16.msra.mxu0 %v15741_v1 }
0x17cc   :  { %10398 = vmatprep.subr.bf16.mxu0 %v15746_v51 }
0x17cd   :  { %v10160_v20 = vsel %vm1937_vm4, %v10138_v16, 0.0 }
0x17ce   :  { %10161 = vadd.xlane.f32.xlu0 %v10160_v20 }
0x17cf   :  { %10399 = vmatpush1.bf16.msra.mxu0 %v15744_v31 }
0x17d0   :  { %10400 = vmatprep.subr.bf16.mxu0 %v15749_v41 }
0x17d3   :  { %10401 = vmatpush1.bf16.msra.mxu0 %v15747_v56 }
0x17d4   :  { %10402 = vmatprep.subr.bf16.mxu0 %v15752_v30 }
0x17d7   :  { %10403 = vmatpush1.bf16.msra.mxu0 %v15750_v53 }
0x17d8   :  { %15379 = vmatprep.subr.bf16.mxu0 %v21546_v21 }
0x17f7   :  { %v10069_v27 = vpop.xlane.xlu1 %10068 }
0x17f8   :  { %v10107_v42 = vmul.f32 0.015625, %v10069_v27 }
0x17fa   :  { %v20055_v2 = vsub.f32 %v19936_v35, %v10107_v42 }
0x17fb   :  { %v10075_v39 = vpop.xlane.xlu1 %10074  ;;  %v10072_v49 = vpop.xlane.xlu0 %10071 }
0x17fc   :  { %v10109_v19 = vmul.f32 0.015625, %v10075_v39  ;;  %v10108_v59 = vmul.f32 0.015625, %v10072_v49  ;;  %v10139_v47 = vmul.f32 %v20055_v2, %v20055_v2 }
0x17fe   :  { %v20060_v18 = vsub.f32 %v19939_v4, %v10109_v19  ;;  %v20063_v63 = vsub.f32 %v19946_v48, %v10108_v59  ;;  %v10163_v33 = vsel %vm1937_vm4, %v10139_v47, 0.0 }
0x17ff   :  { %10164 = vadd.xlane.f32.xlu1 %v10163_v33  ;;  %v10078_v10 = vpop.xlane.xlu0 %10077 }
0x1800   :  { %v10110_v46 = vmul.f32 0.015625, %v10078_v10  ;;  %v10141_v35 = vmul.f32 %v20060_v18, %v20060_v18  ;;  %v10140_v5 = vmul.f32 %v20063_v63, %v20063_v63 }
0x1801   :  { %v10081_v9 = vpop.xlane.xlu1 %10080 }
0x1802   :  { %v20071_v3 = vsub.f32 %v19949_v7, %v10110_v46  ;;  %v10169_v4 = vsel %vm1937_vm4, %v10141_v35, 0.0  ;;  %v10166_v48 = vsel %vm1937_vm4, %v10140_v5, 0.0  ;;  %v10111_v62 = vmul.f32 0.015625, %v10081_v9 }
0x1803   :  { %10170 = vadd.xlane.f32.xlu1 %v10169_v4  ;;  %10167 = vadd.xlane.f32.xlu0 %v10166_v48 }
0x1804   :  { %v10142_v52 = vmul.f32 %v20071_v3, %v20071_v3  ;;  %v20078_v43 = vsub.f32 %v19960_v22, %v10111_v62 }
0x1805   :  { %v10087_v45 = vpop.xlane.xlu1 %10086  ;;  %v10084_v37 = vpop.xlane.xlu0 %10083 }
0x1806   :  { %v10172_v6 = vsel %vm1937_vm4, %v10142_v52, 0.0  ;;  %v10113_v29 = vmul.f32 0.015625, %v10087_v45  ;;  %v10112_v7 = vmul.f32 0.015625, %v10084_v37  ;;  %v10143_v24 = vmul.f32 %v20078_v43, %v20078_v43  ;;  %v20130_v52 = vld [vmem:[%s21512_s3 + $0x22] ss:$0 sm:$0xff] }
0x1807   :  { %10173 = vadd.xlane.f32.xlu0 %v10172_v6 }
0x1808   :  { %v20084_v55 = vsub.f32 %v19964_v11, %v10113_v29  ;;  %v20087_v38 = vsub.f32 %v19970_v8, %v10112_v7  ;;  %v10175_v15 = vsel %vm1937_vm4, %v10143_v24, 0.0  ;;  %v20137_v7 = vld [vmem:[%s21512_s3 + $0x23] ss:$0 sm:$0xff] }
0x1809   :  { %10176 = vadd.xlane.f32.xlu1 %v10175_v15  ;;  %v10093_v22 = vpop.xlane.xlu1 %10092  ;;  %v10090_v32 = vpop.xlane.xlu0 %10089 }
0x180a   :  { %v10115_v61 = vmul.f32 0.015625, %v10093_v22  ;;  %v10114_v36 = vmul.f32 0.015625, %v10090_v32  ;;  %v10145_v40 = vmul.f32 %v20084_v55, %v20084_v55  ;;  %v10144_v28 = vmul.f32 %v20087_v38, %v20087_v38 }
0x180c   :  { %v20095_v0 = vsub.f32 %v19982_v25, %v10115_v61  ;;  %v20098_v11 = vsub.f32 %v19973_v54, %v10114_v36  ;;  %v10181_v8 = vsel %vm1937_vm4, %v10145_v40, 0.0  ;;  %v10178_v14 = vsel %vm1937_vm4, %v10144_v28, 0.0 }
0x180d   :  { %10182 = vadd.xlane.f32.xlu1 %v10181_v8  ;;  %v10099_v60 = vpop.xlane.xlu1 %10098  ;;  %10179 = vadd.xlane.f32.xlu0 %v10178_v14  ;;  %v10096_v12 = vpop.xlane.xlu0 %10095 }
0x180e   :  { %v10117_v16 = vmul.f32 0.015625, %v10099_v60  ;;  %v10116_v20 = vmul.f32 0.015625, %v10096_v12  ;;  %v10147_v57 = vmul.f32 %v20095_v0, %v20095_v0  ;;  %v10146_v25 = vmul.f32 %v20098_v11, %v20098_v11 }
0x1810   :  { %v20107_v1 = vsub.f32 %v19987_v13, %v10117_v16  ;;  %v20110_v54 = vsub.f32 %v19994_v58, %v10116_v20  ;;  %v10187_v51 = vsel %vm1937_vm4, %v10147_v57, 0.0  ;;  %v10184_v31 = vsel %vm1937_vm4, %v10146_v25, 0.0 }
0x1811   :  { %10188 = vadd.xlane.f32.xlu1 %v10187_v51  ;;  %10185 = vadd.xlane.f32.xlu0 %v10184_v31  ;;  %v10102_v56 = vpop.xlane.xlu0 %10101 }
0x1812   :  { %v10118_v41 = vmul.f32 0.015625, %v10102_v56  ;;  %v10149_v30 = vmul.f32 %v20107_v1, %v20107_v1  ;;  %v10148_v53 = vmul.f32 %v20110_v54, %v20110_v54 }
0x1814   :  { %v20119_v13 = vsub.f32 %v19997_v34, %v10118_v41  ;;  %v10193_v58 = vsel %vm1937_vm4, %v10149_v30, 0.0  ;;  %v10190_v27 = vsel %vm1937_vm4, %v10148_v53, 0.0 }
0x1815   :  { %10194 = vadd.xlane.f32.xlu1 %v10193_v58  ;;  %10191 = vadd.xlane.f32.xlu0 %v10190_v27 }
0x1816   :  { %v10150_v42 = vmul.f32 %v20119_v13, %v20119_v13 }
0x1818   :  { %v10196_v39 = vsel %vm1937_vm4, %v10150_v42, 0.0 }
0x1819   :  { %10197 = vadd.xlane.f32.xlu0 %v10196_v39 }
0x184f   :  { %v10153_v49 = vpop.xlane.xlu1 %10152 }
0x1850   :  { %v10199_v19 = vmul.f32 0.015625, %v10153_v49 }
0x1852   :  { %v10215_v59 = vadd.f32 1e-05, %v10199_v19 }
0x1853   :  { %v10159_v47 = vpop.xlane.xlu1 %10158  ;;  %v10156_v33 = vpop.xlane.xlu0 %10155 }
0x1854   :  { %16157 = vrsqrt.f32 %v10215_v59  ;;  %v10201_v34 = vmul.f32 0.015625, %v10159_v47  ;;  %v10200_v10 = vmul.f32 0.015625, %v10156_v33 }
0x1856   :  { %v10216_v46 = vadd.f32 1e-05, %v10200_v10  ;;  %v10217_v35 = vadd.f32 1e-05, %v10201_v34 }
0x1857   :  { %v10162_v5 = vpop.xlane.xlu0 %10161 }
0x1858   :  { %v10202_v9 = vmul.f32 0.015625, %v10162_v5  ;;  %16159 = vrsqrt.f32 %v10216_v46 }
0x1859   :  { %16161 = vrsqrt.f32 %v10217_v35 }
0x185a   :  { %v10218_v4 = vadd.f32 1e-05, %v10202_v9 }
0x185c   :  { %16163 = vrsqrt.f32 %v10218_v4 }
0x1861   :  { %v16158_v48 = vpop.eup %16157 }
0x1862   :  { %v10247_v62 = vmul.f32 %v16158_v48, %v20006_v23 }
0x1864   :  { %v10263_v37 = vmul.f32 %v10247_v62, %v20130_v52 }
0x1865   :  { %v16160_v45 = vpop.eup %16159 }
0x1866   :  { %v10248_v6 = vmul.f32 %v16160_v45, %v20014_v17  ;;  %v16162_v29 = vpop.eup %16161  ;;  %v20142_v22 = vadd.f32 %v10263_v37, %v20137_v7 }
0x1867   :  { %v10249_v32 = vmul.f32 %v16162_v29, %v20011_v44 }
0x1868   :  { %v10264_v15 = vmul.f32 %v10248_v6, %v20130_v52 }
0x1869   :  { %v16164_v24 = vpop.eup %16163  ;;  %v10265_v40 = vmul.f32 %v10249_v32, %v20130_v52 }
0x186a   :  { %v10250_v23 = vmul.f32 %v16164_v24, %v20022_v50  ;;  %v20146_v61 = vadd.f32 %v10264_v15, %v20137_v7 }
0x186b   :  { %v20158_v28 = vadd.f32 %v10265_v40, %v20137_v7 }
0x186c   :  { %v10303_v17 = vpack.c.bf16 %v20146_v61, %v20142_v22  ;;  %v10266_v36 = vmul.f32 %v10250_v23, %v20130_v52 }
0x186e   :  { %14206 = vmatmul.mubr.msk.bf16.vlgmr.msra.gmra.mxu0 %vm1937_vm4, %v10303_v17  ;;  %v20155_v50 = vadd.f32 %v10266_v36, %v20137_v7 }
0x186f   :  { %10430 = vmatprep.mubr.bf16.mxu0 %v21579_v26 }
0x1870   :  { %v10304_v44 = vpack.c.bf16 %v20155_v50, %v20158_v28 }
0x1876   :  { %14207 = vmatmul.mubr.msk.bf16.gmra.mxu0 %vm1937_vm4, %v10304_v44 }
0x1877   :  { %10440 = vmatprep.mubr.bf16.mxu0 %v21579_v26 }
0x1888   :  { %v10165_v8 = vpop.xlane.xlu1 %10164 }
0x1889   :  { %v10203_v14 = vmul.f32 0.015625, %v10165_v8 }
0x188b   :  { %v10219_v60 = vadd.f32 1e-05, %v10203_v14 }
0x188c   :  { %v10171_v12 = vpop.xlane.xlu1 %10170  ;;  %v10168_v16 = vpop.xlane.xlu0 %10167 }
0x188d   :  { %16165 = vrsqrt.f32 %v10219_v60  ;;  %v10205_v20 = vmul.f32 0.015625, %v10171_v12  ;;  %v10204_v57 = vmul.f32 0.015625, %v10168_v16 }
0x188f   :  { %v10220_v25 = vadd.f32 1e-05, %v10204_v57  ;;  %v10221_v51 = vadd.f32 1e-05, %v10205_v20 }
0x1890   :  { %v10174_v31 = vpop.xlane.xlu0 %10173 }
0x1891   :  { %v10206_v56 = vmul.f32 0.015625, %v10174_v31  ;;  %16167 = vrsqrt.f32 %v10220_v25 }
0x1892   :  { %v10177_v41 = vpop.xlane.xlu1 %10176  ;;  %16169 = vrsqrt.f32 %v10221_v51 }
0x1893   :  { %v10222_v30 = vadd.f32 1e-05, %v10206_v56  ;;  %v10207_v53 = vmul.f32 0.015625, %v10177_v41 }
0x1895   :  { %16171 = vrsqrt.f32 %v10222_v30  ;;  %v10223_v27 = vadd.f32 1e-05, %v10207_v53 }
0x1896   :  { %v10180_v58 = vpop.xlane.xlu0 %10179  ;;  %v10183_v42 = vpop.xlane.xlu1 %10182 }
0x1897   :  { %v10208_v39 = vmul.f32 0.015625, %v10180_v58  ;;  %v10209_v59 = vmul.f32 0.015625, %v10183_v42  ;;  %16173 = vrsqrt.f32 %v10223_v27 }
0x1899   :  { %v10224_v19 = vadd.f32 1e-05, %v10208_v39  ;;  %v10225_v35 = vadd.f32 1e-05, %v10209_v59 }
0x189a   :  { %v16166_v49 = vpop.eup %16165  ;;  %v10186_v47 = vpop.xlane.xlu0 %10185 }
0x189b   :  { %v10251_v33 = vmul.f32 %v16166_v49, %v20055_v2  ;;  %v10210_v34 = vmul.f32 0.015625, %v10186_v47  ;;  %16175 = vrsqrt.f32 %v10224_v19  ;;  %v10189_v62 = vpop.xlane.xlu1 %10188 }
0x189c   :  { %v10211_v24 = vmul.f32 0.015625, %v10189_v62 }
0x189d   :  { %v10226_v10 = vadd.f32 1e-05, %v10210_v34  ;;  %v10267_v4 = vmul.f32 %v10251_v33, %v20130_v52 }
0x189e   :  { %v16168_v46 = vpop.eup %16167  ;;  %v10192_v5 = vpop.xlane.xlu0 %10191  ;;  %v10227_v40 = vadd.f32 1e-05, %v10211_v24 }
0x189f   :  { %v10252_v9 = vmul.f32 %v16168_v46, %v20063_v63  ;;  %v16170_v48 = vpop.eup %16169  ;;  %16177 = vrsqrt.f32 %v10226_v10  ;;  %v10212_v37 = vmul.f32 0.015625, %v10192_v5  ;;  %v20171_v15 = vadd.f32 %v10267_v4, %v20137_v7  ;;  %v10195_v44 = vpop.xlane.xlu1 %10194 }
0x18a0   :  { %16179 = vrsqrt.f32 %v10225_v35  ;;  %v10253_v29 = vmul.f32 %v16170_v48, %v20060_v18  ;;  %v10213_v20 = vmul.f32 0.015625, %v10195_v44 }
0x18a1   :  { %v10268_v6 = vmul.f32 %v10252_v9, %v20130_v52  ;;  %v10228_v23 = vadd.f32 1e-05, %v10212_v37 }
0x18a2   :  { %v16172_v45 = vpop.eup %16171  ;;  %v10198_v36 = vpop.xlane.xlu0 %10197  ;;  %v10229_v30 = vadd.f32 1e-05, %v10213_v20 }
0x18a3   :  { %v10254_v2 = vmul.f32 %v16172_v45, %v20071_v3  ;;  %v20174_v63 = vadd.f32 %v10268_v6, %v20137_v7  ;;  %v10269_v3 = vmul.f32 %v10253_v29, %v20130_v52  ;;  %16181 = vrsqrt.f32 %v10228_v23  ;;  %v21583_v23 = vld [vmem:[#allocation9_spill] sm:$0xff] }
0x18a4   :  { %v16174_v18 = vpop.eup %16173  ;;  %v10214_v14 = vmul.f32 0.015625, %v10198_v36  ;;  %16183 = vrsqrt.f32 %v10227_v40 }
0x18a5   :  { %v10305_v32 = vpack.c.bf16 %v20174_v63, %v20171_v15  ;;  %v10270_v17 = vmul.f32 %v10254_v2, %v20130_v52  ;;  %v10255_v16 = vmul.f32 %v16174_v18, %v20078_v43  ;;  %v20188_v57 = vadd.f32 %v10269_v3, %v20137_v7  ;;  %v21582_v2 = vld [vmem:[#allocation2_spill] sm:$0xff] }
0x18a6   :  { %v10230_v25 = vadd.f32 1e-05, %v10214_v14 }
0x18a7   :  { %14208 = vmatmul.mubr.msk.bf16.gmra.mxu0 %vm1937_vm4, %v10305_v32  ;;  %v20183_v60 = vadd.f32 %v10270_v17, %v20137_v7 }
0x18a8   :  { %10450 = vmatprep.mubr.bf16.mxu0 %v21579_v26  ;;  %v16176_v8 = vpop.eup %16175  ;;  %16185 = vrsqrt.f32 %v10230_v25 }
0x18a9   :  { %v10256_v12 = vmul.f32 %v16176_v8, %v20087_v38  ;;  %v10306_v51 = vpack.c.bf16 %v20183_v60, %v20188_v57  ;;  %v10271_v38 = vmul.f32 %v10255_v16, %v20130_v52  ;;  %16187 = vrsqrt.f32 %v10229_v30 }
0x18ab   :  { %v10272_v31 = vmul.f32 %v10256_v12, %v20130_v52  ;;  %v20202_v27 = vadd.f32 %v10271_v38, %v20137_v7 }
0x18ac   :  { %v16178_v56 = vpop.eup %16177 }
0x18ad   :  { %v16180_v41 = vpop.eup %16179  ;;  %v10258_v43 = vmul.f32 %v16178_v56, %v20098_v11  ;;  %v20198_v53 = vadd.f32 %v10272_v31, %v20137_v7 }
0x18ae   :  { %v10257_v58 = vmul.f32 %v16180_v41, %v20084_v55 }
0x18af   :  { %14209 = vmatmul.mubr.msk.bf16.gmra.mxu0 %vm1937_vm4, %v10306_v51  ;;  %v10307_v42 = vpack.c.bf16 %v20198_v53, %v20202_v27  ;;  %v10274_v39 = vmul.f32 %v10258_v43, %v20130_v52 }
0x18b0   :  { %10460 = vmatprep.mubr.bf16.mxu0 %v21579_v26  ;;  %v16182_v49 = vpop.eup %16181  ;;  %v10273_v11 = vmul.f32 %v10257_v58, %v20130_v52 }
0x18b1   :  { %v16184_v19 = vpop.eup %16183  ;;  %v10260_v59 = vmul.f32 %v16182_v49, %v20110_v54  ;;  %v20212_v55 = vadd.f32 %v10274_v39, %v20137_v7 }
0x18b2   :  { %v10259_v47 = vmul.f32 %v16184_v19, %v20095_v0  ;;  %v20216_v33 = vadd.f32 %v10273_v11, %v20137_v7 }
0x18b3   :  { %v10276_v10 = vmul.f32 %v10260_v59, %v20130_v52 }
0x18b4   :  { %v10308_v34 = vpack.c.bf16 %v20212_v55, %v20216_v33  ;;  %v10275_v35 = vmul.f32 %v10259_v47, %v20130_v52 }
0x18b5   :  { %v16186_v46 = vpop.eup %16185  ;;  %v20226_v0 = vadd.f32 %v10276_v10, %v20137_v7 }
0x18b6   :  { %v16188_v5 = vpop.eup %16187  ;;  %v10262_v54 = vmul.f32 %v16186_v46, %v20119_v13  ;;  %v20230_v4 = vadd.f32 %v10275_v35, %v20137_v7 }
0x18b7   :  { %14210 = vmatmul.mubr.msk.bf16.gmra.mxu0 %vm1937_vm4, %v10307_v42  ;;  %21580 = vst [vmem:[#allocation8_spill] sm:$0xff] %v20226_v0  ;;  %v10261_v9 = vmul.f32 %v16188_v5, %v20107_v1 }
0x18b8   :  { %10470 = vmatprep.mubr.bf16.mxu0 %v21579_v26  ;;  %v10309_v48 = vpack.c.bf16 %v20226_v0, %v20230_v4  ;;  %v10278_v62 = vmul.f32 %v10262_v54, %v20130_v52 }
0x18b9   :  { %v10277_v45 = vmul.f32 %v10261_v9, %v20130_v52  ;;  %v14197_v52 = vld [vmem:[%s21512_s3 + $0x24] ss:$8 sm:$0x3] }
0x18ba   :  { %v20239_v13 = vadd.f32 %v10278_v62, %v20137_v7  ;;  %v20253_v29 = vrot.slane %v14197_v52, %v21582_v2 }
0x18bb   :  { %v20242_v37 = vadd.f32 %v10277_v45, %v20137_v7  ;;  %v20256_v7 = vrot.slane %v14197_v52, %v21583_v23 }
0x18bc   :  { %21581 = vst [vmem:[#allocation6_spill] sm:$0xff] %v20239_v13 }
0x18bd   :  { %v10310_v1 = vpack.c.bf16 %v20239_v13, %v20242_v37 }
0x18bf   :  { %14211 = vmatmul.mubr.msk.bf16.gmra.mxu0 %vm1937_vm4, %v10308_v34 }
0x18c0   :  { %10480 = vmatprep.mubr.bf16.mxu0 %v21579_v26 }
0x18c7   :  { %14212 = vmatmul.mubr.msk.bf16.gmra.mxu0 %vm1937_vm4, %v10309_v48 }
0x18c8   :  { %10490 = vmatprep.mubr.bf16.mxu0 %v21579_v26 }
0x18cf   :  { %14213 = vmatmul.mubr.msk.bf16.gmra.mxu0 %vm1937_vm4, %v10310_v1 }
0x18d0   :  { %15381 = vmatprep.mubr.msk.bf16.mxu0 %vm16367_vm1, %v21546_v21 }
0x192e   :  { %v10422_v6 = vpop.f32.mrf.mxu0 }
0x192f   :  { %v10423_v17 = vadd.f32 %v10422_v6, %v20253_v29 }
0x1930   :  { %v10424_v24 = vpop.f32.mrf.mxu0 }
0x1931   :  { %v10425_v3 = vadd.f32 %v10424_v24, %v20256_v7 }
0x1932   :  { %v10426_v32 = vpop.f32.mrf.mxu0 }
0x1933   :  { %v10427_v36 = vadd.f32 %v10426_v32, %v20253_v29 }
0x1934   :  { %v10428_v40 = vpop.f32.mrf.mxu0 }
0x1935   :  { %v20261_v18 = vpack.c.bf16 %v10427_v36, %v10423_v17  ;;  %v10429_v44 = vadd.f32 %v10428_v40, %v20256_v7 }
0x1936   :  { %v10432_v8 = vpop.f32.mrf.mxu0 }
0x1937   :  { %v20264_v14 = vpack.c.bf16 %v10429_v44, %v10425_v3  ;;  %10518 = vrot.lane.b32.xlu1 %v20261_v18, %s16369_s23  ;;  %v10433_v20 = vadd.f32 %v10432_v8, %v20253_v29 }
0x1938   :  { %v20268_v12 = vpop.f32.mrf.mxu0 }
0x1939   :  { %15380 = vmatpush3.bf16.msra.mxu0 %v20264_v14 }
0x193a   :  { %v10436_v16 = vpop.f32.mrf.mxu0  ;;  %15391 = vmatprep.subr.bf16.mxu0 %v21546_v21 }
0x193b   :  { %v10437_v25 = vadd.f32 %v10436_v16, %v20253_v29 }
0x193c   :  { %v20278_v31 = vpop.f32.mrf.mxu0 }
0x193d   :  { %v20274_v51 = vpack.c.bf16 %v10437_v25, %v10433_v20 }
0x193f   :  { %10568 = vrot.lane.b32.xlu0 %v20274_v51, %s16369_s23 }
0x1967   :  { %v10442_v56 = vpop.f32.mrf.mxu0 }
0x1968   :  { %v10443_v38 = vadd.f32 %v10442_v56, %v20253_v29 }
0x1969   :  { %v10444_v41 = vpop.f32.mrf.mxu0 }
0x196a   :  { %v10445_v42 = vadd.f32 %v10444_v41, %v20256_v7 }
0x196b   :  { %v10446_v30 = vpop.f32.mrf.mxu0 }
0x196c   :  { %v10447_v43 = vadd.f32 %v10446_v30, %v20253_v29 }
0x196d   :  { %v10448_v58 = vpop.f32.mrf.mxu0 }
0x196e   :  { %v20283_v39 = vpack.c.bf16 %v10447_v43, %v10443_v38  ;;  %v10449_v49 = vadd.f32 %v10448_v58, %v20256_v7 }
0x196f   :  { %v10452_v11 = vpop.f32.mrf.mxu0 }
0x1970   :  { %v20286_v19 = vpack.c.bf16 %v10449_v49, %v10445_v42  ;;  %10618 = vrot.lane.b32.xlu1 %v20283_v39, %s16369_s23  ;;  %v10453_v34 = vadd.f32 %v10452_v11, %v20253_v29 }
0x1971   :  { %v10454_v59 = vpop.f32.mrf.mxu0 }
0x1972   :  { %v10455_v35 = vadd.f32 %v10454_v59, %v20256_v7 }
0x1973   :  { %v10456_v47 = vpop.f32.mrf.mxu0 }
0x1974   :  { %v10457_v10 = vadd.f32 %v10456_v47, %v20253_v29 }
0x1975   :  { %v10458_v46 = vpop.f32.mrf.mxu0 }
0x1976   :  { %v20293_v5 = vpack.c.bf16 %v10457_v10, %v10453_v34  ;;  %v10459_v54 = vadd.f32 %v10458_v46, %v20256_v7 }
0x1977   :  { %v10462_v9 = vpop.f32.mrf.mxu0 }
0x1978   :  { %v20296_v48 = vpack.c.bf16 %v10459_v54, %v10455_v35  ;;  %10668 = vrot.lane.b32.xlu1 %v20293_v5, %s16369_s23  ;;  %v10463_v1 = vadd.f32 %v10462_v9, %v20253_v29 }
0x1979   :  { %v10464_v62 = vpop.f32.mrf.mxu0 }
0x197a   :  { %v10465_v24 = vadd.f32 %v10464_v62, %v20256_v7 }
0x197b   :  { %v10466_v45 = vpop.f32.mrf.mxu0 }
0x197c   :  { %v10467_v52 = vadd.f32 %v10466_v45, %v20253_v29 }
0x197d   :  { %v10468_v6 = vpop.f32.mrf.mxu0 }
0x197e   :  { %v20303_v32 = vpack.c.bf16 %v10467_v52, %v10463_v1  ;;  %v10469_v17 = vadd.f32 %v10468_v6, %v20256_v7 }
0x197f   :  { %v10472_v36 = vpop.f32.mrf.mxu0 }
0x1980   :  { %v20306_v40 = vpack.c.bf16 %v10469_v17, %v10465_v24  ;;  %10718 = vrot.lane.b32.xlu0 %v20303_v32, %s16369_s23  ;;  %v10473_v8 = vadd.f32 %v10472_v36, %v20253_v29 }
0x1981   :  { %v10474_v3 = vpop.f32.mrf.mxu0 }
0x1982   :  { %v10475_v25 = vadd.f32 %v10474_v3, %v20256_v7 }
0x1983   :  { %v10476_v44 = vpop.f32.mrf.mxu0 }
0x1984   :  { %v10477_v16 = vadd.f32 %v10476_v44, %v20253_v29 }
0x1985   :  { %v10478_v20 = vpop.f32.mrf.mxu0 }
0x1986   :  { %v20313_v56 = vpack.c.bf16 %v10477_v16, %v10473_v8  ;;  %v10479_v41 = vadd.f32 %v10478_v20, %v20256_v7 }
0x1987   :  { %v10482_v30 = vpop.f32.mrf.mxu0 }
0x1988   :  { %v20316_v38 = vpack.c.bf16 %v10479_v41, %v10475_v25  ;;  %10768 = vrot.lane.b32.xlu1 %v20313_v56, %s16369_s23  ;;  %v10483_v42 = vadd.f32 %v10482_v30, %v20253_v29 }
0x1989   :  { %v10484_v43 = vpop.f32.mrf.mxu0 }
0x198a   :  { %v10485_v59 = vadd.f32 %v10484_v43, %v20256_v7 }
0x198b   :  { %v10486_v58 = vpop.f32.mrf.mxu0 }
0x198c   :  { %v10487_v49 = vadd.f32 %v10486_v58, %v20253_v29  ;;  %v10439_v58 = vadd.f32 %v20278_v31, %v20256_v7 }
0x198d   :  { %v10488_v11 = vpop.f32.mrf.mxu0 }
0x198e   :  { %v20323_v47 = vpack.c.bf16 %v10487_v49, %v10483_v42  ;;  %v10489_v34 = vadd.f32 %v10488_v11, %v20256_v7  ;;  %v10435_v42 = vadd.f32 %v20268_v12, %v20256_v7 }
0x198f   :  { %v10492_v10 = vpop.f32.mrf.mxu0 }
0x1990   :  { %v20326_v46 = vpack.c.bf16 %v10489_v34, %v10485_v59  ;;  %10818 = vrot.lane.b32.xlu0 %v20323_v47, %s16369_s23  ;;  %v10493_v9 = vadd.f32 %v10492_v10, %v20253_v29  ;;  %v20386_v49 = vpack.c.bf16 %v10439_v58, %v10435_v42 }
0x1991   :  { %v20330_v35 = vpop.f32.mrf.mxu0 }
0x1993   :  { %v10496_v54 = vpop.f32.mrf.mxu0 }
0x1994   :  { %v10497_v62 = vadd.f32 %v10496_v54, %v20253_v29 }
0x1996   :  { %v20334_v45 = vpack.c.bf16 %v10497_v62, %v10493_v9 }
0x1998   :  { %10868 = vrot.lane.b32.xlu1 %v20334_v45, %s16369_s23 }
0x19a9   :  { %v10519_v1 = vpop.permute.xlu1 %10518 }
0x19aa   :  { %v10524_v52 = vsel %vm54_vm3, %v10519_v1, 0 }
0x19ab   :  { %15332 = vmatpush3.bf16.xpose.msra.mxu1 %v10524_v52 }
0x19ac   :  { %15337 = vmatprep.subr.bf16.mxu1 %v21546_v21 }
0x19b1   :  { %v10569_v6 = vpop.permute.xlu0 %10568 }
0x19b2   :  { %v10574_v24 = vsel %vm54_vm3, %v10569_v6, 0  ;;  %15334 = vmatmul.mubr.msk.bf16.vlgmr.msra.gmra.mxu1 %vm54_vm3, %v20261_v18 }
0x19b3   :  { %15338 = vmatpush3.bf16.xpose.msra.mxu1 %v10574_v24  ;;  %15339 = vmatprep.mubr.msk.bf16.mxu1 %vm16367_vm1, %v21546_v21 }
0x19b4   :  { %15343 = vmatprep.subr.bf16.mxu1 %v21546_v21 }
0x19ba   :  { %15340 = vmatmul.mubr.msk.bf16.vlgmr.msra.gmra.mxu1 %vm54_vm3, %v20274_v51 }
0x19bb   :  { %15345 = vmatprep.mubr.msk.bf16.mxu1 %vm16367_vm1, %v21546_v21 }
0x19e2   :  { %v10619_v29 = vpop.permute.xlu1 %10618 }
0x19e3   :  { %v10624_v17 = vsel %vm54_vm3, %v10619_v29, 0 }
0x19e4   :  { %15344 = vmatpush3.bf16.xpose.msra.mxu1 %v10624_v17 }
0x19e5   :  { %15349 = vmatprep.subr.bf16.mxu1 %v21546_v21 }
0x19ea   :  { %v10669_v36 = vpop.permute.xlu1 %10668 }
0x19eb   :  { %v10674_v3 = vsel %vm54_vm3, %v10669_v36, 0  ;;  %15346 = vmatmul.mubr.msk.bf16.vlgmr.msra.gmra.mxu1 %vm54_vm3, %v20283_v39 }
0x19ec   :  { %15350 = vmatpush3.bf16.xpose.msra.mxu1 %v10674_v3  ;;  %15351 = vmatprep.mubr.msk.bf16.mxu1 %vm16367_vm1, %v21546_v21 }
0x19ed   :  { %15355 = vmatprep.subr.bf16.mxu1 %v21546_v21 }
0x19f2   :  { %v10719_v44 = vpop.permute.xlu0 %10718 }
0x19f3   :  { %v10724_v8 = vsel %vm54_vm3, %v10719_v44, 0  ;;  %15352 = vmatmul.mubr.msk.bf16.vlgmr.msra.gmra.mxu1 %vm54_vm3, %v20293_v5 }
0x19f4   :  { %15356 = vmatpush3.bf16.xpose.msra.mxu1 %v10724_v8  ;;  %15357 = vmatprep.mubr.msk.bf16.mxu1 %vm16367_vm1, %v21546_v21 }
0x19f5   :  { %15361 = vmatprep.subr.bf16.mxu1 %v21546_v21 }
0x19fa   :  { %v10769_v16 = vpop.permute.xlu1 %10768 }
0x19fb   :  { %v10774_v20 = vsel %vm54_vm3, %v10769_v16, 0  ;;  %15358 = vmatmul.mubr.msk.bf16.vlgmr.msra.gmra.mxu1 %vm54_vm3, %v20303_v32 }
0x19fc   :  { %15362 = vmatpush3.bf16.xpose.msra.mxu1 %v10774_v20  ;;  %15363 = vmatprep.mubr.msk.bf16.mxu1 %vm16367_vm1, %v21546_v21 }
0x19fd   :  { %15367 = vmatprep.subr.bf16.mxu1 %v21546_v21 }
0x1a02   :  { %v10819_v25 = vpop.permute.xlu0 %10818 }
0x1a03   :  { %v10824_v41 = vsel %vm54_vm3, %v10819_v25, 0  ;;  %15364 = vmatmul.mubr.msk.bf16.vlgmr.msra.gmra.mxu1 %vm54_vm3, %v20313_v56 }
0x1a04   :  { %15368 = vmatpush3.bf16.xpose.msra.mxu1 %v10824_v41  ;;  %15369 = vmatprep.mubr.msk.bf16.mxu1 %vm16367_vm1, %v21546_v21 }
0x1a05   :  { %15373 = vmatprep.subr.bf16.mxu1 %v21546_v21 }
0x1a0a   :  { %v10869_v30 = vpop.permute.xlu1 %10868 }
0x1a0b   :  { %v10874_v43 = vsel %vm54_vm3, %v10869_v30, 0  ;;  %15370 = vmatmul.mubr.msk.bf16.vlgmr.msra.gmra.mxu1 %vm54_vm3, %v20323_v47 }
0x1a0c   :  { %15374 = vmatpush3.bf16.xpose.msra.mxu1 %v10874_v43  ;;  %15375 = vmatprep.mubr.msk.bf16.mxu1 %vm16367_vm1, %v21546_v21 }
0x1a0d   :  { %15385 = vmatprep.subr.bf16.mxu1 %v21546_v21 }
0x1a13   :  { %15376 = vmatmul.mubr.msk.bf16.vlgmr.msra.gmra.mxu1 %vm54_vm3, %v20334_v45 }
0x1a14   :  { %15386 = vmatpush3.bf16.msra.mxu1 %v20386_v49  ;;  %15387 = vmatprep.mubr.msk.bf16.mxu1 %vm16367_vm1, %v21546_v21 }
0x1a15   :  { %15397 = vmatprep.subr.bf16.mxu1 %v21546_v21 }
0x1a72   :  { %v20394_v11 = vpop.f32.mrf.mxu1 }
0x1a73   :  { %v10917_v31 = vsel %vm4321_vm6, %v20394_v11, -inf }
0x1a74   :  { %v15335_v59 = vpop.f32.mrf.mxu1  ;;  %10918 = vmax.xlane.f32.xlu0 %v10917_v31 }
0x1a76   :  { %v20398_v12 = vpop.f32.mrf.mxu1 }
0x1a77   :  { %v10920_v34 = vsel %vm4321_vm6, %v20398_v12, -inf }
0x1a78   :  { %v15336_v10 = vpop.f32.mrf.mxu1  ;;  %10921 = vmax.xlane.f32.xlu1 %v10920_v34 }
0x1a7a   :  { %v20402_v54 = vpop.f32.mrf.mxu1 }
0x1a7b   :  { %v10923_v9 = vsel %vm4321_vm6, %v20402_v54, -inf }
0x1a7c   :  { %10924 = vmax.xlane.f32.xlu0 %v10923_v9  ;;  %v15341_v62 = vpop.f32.mrf.mxu1 }
0x1a7e   :  { %v20406_v1 = vpop.f32.mrf.mxu1 }
0x1a7f   :  { %v10926_v52 = vsel %vm4321_vm6, %v20406_v1, -inf }
0x1a80   :  { %10927 = vmax.xlane.f32.xlu0 %v10926_v52  ;;  %v15342_v6 = vpop.f32.mrf.mxu1 }
0x1aab   :  { %v20410_v24 = vpop.f32.mrf.mxu1 }
0x1aac   :  { %v10929_v29 = vsel %vm4321_vm6, %v20410_v24, -inf }
0x1aad   :  { %10930 = vmax.xlane.f32.xlu1 %v10929_v29  ;;  %v15347_v17 = vpop.f32.mrf.mxu1 }
0x1aaf   :  { %v20414_v36 = vpop.f32.mrf.mxu1 }
0x1ab0   :  { %v10932_v3 = vsel %vm4321_vm6, %v20414_v36, -inf }
0x1ab1   :  { %10933 = vmax.xlane.f32.xlu0 %v10932_v3  ;;  %v15348_v44 = vpop.f32.mrf.mxu1 }
0x1ab3   :  { %v20418_v8 = vpop.f32.mrf.mxu1 }
0x1ab4   :  { %v10935_v16 = vsel %vm4321_vm6, %v20418_v8, -inf }
0x1ab5   :  { %10936 = vmax.xlane.f32.xlu1 %v10935_v16  ;;  %v15353_v20 = vpop.f32.mrf.mxu1 }
0x1ab7   :  { %v20422_v25 = vpop.f32.mrf.mxu1 }
0x1ab8   :  { %v10938_v41 = vsel %vm4321_vm6, %v20422_v25, -inf }
0x1ab9   :  { %10939 = vmax.xlane.f32.xlu0 %v10938_v41  ;;  %v15354_v30 = vpop.f32.mrf.mxu1 }
0x1abb   :  { %v20426_v43 = vpop.f32.mrf.mxu1 }
0x1abc   :  { %v10941_v58 = vsel %vm4321_vm6, %v20426_v43, -inf }
0x1abd   :  { %10942 = vmax.xlane.f32.xlu1 %v10941_v58  ;;  %v15359_v42 = vpop.f32.mrf.mxu1 }
0x1abf   :  { %v20430_v31 = vpop.f32.mrf.mxu1 }
0x1ac0   :  { %v10944_v59 = vsel %vm4321_vm6, %v20430_v31, -inf }
0x1ac1   :  { %10945 = vmax.xlane.f32.xlu0 %v10944_v59  ;;  %v15360_v34 = vpop.f32.mrf.mxu1 }
0x1ac3   :  { %v20434_v10 = vpop.f32.mrf.mxu1 }
0x1ac4   :  { %v10947_v9 = vsel %vm4321_vm6, %v20434_v10, -inf }
0x1ac5   :  { %10948 = vmax.xlane.f32.xlu1 %v10947_v9  ;;  %v15365_v62 = vpop.f32.mrf.mxu1 }
0x1ac7   :  { %v20438_v52 = vpop.f32.mrf.mxu1 }
0x1ac8   :  { %v10950_v6 = vsel %vm4321_vm6, %v20438_v52, -inf }
0x1ac9   :  { %10951 = vmax.xlane.f32.xlu0 %v10950_v6  ;;  %v15366_v29 = vpop.f32.mrf.mxu1 }
0x1acb   :  { %v20442_v17 = vpop.f32.mrf.mxu1 }
0x1acc   :  { %v10953_v3 = vsel %vm4321_vm6, %v20442_v17, -inf }
0x1acd   :  { %10954 = vmax.xlane.f32.xlu1 %v10953_v3  ;;  %v15371_v44 = vpop.f32.mrf.mxu1 }
0x1acf   :  { %v20446_v16 = vpop.f32.mrf.mxu1 }
0x1ad0   :  { %v10956_v20 = vsel %vm4321_vm6, %v20446_v16, -inf }
0x1ad1   :  { %10957 = vmax.xlane.f32.xlu0 %v10956_v20  ;;  %v15372_v41 = vpop.f32.mrf.mxu1 }
0x1ad3   :  { %v20450_v30 = vpop.f32.mrf.mxu1 }
0x1ad4   :  { %v10959_v58 = vsel %vm4321_vm6, %v20450_v30, -inf }
0x1ad5   :  { %10960 = vmax.xlane.f32.xlu1 %v10959_v58  ;;  %v15377_v42 = vpop.f32.mrf.mxu1 }
0x1ad7   :  { %v20454_v59 = vpop.f32.mrf.mxu1 }
0x1ad8   :  { %v10962_v34 = vsel %vm4321_vm6, %v20454_v59, -inf }
0x1ad9   :  { %10963 = vmax.xlane.f32.xlu0 %v10962_v34  ;;  %v15378_v9 = vpop.f32.mrf.mxu1 }
0x1ae6   :  { %11467 = vrot.lane.b32.xlu1 %v20261_v18, %s16370_s24 }
0x1afd   :  { %v10919_v62 = vpop.xlane.xlu0 %10918 }
0x1afe   :  { %v10965_v6 = vsub.f32 %v20394_v11, %v10919_v62 }
0x1b00   :  { %v10981_v29 = vmul.f32 1.442695, %v10965_v6 }
0x1b01   :  { %v10922_v3 = vpop.xlane.xlu1 %10921 }
0x1b02   :  { %16189 = vpow2.f32 %v10981_v29  ;;  %v10966_v44 = vsub.f32 %v20398_v12, %v10922_v3 }
0x1b04   :  { %v10983_v20 = vmul.f32 1.442695, %v10966_v44 }
0x1b05   :  { %v10925_v41 = vpop.xlane.xlu0 %10924 }
0x1b06   :  { %16191 = vpow2.f32 %v10983_v20  ;;  %v10967_v58 = vsub.f32 %v20402_v54, %v10925_v41 }
0x1b08   :  { %v10985_v42 = vmul.f32 1.442695, %v10967_v58 }
0x1b09   :  { %v10928_v23 = vpop.xlane.xlu0 %10927 }
0x1b0a   :  { %16193 = vpow2.f32 %v10985_v42  ;;  %v10968_v34 = vsub.f32 %v20406_v1, %v10928_v23 }
0x1b0c   :  { %v10987_v9 = vmul.f32 1.442695, %v10968_v34 }
0x1b0e   :  { %16195 = vpow2.f32 %v10987_v9 }
0x1b0f   :  { %v20464_v2 = vpop.eup %16189 }
0x1b10   :  { %v11013_v11 = vsel %vm4321_vm6, %v20464_v2, 0.0 }
0x1b11   :  { %11014 = vadd.xlane.f32.xlu1 %v11013_v11 }
0x1b13   :  { %v20468_v62 = vpop.eup %16191 }
0x1b14   :  { %v11016_v12 = vsel %vm4321_vm6, %v20468_v62, 0.0 }
0x1b15   :  { %11017 = vadd.xlane.f32.xlu0 %v11016_v12 }
0x1b17   :  { %v20472_v54 = vpop.eup %16193 }
0x1b18   :  { %v11019_v6 = vsel %vm4321_vm6, %v20472_v54, 0.0 }
0x1b19   :  { %11020 = vadd.xlane.f32.xlu1 %v11019_v6 }
0x1b1b   :  { %v20476_v23 = vpop.eup %16195 }
0x1b1c   :  { %v11022_v1 = vsel %vm4321_vm6, %v20476_v23, 0.0 }
0x1b1d   :  { %11023 = vadd.xlane.f32.xlu0 %v11022_v1 }
0x1b36   :  { %v10931_v29 = vpop.xlane.xlu1 %10930 }
0x1b37   :  { %v10969_v3 = vsub.f32 %v20410_v24, %v10931_v29 }
0x1b39   :  { %v10989_v44 = vmul.f32 1.442695, %v10969_v3 }
0x1b3a   :  { %v10934_v20 = vpop.xlane.xlu0 %10933 }
0x1b3b   :  { %16197 = vpow2.f32 %v10989_v44  ;;  %v10970_v41 = vsub.f32 %v20414_v36, %v10934_v20 }
0x1b3d   :  { %v10991_v58 = vmul.f32 1.442695, %v10970_v41 }
0x1b3e   :  { %v10937_v42 = vpop.xlane.xlu1 %10936 }
0x1b3f   :  { %16199 = vpow2.f32 %v10991_v58  ;;  %v10971_v34 = vsub.f32 %v20418_v8, %v10937_v42 }
0x1b41   :  { %v10993_v9 = vmul.f32 1.442695, %v10971_v34 }
0x1b42   :  { %v10940_v11 = vpop.xlane.xlu0 %10939 }
0x1b43   :  { %16201 = vpow2.f32 %v10993_v9  ;;  %v10972_v12 = vsub.f32 %v20422_v25, %v10940_v11 }
0x1b45   :  { %v10995_v6 = vmul.f32 1.442695, %v10972_v12 }
0x1b46   :  { %v10943_v1 = vpop.xlane.xlu1 %10942 }
0x1b47   :  { %16203 = vpow2.f32 %v10995_v6  ;;  %v10973_v24 = vsub.f32 %v20426_v43, %v10943_v1 }
0x1b48   :  { %v20485_v29 = vpop.eup %16197 }
0x1b49   :  { %v10997_v3 = vmul.f32 1.442695, %v10973_v24  ;;  %v11025_v36 = vsel %vm4321_vm6, %v20485_v29, 0.0 }
0x1b4a   :  { %11026 = vadd.xlane.f32.xlu1 %v11025_v36  ;;  %v10946_v44 = vpop.xlane.xlu0 %10945 }
0x1b4b   :  { %16205 = vpow2.f32 %v10997_v3  ;;  %v10974_v8 = vsub.f32 %v20430_v31, %v10946_v44 }
0x1b4c   :  { %v20490_v20 = vpop.eup %16199 }
0x1b4d   :  { %v10999_v41 = vmul.f32 1.442695, %v10974_v8  ;;  %v11028_v25 = vsel %vm4321_vm6, %v20490_v20, 0.0 }
0x1b4e   :  { %v10949_v58 = vpop.xlane.xlu1 %10948  ;;  %11029 = vadd.xlane.f32.xlu0 %v11028_v25 }
0x1b4f   :  { %16207 = vpow2.f32 %v10999_v41  ;;  %v10975_v43 = vsub.f32 %v20434_v10, %v10949_v58 }
0x1b50   :  { %v20495_v42 = vpop.eup %16201 }
0x1b51   :  { %v11001_v34 = vmul.f32 1.442695, %v10975_v43  ;;  %v11031_v9 = vsel %vm4321_vm6, %v20495_v42, 0.0 }
0x1b52   :  { %11032 = vadd.xlane.f32.xlu1 %v11031_v9  ;;  %v10952_v11 = vpop.xlane.xlu0 %10951 }
0x1b53   :  { %16209 = vpow2.f32 %v11001_v34  ;;  %v10976_v31 = vsub.f32 %v20438_v52, %v10952_v11 }
0x1b54   :  { %v20500_v12 = vpop.eup %16203 }
0x1b55   :  { %v11003_v6 = vmul.f32 1.442695, %v10976_v31  ;;  %v11034_v1 = vsel %vm4321_vm6, %v20500_v12, 0.0 }
0x1b56   :  { %v10955_v24 = vpop.xlane.xlu1 %10954  ;;  %11035 = vadd.xlane.f32.xlu0 %v11034_v1 }
0x1b57   :  { %16211 = vpow2.f32 %v11003_v6  ;;  %v10977_v10 = vsub.f32 %v20442_v17, %v10955_v24 }
0x1b58   :  { %v20505_v3 = vpop.eup %16205 }
0x1b59   :  { %v11005_v36 = vmul.f32 1.442695, %v10977_v10  ;;  %v11037_v44 = vsel %vm4321_vm6, %v20505_v3, 0.0 }
0x1b5a   :  { %11038 = vadd.xlane.f32.xlu1 %v11037_v44  ;;  %v10958_v8 = vpop.xlane.xlu0 %10957 }
0x1b5b   :  { %16213 = vpow2.f32 %v11005_v36  ;;  %v10978_v52 = vsub.f32 %v20446_v16, %v10958_v8 }
0x1b5c   :  { %v20510_v41 = vpop.eup %16207 }
0x1b5d   :  { %v11007_v25 = vmul.f32 1.442695, %v10978_v52  ;;  %v11040_v58 = vsel %vm4321_vm6, %v20510_v41, 0.0 }
0x1b5e   :  { %v10961_v43 = vpop.xlane.xlu1 %10960  ;;  %11041 = vadd.xlane.f32.xlu0 %v11040_v58 }
0x1b5f   :  { %16215 = vpow2.f32 %v11007_v25  ;;  %v10979_v17 = vsub.f32 %v20450_v30, %v10961_v43 }
0x1b60   :  { %v20515_v34 = vpop.eup %16209 }
0x1b61   :  { %v11009_v9 = vmul.f32 1.442695, %v10979_v17  ;;  %v11043_v11 = vsel %vm4321_vm6, %v20515_v34, 0.0 }
0x1b62   :  { %11044 = vadd.xlane.f32.xlu1 %v11043_v11  ;;  %v10964_v31 = vpop.xlane.xlu0 %10963 }
0x1b63   :  { %16217 = vpow2.f32 %v11009_v9  ;;  %v10980_v16 = vsub.f32 %v20454_v59, %v10964_v31 }
0x1b64   :  { %v20520_v6 = vpop.eup %16211 }
0x1b65   :  { %v11011_v1 = vmul.f32 1.442695, %v10980_v16  ;;  %v11046_v24 = vsel %vm4321_vm6, %v20520_v6, 0.0 }
0x1b66   :  { %11047 = vadd.xlane.f32.xlu0 %v11046_v24 }
0x1b67   :  { %16219 = vpow2.f32 %v11011_v1 }
0x1b68   :  { %v20524_v30 = vpop.eup %16213 }
0x1b69   :  { %v11049_v10 = vsel %vm4321_vm6, %v20524_v30, 0.0 }
0x1b6a   :  { %11050 = vadd.xlane.f32.xlu1 %v11049_v10 }
0x1b6c   :  { %v20528_v36 = vpop.eup %16215 }
0x1b6d   :  { %v11052_v44 = vsel %vm4321_vm6, %v20528_v36, 0.0 }
0x1b6e   :  { %11053 = vadd.xlane.f32.xlu0 %v11052_v44 }
0x1b70   :  { %v20532_v59 = vpop.eup %16217 }
0x1b71   :  { %v11055_v8 = vsel %vm4321_vm6, %v20532_v59, 0.0 }
0x1b72   :  { %11056 = vadd.xlane.f32.xlu1 %v11055_v8 }
0x1b74   :  { %v20536_v52 = vpop.eup %16219 }
0x1b75   :  { %v11058_v25 = vsel %vm4321_vm6, %v20536_v52, 0.0 }
0x1b76   :  { %11059 = vadd.xlane.f32.xlu0 %v11058_v25 }
0x1b83   :  { %11465 = vrot.lane.b32.xlu1 %v20261_v18, %s16371_s25  ;;  %v20556_v18 = vpop.permute.xlu1 %11467 }
0x1b87   :  { %11569 = vrot.lane.b32.xlu1 %v20283_v39, %s16370_s24 }
0x1b8b   :  { %11620 = vrot.lane.b32.xlu1 %v20293_v5, %s16370_s24 }
0x1b8c   :  { %11518 = vrot.lane.b32.xlu0 %v20274_v51, %s16370_s24 }
0x1b8f   :  { %11671 = vrot.lane.b32.xlu1 %v20303_v32, %s16370_s24 }
0x1b90   :  { %11516 = vrot.lane.b32.xlu0 %v20274_v51, %s16371_s25 }
0x1b93   :  { %11722 = vrot.lane.b32.xlu1 %v20313_v56, %s16370_s24 }
0x1b94   :  { %11567 = vrot.lane.b32.xlu0 %v20283_v39, %s16371_s25 }
0x1b97   :  { %11773 = vrot.lane.b32.xlu1 %v20323_v47, %s16370_s24 }
0x1b98   :  { %11618 = vrot.lane.b32.xlu0 %v20293_v5, %s16371_s25 }
0x1b9a   :  { %v11015_v58 = vpop.xlane.xlu1 %11014 }
0x1b9b   :  { %11824 = vrot.lane.b32.xlu1 %v20334_v45, %s16370_s24  ;;  %16221 = vrcp.f32 %v11015_v58 }
0x1b9c   :  { %11669 = vrot.lane.b32.xlu0 %v20303_v32, %s16371_s25 }
0x1b9e   :  { %v11018_v51 = vpop.xlane.xlu0 %11017 }
0x1b9f   :  { %16223 = vrcp.f32 %v11018_v51  ;;  %11822 = vrot.lane.b32.xlu1 %v20334_v45, %s16371_s25 }
0x1ba0   :  { %11720 = vrot.lane.b32.xlu0 %v20313_v56, %s16371_s25 }
0x1ba2   :  { %v11021_v39 = vpop.xlane.xlu1 %11020 }
0x1ba3   :  { %12058 = vrot.lane.b32.xlu1 %v20264_v14, %s16371_s25  ;;  %16225 = vrcp.f32 %v11021_v39 }
0x1ba4   :  { %11771 = vrot.lane.b32.xlu0 %v20323_v47, %s16371_s25 }
0x1ba6   :  { %v11024_v5 = vpop.xlane.xlu0 %11023 }
0x1ba7   :  { %16227 = vrcp.f32 %v11024_v5 }
0x1ba8   :  { %v16222_v32 = vpop.eup %16221 }
0x1ba9   :  { %v11077_v17 = vmul.f32 %v16222_v32, %v20464_v2 }
0x1bac   :  { %v16224_v43 = vpop.eup %16223 }
0x1bad   :  { %v11078_v9 = vmul.f32 %v16224_v43, %v20468_v62 }
0x1baf   :  { %v11093_v45 = vpack.c.bf16 %v11078_v9, %v11077_v17 }
0x1bb0   :  { %v16226_v56 = vpop.eup %16225 }
0x1bb1   :  { %15382 = vmatmul.mubr.msk.bf16.vlgmr.msra.gmra.mxu0 %vm4321_vm6, %v11093_v45  ;;  %v11079_v47 = vmul.f32 %v16226_v56, %v20472_v54 }
0x1bb2   :  { %15392 = vmatpush3.bf16.msra.mxu0 %v20286_v19  ;;  %15393 = vmatprep.mubr.msk.bf16.mxu0 %vm16367_vm1, %v21546_v21 }
0x1bb3   :  { %15403 = vmatprep.subr.bf16.mxu0 %v21546_v21 }
0x1bb4   :  { %v16228_v14 = vpop.eup %16227 }
0x1bb5   :  { %v11080_v11 = vmul.f32 %v16228_v14, %v20476_v23  ;;  %v10498_v14 = vpop.f32.mrf.mxu0 }
0x1bb7   :  { %v11094_v31 = vpack.c.bf16 %v11080_v11, %v11079_v47 }
0x1bb9   :  { %15388 = vmatmul.mubr.msk.bf16.vlgmr.msra.gmra.mxu1 %vm4321_vm6, %v11094_v31 }
0x1bba   :  { %15398 = vmatpush3.bf16.msra.mxu1 %v20296_v48  ;;  %15399 = vmatprep.mubr.msk.bf16.mxu1 %vm16367_vm1, %v21546_v21 }
0x1bbb   :  { %15409 = vmatprep.subr.bf16.mxu1 %v21546_v21 }
0x1bd3   :  { %v11027_v2 = vpop.xlane.xlu1 %11026 }
0x1bd4   :  { %16229 = vrcp.f32 %v11027_v2 }
0x1bd7   :  { %v11030_v62 = vpop.xlane.xlu0 %11029 }
0x1bd8   :  { %16231 = vrcp.f32 %v11030_v62  ;;  %v10495_v62 = vadd.f32 %v20330_v35, %v20256_v7 }
0x1bdb   :  { %v11033_v16 = vpop.xlane.xlu1 %11032 }
0x1bdc   :  { %16233 = vrcp.f32 %v11033_v16 }
0x1bdf   :  { %v11036_v1 = vpop.xlane.xlu0 %11035 }
0x1be0   :  { %16235 = vrcp.f32 %v11036_v1 }
0x1be1   :  { %v16230_v54 = vpop.eup %16229 }
0x1be2   :  { %v11081_v10 = vmul.f32 %v16230_v54, %v20485_v29 }
0x1be3   :  { %v11039_v23 = vpop.xlane.xlu1 %11038 }
0x1be4   :  { %16237 = vrcp.f32 %v11039_v23 }
0x1be5   :  { %v16232_v24 = vpop.eup %16231 }
0x1be6   :  { %v11082_v44 = vmul.f32 %v16232_v24, %v20490_v20 }
0x1be7   :  { %v11042_v8 = vpop.xlane.xlu0 %11041 }
0x1be8   :  { %16239 = vrcp.f32 %v11042_v8  ;;  %v11095_v25 = vpack.c.bf16 %v11082_v44, %v11081_v10 }
0x1be9   :  { %v16234_v58 = vpop.eup %16233 }
0x1bea   :  { %15394 = vmatmul.mubr.msk.bf16.vlgmr.msra.gmra.mxu0 %vm4321_vm6, %v11095_v25  ;;  %v11083_v29 = vmul.f32 %v16234_v58, %v20495_v42  ;;  %v11473_v25 = vsel %vm54_vm3, %v20556_v18, 0 }
0x1beb   :  { %15404 = vmatpush3.bf16.msra.mxu0 %v20306_v40  ;;  %v11045_v51 = vpop.xlane.xlu1 %11044  ;;  %15405 = vmatprep.mubr.msk.bf16.mxu0 %vm16367_vm1, %v21546_v21 }
0x1bec   :  { %15415 = vmatprep.subr.bf16.mxu0 %v21546_v21  ;;  %16241 = vrcp.f32 %v11045_v51 }
0x1bed   :  { %v16236_v39 = vpop.eup %16235 }
0x1bee   :  { %v11084_v20 = vmul.f32 %v16236_v39, %v20500_v12 }
0x1bef   :  { %v11048_v5 = vpop.xlane.xlu0 %11047 }
0x1bf0   :  { %16243 = vrcp.f32 %v11048_v5  ;;  %v11096_v32 = vpack.c.bf16 %v11084_v20, %v11083_v29 }
0x1bf1   :  { %v16238_v43 = vpop.eup %16237 }
0x1bf2   :  { %15400 = vmatmul.mubr.msk.bf16.vlgmr.msra.gmra.mxu1 %vm4321_vm6, %v11096_v32  ;;  %v11085_v42 = vmul.f32 %v16238_v43, %v20505_v3  ;;  %v10499_v3 = vadd.f32 %v10498_v14, %v20256_v7 }
0x1bf3   :  { %15410 = vmatpush3.bf16.msra.mxu1 %v20316_v38  ;;  %v11051_v17 = vpop.xlane.xlu1 %11050  ;;  %15411 = vmatprep.mubr.msk.bf16.mxu1 %vm16367_vm1, %v21546_v21 }
0x1bf4   :  { %15421 = vmatprep.subr.bf16.mxu1 %v21546_v21  ;;  %16245 = vrcp.f32 %v11051_v17  ;;  %v20614_v23 = vpack.c.bf16 %v10499_v3, %v10495_v62 }
0x1bf5   :  { %v16240_v9 = vpop.eup %16239 }
0x1bf6   :  { %v11086_v12 = vmul.f32 %v16240_v9, %v20510_v41 }
0x1bf7   :  { %v11054_v45 = vpop.xlane.xlu0 %11053 }
0x1bf8   :  { %16247 = vrcp.f32 %v11054_v45  ;;  %v11097_v56 = vpack.c.bf16 %v11086_v12, %v11085_v42 }
0x1bf9   :  { %v16242_v47 = vpop.eup %16241 }
0x1bfa   :  { %15406 = vmatmul.mubr.msk.bf16.vlgmr.msra.gmra.mxu0 %vm4321_vm6, %v11097_v56  ;;  %v11087_v41 = vmul.f32 %v16242_v47, %v20515_v34 }
0x1bfb   :  { %15416 = vmatpush3.bf16.msra.mxu0 %v20326_v46  ;;  %v11057_v11 = vpop.xlane.xlu1 %11056  ;;  %15417 = vmatprep.mubr.msk.bf16.mxu0 %vm16367_vm1, %v21546_v21 }
0x1bfc   :  { %15427 = vmatprep.subr.bf16.mxu0 %v21546_v21  ;;  %16249 = vrcp.f32 %v11057_v11 }
0x1bfd   :  { %v16244_v31 = vpop.eup %16243 }
0x1bfe   :  { %v11088_v2 = vmul.f32 %v16244_v31, %v20520_v6 }
0x1bff   :  { %v11466_v16 = vpop.permute.xlu1 %11465  ;;  %v11060_v1 = vpop.xlane.xlu0 %11059 }
0x1c00   :  { %16251 = vrcp.f32 %v11060_v1  ;;  %v11098_v54 = vpack.c.bf16 %v11088_v2, %v11087_v41 }
0x1c01   :  { %v16246_v24 = vpop.eup %16245 }
0x1c02   :  { %15412 = vmatmul.mubr.msk.bf16.vlgmr.msra.gmra.mxu1 %vm4321_vm6, %v11098_v54  ;;  %v11089_v7 = vmul.f32 %v16246_v24, %v20524_v30 }
0x1c03   :  { %15422 = vmatpush3.bf16.msra.mxu1 %v20614_v23  ;;  %v11570_v10 = vpop.permute.xlu1 %11569  ;;  %15423 = vmatprep.mubr.msk.bf16.mxu1 %vm16367_vm1, %v21546_v21  ;;  %v11519_v6 = vpop.permute.xlu0 %11518 }
0x1c04   :  { %15433 = vmatprep.subr.bf16.mxu1 %v21546_v21  ;;  %v11575_v18 = vsel %vm54_vm3, %v11570_v10, 0  ;;  %v11524_v32 = vsel %vm54_vm3, %v11519_v6, 0 }
0x1c05   :  { %v16248_v34 = vpop.eup %16247 }
0x1c06   :  { %v11090_v35 = vmul.f32 %v16248_v34, %v20528_v36 }
0x1c07   :  { %v11621_v44 = vpop.permute.xlu1 %11620  ;;  %v11517_v51 = vpop.permute.xlu0 %11516 }
0x1c08   :  { %v11099_v8 = vpack.c.bf16 %v11090_v35, %v11089_v7  ;;  %v11626_v17 = vsel %vm54_vm3, %v11621_v44, 0 }
0x1c09   :  { %v16250_v58 = vpop.eup %16249 }
0x1c0a   :  { %15418 = vmatmul.mubr.msk.bf16.vlgmr.msra.gmra.mxu0 %vm4321_vm6, %v11099_v8  ;;  %v11091_v30 = vmul.f32 %v16250_v58, %v20532_v59 }
0x1c0b   :  { %15428 = vmatpush3.bf16.xpose.msra.mxu0 %v11473_v25  ;;  %15429 = vmatprep.mubr.msk.bf16.mxu0 %vm16367_vm1, %v21546_v21  ;;  %v11672_v39 = vpop.permute.xlu1 %11671  ;;  %v11568_v5 = vpop.permute.xlu0 %11567 }
0x1c0c   :  { %15439 = vmatprep.subr.bf16.mxu0 %v21546_v21  ;;  %v11677_v9 = vsel %vm54_vm3, %v11672_v39, 0 }
0x1c0d   :  { %v16252_v29 = vpop.eup %16251 }
0x1c0e   :  { %v11092_v36 = vmul.f32 %v16252_v29, %v20536_v52 }
0x1c0f   :  { %v11723_v43 = vpop.permute.xlu1 %11722  ;;  %v11619_v59 = vpop.permute.xlu0 %11618 }
0x1c10   :  { %v11100_v20 = vpack.c.bf16 %v11092_v36, %v11091_v30  ;;  %v11728_v45 = vsel %vm54_vm3, %v11723_v43, 0 }
0x1c12   :  { %15424 = vmatmul.mubr.msk.bf16.vlgmr.msra.gmra.mxu1 %vm4321_vm6, %v11100_v20  ;;  %15430 = vmatmul.mubr.msk.bf16.vlgmr.msra.gmra.mxu0 %vm54_vm3, %v11466_v16 }
0x1c13   :  { %15434 = vmatpush3.bf16.xpose.msra.mxu1 %v11524_v32  ;;  %15440 = vmatpush3.bf16.xpose.msra.mxu0 %v11575_v18  ;;  %v11774_v52 = vpop.permute.xlu1 %11773  ;;  %v11670_v42 = vpop.permute.xlu0 %11669 }
0x1c14   :  { %15435 = vmatprep.mubr.msk.bf16.mxu1 %vm16367_vm1, %v21546_v21  ;;  %15441 = vmatprep.mubr.msk.bf16.mxu0 %vm16367_vm1, %v21546_v21  ;;  %v11779_v56 = vsel %vm54_vm3, %v11774_v52, 0 }
0x1c15   :  { %15445 = vmatprep.subr.bf16.mxu1 %v21546_v21  ;;  %15451 = vmatprep.subr.bf16.mxu0 %v21546_v21 }
0x1c17   :  { %v11825_v12 = vpop.permute.xlu1 %11824  ;;  %v11721_v14 = vpop.permute.xlu0 %11720 }
0x1c18   :  { %v11830_v31 = vsel %vm54_vm3, %v11825_v12, 0 }
0x1c1a   :  { %15436 = vmatmul.mubr.msk.bf16.vlgmr.msra.gmra.mxu1 %vm54_vm3, %v11517_v51  ;;  %15442 = vmatmul.mubr.msk.bf16.vlgmr.msra.gmra.mxu0 %vm54_vm3, %v11568_v5 }
0x1c1b   :  { %15446 = vmatpush3.bf16.xpose.msra.mxu1 %v11626_v17  ;;  %15452 = vmatpush3.bf16.xpose.msra.mxu0 %v11677_v9  ;;  %v11823_v47 = vpop.permute.xlu1 %11822  ;;  %v11772_v11 = vpop.permute.xlu0 %11771 }
0x1c1c   :  { %15447 = vmatprep.mubr.msk.bf16.mxu1 %vm16367_vm1, %v21546_v21  ;;  %15453 = vmatprep.mubr.msk.bf16.mxu0 %vm16367_vm1, %v21546_v21 }
0x1c1d   :  { %15457 = vmatprep.subr.bf16.mxu1 %v21546_v21  ;;  %15463 = vmatprep.subr.bf16.mxu0 %v21546_v21 }
0x1c1f   :  { %v12059_v3 = vpop.permute.xlu1 %12058 }
0x1c22   :  { %15448 = vmatmul.mubr.msk.bf16.vlgmr.msra.gmra.mxu1 %vm54_vm3, %v11619_v59  ;;  %15454 = vmatmul.mubr.msk.bf16.vlgmr.msra.gmra.mxu0 %vm54_vm3, %v11670_v42 }
0x1c23   :  { %15458 = vmatpush3.bf16.xpose.msra.mxu1 %v11728_v45  ;;  %15464 = vmatpush3.bf16.xpose.msra.mxu0 %v11779_v56 }
0x1c24   :  { %15459 = vmatprep.mubr.msk.bf16.mxu1 %vm16367_vm1, %v21546_v21  ;;  %15465 = vmatprep.mubr.msk.bf16.mxu0 %vm16367_vm1, %v21546_v21 }
0x1c25   :  { %15469 = vmatprep.subr.bf16.mxu1 %v21546_v21  ;;  %15475 = vmatprep.subr.bf16.mxu0 %v21546_v21 }
0x1c2a   :  { %15460 = vmatmul.mubr.msk.bf16.vlgmr.msra.gmra.mxu1 %vm54_vm3, %v11721_v14  ;;  %15466 = vmatmul.mubr.msk.bf16.vlgmr.msra.gmra.mxu0 %vm54_vm3, %v11772_v11 }
0x1c2b   :  { %15470 = vmatpush3.bf16.xpose.msra.mxu1 %v11830_v31  ;;  %15476 = vmatpush3.bf16.msra.mxu0 %v12059_v3 }
0x1c2c   :  { %15471 = vmatprep.mubr.msk.bf16.mxu1 %vm16367_vm1, %v21546_v21  ;;  %15481 = vmatprep.subr.bf16.mxu1 %v21546_v21 }
0x1c2d   :  { %15477 = vmatprep.mubr.msk.bf16.mxu0 %vm16367_vm1, %v21546_v21  ;;  %15487 = vmatprep.subr.bf16.mxu0 %v21546_v21 }
0x1c32   :  { %15472 = vmatmul.mubr.msk.bf16.vlgmr.msra.gmra.mxu1 %vm54_vm3, %v11823_v47 }
0x1c33   :  { %15483 = vmatprep.mubr.msk.bf16.mxu1 %vm16367_vm1, %v21546_v21 }
0x1c71   :  { %v20673_v41 = vpop.f32.mrf.mxu0 }
0x1c73   :  { %v15383_v2 = vpop.f32.mrf.mxu0 }
0x1c75   :  { %v20675_v62 = vpop.f32.mrf.mxu0 }
0x1c77   :  { %v15384_v1 = vpop.f32.mrf.mxu0 }
0x1c79   :  { %v20679_v54 = vpop.f32.mrf.mxu1 }
0x1c7b   :  { %v15389_v24 = vpop.f32.mrf.mxu1 }
0x1c7d   :  { %v20681_v10 = vpop.f32.mrf.mxu1 }
0x1c7f   :  { %v15390_v6 = vpop.f32.mrf.mxu1 }
0x1caa   :  { %v20685_v7 = vpop.f32.mrf.mxu0 }
0x1cac   :  { %v15395_v35 = vpop.f32.mrf.mxu0 }
0x1cae   :  { %v20687_v44 = vpop.f32.mrf.mxu0 }
0x1cb0   :  { %v15396_v25 = vpop.f32.mrf.mxu0 }
0x1cb2   :  { %v20691_v58 = vpop.f32.mrf.mxu1 }
0x1cb4   :  { %v15401_v51 = vpop.f32.mrf.mxu1 }
0x1cb6   :  { %v20693_v39 = vpop.f32.mrf.mxu1 }
0x1cb8   :  { %v15402_v30 = vpop.f32.mrf.mxu1 }
0x1cba   :  { %v20697_v36 = vpop.f32.mrf.mxu0 }
0x1cbc   :  { %v15407_v20 = vpop.f32.mrf.mxu0 }
0x1cbe   :  { %v20699_v5 = vpop.f32.mrf.mxu0 }
0x1cc0   :  { %v15408_v32 = vpop.f32.mrf.mxu0 }
0x1cc2   :  { %v20703_v43 = vpop.f32.mrf.mxu1 }
0x1cc4   :  { %v15413_v59 = vpop.f32.mrf.mxu1 }
0x1cc6   :  { %v20705_v52 = vpop.f32.mrf.mxu1 }
0x1cc8   :  { %v15414_v9 = vpop.f32.mrf.mxu1 }
0x1cca   :  { %v20709_v42 = vpop.f32.mrf.mxu0 }
0x1ccc   :  { %v15419_v12 = vpop.f32.mrf.mxu0 }
0x1cce   :  { %v20711_v45 = vpop.f32.mrf.mxu0 }
0x1cd0   :  { %v15420_v14 = vpop.f32.mrf.mxu0 }
0x1cd2   :  { %v20715_v47 = vpop.f32.mrf.mxu1  ;;  %v20717_v11 = vpop.f32.mrf.mxu0 }
0x1cd3   :  { %v11873_v31 = vsel %vm4321_vm6, %v20717_v11, -inf }
0x1cd4   :  { %11874 = vmax.xlane.f32.xlu0 %v11873_v31  ;;  %v15425_v3 = vpop.f32.mrf.mxu1  ;;  %v15431_v2 = vpop.f32.mrf.mxu0 }
0x1cd6   :  { %v20721_v1 = vpop.f32.mrf.mxu1  ;;  %v20723_v24 = vpop.f32.mrf.mxu0 }
0x1cd7   :  { %v11876_v35 = vsel %vm4321_vm6, %v20723_v24, -inf }
0x1cd8   :  { %11877 = vmax.xlane.f32.xlu1 %v11876_v35  ;;  %v15426_v25 = vpop.f32.mrf.mxu1  ;;  %v15432_v51 = vpop.f32.mrf.mxu0 }
0x1cda   :  { %v20729_v30 = vpop.f32.mrf.mxu1  ;;  %v20731_v20 = vpop.f32.mrf.mxu0 }
0x1cdb   :  { %v11879_v32 = vsel %vm4321_vm6, %v20729_v30, -inf  ;;  %v11885_v59 = vsel %vm4321_vm6, %v20731_v20, -inf }
0x1cdc   :  { %11880 = vmax.xlane.f32.xlu0 %v11879_v32  ;;  %v15437_v9 = vpop.f32.mrf.mxu1  ;;  %11886 = vmax.xlane.f32.xlu1 %v11885_v59  ;;  %v15443_v12 = vpop.f32.mrf.mxu0 }
0x1cde   :  { %v20737_v14 = vpop.f32.mrf.mxu1  ;;  %v20739_v31 = vpop.f32.mrf.mxu0 }
0x1cdf   :  { %v11882_v3 = vsel %vm4321_vm6, %v20737_v14, -inf  ;;  %v11888_v32 = vsel %vm4321_vm6, %v20739_v31, -inf }
0x1ce0   :  { %11883 = vmax.xlane.f32.xlu0 %v11882_v3  ;;  %v15438_v2 = vpop.f32.mrf.mxu1  ;;  %v15444_v35 = vpop.f32.mrf.mxu0 }
0x1ce2   :  { %v20743_v25 = vpop.f32.mrf.mxu1  ;;  %v20745_v51 = vpop.f32.mrf.mxu0 }
0x1ce3   :  { %v11891_v59 = vsel %vm4321_vm6, %v20743_v25, -inf  ;;  %v11897_v2 = vsel %vm4321_vm6, %v20745_v51, -inf }
0x1ce4   :  { %11889 = vmax.xlane.f32.xlu0 %v11888_v32  ;;  %11892 = vmax.xlane.f32.xlu1 %v11891_v59  ;;  %v15449_v9 = vpop.f32.mrf.mxu1  ;;  %v15455_v12 = vpop.f32.mrf.mxu0 }
0x1ce6   :  { %v20751_v6 = vpop.f32.mrf.mxu1  ;;  %v20753_v56 = vpop.f32.mrf.mxu0 }
0x1ce7   :  { %v11894_v3 = vsel %vm4321_vm6, %v20751_v6, -inf  ;;  %v11900_v59 = vsel %vm4321_vm6, %v20753_v56, -inf }
0x1ce8   :  { %11895 = vmax.xlane.f32.xlu0 %v11894_v3  ;;  %v15450_v35 = vpop.f32.mrf.mxu1  ;;  %11898 = vmax.xlane.f32.xlu1 %v11897_v2  ;;  %v15456_v17 = vpop.f32.mrf.mxu0 }
0x1cea   :  { %v20759_v18 = vpop.f32.mrf.mxu1  ;;  %v20761_v32 = vpop.f32.mrf.mxu0 }
0x1ceb   :  { %v11903_v9 = vsel %vm4321_vm6, %v20759_v18, -inf  ;;  %v11909_v2 = vsel %vm4321_vm6, %v20761_v32, -inf }
0x1cec   :  { %11901 = vmax.xlane.f32.xlu0 %v11900_v59  ;;  %11904 = vmax.xlane.f32.xlu1 %v11903_v9  ;;  %v15461_v12 = vpop.f32.mrf.mxu1  ;;  %v15467_v29 = vpop.f32.mrf.mxu0 }
0x1cee   :  { %v20767_v8 = vpop.f32.mrf.mxu1  ;;  %v20769_v3 = vpop.f32.mrf.mxu0 }
0x1cef   :  { %v11906_v17 = vsel %vm4321_vm6, %v20767_v8, -inf  ;;  %v11912_v29 = vsel %vm4321_vm6, %v20769_v3, -inf }
0x1cf0   :  { %11907 = vmax.xlane.f32.xlu0 %v11906_v17  ;;  %v15462_v35 = vpop.f32.mrf.mxu1  ;;  %11910 = vmax.xlane.f32.xlu1 %v11909_v2  ;;  %v15468_v34 = vpop.f32.mrf.mxu0 }
0x1cf2   :  { %v20775_v16 = vpop.f32.mrf.mxu1 }
0x1cf3   :  { %v11915_v59 = vsel %vm4321_vm6, %v20775_v16, -inf }
0x1cf4   :  { %v15473_v9 = vpop.f32.mrf.mxu1  ;;  %11916 = vmax.xlane.f32.xlu1 %v11915_v59  ;;  %11913 = vmax.xlane.f32.xlu0 %v11912_v29 }
0x1cf6   :  { %v20781_v12 = vpop.f32.mrf.mxu1 }
0x1cf7   :  { %v11918_v26 = vsel %vm4321_vm6, %v20781_v12, -inf }
0x1cf8   :  { %v15474_v17 = vpop.f32.mrf.mxu1  ;;  %11919 = vmax.xlane.f32.xlu0 %v11918_v26 }
0x1d05   :  { %12154 = vrot.lane.b32.xlu1 %v20286_v19, %s16371_s25 }
0x1d09   :  { %12202 = vrot.lane.b32.xlu1 %v20296_v48, %s16371_s25 }
0x1d0d   :  { %12298 = vrot.lane.b32.xlu1 %v20316_v38, %s16371_s25 }
0x1d0e   :  { %12106 = vrot.lane.b32.xlu0 %v20386_v49, %s16371_s25 }
0x1d12   :  { %12250 = vrot.lane.b32.xlu0 %v20306_v40, %s16371_s25 }
0x1d5d   :  { %v11875_v34 = vpop.xlane.xlu0 %11874 }
0x1d5e   :  { %v11921_v2 = vsub.f32 %v20717_v11, %v11875_v34 }
0x1d60   :  { %v11937_v35 = vmul.f32 1.442695, %v11921_v2 }
0x1d61   :  { %v11878_v26 = vpop.xlane.xlu1 %11877 }
0x1d62   :  { %16253 = vpow2.f32 %v11937_v35  ;;  %v11922_v19 = vsub.f32 %v20723_v24, %v11878_v26 }
0x1d64   :  { %v11939_v59 = vmul.f32 1.442695, %v11922_v19 }
0x1d65   :  { %v11887_v29 = vpop.xlane.xlu1 %11886  ;;  %v11881_v48 = vpop.xlane.xlu0 %11880 }
0x1d66   :  { %16255 = vpow2.f32 %v11939_v59  ;;  %v11925_v38 = vsub.f32 %v20731_v20, %v11887_v29  ;;  %v11923_v9 = vsub.f32 %v20729_v30, %v11881_v48 }
0x1d68   :  { %v11941_v49 = vmul.f32 1.442695, %v11923_v9  ;;  %v11945_v17 = vmul.f32 1.442695, %v11925_v38 }
0x1d69   :  { %v11884_v13 = vpop.xlane.xlu0 %11883 }
0x1d6a   :  { %v11924_v40 = vsub.f32 %v20737_v14, %v11884_v13  ;;  %16257 = vpow2.f32 %v11941_v49 }
0x1d6b   :  { %16259 = vpow2.f32 %v11945_v17 }
0x1d6c   :  { %v11943_v11 = vmul.f32 1.442695, %v11924_v40 }
0x1d6d   :  { %v11893_v34 = vpop.xlane.xlu1 %11892  ;;  %v11890_v2 = vpop.xlane.xlu0 %11889 }
0x1d6e   :  { %16261 = vpow2.f32 %v11943_v11  ;;  %v11927_v24 = vsub.f32 %v20743_v25, %v11893_v34  ;;  %v11926_v35 = vsub.f32 %v20739_v31, %v11890_v2 }
0x1d6f   :  { %v20802_v26 = vpop.eup %16253 }
0x1d70   :  { %v11949_v20 = vmul.f32 1.442695, %v11927_v24  ;;  %v11947_v19 = vmul.f32 1.442695, %v11926_v35  ;;  %v11969_v30 = vsel %vm4321_vm6, %v20802_v26, 0.0 }
0x1d71   :  { %v11899_v59 = vpop.xlane.xlu1 %11898  ;;  %11970 = vadd.xlane.f32.xlu1 %v11969_v30  ;;  %v11896_v13 = vpop.xlane.xlu0 %11895 }
0x1d72   :  { %16263 = vpow2.f32 %v11949_v20  ;;  %v11929_v14 = vsub.f32 %v20745_v51, %v11899_v59  ;;  %v11928_v29 = vsub.f32 %v20751_v6, %v11896_v13 }
0x1d73   :  { %v20808_v48 = vpop.eup %16255  ;;  %16265 = vpow2.f32 %v11947_v19 }
0x1d74   :  { %v11953_v25 = vmul.f32 1.442695, %v11929_v14  ;;  %v11951_v31 = vmul.f32 1.442695, %v11928_v29  ;;  %v11972_v38 = vsel %vm4321_vm6, %v20808_v48, 0.0 }
0x1d75   :  { %v11905_v9 = vpop.xlane.xlu1 %11904  ;;  %11973 = vadd.xlane.f32.xlu0 %v11972_v38  ;;  %v11902_v49 = vpop.xlane.xlu0 %11901 }
0x1d76   :  { %16267 = vpow2.f32 %v11953_v25  ;;  %v11931_v17 = vsub.f32 %v20759_v18, %v11905_v9  ;;  %v11930_v40 = vsub.f32 %v20753_v56, %v11902_v49 }
0x1d77   :  { %16269 = vpow2.f32 %v11951_v31  ;;  %v20814_v51 = vpop.eup %16257 }
0x1d78   :  { %v11957_v6 = vmul.f32 1.442695, %v11931_v17  ;;  %v11955_v11 = vmul.f32 1.442695, %v11930_v40  ;;  %v11975_v2 = vsel %vm4321_vm6, %v20814_v51, 0.0  ;;  %v20818_v35 = vpop.eup %16259 }
0x1d79   :  { %v11911_v34 = vpop.xlane.xlu1 %11910  ;;  %v11908_v24 = vpop.xlane.xlu0 %11907  ;;  %11976 = vadd.xlane.f32.xlu1 %v11975_v2  ;;  %v11981_v14 = vsel %vm4321_vm6, %v20818_v35, 0.0 }
0x1d7a   :  { %16271 = vpow2.f32 %v11957_v6  ;;  %v11933_v20 = vsub.f32 %v20761_v32, %v11911_v34  ;;  %v11932_v18 = vsub.f32 %v20767_v8, %v11908_v24 }
0x1d7b   :  { %v20822_v19 = vpop.eup %16261  ;;  %16273 = vpow2.f32 %v11955_v11 }
0x1d7c   :  { %v11961_v56 = vmul.f32 1.442695, %v11933_v20  ;;  %v11959_v30 = vmul.f32 1.442695, %v11932_v18  ;;  %v11978_v59 = vsel %vm4321_vm6, %v20822_v19, 0.0 }
0x1d7d   :  { %v11917_v13 = vpop.xlane.xlu1 %11916  ;;  %11979 = vadd.xlane.f32.xlu0 %v11978_v59  ;;  %v11914_v29 = vpop.xlane.xlu0 %11913  ;;  %11982 = vadd.xlane.f32.xlu1 %v11981_v14 }
0x1d7e   :  { %16275 = vpow2.f32 %v11961_v56  ;;  %v11935_v32 = vsub.f32 %v20775_v16, %v11917_v13  ;;  %v11934_v8 = vsub.f32 %v20769_v3, %v11914_v29 }
0x1d7f   :  { %v20830_v25 = vpop.eup %16263  ;;  %16277 = vpow2.f32 %v11959_v30 }
0x1d80   :  { %v20832_v31 = vpop.eup %16265  ;;  %v11965_v38 = vmul.f32 1.442695, %v11935_v32  ;;  %v11963_v9 = vmul.f32 1.442695, %v11934_v8  ;;  %v11987_v49 = vsel %vm4321_vm6, %v20830_v25, 0.0 }
0x1d81   :  { %v11984_v17 = vsel %vm4321_vm6, %v20832_v31, 0.0  ;;  %v11920_v40 = vpop.xlane.xlu0 %11919  ;;  %11988 = vadd.xlane.f32.xlu1 %v11987_v49 }
0x1d82   :  { %16279 = vpow2.f32 %v11965_v38  ;;  %11985 = vadd.xlane.f32.xlu0 %v11984_v17  ;;  %v11936_v16 = vsub.f32 %v20781_v12, %v11920_v40  ;;  %v12155_v17 = vpop.permute.xlu1 %12154 }
0x1d83   :  { %v20839_v3 = vpop.eup %16267  ;;  %16281 = vpow2.f32 %v11963_v9 }
0x1d84   :  { %v20841_v6 = vpop.eup %16269  ;;  %v11967_v11 = vmul.f32 1.442695, %v11936_v16  ;;  %v11993_v34 = vsel %vm4321_vm6, %v20839_v3, 0.0 }
0x1d85   :  { %v11990_v2 = vsel %vm4321_vm6, %v20841_v6, 0.0  ;;  %v12107_v24 = vpop.permute.xlu0 %12106  ;;  %11994 = vadd.xlane.f32.xlu1 %v11993_v34 }
0x1d86   :  { %16283 = vpow2.f32 %v11967_v11  ;;  %11991 = vadd.xlane.f32.xlu0 %v11990_v2  ;;  %15482 = vmatpush3.bf16.msra.mxu1 %v12107_v24  ;;  %v12203_v40 = vpop.permute.xlu1 %12202 }
0x1d87   :  { %v20847_v20 = vpop.eup %16271  ;;  %15493 = vmatprep.subr.bf16.mxu1 %v21546_v21 }
0x1d88   :  { %v20849_v12 = vpop.eup %16273  ;;  %v11999_v18 = vsel %vm4321_vm6, %v20847_v20, 0.0 }
0x1d89   :  { %v11996_v56 = vsel %vm4321_vm6, %v20849_v12, 0.0  ;;  %12000 = vadd.xlane.f32.xlu1 %v11999_v18  ;;  %v12251_v11 = vpop.permute.xlu0 %12250 }
0x1d8a   :  { %11997 = vadd.xlane.f32.xlu0 %v11996_v56  ;;  %v20880_v16 = vpop.permute.xlu1 %12298 }
0x1d8b   :  { %v20856_v30 = vpop.eup %16275 }
0x1d8c   :  { %v20858_v59 = vpop.eup %16277  ;;  %v12005_v13 = vsel %vm4321_vm6, %v20856_v30, 0.0 }
0x1d8d   :  { %v12002_v14 = vsel %vm4321_vm6, %v20858_v59, 0.0  ;;  %12006 = vadd.xlane.f32.xlu1 %v12005_v13 }
0x1d8e   :  { %12003 = vadd.xlane.f32.xlu0 %v12002_v14 }
0x1d8f   :  { %v20864_v29 = vpop.eup %16279 }
0x1d90   :  { %v20866_v32 = vpop.eup %16281  ;;  %v12011_v8 = vsel %vm4321_vm6, %v20864_v29, 0.0 }
0x1d91   :  { %v12008_v38 = vsel %vm4321_vm6, %v20866_v32, 0.0  ;;  %12012 = vadd.xlane.f32.xlu1 %v12011_v8 }
0x1d92   :  { %12009 = vadd.xlane.f32.xlu0 %v12008_v38 }
0x1d93   :  { %v20872_v9 = vpop.eup %16283 }
0x1d94   :  { %v12014_v49 = vsel %vm4321_vm6, %v20872_v9, 0.0 }
0x1d96   :  { %12015 = vadd.xlane.f32.xlu0 %v12014_v49 }
0x1da2   :  { %12394 = vrot.lane.b32.xlu1 %v20614_v23, %s16371_s25 }
0x1dac   :  { %12346 = vrot.lane.b32.xlu0 %v20326_v46, %s16371_s25 }
0x1dfa   :  { %v11971_v34 = vpop.xlane.xlu1 %11970 }
0x1dfb   :  { %16285 = vrcp.f32 %v11971_v34 }
0x1dfe   :  { %v11974_v2 = vpop.xlane.xlu0 %11973 }
0x1dff   :  { %16287 = vrcp.f32 %v11974_v2 }
0x1e02   :  { %v11977_v24 = vpop.xlane.xlu1 %11976 }
0x1e03   :  { %16289 = vrcp.f32 %v11977_v24 }
0x1e06   :  { %v11980_v18 = vpop.xlane.xlu0 %11979  ;;  %v11983_v56 = vpop.xlane.xlu1 %11982 }
0x1e07   :  { %16291 = vrcp.f32 %v11980_v18 }
0x1e08   :  { %v16286_v13 = vpop.eup %16285  ;;  %16293 = vrcp.f32 %v11983_v56 }
0x1e09   :  { %v12033_v46 = vmul.f32 %v16286_v13, %v20802_v26 }
0x1e0a   :  { %v11989_v23 = vpop.xlane.xlu1 %11988 }
0x1e0b   :  { %v11986_v14 = vpop.xlane.xlu0 %11985 }
0x1e0c   :  { %v16288_v8 = vpop.eup %16287  ;;  %16295 = vrcp.f32 %v11986_v14 }
0x1e0d   :  { %v12034_v38 = vmul.f32 %v16288_v8, %v20808_v48  ;;  %16297 = vrcp.f32 %v11989_v23 }
0x1e0e   :  { %v11995_v34 = vpop.xlane.xlu1 %11994 }
0x1e0f   :  { %v12049_v49 = vpack.c.bf16 %v12034_v38, %v12033_v46  ;;  %v11992_v0 = vpop.xlane.xlu0 %11991 }
0x1e10   :  { %16299 = vrcp.f32 %v11992_v0  ;;  %v16290_v2 = vpop.eup %16289 }
0x1e11   :  { %15478 = vmatmul.mubr.msk.bf16.vlgmr.msra.gmra.mxu0 %vm4321_vm6, %v12049_v49  ;;  %16301 = vrcp.f32 %v11995_v34  ;;  %v12035_v48 = vmul.f32 %v16290_v2, %v20814_v51 }
0x1e12   :  { %15488 = vmatpush3.bf16.msra.mxu0 %v12155_v17  ;;  %15489 = vmatprep.mubr.msk.bf16.mxu0 %vm16367_vm1, %v21546_v21  ;;  %v12001_v24 = vpop.xlane.xlu1 %12000 }
0x1e13   :  { %v11998_v18 = vpop.xlane.xlu0 %11997  ;;  %15499 = vmatprep.subr.bf16.mxu0 %v21546_v21 }
0x1e14   :  { %v16292_v26 = vpop.eup %16291  ;;  %16303 = vrcp.f32 %v11998_v18 }
0x1e15   :  { %v12036_v56 = vmul.f32 %v16292_v26, %v20822_v19  ;;  %16305 = vrcp.f32 %v12001_v24  ;;  %v16294_v14 = vpop.eup %16293 }
0x1e16   :  { %v12007_v0 = vpop.xlane.xlu1 %12006  ;;  %v12037_v8 = vmul.f32 %v16294_v14, %v20818_v35 }
0x1e17   :  { %v12050_v13 = vpack.c.bf16 %v12036_v56, %v12035_v48  ;;  %v12004_v23 = vpop.xlane.xlu0 %12003 }
0x1e18   :  { %16307 = vrcp.f32 %v12004_v23 }
0x1e19   :  { %15484 = vmatmul.mubr.msk.bf16.vlgmr.msra.gmra.mxu1 %vm4321_vm6, %v12050_v13  ;;  %v16296_v17 = vpop.eup %16295  ;;  %16309 = vrcp.f32 %v12007_v0 }
0x1e1a   :  { %15494 = vmatpush3.bf16.msra.mxu1 %v12203_v40  ;;  %15495 = vmatprep.mubr.msk.bf16.mxu1 %vm16367_vm1, %v21546_v21  ;;  %v12038_v51 = vmul.f32 %v16296_v17, %v20832_v31  ;;  %v12013_v19 = vpop.xlane.xlu1 %12012  ;;  %v16298_v38 = vpop.eup %16297 }
0x1e1b   :  { %v12010_v46 = vpop.xlane.xlu0 %12009  ;;  %15505 = vmatprep.subr.bf16.mxu1 %v21546_v21  ;;  %v12039_v2 = vmul.f32 %v16298_v38, %v20830_v25 }
0x1e1c   :  { %v12051_v49 = vpack.c.bf16 %v12038_v51, %v12037_v8  ;;  %16311 = vrcp.f32 %v12010_v46 }
0x1e1d   :  { %v16300_v34 = vpop.eup %16299  ;;  %16313 = vrcp.f32 %v12013_v19 }
0x1e1e   :  { %v12040_v40 = vmul.f32 %v16300_v34, %v20841_v6  ;;  %15490 = vmatmul.mubr.msk.bf16.vlgmr.msra.gmra.mxu0 %vm4321_vm6, %v12051_v49  ;;  %v16302_v35 = vpop.eup %16301  ;;  %v21587_v49 = vpack.c.bf16 %v20693_v39, %v20691_v58 }
0x1e1f   :  { %v12016_v24 = vpop.xlane.xlu0 %12015  ;;  %15500 = vmatpush3.bf16.msra.mxu0 %v12251_v11  ;;  %15501 = vmatprep.mubr.msk.bf16.mxu0 %vm16367_vm1, %v21546_v21  ;;  %v12041_v26 = vmul.f32 %v16302_v35, %v20839_v3 }
0x1e20   :  { %16315 = vrcp.f32 %v12016_v24  ;;  %v12052_v31 = vpack.c.bf16 %v12040_v40, %v12039_v2  ;;  %15511 = vmatprep.subr.bf16.mxu0 %v21546_v21 }
0x1e21   :  { %v16304_v18 = vpop.eup %16303 }
0x1e22   :  { %v12042_v48 = vmul.f32 %v16304_v18, %v20849_v12  ;;  %15496 = vmatmul.mubr.msk.bf16.vlgmr.msra.gmra.mxu1 %vm4321_vm6, %v12052_v31  ;;  %v16306_v25 = vpop.eup %16305 }
0x1e23   :  { %15506 = vmatpush3.bf16.msra.mxu1 %v20880_v16  ;;  %15507 = vmatprep.mubr.msk.bf16.mxu1 %vm16367_vm1, %v21546_v21  ;;  %v12043_v56 = vmul.f32 %v16306_v25, %v20847_v20  ;;  %v12347_v0 = vpop.permute.xlu0 %12346  ;;  %v15753_v16 = vld [vmem:[%s21509_s2 + $0x340] ss:$8 sps:$4 sm:$0xff]  }
0x1e24   :  { %v12053_v6 = vpack.c.bf16 %v12042_v48, %v12041_v26  ;;  %15517 = vmatprep.subr.bf16.mxu1 %v21546_v21 }
0x1e25   :  { %v16308_v11 = vpop.eup %16307 }
0x1e26   :  { %v12044_v13 = vmul.f32 %v16308_v11, %v20858_v59  ;;  %15502 = vmatmul.mubr.msk.bf16.vlgmr.msra.gmra.mxu0 %vm4321_vm6, %v12053_v6  ;;  %v16310_v3 = vpop.eup %16309  ;;  %v12395_v59 = vpop.permute.xlu1 %12394 }
0x1e27   :  { %15512 = vmatpush3.bf16.msra.mxu0 %v12347_v0  ;;  %15513 = vmatprep.mubr.msk.bf16.mxu0 %vm16367_vm1, %v21546_v21  ;;  %v12045_v17 = vmul.f32 %v16310_v3, %v20856_v30  ;;  %v15754_v30 = vld [vmem:[%s21509_s2 + $0x330] ss:$8 sps:$4 sm:$0xff]  }
0x1e28   :  { %v12054_v12 = vpack.c.bf16 %v12044_v13, %v12043_v56 }
0x1e29   :  { %v16312_v23 = vpop.eup %16311 }
0x1e2a   :  { %v16314_v14 = vpop.eup %16313  ;;  %v12046_v20 = vmul.f32 %v16312_v23, %v20866_v32  ;;  %15508 = vmatmul.mubr.msk.bf16.vlgmr.msra.gmra.mxu1 %vm4321_vm6, %v12054_v12  ;;  %v21584_v32 = vpack.c.bf16 %v20675_v62, %v20673_v41  ;;  %v21588_v41 = vpack.c.bf16 %v20699_v5, %v20697_v36  ;;  %v21589_v62 = vpack.c.bf16 %v20705_v52, %v20703_v43 }
0x1e2b   :  { %15518 = vmatpush3.bf16.msra.mxu1 %v12395_v59  ;;  %15519 = vmatprep.mubr.msk.bf16.mxu1 %vm16367_vm1, %v21546_v21  ;;  %v12047_v19 = vmul.f32 %v16314_v14, %v20864_v29  ;;  %v21585_v29 = vpack.c.bf16 %v20681_v10, %v20679_v54  ;;  %v21590_v54 = vpack.c.bf16 %v20711_v45, %v20709_v42 }
0x1e2c   :  { %v12055_v51 = vpack.c.bf16 %v12046_v20, %v12045_v17  ;;  %15543 = vmatprep.subr.bf16.mxu1 %v15753_v16  ;;  %v21591_v10 = vpack.c.bf16 %v20721_v1, %v20715_v47 }
0x1e2d   :  { %v16316_v8 = vpop.eup %16315 }
0x1e2e   :  { %v12048_v46 = vmul.f32 %v16316_v8, %v20872_v9  ;;  %15514 = vmatmul.mubr.msk.bf16.vlgmr.msra.gmra.mxu0 %vm4321_vm6, %v12055_v51  ;;  %v21586_v9 = vpack.c.bf16 %v20687_v44, %v20685_v7  ;;  %v15755_v7 = vld [vmem:[%s21509_s2 + $0x360] ss:$8 sps:$4 sm:$0xff]   ;;  %v15756_v44 = vld [vmem:[%s21509_s2 + $0x350] ss:$8 sps:$4 sm:$0xff]  }
0x1e2f   :  { %15523 = vmatprep.subr.bf16.mxu0 %v15755_v7 }
0x1e30   :  { %v12056_v38 = vpack.c.bf16 %v12048_v46, %v12047_v19  ;;  %15524 = vmatpush3.bf16.msra.mxu0 %v15755_v7 }
0x1e31   :  { %15525 = vmatprep.subr.bf16.mxu0 %v15756_v44 }
0x1e32   :  { %15520 = vmatmul.mubr.msk.bf16.vlgmr.msra.gmra.mxu1 %vm4321_vm6, %v12056_v38 }
0x1e33   :  { %15544 = vmatpush3.bf16.msra.mxu1 %v15753_v16  ;;  %15547 = vmatprep.mubr.msk.bf16.mxu1 %vm54_vm3, %v21584_v32 }
0x1e34   :  { %15545 = vmatprep.subr.bf16.mxu1 %v15754_v30  ;;  %15526 = vmatpush3.bf16.msra.mxu0 %v15756_v44 }
0x1e37   :  { %15546 = vmatpush3.bf16.msra.mxu1 %v15754_v30 }
0x1e3a   :  { %15548 = vmatmul.mubr.msk.bf16.vlgmr.msra.gmra.mxu1 %vm54_vm3, %v21585_v29 }
0x1e3b   :  { %15551 = vmatprep.mubr.msk.bf16.mxu1 %vm54_vm3, %v21586_v9 }
0x1e42   :  { %15552 = vmatmul.mubr.msk.bf16.gmra.mxu1 %vm54_vm3, %v21587_v49 }
0x1e43   :  { %15555 = vmatprep.mubr.msk.bf16.mxu1 %vm54_vm3, %v21588_v41 }
0x1e4a   :  { %15556 = vmatmul.mubr.msk.bf16.gmra.mxu1 %vm54_vm3, %v21589_v62 }
0x1e4b   :  { %15559 = vmatprep.mubr.msk.bf16.mxu1 %vm54_vm3, %v21590_v54 }
0x1e52   :  { %15560 = vmatmul.mubr.msk.bf16.gmra.mxu1 %vm54_vm3, %v21591_v10 }
0x1ed1   :  { %v12098_v58 = vpop.f32.mrf.mxu0 }
0x1ed3   :  { %v15479_v39 = vpop.f32.mrf.mxu0 }
0x1ed4   :  { %v20978_v39 = vld [vmem:[%s21512_s3 + $0x25] ss:$0 sm:$0xff] }
0x1ed5   :  { %v12101_v36 = vpop.f32.mrf.mxu0 }
0x1ed6   :  { %v12445_v5 = vpack.c.bf16 %v12101_v36, %v12098_v58 }
0x1ed7   :  { %v15480_v43 = vpop.f32.mrf.mxu0 }
0x1ed8   :  { %15527 = vmatprep.mubr.msk.bf16.mxu0 %vm54_vm3, %v12445_v5 }
0x1ed9   :  { %v12146_v52 = vpop.f32.mrf.mxu1 }
0x1edb   :  { %v15485_v42 = vpop.f32.mrf.mxu1 }
0x1edd   :  { %v12149_v45 = vpop.f32.mrf.mxu1 }
0x1ede   :  { %v12446_v47 = vpack.c.bf16 %v12149_v45, %v12146_v52  ;;  %v12194_v1 = vpop.f32.mrf.mxu0 }
0x1edf   :  { %v15486_v34 = vpop.f32.mrf.mxu1 }
0x1ee0   :  { %15528 = vmatmul.mubr.msk.bf16.vlgmr.msra.gmra.mxu0 %vm54_vm3, %v12446_v47  ;;  %v15491_v2 = vpop.f32.mrf.mxu0 }
0x1ee2   :  { %v12197_v40 = vpop.f32.mrf.mxu0  ;;  %v12242_v24 = vpop.f32.mrf.mxu1 }
0x1ee3   :  { %v12447_v35 = vpack.c.bf16 %v12197_v40, %v12194_v1 }
0x1ee4   :  { %v15492_v31 = vpop.f32.mrf.mxu0  ;;  %v15497_v18 = vpop.f32.mrf.mxu1 }
0x1ee5   :  { %15531 = vmatprep.mubr.msk.bf16.mxu0 %vm54_vm3, %v12447_v35 }
0x1ee6   :  { %v12245_v26 = vpop.f32.mrf.mxu1  ;;  %v12290_v48 = vpop.f32.mrf.mxu0 }
0x1ee7   :  { %v12448_v25 = vpack.c.bf16 %v12245_v26, %v12242_v24 }
0x1ee8   :  { %v15498_v6 = vpop.f32.mrf.mxu1  ;;  %v15503_v11 = vpop.f32.mrf.mxu0 }
0x1ee9   :  { %15532 = vmatmul.mubr.msk.bf16.gmra.mxu0 %vm54_vm3, %v12448_v25 }
0x1eea   :  { %v12293_v56 = vpop.f32.mrf.mxu0  ;;  %v12338_v13 = vpop.f32.mrf.mxu1 }
0x1eeb   :  { %v12449_v0 = vpack.c.bf16 %v12293_v56, %v12290_v48 }
0x1eec   :  { %v15504_v3 = vpop.f32.mrf.mxu0  ;;  %v15509_v12 = vpop.f32.mrf.mxu1 }
0x1eed   :  { %15535 = vmatprep.mubr.msk.bf16.mxu0 %vm54_vm3, %v12449_v0 }
0x1eee   :  { %v12341_v16 = vpop.f32.mrf.mxu1  ;;  %v12386_v23 = vpop.f32.mrf.mxu0 }
0x1eef   :  { %v12450_v14 = vpack.c.bf16 %v12341_v16, %v12338_v13 }
0x1ef0   :  { %v15510_v17 = vpop.f32.mrf.mxu1  ;;  %v15515_v20 = vpop.f32.mrf.mxu0 }
0x1ef1   :  { %15536 = vmatmul.mubr.msk.bf16.gmra.mxu0 %vm54_vm3, %v12450_v14 }
0x1ef2   :  { %v12389_v59 = vpop.f32.mrf.mxu0  ;;  %v12434_v8 = vpop.f32.mrf.mxu1 }
0x1ef3   :  { %v12451_v51 = vpack.c.bf16 %v12389_v59, %v12386_v23 }
0x1ef4   :  { %v15516_v19 = vpop.f32.mrf.mxu0  ;;  %v15521_v46 = vpop.f32.mrf.mxu1 }
0x1ef5   :  { %15539 = vmatprep.mubr.msk.bf16.mxu0 %vm54_vm3, %v12451_v51 }
0x1ef6   :  { %v12437_v38 = vpop.f32.mrf.mxu1 }
0x1ef7   :  { %v12452_v30 = vpack.c.bf16 %v12437_v38, %v12434_v8 }
0x1ef8   :  { %v15522_v32 = vpop.f32.mrf.mxu1 }
0x1ef9   :  { %15540 = vmatmul.mubr.msk.bf16.gmra.mxu0 %vm54_vm3, %v12452_v30 }
0x1efa   :  { %v15549_v29 = vpop.f32.mrf.mxu1 }
0x1efc   :  { %v12656_v9 = vpop.f32.mrf.mxu1 }
0x1efe   :  { %v15550_v49 = vpop.f32.mrf.mxu1 }
0x1f00   :  { %v12659_v41 = vpop.f32.mrf.mxu1 }
0x1f02   :  { %v15553_v62 = vpop.f32.mrf.mxu1 }
0x1f04   :  { %v12672_v54 = vpop.f32.mrf.mxu1 }
0x1f06   :  { %v15554_v10 = vpop.f32.mrf.mxu1 }
0x1f08   :  { %v12675_v7 = vpop.f32.mrf.mxu1 }
0x1f0a   :  { %v15557_v43 = vpop.f32.mrf.mxu1 }
0x1f0c   :  { %v12688_v40 = vpop.f32.mrf.mxu1 }
0x1f0e   :  { %v15558_v6 = vpop.f32.mrf.mxu1 }
0x1f10   :  { %v12691_v16 = vpop.f32.mrf.mxu1 }
0x1f12   :  { %v15561_v38 = vpop.f32.mrf.mxu1 }
0x1fa0   :  { %v15529_v44 = vpop.f32.mrf.mxu0 }
0x1fa1   :  { %v12665_v58 = vadd.f32 %v15549_v29, %v15529_v44 }
0x1fa2   :  { %v12523_v36 = vpop.f32.mrf.mxu0 }
0x1fa3   :  { %v12657_v5 = vadd.f32 %v12656_v9, %v12523_v36  ;;  %v12722_v42 = vadd.f32 %v20978_v39, %v12665_v58 }
0x1fa4   :  { %v15530_v52 = vpop.f32.mrf.mxu0 }
0x1fa5   :  { %v12720_v45 = vadd.f32 %v20978_v39, %v12657_v5  ;;  %v12668_v47 = vadd.f32 %v15550_v49, %v15530_v52  ;;  %v20990_v18 = vadd.f32 %v12722_v42, %v20158_v28 }
0x1fa6   :  { %v12526_v1 = vpop.f32.mrf.mxu0 }
0x1fa7   :  { %v12660_v34 = vadd.f32 %v12659_v41, %v12526_v1  ;;  %v20983_v2 = vadd.f32 %v12720_v45, %v20142_v22  ;;  %v12723_v24 = vadd.f32 %v20978_v39, %v12668_v47  ;;  %v12760_v56 = vsel %vm1937_vm4, %v20990_v18, 0.0 }
0x1fa9   :  { %v12721_v35 = vadd.f32 %v20978_v39, %v12660_v34  ;;  %v12754_v31 = vsel %vm1937_vm4, %v20983_v2, 0.0  ;;  %v15533_v26 = vpop.f32.mrf.mxu0  ;;  %v21000_v0 = vadd.f32 %v12723_v24, %v20155_v50 }
0x1faa   :  { %12755 = vadd.xlane.f32.xlu0 %v12754_v31  ;;  %v12681_v48 = vadd.f32 %v15553_v62, %v15533_v26 }
0x1fab   :  { %v20993_v25 = vadd.f32 %v12721_v35, %v20146_v61  ;;  %v12539_v22 = vpop.f32.mrf.mxu0  ;;  %v12763_v17 = vsel %vm1937_vm4, %v21000_v0, 0.0 }
0x1fac   :  { %v12673_v11 = vadd.f32 %v12672_v54, %v12539_v22  ;;  %v12726_v28 = vadd.f32 %v20978_v39, %v12681_v48 }
0x1fad   :  { %v12757_v13 = vsel %vm1937_vm4, %v20993_v25, 0.0  ;;  %v15534_v3 = vpop.f32.mrf.mxu0 }
0x1fae   :  { %12761 = vadd.xlane.f32.xlu0 %v12760_v56  ;;  %12758 = vadd.xlane.f32.xlu1 %v12757_v13  ;;  %v12724_v61 = vadd.f32 %v20978_v39, %v12673_v11  ;;  %v12684_v12 = vadd.f32 %v15554_v10, %v15534_v3  ;;  %v21010_v50 = vadd.f32 %v12726_v28, %v20188_v57  ;;  %v12704_v10 = vpop.f32.mrf.mxu1  ;;  %v21592_v3 = vld [vmem:[#allocation8_spill] sm:$0xff] }
0x1faf   :  { %v12542_v23 = vpop.f32.mrf.mxu0 }
0x1fb0   :  { %v12676_v14 = vadd.f32 %v12675_v7, %v12542_v23  ;;  %v21007_v20 = vadd.f32 %v12724_v61, %v20171_v15  ;;  %v12727_v8 = vadd.f32 %v20978_v39, %v12684_v12  ;;  %v12772_v57 = vsel %vm1937_vm4, %v21010_v50, 0.0  ;;  %v15562_v45 = vpop.f32.mrf.mxu1 }
0x1fb1   :  { %v15537_v59 = vpop.f32.mrf.mxu0 }
0x1fb2   :  { %12764 = vadd.xlane.f32.xlu0 %v12763_v17  ;;  %v12725_v51 = vadd.f32 %v20978_v39, %v12676_v14  ;;  %v12697_v19 = vadd.f32 %v15557_v43, %v15537_v59  ;;  %v12766_v46 = vsel %vm1937_vm4, %v21007_v20, 0.0  ;;  %v21026_v54 = vadd.f32 %v12727_v8, %v20183_v60  ;;  %v12707_v48 = vpop.f32.mrf.mxu1 }
0x1fb3   :  { %12767 = vadd.xlane.f32.xlu1 %v12766_v46  ;;  %v12555_v30 = vpop.f32.mrf.mxu0 }
0x1fb4   :  { %v12689_v32 = vadd.f32 %v12688_v40, %v12555_v30  ;;  %v21017_v15 = vadd.f32 %v12725_v51, %v20174_v63  ;;  %v12730_v29 = vadd.f32 %v20978_v39, %v12697_v19  ;;  %v12775_v60 = vsel %vm1937_vm4, %v21026_v54, 0.0 }
0x1fb5   :  { %v15538_v9 = vpop.f32.mrf.mxu0 }
0x1fb6   :  { %v12728_v49 = vadd.f32 %v20978_v39, %v12689_v32  ;;  %v12700_v41 = vadd.f32 %v15558_v6, %v15538_v9  ;;  %v12769_v62 = vsel %vm1937_vm4, %v21017_v15, 0.0  ;;  %v21033_v5 = vadd.f32 %v12730_v29, %v20216_v33 }
0x1fb7   :  { %12773 = vadd.xlane.f32.xlu1 %v12772_v57  ;;  %12770 = vadd.xlane.f32.xlu0 %v12769_v62  ;;  %v12558_v63 = vpop.f32.mrf.mxu0 }
0x1fb8   :  { %v12692_v7 = vadd.f32 %v12691_v16, %v12558_v63  ;;  %v21029_v44 = vadd.f32 %v12728_v49, %v20202_v27  ;;  %v12731_v58 = vadd.f32 %v20978_v39, %v12700_v41  ;;  %v12784_v33 = vsel %vm1937_vm4, %v21033_v5, 0.0  ;;  %v21593_v16 = vld [vmem:[#allocation6_spill] sm:$0xff] }
0x1fb9   :  { %v15541_v36 = vpop.f32.mrf.mxu0 }
0x1fba   :  { %v12729_v43 = vadd.f32 %v20978_v39, %v12692_v7  ;;  %v12713_v52 = vadd.f32 %v15561_v38, %v15541_v36  ;;  %v12778_v42 = vsel %vm1937_vm4, %v21029_v44, 0.0  ;;  %v21046_v40 = vadd.f32 %v12731_v58, %v20212_v55 }
0x1fbb   :  { %12776 = vadd.xlane.f32.xlu0 %v12775_v60  ;;  %12779 = vadd.xlane.f32.xlu1 %v12778_v42  ;;  %v12571_v27 = vpop.f32.mrf.mxu0 }
0x1fbc   :  { %v12705_v47 = vadd.f32 %v12704_v10, %v12571_v27  ;;  %v21041_v1 = vadd.f32 %v12729_v43, %v20198_v53  ;;  %v12734_v24 = vadd.f32 %v20978_v39, %v12713_v52  ;;  %v12787_v55 = vsel %vm1937_vm4, %v21046_v40, 0.0 }
0x1fbd   :  { %v15542_v34 = vpop.f32.mrf.mxu0 }
0x1fbe   :  { %v12732_v35 = vadd.f32 %v20978_v39, %v12705_v47  ;;  %v12716_v31 = vadd.f32 %v15562_v45, %v15542_v34  ;;  %v12781_v26 = vsel %vm1937_vm4, %v21041_v1, 0.0  ;;  %v21062_v28 = vadd.f32 %v12734_v24, %v20242_v37 }
0x1fbf   :  { %12785 = vadd.xlane.f32.xlu1 %v12784_v33  ;;  %12782 = vadd.xlane.f32.xlu0 %v12781_v26  ;;  %v12574_v53 = vpop.f32.mrf.mxu0 }
0x1fc0   :  { %v12708_v6 = vadd.f32 %v12707_v48, %v12574_v53  ;;  %v21053_v22 = vadd.f32 %v12732_v35, %v20230_v4  ;;  %v12735_v11 = vadd.f32 %v20978_v39, %v12716_v31  ;;  %v12796_v4 = vsel %vm1937_vm4, %v21062_v28, 0.0 }
0x1fc2   :  { %v12733_v56 = vadd.f32 %v20978_v39, %v12708_v6  ;;  %v12790_v13 = vsel %vm1937_vm4, %v21053_v22, 0.0  ;;  %v21072_v23 = vadd.f32 %v12735_v11, %v21593_v16 }
0x1fc3   :  { %12788 = vadd.xlane.f32.xlu0 %v12787_v55  ;;  %12791 = vadd.xlane.f32.xlu1 %v12790_v13 }
0x1fc4   :  { %v21065_v61 = vadd.f32 %v12733_v56, %v21592_v3  ;;  %v12799_v37 = vsel %vm1937_vm4, %v21072_v23, 0.0 }
0x1fc6   :  { %v12793_v12 = vsel %vm1937_vm4, %v21065_v61, 0.0 }
0x1fc7   :  { %12797 = vadd.xlane.f32.xlu1 %v12796_v4  ;;  %12794 = vadd.xlane.f32.xlu0 %v12793_v12 }
0x1fcb   :  { %12800 = vadd.xlane.f32.xlu0 %v12799_v37 }
0x2033   :  { %v12756_v39 = vpop.xlane.xlu0 %12755 }
0x2034   :  { %v12802_v14 = vmul.f32 0.015625, %v12756_v39 }
0x2036   :  { %v21077_v17 = vsub.f32 %v20983_v2, %v12802_v14 }
0x2037   :  { %v12762_v59 = vpop.xlane.xlu0 %12761  ;;  %v12759_v8 = vpop.xlane.xlu1 %12758 }
0x2038   :  { %v12804_v51 = vmul.f32 0.015625, %v12762_v59  ;;  %v12803_v19 = vmul.f32 0.015625, %v12759_v8  ;;  %v12834_v46 = vmul.f32 %v21077_v17, %v21077_v17 }
0x203a   :  { %v21082_v38 = vsub.f32 %v20990_v18, %v12804_v51  ;;  %v21085_v30 = vsub.f32 %v20993_v25, %v12803_v19  ;;  %v12850_v32 = vsel %vm1937_vm4, %v12834_v46, 0.0 }
0x203b   :  { %v12765_v29 = vpop.xlane.xlu0 %12764  ;;  %12851 = vadd.xlane.f32.xlu1 %v12850_v32 }
0x203c   :  { %v12805_v9 = vmul.f32 0.015625, %v12765_v29  ;;  %v12836_v2 = vmul.f32 %v21082_v38, %v21082_v38  ;;  %v12835_v57 = vmul.f32 %v21085_v30, %v21085_v30  ;;  %v12768_v49 = vpop.xlane.xlu1 %12767 }
0x203d   :  { %v12806_v18 = vmul.f32 0.015625, %v12768_v49 }
0x203e   :  { %v21093_v41 = vsub.f32 %v21000_v0, %v12805_v9  ;;  %v12856_v62 = vsel %vm1937_vm4, %v12836_v2, 0.0  ;;  %v12853_v25 = vsel %vm1937_vm4, %v12835_v57, 0.0 }
0x203f   :  { %12857 = vadd.xlane.f32.xlu1 %v12856_v62  ;;  %12854 = vadd.xlane.f32.xlu0 %v12853_v25  ;;  %v21098_v10 = vsub.f32 %v21007_v20, %v12806_v18 }
0x2040   :  { %v12837_v63 = vmul.f32 %v21093_v41, %v21093_v41  ;;  %v12774_v7 = vpop.xlane.xlu1 %12773  ;;  %v12771_v58 = vpop.xlane.xlu0 %12770 }
0x2041   :  { %v12808_v36 = vmul.f32 0.015625, %v12774_v7  ;;  %v12807_v43 = vmul.f32 0.015625, %v12771_v58  ;;  %v12838_v0 = vmul.f32 %v21098_v10, %v21098_v10  ;;  %v15757_v58 = vld [vmem:[%s21509_s2 + $0x3a0] ss:$8 sps:$4 sm:$0xff]  }
0x2042   :  { %v12859_v52 = vsel %vm1937_vm4, %v12837_v63, 0.0  ;;  %15563 = vmatprep.subr.bf16.mxu0 %v15757_v58 }
0x2043   :  { %12860 = vadd.xlane.f32.xlu0 %v12859_v52  ;;  %v21106_v60 = vsub.f32 %v21010_v50, %v12808_v36  ;;  %v21109_v42 = vsub.f32 %v21017_v15, %v12807_v43  ;;  %v12862_v20 = vsel %vm1937_vm4, %v12838_v0, 0.0  ;;  %15564 = vmatpush3.bf16.msra.mxu0 %v15757_v58  ;;  %v15759_v36 = vld [vmem:[%s21509_s2 + $0x380] ss:$8 sps:$4 sm:$0xff]   ;;  %v15760_v43 = vld [vmem:[%s21509_s2 + $0x370] ss:$8 sps:$4 sm:$0xff]  }
0x2044   :  { %v12777_v45 = vpop.xlane.xlu0 %12776  ;;  %v12780_v27 = vpop.xlane.xlu1 %12779  ;;  %12863 = vadd.xlane.f32.xlu1 %v12862_v20  ;;  %v15761_v0 = vld [vmem:[%s21509_s2 + $0x3e0] ss:$8 sps:$4 sm:$0xff]  }
0x2045   :  { %v12809_v47 = vmul.f32 0.015625, %v12777_v45  ;;  %v12810_v34 = vmul.f32 0.015625, %v12780_v27  ;;  %v12840_v33 = vmul.f32 %v21106_v60, %v21106_v60  ;;  %v12839_v24 = vmul.f32 %v21109_v42, %v21109_v42  ;;  %15587 = vmatprep.subr.bf16.mxu1 %v15761_v0 }
0x2046   :  { %15588 = vmatpush3.bf16.msra.mxu1 %v15761_v0 }
0x2047   :  { %v21117_v35 = vsub.f32 %v21026_v54, %v12809_v47  ;;  %v21120_v50 = vsub.f32 %v21029_v44, %v12810_v34  ;;  %v12868_v15 = vsel %vm1937_vm4, %v12840_v33, 0.0  ;;  %v12865_v31 = vsel %vm1937_vm4, %v12839_v24, 0.0 }
0x2048   :  { %v12786_v26 = vpop.xlane.xlu1 %12785  ;;  %v12783_v48 = vpop.xlane.xlu0 %12782  ;;  %12869 = vadd.xlane.f32.xlu1 %v12868_v15  ;;  %12866 = vadd.xlane.f32.xlu0 %v12865_v31 }
0x2049   :  { %v12812_v53 = vmul.f32 0.015625, %v12786_v26  ;;  %v12811_v6 = vmul.f32 0.015625, %v12783_v48  ;;  %v12842_v55 = vmul.f32 %v21120_v50, %v21120_v50  ;;  %v12841_v54 = vmul.f32 %v21117_v35, %v21117_v35 }
0x204b   :  { %v21129_v11 = vsub.f32 %v21033_v5, %v12812_v53  ;;  %v21132_v44 = vsub.f32 %v21041_v1, %v12811_v6  ;;  %v12874_v56 = vsel %vm1937_vm4, %v12842_v55, 0.0  ;;  %v12871_v13 = vsel %vm1937_vm4, %v12841_v54, 0.0 }
0x204c   :  { %v12789_v3 = vpop.xlane.xlu0 %12788  ;;  %12875 = vadd.xlane.f32.xlu1 %v12874_v56  ;;  %v12792_v4 = vpop.xlane.xlu1 %12791  ;;  %12872 = vadd.xlane.f32.xlu0 %v12871_v13 }
0x204d   :  { %v12813_v12 = vmul.f32 0.015625, %v12789_v3  ;;  %v12814_v16 = vmul.f32 0.015625, %v12792_v4  ;;  %v12844_v37 = vmul.f32 %v21129_v11, %v21129_v11  ;;  %v12843_v5 = vmul.f32 %v21132_v44, %v21132_v44 }
0x204f   :  { %v21141_v39 = vsub.f32 %v21046_v40, %v12813_v12  ;;  %v21144_v1 = vsub.f32 %v21053_v22, %v12814_v16  ;;  %v12880_v14 = vsel %vm1937_vm4, %v12844_v37, 0.0  ;;  %v12877_v59 = vsel %vm1937_vm4, %v12843_v5, 0.0 }
0x2050   :  { %12881 = vadd.xlane.f32.xlu1 %v12880_v14  ;;  %v12798_v8 = vpop.xlane.xlu1 %12797  ;;  %12878 = vadd.xlane.f32.xlu0 %v12877_v59  ;;  %v12795_v51 = vpop.xlane.xlu0 %12794 }
0x2051   :  { %v12816_v19 = vmul.f32 0.015625, %v12798_v8  ;;  %v12815_v46 = vmul.f32 0.015625, %v12795_v51  ;;  %v12846_v32 = vmul.f32 %v21144_v1, %v21144_v1  ;;  %v12845_v40 = vmul.f32 %v21141_v39, %v21141_v39  ;;  %v21192_v51 = vld [vmem:[%s21512_s3 + $0x26] ss:$0 sm:$0xff] }
0x2053   :  { %v21153_v29 = vsub.f32 %v21062_v28, %v12816_v19  ;;  %v21156_v22 = vsub.f32 %v21065_v61, %v12815_v46  ;;  %v12886_v9 = vsel %vm1937_vm4, %v12846_v32, 0.0  ;;  %v12883_v2 = vsel %vm1937_vm4, %v12845_v40, 0.0 }
0x2054   :  { %12887 = vadd.xlane.f32.xlu1 %v12886_v9  ;;  %12884 = vadd.xlane.f32.xlu0 %v12883_v2  ;;  %v12801_v57 = vpop.xlane.xlu0 %12800 }
0x2055   :  { %v12817_v49 = vmul.f32 0.015625, %v12801_v57  ;;  %v12848_v18 = vmul.f32 %v21153_v29, %v21153_v29  ;;  %v12847_v62 = vmul.f32 %v21156_v22, %v21156_v22 }
0x2057   :  { %v21165_v28 = vsub.f32 %v21072_v23, %v12817_v49  ;;  %v12892_v61 = vsel %vm1937_vm4, %v12848_v18, 0.0  ;;  %v12889_v25 = vsel %vm1937_vm4, %v12847_v62, 0.0  ;;  %v15758_v23 = vld [vmem:[%s21509_s2 + $0x390] ss:$8 sps:$4 sm:$0xff]  }
0x2058   :  { %12893 = vadd.xlane.f32.xlu1 %v12892_v61  ;;  %12890 = vadd.xlane.f32.xlu0 %v12889_v25  ;;  %v21200_v61 = vld [vmem:[%s21512_s3 + $0x27] ss:$0 sm:$0xff] }
0x2059   :  { %v12849_v63 = vmul.f32 %v21165_v28, %v21165_v28  ;;  %15565 = vmatprep.subr.bf16.mxu0 %v15758_v23 }
0x205a   :  { %15566 = vmatpush3.bf16.msra.mxu0 %v15758_v23 }
0x205b   :  { %v12895_v7 = vsel %vm1937_vm4, %v12849_v63, 0.0  ;;  %15567 = vmatprep.subr.bf16.mxu0 %v15759_v36 }
0x205c   :  { %12896 = vadd.xlane.f32.xlu0 %v12895_v7 }
0x205e   :  { %15568 = vmatpush3.bf16.msra.mxu0 %v15759_v36 }
0x205f   :  { %15569 = vmatprep.subr.bf16.mxu0 %v15760_v43 }
0x2062   :  { %15570 = vmatpush3.bf16.msra.mxu0 %v15760_v43 }
0x2063   :  { %15611 = vmatprep.subr.bf16.mxu0 %v21546_v21 }
0x20c4   :  { %v12852_v52 = vpop.xlane.xlu1 %12851 }
0x20c5   :  { %v12898_v20 = vmul.f32 0.015625, %v12852_v52 }
0x20c7   :  { %v12914_v45 = vadd.f32 1e-05, %v12898_v20 }
0x20c8   :  { %v12858_v27 = vpop.xlane.xlu1 %12857  ;;  %v12855_v47 = vpop.xlane.xlu0 %12854 }
0x20c9   :  { %16317 = vrsqrt.f32 %v12914_v45  ;;  %v12900_v34 = vmul.f32 0.015625, %v12858_v27  ;;  %v12899_v33 = vmul.f32 0.015625, %v12855_v47 }
0x20cb   :  { %v12916_v24 = vadd.f32 1e-05, %v12900_v34  ;;  %v12915_v15 = vadd.f32 1e-05, %v12899_v33 }
0x20cc   :  { %v12861_v31 = vpop.xlane.xlu0 %12860 }
0x20cd   :  { %16319 = vrsqrt.f32 %v12916_v24  ;;  %v12901_v26 = vmul.f32 0.015625, %v12861_v31  ;;  %v12864_v48 = vpop.xlane.xlu1 %12863 }
0x20ce   :  { %16321 = vrsqrt.f32 %v12915_v15  ;;  %v12902_v53 = vmul.f32 0.015625, %v12864_v48 }
0x20cf   :  { %v12917_v6 = vadd.f32 1e-05, %v12901_v26 }
0x20d0   :  { %v12918_v55 = vadd.f32 1e-05, %v12902_v53 }
0x20d1   :  { %16323 = vrsqrt.f32 %v12917_v6  ;;  %v12870_v54 = vpop.xlane.xlu1 %12869  ;;  %v12867_v56 = vpop.xlane.xlu0 %12866 }
0x20d2   :  { %16325 = vrsqrt.f32 %v12918_v55  ;;  %v12904_v13 = vmul.f32 0.015625, %v12870_v54  ;;  %v12903_v3 = vmul.f32 0.015625, %v12867_v56 }
0x20d4   :  { %v12920_v4 = vadd.f32 1e-05, %v12904_v13  ;;  %v12919_v12 = vadd.f32 1e-05, %v12903_v3 }
0x20d5   :  { %v12876_v37 = vpop.xlane.xlu1 %12875  ;;  %v12873_v5 = vpop.xlane.xlu0 %12872 }
0x20d6   :  { %v16318_v16 = vpop.eup %16317  ;;  %16327 = vrsqrt.f32 %v12920_v4  ;;  %v12906_v14 = vmul.f32 0.015625, %v12876_v37  ;;  %v12905_v59 = vmul.f32 0.015625, %v12873_v5 }
0x20d7   :  { %16329 = vrsqrt.f32 %v12919_v12  ;;  %v12946_v8 = vmul.f32 %v16318_v16, %v21077_v17 }
0x20d8   :  { %v12922_v19 = vadd.f32 1e-05, %v12906_v14  ;;  %v12921_v46 = vadd.f32 1e-05, %v12905_v59 }
0x20d9   :  { %v12882_v40 = vpop.xlane.xlu1 %12881  ;;  %v12879_v9 = vpop.xlane.xlu0 %12878  ;;  %v12962_v17 = vmul.f32 %v12946_v8, %v21192_v51 }
0x20da   :  { %v16320_v32 = vpop.eup %16319  ;;  %16331 = vrsqrt.f32 %v12922_v19  ;;  %v12908_v49 = vmul.f32 0.015625, %v12882_v40  ;;  %v12907_v18 = vmul.f32 0.015625, %v12879_v9 }
0x20db   :  { %v16322_v2 = vpop.eup %16321  ;;  %v12948_v57 = vmul.f32 %v16320_v32, %v21082_v38  ;;  %16333 = vrsqrt.f32 %v12921_v46  ;;  %v12978_v20 = vadd.f32 %v12962_v17, %v21200_v61 }
0x20dc   :  { %v12947_v62 = vmul.f32 %v16322_v2, %v21085_v30  ;;  %v12924_v25 = vadd.f32 1e-05, %v12908_v49  ;;  %v12923_v63 = vadd.f32 1e-05, %v12907_v18 }
0x20dd   :  { %v12964_v58 = vmul.f32 %v12948_v57, %v21192_v51  ;;  %v12888_v23 = vpop.xlane.xlu1 %12887  ;;  %v12885_v38 = vpop.xlane.xlu0 %12884 }
0x20de   :  { %v16324_v7 = vpop.eup %16323  ;;  %v12963_v36 = vmul.f32 %v12947_v62, %v21192_v51  ;;  %16335 = vrsqrt.f32 %v12924_v25  ;;  %v12910_v30 = vmul.f32 0.015625, %v12888_v23  ;;  %v12909_v52 = vmul.f32 0.015625, %v12885_v38 }
0x20df   :  { %v12949_v43 = vmul.f32 %v16324_v7, %v21093_v41  ;;  %v16326_v0 = vpop.eup %16325  ;;  %16337 = vrsqrt.f32 %v12923_v63  ;;  %v12980_v34 = vadd.f32 %v12964_v58, %v21200_v61 }
0x20e0   :  { %v21207_v45 = vadd.f32 %v12963_v36, %v21200_v61  ;;  %v12926_v47 = vadd.f32 1e-05, %v12910_v30  ;;  %v12925_v33 = vadd.f32 1e-05, %v12909_v52  ;;  %v12950_v31 = vmul.f32 %v16326_v0, %v21098_v10 }
0x20e1   :  { %v12965_v27 = vmul.f32 %v12949_v43, %v21192_v51  ;;  %v12894_v24 = vpop.xlane.xlu1 %12893  ;;  %v12891_v15 = vpop.xlane.xlu0 %12890 }
0x20e2   :  { %v13012_v41 = vpack.c.bf16 %v21207_v45, %v12978_v20  ;;  %16339 = vrsqrt.f32 %v12926_v47  ;;  %v12912_v48 = vmul.f32 0.015625, %v12894_v24  ;;  %v12911_v53 = vmul.f32 0.015625, %v12891_v15 }
0x20e3   :  { %v21214_v26 = vadd.f32 %v12965_v27, %v21200_v61  ;;  %v16328_v6 = vpop.eup %16327  ;;  %16341 = vrsqrt.f32 %v12925_v33  ;;  %v12966_v12 = vmul.f32 %v12950_v31, %v21192_v51 }
0x20e4   :  { %15571 = vmatprep.mubr.msk.bf16.mxu0 %vm1937_vm4, %v13012_v41  ;;  %v16330_v55 = vpop.eup %16329  ;;  %v12928_v56 = vadd.f32 1e-05, %v12912_v48  ;;  %v12927_v13 = vadd.f32 1e-05, %v12911_v53  ;;  %v12952_v3 = vmul.f32 %v16328_v6, %v21106_v60  ;;  %v15764_v53 = vld [vmem:[%s21509_s2 + $0x3b0] ss:$8 sps:$4 sm:$0xff]  }
0x20e5   :  { %v13013_v54 = vpack.c.bf16 %v21214_v26, %v12980_v34  ;;  %v12897_v4 = vpop.xlane.xlu0 %12896  ;;  %v12951_v10 = vmul.f32 %v16330_v55, %v21109_v42  ;;  %v12982_v60 = vadd.f32 %v12966_v12, %v21200_v61 }
0x20e6   :  { %16343 = vrsqrt.f32 %v12928_v56  ;;  %v12913_v16 = vmul.f32 0.015625, %v12897_v4  ;;  %v12968_v46 = vmul.f32 %v12952_v3, %v21192_v51 }
0x20e7   :  { %15572 = vmatmul.mubr.msk.bf16.vlgmr.msra.gmra.mxu0 %vm1937_vm4, %v13013_v54  ;;  %v16332_v37 = vpop.eup %16331  ;;  %16345 = vrsqrt.f32 %v12927_v13  ;;  %v12967_v5 = vmul.f32 %v12951_v10, %v21192_v51  ;;  %v13002_v54 = vld [vmem:[%s21512_s3 + $0x30] ss:$0 sm:$0xff] }
0x20e8   :  { %v16334_v14 = vpop.eup %16333  ;;  %v12929_v59 = vadd.f32 1e-05, %v12913_v16  ;;  %v12954_v8 = vmul.f32 %v16332_v37, %v21120_v50 }
0x20e9   :  { %v12953_v19 = vmul.f32 %v16334_v14, %v21117_v35  ;;  %v21227_v42 = vadd.f32 %v12967_v5, %v21200_v61  ;;  %v12984_v35 = vadd.f32 %v12968_v46, %v21200_v61 }
0x20ea   :  { %16347 = vrsqrt.f32 %v12929_v59  ;;  %v12970_v57 = vmul.f32 %v12954_v8, %v21192_v51 }
0x20eb   :  { %v16336_v32 = vpop.eup %16335  ;;  %v13014_v40 = vpack.c.bf16 %v21227_v42, %v12982_v60  ;;  %v12969_v9 = vmul.f32 %v12953_v19, %v21192_v51 }
0x20ec   :  { %v16338_v2 = vpop.eup %16337  ;;  %v12956_v50 = vmul.f32 %v16336_v32, %v21129_v11  ;;  %v12986_v7 = vadd.f32 %v12970_v57, %v21200_v61 }
0x20ed   :  { %15575 = vmatprep.mubr.msk.bf16.mxu0 %vm1937_vm4, %v13014_v40  ;;  %v21237_v49 = vadd.f32 %v12969_v9, %v21200_v61  ;;  %v12955_v18 = vmul.f32 %v16338_v2, %v21132_v44 }
0x20ee   :  { %v12972_v23 = vmul.f32 %v12956_v50, %v21192_v51 }
0x20ef   :  { %v16340_v62 = vpop.eup %16339  ;;  %v13015_v17 = vpack.c.bf16 %v21237_v49, %v12984_v35  ;;  %v12971_v25 = vmul.f32 %v12955_v18, %v21192_v51 }
0x20f0   :  { %v16342_v63 = vpop.eup %16341  ;;  %v12958_v38 = vmul.f32 %v16340_v62, %v21144_v1 }
0x20f1   :  { %v12957_v58 = vmul.f32 %v16342_v63, %v21141_v39  ;;  %15576 = vmatmul.mubr.msk.bf16.gmra.mxu0 %vm1937_vm4, %v13015_v17  ;;  %v21246_v11 = vadd.f32 %v12971_v25, %v21200_v61  ;;  %v12988_v39 = vadd.f32 %v12972_v23, %v21200_v61 }
0x20f2   :  { %v12974_v27 = vmul.f32 %v12958_v38, %v21192_v51 }
0x20f3   :  { %v16344_v44 = vpop.eup %16343  ;;  %v13016_v36 = vpack.c.bf16 %v21246_v11, %v12986_v7  ;;  %v12973_v43 = vmul.f32 %v12957_v58, %v21192_v51 }
0x20f4   :  { %v16346_v30 = vpop.eup %16345  ;;  %v12960_v0 = vmul.f32 %v16344_v44, %v21153_v29  ;;  %v12990_v24 = vadd.f32 %v12974_v27, %v21200_v61 }
0x20f5   :  { %15579 = vmatprep.mubr.msk.bf16.mxu0 %vm1937_vm4, %v13016_v36  ;;  %v21256_v52 = vadd.f32 %v12973_v43, %v21200_v61  ;;  %v12959_v20 = vmul.f32 %v16346_v30, %v21156_v22 }
0x20f6   :  { %v12976_v29 = vmul.f32 %v12960_v0, %v21192_v51 }
0x20f7   :  { %v16348_v1 = vpop.eup %16347  ;;  %v13017_v47 = vpack.c.bf16 %v21256_v52, %v12988_v39  ;;  %v12975_v34 = vmul.f32 %v12959_v20, %v21192_v51 }
0x20f8   :  { %v12961_v33 = vmul.f32 %v16348_v1, %v21165_v28  ;;  %v12992_v31 = vadd.f32 %v12976_v29, %v21200_v61 }
0x20f9   :  { %15580 = vmatmul.mubr.msk.bf16.gmra.mxu0 %vm1937_vm4, %v13017_v47  ;;  %v21267_v15 = vadd.f32 %v12975_v34, %v21200_v61 }
0x20fa   :  { %v12977_v22 = vmul.f32 %v12961_v33, %v21192_v51  ;;  %v15762_v51 = vld [vmem:[%s21509_s2 + $0x3d0] ss:$8 sps:$4 sm:$0xff]  }
0x20fb   :  { %v13018_v41 = vpack.c.bf16 %v21267_v15, %v12990_v24  ;;  %15589 = vmatprep.subr.bf16.mxu1 %v15762_v51 }
0x20fc   :  { %v21273_v48 = vadd.f32 %v12977_v22, %v21200_v61  ;;  %15590 = vmatpush3.bf16.msra.mxu1 %v15762_v51  ;;  %v15763_v61 = vld [vmem:[%s21509_s2 + $0x3c0] ss:$8 sps:$4 sm:$0xff]  }
0x20fd   :  { %15583 = vmatprep.mubr.msk.bf16.mxu0 %vm1937_vm4, %v13018_v41  ;;  %15591 = vmatprep.subr.bf16.mxu1 %v15763_v61 }
0x20fe   :  { %v13019_v28 = vpack.c.bf16 %v21273_v48, %v12992_v31 }
0x2100   :  { %15592 = vmatpush3.bf16.msra.mxu1 %v15763_v61 }
0x2101   :  { %15584 = vmatmul.mubr.msk.bf16.gmra.mxu0 %vm1937_vm4, %v13019_v28  ;;  %15593 = vmatprep.subr.bf16.mxu1 %v15764_v53 }
0x2102   :  { %15619 = vmatprep.mubr.msk.bf16.mxu0 %vm16367_vm1, %v21546_v21 }
0x2104   :  { %15594 = vmatpush3.bf16.msra.mxu1 %v15764_v53 }
0x21a7   :  { %v15573_v6 = vpop.f32.mrf.mxu0 }
0x21a8   :  { %v13111_v4 = vadd.f32 %v15573_v6, %v13002_v54 }
0x21a9   :  { %v13102_v55 = vpop.f32.mrf.mxu0 }
0x21aa   :  { %v13103_v13 = vadd.f32 %v13102_v55, %v13002_v54  ;;  %v13167_v14 = vmax.f32 %v13111_v4, 0.0  ;;  %v13011_v4 = vld [vmem:[%s21512_s3 + $0x31] ss:$0 sm:$0xff] }
0x21ab   :  { %v15574_v56 = vpop.f32.mrf.mxu0 }
0x21ac   :  { %v13114_v3 = vadd.f32 %v15574_v56, %v13002_v54  ;;  %v13165_v37 = vmax.f32 %v13103_v13, 0.0  ;;  %v21594_v56 = vmov 0  }
0x21ad   :  { %v13105_v10 = vpop.f32.mrf.mxu0 }
0x21ae   :  { %v13106_v12 = vadd.f32 %v13105_v10, %v13002_v54  ;;  %v13168_v16 = vmax.f32 %v13114_v3, 0.0 }
0x21b0   :  { %v13166_v5 = vmax.f32 %v13106_v12, 0.0  ;;  %v13182_v19 = vpack.c.bf16 %v13168_v16, %v13167_v14 }
0x21b1   :  { %v15577_v8 = vpop.f32.mrf.mxu0 }
0x21b2   :  { %v13181_v59 = vpack.c.bf16 %v13166_v5, %v13165_v37  ;;  %v13127_v9 = vadd.f32 %v15577_v8, %v13002_v54 }
0x21b3   :  { %v13118_v60 = vpop.f32.mrf.mxu0 }
0x21b4   :  { %15595 = vmatprep.mubr.msk.bf16.mxu1 %vm1937_vm4, %v13181_v59  ;;  %v13119_v32 = vadd.f32 %v13118_v60, %v13002_v54  ;;  %v13171_v17 = vmax.f32 %v13127_v9, 0.0 }
0x21b5   :  { %15596 = vmatmul.mubr.msk.bf16.vlgmr.msra.gmra.mxu1 %vm1937_vm4, %v13182_v19  ;;  %v15578_v46 = vpop.f32.mrf.mxu0 }
0x21b6   :  { %v13130_v40 = vadd.f32 %v15578_v46, %v13002_v54  ;;  %v13169_v18 = vmax.f32 %v13119_v32, 0.0 }
0x21b7   :  { %v13121_v2 = vpop.f32.mrf.mxu0 }
0x21b8   :  { %v13122_v57 = vadd.f32 %v13121_v2, %v13002_v54  ;;  %v13172_v50 = vmax.f32 %v13130_v40, 0.0 }
0x21b9   :  { %v15581_v35 = vpop.f32.mrf.mxu0 }
0x21ba   :  { %v13170_v62 = vmax.f32 %v13122_v57, 0.0  ;;  %v13184_v7 = vpack.c.bf16 %v13172_v50, %v13171_v17  ;;  %v13143_v44 = vadd.f32 %v15581_v35, %v13002_v54 }
0x21bb   :  { %v13134_v25 = vpop.f32.mrf.mxu0 }
0x21bc   :  { %v13183_v63 = vpack.c.bf16 %v13170_v62, %v13169_v18  ;;  %v13135_v23 = vadd.f32 %v13134_v25, %v13002_v54  ;;  %v13175_v27 = vmax.f32 %v13143_v44, 0.0 }
0x21bd   :  { %v15582_v58 = vpop.f32.mrf.mxu0 }
0x21be   :  { %v13146_v38 = vadd.f32 %v15582_v58, %v13002_v54  ;;  %15599 = vmatprep.mubr.msk.bf16.mxu1 %vm1937_vm4, %v13183_v63  ;;  %v13173_v39 = vmax.f32 %v13135_v23, 0.0 }
0x21bf   :  { %v13137_v36 = vpop.f32.mrf.mxu0  ;;  %15600 = vmatmul.mubr.msk.bf16.gmra.mxu1 %vm1937_vm4, %v13184_v7 }
0x21c0   :  { %v13138_v43 = vadd.f32 %v13137_v36, %v13002_v54  ;;  %v13176_v30 = vmax.f32 %v13146_v38, 0.0 }
0x21c1   :  { %v15585_v0 = vpop.f32.mrf.mxu0 }
0x21c2   :  { %v13174_v20 = vmax.f32 %v13138_v43, 0.0  ;;  %v13186_v34 = vpack.c.bf16 %v13176_v30, %v13175_v27  ;;  %v13159_v22 = vadd.f32 %v15585_v0, %v13002_v54 }
0x21c3   :  { %v13150_v1 = vpop.f32.mrf.mxu0 }
0x21c4   :  { %v13185_v47 = vpack.c.bf16 %v13174_v20, %v13173_v39  ;;  %v13151_v29 = vadd.f32 %v13150_v1, %v13002_v54  ;;  %v13179_v53 = vmax.f32 %v13159_v22, 0.0 }
0x21c5   :  { %v15586_v33 = vpop.f32.mrf.mxu0 }
0x21c6   :  { %v13162_v24 = vadd.f32 %v15586_v33, %v13002_v54  ;;  %15603 = vmatprep.mubr.msk.bf16.mxu1 %vm1937_vm4, %v13185_v47  ;;  %v13177_v51 = vmax.f32 %v13151_v29, 0.0 }
0x21c7   :  { %v13153_v41 = vpop.f32.mrf.mxu0  ;;  %15604 = vmatmul.mubr.msk.bf16.gmra.mxu1 %vm1937_vm4, %v13186_v34 }
0x21c8   :  { %v13154_v31 = vadd.f32 %v13153_v41, %v13002_v54  ;;  %v13180_v28 = vmax.f32 %v13162_v24, 0.0 }
0x21ca   :  { %v13178_v61 = vmax.f32 %v13154_v31, 0.0  ;;  %v13188_v55 = vpack.c.bf16 %v13180_v28, %v13179_v53 }
0x21cc   :  { %v13187_v6 = vpack.c.bf16 %v13178_v61, %v13177_v51 }
0x21ce   :  { %15607 = vmatprep.mubr.msk.bf16.mxu1 %vm1937_vm4, %v13187_v6 }
0x21cf   :  { %15608 = vmatmul.mubr.msk.bf16.gmra.mxu1 %vm1937_vm4, %v13188_v55 }
0x21d0   :  { %13721 = vmatprep.mubr.bf16.mxu1 %v21594_v56 }
0x2275   :  { %v15597_v13 = vpop.f32.mrf.mxu1 }
0x2277   :  { %v13271_v3 = vpop.f32.mrf.mxu1 }
0x2279   :  { %v15598_v10 = vpop.f32.mrf.mxu1 }
0x227a   :  { %v13281_v54 = vadd.f32 %v15598_v10, %v13011_v4 }
0x227b   :  { %v13273_v12 = vpop.f32.mrf.mxu1 }
0x227c   :  { %v13327_v16 = vadd.f32 %v13281_v54, %v21214_v26  ;;  %v13274_v37 = vadd.f32 %v13273_v12, %v13011_v4 }
0x227e   :  { %v13326_v5 = vadd.f32 %v13274_v37, %v21207_v45  ;;  %v13339_v14 = vsel %vm1937_vm4, %v13327_v16, 0.0 }
0x227f   :  { %13340 = vadd.xlane.f32.xlu0 %v13339_v14  ;;  %v15601_v59 = vpop.f32.mrf.mxu1 }
0x2280   :  { %v13336_v8 = vsel %vm1937_vm4, %v13326_v5, 0.0 }
0x2281   :  { %13337 = vadd.xlane.f32.xlu1 %v13336_v8  ;;  %v13285_v19 = vpop.f32.mrf.mxu1 }
0x2283   :  { %v15602_v60 = vpop.f32.mrf.mxu1 }
0x2284   :  { %v13295_v46 = vadd.f32 %v15602_v60, %v13011_v4 }
0x2285   :  { %v13287_v32 = vpop.f32.mrf.mxu1 }
0x2286   :  { %v13329_v40 = vadd.f32 %v13295_v46, %v21237_v49  ;;  %v13288_v9 = vadd.f32 %v13287_v32, %v13011_v4 }
0x2287   :  { %v15605_v2 = vpop.f32.mrf.mxu1 }
0x2288   :  { %v13328_v26 = vadd.f32 %v13288_v9, %v21227_v42  ;;  %v13345_v57 = vsel %vm1937_vm4, %v13329_v40, 0.0  ;;  %v15765_v2 = vld [vmem:[%s21509_s2 + $0x420] ss:$8 sps:$4 sm:$0xff]  }
0x2289   :  { %13346 = vadd.xlane.f32.xlu0 %v13345_v57  ;;  %v13299_v45 = vpop.f32.mrf.mxu1  ;;  %15612 = vmatpush3.bf16.msra.mxu0 %v15765_v2  ;;  %v15767_v57 = vld [vmem:[%s21509_s2 + $0x400] ss:$8 sps:$4 sm:$0xff]  }
0x228a   :  { %v13342_v50 = vsel %vm1937_vm4, %v13328_v26, 0.0  ;;  %15613 = vmatprep.subr.bf16.mxu0 %v21546_v21  ;;  %v15768_v45 = vld [vmem:[%s21509_s2 + $0x3f0] ss:$8 sps:$4 sm:$0xff]  }
0x228b   :  { %13343 = vadd.xlane.f32.xlu1 %v13342_v50  ;;  %v15606_v35 = vpop.f32.mrf.mxu1  ;;  %v15769_v50 = vld [vmem:[%s21509_s2 + $0x4a0] ss:$8 sps:$4 sm:$0xff]  }
0x228c   :  { %v13309_v18 = vadd.f32 %v15606_v35, %v13011_v4  ;;  %v15771_v35 = vld [vmem:[%s21509_s2 + $0x4a4] ss:$8 sps:$4 sm:$0xff]  }
0x228d   :  { %v13301_v62 = vpop.f32.mrf.mxu1  ;;  %13689 = vmatprep.subr.bf16.mxu1 %v15771_v35 }
0x228e   :  { %v13331_v17 = vadd.f32 %v13309_v18, %v21256_v52  ;;  %v13302_v25 = vadd.f32 %v13301_v62, %v13011_v4  ;;  %v15774_v18 = vld [vmem:[%s21509_s2 + $0x494] ss:$8 sps:$4 sm:$0xff]   ;;  %13690 = vmatpush1.bf16.msra.mxu1 %v15769_v50  ;;  %v15772_v62 = vld [vmem:[%s21509_s2 + $0x490] ss:$8 sps:$4 sm:$0xff]  }
0x228f   :  { %v15609_v63 = vpop.f32.mrf.mxu1  ;;  %13691 = vmatprep.subr.bf16.mxu1 %v15774_v18 }
0x2290   :  { %v13330_v49 = vadd.f32 %v13302_v25, %v21246_v11  ;;  %v13351_v7 = vsel %vm1937_vm4, %v13331_v17, 0.0  ;;  %v15775_v25 = vld [vmem:[%s21509_s2 + $0x480] ss:$8 sps:$4 sm:$0xff]   ;;  %v15780_v63 = vld [vmem:[%s21509_s2 + $0x474] ss:$8 sps:$4 sm:$0xff]  }
0x2291   :  { %13352 = vadd.xlane.f32.xlu0 %v13351_v7  ;;  %v13313_v42 = vpop.f32.mrf.mxu1  ;;  %v15783_v7 = vld [vmem:[%s21509_s2 + $0x464] ss:$8 sps:$4 sm:$0xff]  }
0x2292   :  { %v13348_v58 = vsel %vm1937_vm4, %v13330_v49, 0.0  ;;  %13692 = vmatpush1.bf16.msra.mxu1 %v15772_v62  ;;  %v15781_v42 = vld [vmem:[%s21509_s2 + $0x460] ss:$8 sps:$4 sm:$0xff]  }
0x2293   :  { %13349 = vadd.xlane.f32.xlu1 %v13348_v58  ;;  %v15610_v23 = vpop.f32.mrf.mxu1  ;;  %v15786_v58 = vld [vmem:[%s21509_s2 + $0x454] ss:$8 sps:$4 sm:$0xff]  }
0x2294   :  { %v13323_v38 = vadd.f32 %v15610_v23, %v13011_v4  ;;  %v15784_v23 = vld [vmem:[%s21509_s2 + $0x450] ss:$8 sps:$4 sm:$0xff]  }
0x2295   :  { %v13315_v44 = vpop.f32.mrf.mxu1 }
0x2296   :  { %v13333_v36 = vadd.f32 %v13323_v38, %v21273_v48  ;;  %v13316_v43 = vadd.f32 %v13315_v44, %v13011_v4  ;;  %v15789_v38 = vld [vmem:[%s21509_s2 + $0x444] ss:$8 sps:$4 sm:$0xff]   ;;  %v15787_v44 = vld [vmem:[%s21509_s2 + $0x440] ss:$8 sps:$4 sm:$0xff]  }
0x2298   :  { %v13332_v30 = vadd.f32 %v13316_v43, %v21267_v15  ;;  %v13357_v52 = vsel %vm1937_vm4, %v13333_v36, 0.0 }
0x2299   :  { %13358 = vadd.xlane.f32.xlu0 %v13357_v52 }
0x229a   :  { %v13354_v11 = vsel %vm1937_vm4, %v13332_v30, 0.0 }
0x229b   :  { %13355 = vadd.xlane.f32.xlu1 %v13354_v11 }
0x2308   :  { %v13341_v0 = vpop.xlane.xlu0 %13340 }
0x2309   :  { %v13361_v39 = vmul.f32 0.015625, %v13341_v0 }
0x230a   :  { %v13338_v20 = vpop.xlane.xlu1 %13337 }
0x230b   :  { %v21320_v27 = vsub.f32 %v13327_v16, %v13361_v39  ;;  %v13360_v1 = vmul.f32 0.015625, %v13338_v20 }
0x230d   :  { %v21322_v47 = vsub.f32 %v13326_v5, %v13360_v1  ;;  %v13377_v48 = vmul.f32 %v21320_v27, %v21320_v27 }
0x230f   :  { %v13387_v34 = vsel %vm1937_vm4, %v13377_v48, 0.0  ;;  %v13376_v15 = vmul.f32 %v21322_v47, %v21322_v47 }
0x2310   :  { %13388 = vadd.xlane.f32.xlu0 %v13387_v34 }
0x2311   :  { %v13384_v33 = vsel %vm1937_vm4, %v13376_v15, 0.0 }
0x2312   :  { %13385 = vadd.xlane.f32.xlu1 %v13384_v33  ;;  %v13347_v29 = vpop.xlane.xlu0 %13346 }
0x2313   :  { %v13363_v24 = vmul.f32 0.015625, %v13347_v29 }
0x2314   :  { %v13344_v22 = vpop.xlane.xlu1 %13343 }
0x2315   :  { %v21330_v41 = vsub.f32 %v13329_v40, %v13363_v24  ;;  %v13362_v31 = vmul.f32 0.015625, %v13344_v22 }
0x2317   :  { %v21332_v28 = vsub.f32 %v13328_v26, %v13362_v31  ;;  %v13379_v51 = vmul.f32 %v21330_v41, %v21330_v41  ;;  %v15766_v26 = vld [vmem:[%s21509_s2 + $0x410] ss:$8 sps:$4 sm:$0xff]  }
0x2318   :  { %15614 = vmatpush3.bf16.msra.mxu0 %v15766_v26 }
0x2319   :  { %v13393_v61 = vsel %vm1937_vm4, %v13379_v51, 0.0  ;;  %v13378_v53 = vmul.f32 %v21332_v28, %v21332_v28  ;;  %15615 = vmatprep.subr.bf16.mxu0 %v21546_v21 }
0x231a   :  { %13394 = vadd.xlane.f32.xlu0 %v13393_v61  ;;  %v13353_v6 = vpop.xlane.xlu0 %13352 }
0x231b   :  { %v13365_v55 = vmul.f32 0.015625, %v13353_v6  ;;  %v13390_v56 = vsel %vm1937_vm4, %v13378_v53, 0.0 }
0x231c   :  { %v13350_v13 = vpop.xlane.xlu1 %13349  ;;  %13391 = vadd.xlane.f32.xlu1 %v13390_v56  ;;  %15616 = vmatpush3.bf16.msra.mxu0 %v15767_v57 }
0x231d   :  { %v21340_v3 = vsub.f32 %v13331_v17, %v13365_v55  ;;  %v13364_v4 = vmul.f32 0.015625, %v13350_v13  ;;  %15617 = vmatprep.subr.bf16.mxu0 %v21546_v21  ;;  %v15777_v17 = vld [vmem:[%s21509_s2 + $0x484] ss:$8 sps:$4 sm:$0xff]  }
0x231e   :  { %13693 = vmatprep.subr.bf16.mxu1 %v15777_v17 }
0x231f   :  { %v21342_v10 = vsub.f32 %v13330_v49, %v13364_v4  ;;  %v13381_v54 = vmul.f32 %v21340_v3, %v21340_v3  ;;  %13694 = vmatpush1.bf16.msra.mxu1 %v15775_v25  ;;  %v15778_v49 = vld [vmem:[%s21509_s2 + $0x470] ss:$8 sps:$4 sm:$0xff]  }
0x2320   :  { %15618 = vmatpush3.bf16.msra.mxu0 %v15768_v45  ;;  %13695 = vmatprep.subr.bf16.mxu1 %v15780_v63 }
0x2321   :  { %v13399_v12 = vsel %vm1937_vm4, %v13381_v54, 0.0  ;;  %v13380_v16 = vmul.f32 %v21342_v10, %v21342_v10  ;;  %15623 = vmatprep.subr.bf16.mxu0 %v21546_v21 }
0x2322   :  { %13400 = vadd.xlane.f32.xlu0 %v13399_v12  ;;  %v13359_v37 = vpop.xlane.xlu0 %13358  ;;  %v13334_v12 = vld [vmem:[%s21512_s3 + $0x32] ss:$0 sm:$0xff] }
0x2323   :  { %v13367_v5 = vmul.f32 0.015625, %v13359_v37  ;;  %v13396_v14 = vsel %vm1937_vm4, %v13380_v16, 0.0  ;;  %13696 = vmatpush1.bf16.msra.mxu1 %v15778_v49 }
0x2324   :  { %13397 = vadd.xlane.f32.xlu1 %v13396_v14  ;;  %v13356_v59 = vpop.xlane.xlu1 %13355  ;;  %13697 = vmatprep.subr.bf16.mxu1 %v15783_v7 }
0x2325   :  { %v21350_v8 = vsub.f32 %v13333_v36, %v13367_v5  ;;  %v13366_v19 = vmul.f32 0.015625, %v13356_v59 }
0x2327   :  { %v21352_v60 = vsub.f32 %v13332_v30, %v13366_v19  ;;  %v13383_v46 = vmul.f32 %v21350_v8, %v21350_v8  ;;  %13698 = vmatpush1.bf16.msra.mxu1 %v15781_v42 }
0x2328   :  { %13699 = vmatprep.subr.bf16.mxu1 %v15786_v58 }
0x2329   :  { %v13405_v32 = vsel %vm1937_vm4, %v13383_v46, 0.0  ;;  %v13382_v40 = vmul.f32 %v21352_v60, %v21352_v60 }
0x232a   :  { %13406 = vadd.xlane.f32.xlu0 %v13405_v32 }
0x232b   :  { %v13402_v9 = vsel %vm1937_vm4, %v13382_v40, 0.0  ;;  %13700 = vmatpush1.bf16.msra.mxu1 %v15784_v23 }
0x232c   :  { %13403 = vadd.xlane.f32.xlu1 %v13402_v9  ;;  %13701 = vmatprep.subr.bf16.mxu1 %v15789_v38 }
0x232f   :  { %13702 = vmatpush1.bf16.msra.mxu1 %v15787_v44 }
0x2399   :  { %v13389_v36 = vpop.xlane.xlu0 %13388 }
0x239a   :  { %v13409_v52 = vmul.f32 0.015625, %v13389_v36 }
0x239b   :  { %v13386_v43 = vpop.xlane.xlu1 %13385 }
0x239c   :  { %v13408_v30 = vmul.f32 0.015625, %v13386_v43  ;;  %v13417_v0 = vadd.f32 1e-05, %v13409_v52 }
0x239e   :  { %v13416_v11 = vadd.f32 1e-05, %v13408_v30 }
0x23a0   :  { %16349 = vrsqrt.f32 %v13416_v11 }
0x23a1   :  { %16351 = vrsqrt.f32 %v13417_v0 }
0x23a3   :  { %v13395_v39 = vpop.xlane.xlu0 %13394 }
0x23a4   :  { %v13411_v20 = vmul.f32 0.015625, %v13395_v39 }
0x23a5   :  { %v13392_v1 = vpop.xlane.xlu1 %13391 }
0x23a6   :  { %v13419_v48 = vadd.f32 1e-05, %v13411_v20  ;;  %v13410_v34 = vmul.f32 0.015625, %v13392_v1 }
0x23a8   :  { %v13418_v15 = vadd.f32 1e-05, %v13410_v34  ;;  %16353 = vrsqrt.f32 %v13419_v48 }
0x23aa   :  { %16355 = vrsqrt.f32 %v13418_v15 }
0x23ab   :  { %v13401_v33 = vpop.xlane.xlu0 %13400 }
0x23ac   :  { %v13413_v29 = vmul.f32 0.015625, %v13401_v33 }
0x23ad   :  { %v13398_v24 = vpop.xlane.xlu1 %13397  ;;  %v16350_v51 = vpop.eup %16349 }
0x23ae   :  { %v13421_v22 = vadd.f32 1e-05, %v13413_v29  ;;  %v13412_v31 = vmul.f32 0.015625, %v13398_v24  ;;  %v16352_v53 = vpop.eup %16351  ;;  %v13432_v6 = vmul.f32 %v16350_v51, %v21322_v47 }
0x23af   :  { %v13433_v13 = vmul.f32 %v16352_v53, %v21320_v27  ;;  %v13335_v27 = vld [vmem:[%s21512_s3 + $0x33] ss:$0 sm:$0xff] }
0x23b0   :  { %16357 = vrsqrt.f32 %v13421_v22  ;;  %v13420_v61 = vadd.f32 1e-05, %v13412_v31  ;;  %v13440_v14 = vmul.f32 %v13432_v6, %v13334_v12 }
0x23b1   :  { %v13441_v46 = vmul.f32 %v13433_v13, %v13334_v12 }
0x23b2   :  { %16359 = vrsqrt.f32 %v13420_v61  ;;  %v13448_v40 = vadd.f32 %v13440_v14, %v13335_v27  ;;  %v15795_v14 = vld [vmem:[%s21509_s2 + $0x500] ss:$8 sps:$4 sm:$0xff]  }
0x23b3   :  { %v13407_v55 = vpop.xlane.xlu0 %13406  ;;  %v13449_v26 = vadd.f32 %v13441_v46, %v13335_v27  ;;  %v15798_v46 = vld [vmem:[%s21509_s2 + $0x4d0] ss:$8 sps:$4 sm:$0xff]  }
0x23b4   :  { %v13415_v56 = vmul.f32 0.015625, %v13407_v55 }
0x23b5   :  { %v13404_v4 = vpop.xlane.xlu1 %13403  ;;  %v16354_v54 = vpop.eup %16353  ;;  %v13484_v62 = vpack.c.bf16 %v13449_v26, %v13449_v26 }
0x23b6   :  { %v13423_v16 = vadd.f32 1e-05, %v13415_v56  ;;  %v13414_v37 = vmul.f32 0.015625, %v13404_v4  ;;  %v13435_v47 = vmul.f32 %v16354_v54, %v21330_v41 }
0x23b7   :  { %v16356_v5 = vpop.eup %16355  ;;  %v13500_v58 = vunpack.c.l.b16 %v13484_v62  ;;  %v21595_v62 = vld [vmem:[#allocation2_spill] sm:$0xff] }
0x23b8   :  { %v13434_v59 = vmul.f32 %v16356_v5, %v21332_v28  ;;  %16361 = vrsqrt.f32 %v13423_v16  ;;  %v13422_v19 = vadd.f32 1e-05, %v13414_v37  ;;  %v13443_v57 = vmul.f32 %v13435_v47, %v13334_v12  ;;  %v15792_v16 = vld [vmem:[%s21509_s2 + $0x434] ss:$8 sps:$4 sm:$0xff]   ;;  %v15793_v37 = vld [vmem:[%s21509_s2 + $0x520] ss:$8 sps:$4 sm:$0xff]  }
0x23b9   :  { %v13483_v28 = vpack.c.bf16 %v13448_v40, %v13448_v40  ;;  %v13508_v0 = vrot.slane %v13500_v58, 6  ;;  %13703 = vmatprep.subr.bf16.mxu1 %v15792_v16  ;;  %v15794_v5 = vld [vmem:[%s21509_s2 + $0x510] ss:$8 sps:$4 sm:$0xff]   ;;  %v13464_v47 = vld [vmem:[%s21512_s3 + $0x34] ss:$0 sm:$0xff] }
0x23ba   :  { %v13442_v32 = vmul.f32 %v13434_v59, %v13334_v12  ;;  %16363 = vrsqrt.f32 %v13422_v19  ;;  %v13451_v41 = vadd.f32 %v13443_v57, %v13335_v27  ;;  %v15796_v59 = vld [vmem:[%s21509_s2 + $0x4f0] ss:$8 sps:$4 sm:$0xff]   ;;  %v15797_v19 = vld [vmem:[%s21509_s2 + $0x4e0] ss:$8 sps:$4 sm:$0xff]  }
0x23bb   :  { %v13499_v63 = vunpack.c.l.b16 %v13483_v28  ;;  %v15801_v28 = vld [vmem:[%s21509_s2 + $0x560] ss:$8 sps:$4 sm:$0xff]  }
0x23bc   :  { %v13450_v9 = vadd.f32 %v13442_v32, %v13335_v27  ;;  %v13486_v23 = vpack.c.bf16 %v13451_v41, %v13451_v41 }
0x23bd   :  { %v16358_v2 = vpop.eup %16357  ;;  %v13507_v43 = vrot.slane %v13499_v63, 7 }
0x23be   :  { %v13437_v45 = vmul.f32 %v16358_v2, %v21340_v3  ;;  %v13485_v35 = vpack.c.bf16 %v13450_v9, %v13450_v9  ;;  %v13502_v39 = vunpack.c.l.b16 %v13486_v23 }
0x23bf   :  { %v16360_v50 = vpop.eup %16359  ;;  %v13510_v48 = vsel %vm13509_vm7, %v13508_v0, %v13507_v43  ;;  %v15803_v43 = vld [vmem:[%s21509_s2 + $0x540] ss:$8 sps:$4 sm:$0xff]  }
0x23c0   :  { %v13436_v18 = vmul.f32 %v16360_v50, %v21342_v10  ;;  %v13445_v17 = vmul.f32 %v13437_v45, %v13334_v12  ;;  %v13501_v49 = vunpack.c.l.b16 %v13485_v35  ;;  %v15799_v45 = vld [vmem:[%s21509_s2 + $0x4c0] ss:$8 sps:$4 sm:$0xff]   ;;  %v15800_v50 = vld [vmem:[%s21509_s2 + $0x4b0] ss:$8 sps:$4 sm:$0xff]  }
0x23c1   :  { %v15802_v35 = vld [vmem:[%s21509_s2 + $0x550] ss:$8 sps:$4 sm:$0xff]  }
0x23c2   :  { %v13444_v25 = vmul.f32 %v13436_v18, %v13334_v12  ;;  %v13453_v38 = vadd.f32 %v13445_v17, %v13335_v27  ;;  %v13511_v30 = vrot.slane %v13501_v49, 5  ;;  %v14290_v18 = vld [vmem:[%s21512_s3 + $0x35] ss:$8 sm:$0x3] }
0x23c3   :  { %v13602_v41 = vrot.slane %v14290_v18, %v21595_v62  ;;  %v21596_v17 = vld [vmem:[#allocation9_spill] sm:$0xff] }
0x23c4   :  { %v13452_v7 = vadd.f32 %v13444_v25, %v13335_v27  ;;  %v13488_v20 = vpack.c.bf16 %v13453_v38, %v13453_v38  ;;  %v13513_v15 = vsel %vm13512_vm8, %v13511_v30, %v13510_v48  ;;  %v13606_v25 = vrot.slane %v14290_v18, %v21596_v17  ;;  %v15804_v30 = vld [vmem:[%s21509_s2 + $0x530] ss:$8 sps:$4 sm:$0xff]  }
0x23c5   :  { %v16362_v42 = vpop.eup %16361 }
0x23c6   :  { %v13487_v44 = vpack.c.bf16 %v13452_v7, %v13452_v7  ;;  %v13439_v36 = vmul.f32 %v16362_v42, %v21350_v8  ;;  %v13514_v8 = vrot.slane %v13502_v39, 4  ;;  %v13504_v24 = vunpack.c.l.b16 %v13488_v20  ;;  %v21597_v42 = vld [vmem:[#allocation3_spill] sm:$0xff] }
0x23c7   :  { %v16364_v3 = vpop.eup %16363 }
0x23c8   :  { %v13503_v52 = vunpack.c.l.b16 %v13487_v44  ;;  %v13447_v10 = vmul.f32 %v13439_v36, %v13334_v12  ;;  %v13438_v11 = vmul.f32 %v16364_v3, %v21352_v60  ;;  %v13516_v31 = vsel %vm13515_vm9, %v13514_v8, %v13513_v15 }
0x23c9   :  { %v13520_v53 = vrot.slane %v13504_v24, 2 }
0x23ca   :  { %v13446_v1 = vmul.f32 %v13438_v11, %v13334_v12  ;;  %v13455_v34 = vadd.f32 %v13447_v10, %v13335_v27  ;;  %v13517_v33 = vrot.slane %v13503_v52, 3  ;;  %v15790_v12 = vld [vmem:[%s21509_s2 + $0x430] ss:$8 sps:$4 sm:$0xff]   ;;  %v13748_v52 = vld [vmem:[%s21512_s3 + $0x36] ss:$0 sm:$0xff] }
0x23cb   :  { %13704 = vmatpush1.bf16.msra.mxu1 %v15790_v12 }
0x23cc   :  { %v13454_v29 = vadd.f32 %v13446_v1, %v13335_v27  ;;  %v13490_v51 = vpack.c.bf16 %v13455_v34, %v13455_v34  ;;  %v13519_v61 = vsel %vm13518_vm10, %v13517_v33, %v13516_v31  ;;  %15643 = vmatprep.subr.bf16.mxu1 %v21546_v21  ;;  %v13757_v34 = vld [vmem:[%s21512_s3 + $0x37] ss:$0 sm:$0xff] }
0x23cd   :  { %v13522_v56 = vsel %vm13521_vm11, %v13520_v53, %v13519_v61 }
0x23ce   :  { %v13489_v22 = vpack.c.bf16 %v13454_v29, %v13454_v29  ;;  %v13506_v55 = vunpack.c.l.b16 %v13490_v51 }
0x23d0   :  { %v13505_v60 = vunpack.c.l.b16 %v13489_v22 }
0x23d2   :  { %v13523_v6 = vrot.slane %v13505_v60, 1 }
0x23d4   :  { %v13525_v13 = vsel %vm13524_vm12, %v13523_v6, %v13522_v56 }
0x23d5   :  { %v13527_v4 = vsel %vm13526_vm13, %v13506_v55, %v13525_v13 }
0x23d6   :  { %v13528_v54 = vpack.c.b16 %v13527_v4, %v13527_v4 }
0x23d8   :  { %15620 = vmatmul.mubr.msk.bf16.vlgmr.msra.gmra.mxu0 %vm1937_vm4, %v13528_v54 }
0x23d9   :  { %15639 = vmatprep.mubr.msk.bf16.mxu0 %vm16367_vm1, %v21546_v21  ;;  %15624 = vmatpush3.bf16.msra.mxu0 %v15793_v37 }
0x23da   :  { %15625 = vmatprep.subr.bf16.mxu0 %v21546_v21 }
0x23dd   :  { %15626 = vmatpush3.bf16.msra.mxu0 %v15794_v5 }
0x23de   :  { %15627 = vmatprep.subr.bf16.mxu0 %v21546_v21 }
0x23e1   :  { %15628 = vmatpush3.bf16.msra.mxu0 %v15795_v14 }
0x23e2   :  { %15629 = vmatprep.subr.bf16.mxu0 %v21546_v21 }
0x23e5   :  { %15630 = vmatpush3.bf16.msra.mxu0 %v15796_v59 }
0x23e6   :  { %15631 = vmatprep.subr.bf16.mxu0 %v21546_v21 }
0x23e9   :  { %15632 = vmatpush3.bf16.msra.mxu0 %v15797_v19 }
0x23ea   :  { %15633 = vmatprep.subr.bf16.mxu0 %v21546_v21 }
0x23ed   :  { %15634 = vmatpush3.bf16.msra.mxu0 %v15798_v46 }
0x23ee   :  { %15635 = vmatprep.subr.bf16.mxu0 %v21546_v21 }
0x23f1   :  { %15636 = vmatpush3.bf16.msra.mxu0 %v15799_v45 }
0x23f2   :  { %15637 = vmatprep.subr.bf16.mxu0 %v21546_v21 }
0x23f5   :  { %15638 = vmatpush3.bf16.msra.mxu0 %v15800_v50 }
0x2498   :  { %v13590_v27 = vpop.f32.mrf.mxu0 }
0x2499   :  { %v13591_v32 = vadd.f32 %v13590_v27, %v13464_v47 }
0x249a   :  { %v15621_v40 = vpop.f32.mrf.mxu0 }
0x249b   :  { %v13596_v9 = vmax.f32 %v13591_v32, 0.0 }
0x249c   :  { %v13593_v2 = vpop.f32.mrf.mxu0 }
0x249d   :  { %v13597_v26 = vpack.c.bf16 %v13596_v9, %v13596_v9 }
0x249e   :  { %v15622_v57 = vpop.f32.mrf.mxu0 }
0x249f   :  { %13722 = vmatmul.mubr.bf16.vlgmr.msra.gmra.mxu1 %v13597_v26 }
0x24a0   :  { %15651 = vmatprep.mubr.msk.bf16.mxu1 %vm16367_vm1, %v21546_v21  ;;  %15644 = vmatpush3.bf16.msra.mxu1 %v15801_v28 }
0x24a1   :  { %15645 = vmatprep.subr.bf16.mxu1 %v21546_v21 }
0x24a4   :  { %15646 = vmatpush3.bf16.msra.mxu1 %v15802_v35 }
0x24a5   :  { %15647 = vmatprep.subr.bf16.mxu1 %v21546_v21 }
0x24a8   :  { %15648 = vmatpush3.bf16.msra.mxu1 %v15803_v43 }
0x24a9   :  { %15649 = vmatprep.subr.bf16.mxu1 %v21546_v21 }
0x24ac   :  { %15650 = vmatpush3.bf16.msra.mxu1 %v15804_v30 }
0x255f   :  { %v13723_v63 = vpop.f32.mrf.mxu1 }
0x2560   :  { %v13724_v49 = vadd.f32 %v13723_v63, %v13602_v41 }
0x2561   :  { %v13725_v7 = vpop.f32.mrf.mxu1 }
0x2562   :  { %v13730_v58 = vmul.f32 %v13724_v49, %v21597_v42  ;;  %v13726_v23 = vadd.f32 %v13725_v7, %v13606_v25 }
0x2563   :  { %v13727_v38 = vpop.f32.mrf.mxu1 }
0x2564   :  { %v13731_v44 = vadd.f32 %v13730_v58, %v13726_v23 }
0x2565   :  { %v13728_v36 = vpop.f32.mrf.mxu1 }
0x2566   :  { %v13758_v3 = vpack.c.bf16 %v13731_v44, %v13731_v44 }
0x2568   :  { %15640 = vmatmul.mubr.bf16.vlgmr.msra.gmra.mxu0 %v13758_v3 }
0x2628   :  { %v13841_v10 = vpop.f32.mrf.mxu0 }
0x2629   :  { %v13842_v11 = vadd.f32 %v13841_v10, %v13748_v52 }
0x262a   :  { %v15641_v0 = vpop.f32.mrf.mxu0 }
0x262b   :  { %v13847_v39 = vmax.f32 %v13842_v11, 0.0 }
0x262c   :  { %v13844_v20 = vpop.f32.mrf.mxu0 }
0x262d   :  { %v13848_v1 = vpack.c.bf16 %v13847_v39, %v13847_v39 }
0x262e   :  { %v15642_v48 = vpop.f32.mrf.mxu0 }
0x262f   :  { %15652 = vmatmul.mubr.msk.bf16.vlgmr.msra.gmra.mxu1 %vm1937_vm4, %v13848_v1 }
0x26ef   :  { %v13910_v15 = vpop.f32.mrf.mxu1 }
0x26f0   :  { %v13911_v21 = vadd.f32 %v13910_v15, %v13757_v34 }
0x26f1   :  { %v15653_v33 = vpop.f32.mrf.mxu1 }
0x26f2   :  { %13916 = vxpose.xlu1.b32.start.end [1/1] (short) (narrow) %v13911_v21, 8 }
0x26f3   :  { %v13913_v29 = vpop.f32.mrf.mxu1 }
0x26f5   :  { %v15654_v8 = vpop.f32.mrf.mxu1 }
0x276e   :  { %v13932_v24 = vpop.trf.xlu1 }
0x276f   :  { %13949 = vst.msk [vmem:[%s21513_s4] sm:$0xff] %vm13948_vm14, %v13932_v24 }

</bundles_post_ra>
